<compile_context>
chip_gen: v6e
topology: v6e:2x2x1
jax: 0.10.0
libtpu: 0.0.40
codegen_flags: <defaults>
</compile_context>

<pallas_src>
import functools

import jax
import jax.numpy as jnp
from jax.experimental import pallas as pl
from jax.experimental.pallas import tpu as pltpu

# Hyper-parameters. The decoder's z.view(B, image_size, 16, 16) forces the encoder to
# produce a 16x16 spatial map, i.e. the input must be 128x128 spatially.
IMAGE_SIZE = 8     # "image_size" arg of the PyTorch module (channel multiplier)
Z_DIM = 8
CHANNELS = 1
SPATIAL = 128
BATCH = 2

_VMEM_LIMIT = 32 * 1024 * 1024   # explicit scoped-VMEM budget (fits v5e/v6e/v7x defaults)


# ------------------------------- Pallas kernels -----------------------------------


def _gemm_act_kernel(w_ref, x_ref, b_ref, o_ref, *, act):
    # out[Cout, tile_m] = act(W[Cout, K] @ X[K, tile_m] + b[Cout, 1])
    y = jnp.dot(w_ref[...], x_ref[...], preferred_element_type=jnp.float32)
    y = y + b_ref[...]
    if act == "lrelu02":        # LeakyReLU(0.2)
        y = jnp.where(y > 0, y, 0.2 * y)
    elif act == "tanh":
        y = jnp.tanh(y)
    o_ref[...] = y.astype(o_ref.dtype)


def gemm_act(w, x, b, *, act=None, out_dtype=jnp.float32):
    """act(w @ x + b) with w:[Cout,K] bf16, x:[K,M] bf16, b:[Cout,1] f32.
    M (lane axis) is tiled into 2 parallel blocks when large (v7x megacore)."""
    cout, k = w.shape
    k2, m = x.shape
    assert k == k2
    tile_m = m // 2 if (m >= 8192 and (m // 2) % 128 == 0) else m
    return pl.pallas_call(
        functools.partial(_gemm_act_kernel, act=act),
        out_shape=jax.ShapeDtypeStruct((cout, m), out_dtype),
        grid_spec=pltpu.PrefetchScalarGridSpec(
            num_scalar_prefetch=0,
            grid=(m // tile_m,),
            in_specs=[
                pl.BlockSpec((cout, k), lambda i: (0, 0)),
                pl.BlockSpec((k, tile_m), lambda i: (0, i)),
                pl.BlockSpec((cout, 1), lambda i: (0, 0)),
            ],
            out_specs=pl.BlockSpec((cout, tile_m), lambda i: (0, i)),
        ),
        compiler_params=pltpu.CompilerParams(
            dimension_semantics=("parallel",),
            vmem_limit_bytes=_VMEM_LIMIT),
    )(w, x, b)


def _convt_bn_relu_kernel(w_ref, x_ref, b_ref, g_ref, bt_ref, o_ref, y_ref, *, cout):
    # Sub-pixel ConvTranspose GEMM (4*cout phase-major output rows) with fused
    # BatchNorm2d (training-mode batch stats + affine gamma/beta) + ReLU.
    # Per-phase dots keep live data to one (cout, M) block at a time; the f32
    # pre-BN result streams through the VMEM scratch y_ref (no vreg blowout).
    x = x_ref[...]                                          # (K, M) bf16
    m = x.shape[-1]
    cs = jnp.zeros((cout, 1), jnp.float32)
    cq = jnp.zeros((cout, 1), jnp.float32)
    for p in range(4):                                      # static unroll over phases
        yp = jnp.dot(w_ref[p * cout:(p + 1) * cout, :], x,
                     preferred_element_type=jnp.float32) + b_ref[...]
        y_ref[p * cout:(p + 1) * cout, :] = yp
        cs = cs + jnp.sum(yp, axis=-1, keepdims=True)       # per-channel sum
        cq = cq + jnp.sum(yp * yp, axis=-1, keepdims=True)  # per-channel sumsq
    inv_n = 1.0 / (4.0 * m)                                 # N = B * (2H) * (2W)
    mean = cs * inv_n
    var = cq * inv_n - mean * mean                          # biased batch variance
    scale = g_ref[...] * jax.lax.rsqrt(var + 1e-5)
    shift = bt_ref[...] - mean * scale
    for p in range(4):                                      # normalize + ReLU per phase
        blk = y_ref[p * cout:(p + 1) * cout, :]
        o_ref[p * cout:(p + 1) * cout, :] = (
            jnp.maximum(blk * scale + shift, 0.0).astype(o_ref.dtype))


def convt_bn_relu(w, x, b, gamma, beta, *, cout, out_dtype=jnp.bfloat16):
    cp, k = w.shape                                         # cp == 4 * cout
    k2, m = x.shape
    assert k == k2 and cp == 4 * cout
    return pl.pallas_call(
        functools.partial(_convt_bn_relu_kernel, cout=cout),
        out_shape=jax.ShapeDtypeStruct((cp, m), out_dtype),
        grid_spec=pltpu.PrefetchScalarGridSpec(
            num_scalar_prefetch=0,
            grid=(1,),
            in_specs=[
                pl.BlockSpec((cp, k), lambda i: (0, 0)),
                pl.BlockSpec((k, m), lambda i: (0, 0)),
                pl.BlockSpec((cout, 1), lambda i: (0, 0)),
                pl.BlockSpec((cout, 1), lambda i: (0, 0)),
                pl.BlockSpec((cout, 1), lambda i: (0, 0)),
            ],
            out_specs=pl.BlockSpec((cp, m), lambda i: (0, 0)),
            scratch_shapes=[pltpu.VMEM((cp, m), jnp.float32)],
        ),
        compiler_params=pltpu.CompilerParams(
            dimension_semantics=("arbitrary",),
            vmem_limit_bytes=_VMEM_LIMIT),
    )(w, x, b, gamma, beta)


def _fc_fused_kernel(x_ref, wml_ref, bml_ref, eps_ref, w6_ref, b6_ref,
                     mu_ref, lv_ref, z6_ref, *, z_dim):
    # layer4 + layer5 (concatenated weights) + reparameterize + layer6, one kernel.
    x = x_ref[...]                                                       # (4*img, M) bf16
    ml = jnp.dot(wml_ref[...], x, preferred_element_type=jnp.float32) + bml_ref[...]
    mu = ml[0:z_dim, :]
    lv = ml[z_dim:2 * z_dim, :]
    z = mu + eps_ref[...] * jnp.exp(0.5 * lv)                            # reparam (f32)
    z6 = jnp.dot(w6_ref[...], z.astype(jnp.bfloat16),
                 preferred_element_type=jnp.float32) + b6_ref[...]
    z6 = jnp.where(z6 > 0, z6, 0.01 * z6)       # LeakyReLU, PyTorch default slope 0.01
    mu_ref[...] = mu
    lv_ref[...] = lv
    z6_ref[...] = z6.astype(z6_ref.dtype)


def fc_fused(flat_t, wml, bml, eps, w6, b6, z_dim):
    k, m = flat_t.shape
    img = w6.shape[0]
    return pl.pallas_call(
        functools.partial(_fc_fused_kernel, z_dim=z_dim),
        out_shape=(
            jax.ShapeDtypeStruct((z_dim, m), jnp.float32),
            jax.ShapeDtypeStruct((z_dim, m), jnp.float32),
            jax.ShapeDtypeStruct((img, m), jnp.bfloat16),
        ),
        grid_spec=pltpu.PrefetchScalarGridSpec(
            num_scalar_prefetch=0,
            grid=(1,),
            in_specs=[
                pl.BlockSpec((k, m), lambda i: (0, 0)),
                pl.BlockSpec((2 * z_dim, k), lambda i: (0, 0)),
                pl.BlockSpec((2 * z_dim, 1), lambda i: (0, 0)),
                pl.BlockSpec((z_dim, m), lambda i: (0, 0)),
                pl.BlockSpec((img, z_dim), lambda i: (0, 0)),
                pl.BlockSpec((img, 1), lambda i: (0, 0)),
            ],
            out_specs=[
                pl.BlockSpec((z_dim, m), lambda i: (0, 0)),
                pl.BlockSpec((z_dim, m), lambda i: (0, 0)),
                pl.BlockSpec((img, m), lambda i: (0, 0)),
            ],
        ),
        compiler_params=pltpu.CompilerParams(
            dimension_semantics=("arbitrary",),
            vmem_limit_bytes=_VMEM_LIMIT),
    )(flat_t, wml, bml, eps, w6, b6)


# ------------------------------ JAX glue (layout) ----------------------------------


def im2col_T(x_cm, kh, kw, stride, pad, dtype=jnp.bfloat16):
    """x_cm: (Cin, B, H, W) -> patches^T (Cin*kh*kw, B*Ho*Wo); feature order
    ci*kh*kw + ky*kw + kx, column order b*Ho*Wo + yo*Wo + xo."""
    cin, b, h, w = x_cm.shape
    ho = (h + 2 * pad - kh) // stride + 1
    wo = (w + 2 * pad - kw) // stride + 1
    xp = jnp.pad(x_cm, ((0, 0), (0, 0), (pad, pad), (pad, pad)))
    taps = []
    for ky in range(kh):
        for kx in range(kw):
            taps.append(xp[:, :, ky:ky + stride * ho:stride, kx:kx + stride * wo:stride])
    p = jnp.stack(taps, axis=1).reshape(cin * kh * kw, b * ho * wo)
    return p.astype(dtype), (b, ho, wo)


def convt_phase_weight_mat(w):
    """ConvTranspose2d(k=4, s=2, p=1) weight (Cin, Cout, 4, 4) -> sub-pixel phase GEMM
    weight (4*Cout, Cin*9) over 3x3 taps of the 1-padded (un-dilated) input.
    Output rows are phase-major: row = (ry*2 + rx)*Cout + co.
    Derivation: output oy = 2*y + ry reads input iy with 2*iy + ky = oy + 1, so
    phase 0 pairs (tap dy=0, k=3), (dy=1, k=1); phase 1 pairs (dy=1, k=2), (dy=2, k=0)."""
    cin, cout = w.shape[0], w.shape[1]
    taps = ((0, 0, 3), (0, 1, 1), (1, 1, 2), (1, 2, 0))   # (phase r, tap offset d, k idx)
    wp = jnp.zeros((2, 2, cout, cin, 3, 3), w.dtype)
    for ry, dy, ky in taps:
        for rx, dx, kx in taps:
            wp = wp.at[ry, rx, :, :, dy, dx].set(w[:, :, ky, kx].T)
    return wp.reshape(4 * cout, cin * 9)


def phases_to_cm(out_p, cout, b, h, w):
    """(4*cout, B*H*W) phase-major GEMM output -> (cout, B, 2H, 2W) channel-first."""
    t = out_p.reshape(2, 2, cout, b, h, w).transpose(2, 3, 4, 0, 5, 1)
    return t.reshape(cout, b, 2 * h, 2 * w)


# ------------------------------- parameters ----------------------------------------


def init_params(key):
    img, z, ch = IMAGE_SIZE, Z_DIM, CHANNELS
    shapes = {
        "w1": (img, ch, 4, 4), "b1": (img,),
        "w2": (2 * img, img, 4, 4), "b2": (2 * img,),
        "w3": (4 * img, 2 * img, 4, 4), "b3": (4 * img,),
        "w4": (z, 4 * img), "b4": (z,),
        "w5": (z, 4 * img), "b5": (z,),
        "w6": (img, z), "b6": (img,),
        "w7": (img, 2 * img, 4, 4), "b7": (2 * img,),     # ConvTranspose2d layout
        "w8": (2 * img, img, 4, 4), "b8": (img,),
        "w9": (img, ch, 4, 4), "b9": (ch,),
    }
    params = {}
    keys = jax.random.split(key, len(shapes))
    for k_, (name, shp) in zip(keys, sorted(shapes.items())):
        params[name] = 0.05 * jax.random.normal(k_, shp, dtype=jnp.float32)
    # BatchNorm2d affine parameters (PyTorch init: weight=1, bias=0).
    params["g7"] = jnp.ones((2 * img,), jnp.float32)
    params["bt7"] = jnp.zeros((2 * img,), jnp.float32)
    params["g8"] = jnp.ones((img,), jnp.float32)
    params["bt8"] = jnp.zeros((img,), jnp.float32)
    return params


def prepare_params(params):
    """One-time repacking of PyTorch-layout weights into kernel-ready operands.
    Hoisted out of the forward (perf review): bf16 GEMM matrices, sub-pixel phase
    weights, bias/gamma/beta columns are built once, never per call."""
    def cw(w):   # Conv2d weight (Cout, Cin, 4, 4) -> (Cout, Cin*16) bf16
        return w.reshape(w.shape[0], -1).astype(jnp.bfloat16)

    def col(v):
        return v.reshape(-1, 1).astype(jnp.float32)

    pp = {
        "w1": cw(params["w1"]), "b1": col(params["b1"]),
        "w2": cw(params["w2"]), "b2": col(params["b2"]),
        "w3": cw(params["w3"]), "b3": col(params["b3"]),
        # layers 4+5 concatenated so mu/logvar come from one dot
        "wml": jnp.concatenate([params["w4"], params["w5"]], axis=0).astype(jnp.bfloat16),
        "bml": jnp.concatenate([params["b4"], params["b5"]]).reshape(-1, 1).astype(jnp.float32),
        "w6": params["w6"].astype(jnp.bfloat16), "b6": col(params["b6"]),
        # ConvTranspose2d -> sub-pixel phase GEMM weights (K = Cin*9, already 8-aligned)
        "w7": convt_phase_weight_mat(params["w7"]).astype(jnp.bfloat16), "b7": col(params["b7"]),
        "w8": convt_phase_weight_mat(params["w8"]).astype(jnp.bfloat16), "b8": col(params["b8"]),
        "w9": convt_phase_weight_mat(params["w9"]).astype(jnp.bfloat16),
        "b9": jnp.tile(params["b9"], 4).reshape(-1, 1).astype(jnp.float32),  # phase-major rows
        "g7": col(params["g7"]), "bt7": col(params["bt7"]),
        "g8": col(params["g8"]), "bt8": col(params["bt8"]),
    }
    return pp


# -------------------------------- forward pass --------------------------------------


def vae_forward(x, pp, eps_key):
    img, z_dim, ch = IMAGE_SIZE, Z_DIM, CHANNELS
    b = x.shape[0]

    # ------------------ encode: Conv2d(k=4, s=2, p=1) + LeakyReLU(0.2) ---------------
    h = x.transpose(1, 0, 2, 3)                                         # (C, B, H, W)
    p, (_, ho, wo) = im2col_T(h, 4, 4, 2, 1)
    h = gemm_act(pp["w1"], p, pp["b1"], act="lrelu02",
                 out_dtype=jnp.bfloat16).reshape(img, b, ho, wo)        # layer1

    p, (_, ho, wo) = im2col_T(h, 4, 4, 2, 1)
    h = gemm_act(pp["w2"], p, pp["b2"], act="lrelu02",
                 out_dtype=jnp.bfloat16).reshape(2 * img, b, ho, wo)    # layer2

    p, (_, ho, wo) = im2col_T(h, 4, 4, 2, 1)
    h = gemm_act(pp["w3"], p, pp["b3"], act="lrelu02",
                 out_dtype=jnp.bfloat16).reshape(4 * img, b, ho, wo)    # layer3

    # x.view(B, -1, 4*img) on the NCHW tensor (PyTorch flattening mixes channel and
    # spatial); then transpose so the long B*Nseq axis is the lane dim of the FC kernel.
    c3, s = 4 * img, ho * wo
    nseq = (c3 * s) // (4 * img)                                        # = 256
    h_flat = h.reshape(c3, b, s).transpose(1, 0, 2).reshape(b, c3 * s)
    flat_t = h_flat.reshape(b * nseq, 4 * img).T                        # bf16 (4*img, B*Nseq)

    # ------------- layers 4+5 (mu/logvar) + reparameterize + layer6, fused ----------
    eps = jax.random.normal(eps_key, (z_dim, b * nseq), dtype=jnp.float32)
    mu_t, lv_t, z6_t = fc_fused(flat_t, pp["wml"], pp["bml"], eps, pp["w6"], pp["b6"], z_dim)
    mu = mu_t.T.reshape(b, nseq, z_dim)
    logvar = lv_t.T.reshape(b, nseq, z_dim)

    # z.view(B, img, 16, 16) -> channel-first layout for the decoder
    z_dec = (z6_t.T.reshape(b, nseq * img).reshape(b, img, 16, 16)
             .transpose(1, 0, 2, 3))                                    # (img, B, 16, 16)

    # ------------- decode: sub-pixel ConvTranspose2d GEMMs ---------------------------
    # layer7: ConvT(img -> 2*img) + BatchNorm + ReLU (BN fused in the GEMM epilogue)
    p, (_, h7, w7) = im2col_T(z_dec, 3, 3, 1, 1)
    h = convt_bn_relu(pp["w7"], p, pp["b7"], pp["g7"], pp["bt7"], cout=2 * img)
    h = phases_to_cm(h, 2 * img, b, h7, w7)                             # (2*img, B, 32, 32)

    # layer8: ConvT(2*img -> img) + BatchNorm + ReLU
    p, (_, h8, w8) = im2col_T(h, 3, 3, 1, 1)
    h = convt_bn_relu(pp["w8"], p, pp["b8"], pp["g8"], pp["bt8"], cout=img)
    h = phases_to_cm(h, img, b, h8, w8)                                 # (img, B, 64, 64)

    # layer9: ConvT(img -> channels) + Tanh
    p, (_, h9, w9) = im2col_T(h, 3, 3, 1, 1)
    o = gemm_act(pp["w9"], p, pp["b9"], act="tanh", out_dtype=jnp.float32)
    out = phases_to_cm(o, ch, b, h9, w9).transpose(1, 0, 2, 3)          # (B, ch, 128, 128)

    return out, mu, logvar


# --------------------------------------- main ---------------------------------------


if __name__ == "__main__":
    root = jax.random.PRNGKey(0)
    k_param, k_input, k_eps = jax.random.split(root, 3)

    params = init_params(k_param)
    pp = prepare_params(params)       # one-time repacking, outside the jitted forward
    x = jax.random.normal(k_input, (BATCH, CHANNELS, SPATIAL, SPATIAL), dtype=jnp.float32)

    fwd = jax.jit(vae_forward)
    out, mu, logvar = fwd(x, pp, k_eps)
    jax.block_until_ready((out, mu, logvar))

    assert out.shape == (BATCH, CHANNELS, SPATIAL, SPATIAL)
    assert mu.shape == (BATCH, 256, Z_DIM) and logvar.shape == (BATCH, 256, Z_DIM)
    print("KERNEL_OK")
</pallas_src>

<mosaic_0001>
module attributes {stable_mosaic.version = 11 : i64} {
  func.func @_gemm_act_kernel(%arg0: i32, %arg1: memref<8x16xbf16, #tpu.memory_space<vmem>>, %arg2: memref<16x4096xbf16, #tpu.memory_space<vmem>>, %arg3: memref<8x1xf32, #tpu.memory_space<vmem>>, %arg4: memref<8x4096xbf16, #tpu.memory_space<vmem>>) attributes {dimension_semantics = [#tpu.dimension_semantics<parallel>], iteration_bounds = array<i64: 2>, scalar_prefetch = 0 : i64, scratch_operands = 0 : i64, tpu.core_type = #tpu.core_type<tc>, window_params = [{pipeline_mode = #tpu.pipeline_mode<synchronous>, transform_indices = @transform_0, window_bounds = array<i64: 8, 16>}, {transform_indices = @transform_1, window_bounds = array<i64: 16, 4096>}, {pipeline_mode = #tpu.pipeline_mode<synchronous>, transform_indices = @transform_2, window_bounds = array<i64: 8, 1>}, {transform_indices = @transform_3, window_bounds = array<i64: 8, 4096>}]} {
    %c0 = arith.constant 0 : index
    %c0_0 = arith.constant 0 : index
    %0 = vector.load %arg1[%c0, %c0_0] : memref<8x16xbf16, #tpu.memory_space<vmem>>, vector<8x16xbf16>
    %c0_1 = arith.constant 0 : index
    %c0_2 = arith.constant 0 : index
    %1 = vector.load %arg2[%c0_1, %c0_2] : memref<16x4096xbf16, #tpu.memory_space<vmem>>, vector<16x4096xbf16>
    %cst = arith.constant dense<0.000000e+00> : vector<8x4096xf32>
    %2 = tpu.matmul %0, %1, %cst {dimension_numbers = #tpu.dot_dimension_numbers<[1], [0], [0], [1], [0, 0, 1, 1], [], []>} : vector<8x16xbf16>, vector<16x4096xbf16>, vector<8x4096xf32> -> vector<8x4096xf32>
    %c0_3 = arith.constant 0 : index
    %c0_4 = arith.constant 0 : index
    %3 = vector.load %arg3[%c0_3, %c0_4] : memref<8x1xf32, #tpu.memory_space<vmem>>, vector<8x1xf32>
    %4 = vector.broadcast %3 : vector<8x1xf32> to vector<8x4096xf32>
    %5 = arith.addf %2, %4 : vector<8x4096xf32>
    %cst_5 = arith.constant 0.000000e+00 : f32
    %6 = vector.broadcast %cst_5 : f32 to vector<8x4096xf32>
    %7 = arith.cmpf ogt, %5, %6 : vector<8x4096xf32>
    %cst_6 = arith.constant 2.000000e-01 : f32
    %8 = vector.broadcast %cst_6 : f32 to vector<8x4096xf32>
    %9 = arith.mulf %8, %5 : vector<8x4096xf32>
    %10 = arith.select %7, %5, %9 : vector<8x4096xi1>, vector<8x4096xf32>
    %11 = arith.truncf %10 : vector<8x4096xf32> to vector<8x4096xbf16>
    %c0_7 = arith.constant 0 : index
    %c0_8 = arith.constant 0 : index
    %12 = vector.load %arg4[%c0_7, %c0_8] : memref<8x4096xbf16, #tpu.memory_space<vmem>>, vector<8x4096xbf16>
    tpu.vector_store %arg4[%c0_7, %c0_8], %11 {strides = array<i32>} : memref<8x4096xbf16, #tpu.memory_space<vmem>>, vector<8x4096xbf16>,
    return
  }
  func.func @transform_0(%arg0: i32) -> (i32, i32) {
    %c0_i32 = arith.constant 0 : i32
    %c0_i32_0 = arith.constant 0 : i32
    %c0_i32_1 = arith.constant 0 : i32
    return %c0_i32, %c0_i32_0 : i32, i32
  }
  func.func @transform_1(%arg0: i32) -> (i32, i32) {
    %c0_i32 = arith.constant 0 : i32
    %c0_i32_0 = arith.constant 0 : i32
    return %c0_i32, %arg0 : i32, i32
  }
  func.func @transform_2(%arg0: i32) -> (i32, i32) {
    %c0_i32 = arith.constant 0 : i32
    %c0_i32_0 = arith.constant 0 : i32
    %c0_i32_1 = arith.constant 0 : i32
    return %c0_i32, %c0_i32_0 : i32, i32
  }
  func.func @transform_3(%arg0: i32) -> (i32, i32) {
    %c0_i32 = arith.constant 0 : i32
    %c0_i32_0 = arith.constant 0 : i32
    return %c0_i32, %arg0 : i32, i32
  }
}

module attributes {stable_mosaic.version = 11 : i64} {
  func.func @_gemm_act_kernel(%arg0: i32, %arg1: memref<16x128xbf16, #tpu.memory_space<vmem>>, %arg2: memref<128x2048xbf16, #tpu.memory_space<vmem>>, %arg3: memref<16x1xf32, #tpu.memory_space<vmem>>, %arg4: memref<16x2048xbf16, #tpu.memory_space<vmem>>) attributes {dimension_semantics = [#tpu.dimension_semantics<parallel>], iteration_bounds = array<i64: 1>, scalar_prefetch = 0 : i64, scratch_operands = 0 : i64, tpu.core_type = #tpu.core_type<tc>, window_params = [{pipeline_mode = #tpu.pipeline_mode<synchronous>, transform_indices = @transform_0, window_bounds = array<i64: 16, 128>}, {transform_indices = @transform_1, window_bounds = array<i64: 128, 2048>}, {pipeline_mode = #tpu.pipeline_mode<synchronous>, transform_indices = @transform_2, window_bounds = array<i64: 16, 1>}, {transform_indices = @transform_3, window_bounds = array<i64: 16, 2048>}]} {
    %c0 = arith.constant 0 : index
    %c0_0 = arith.constant 0 : index
    %0 = vector.load %arg1[%c0, %c0_0] : memref<16x128xbf16, #tpu.memory_space<vmem>>, vector<16x128xbf16>
    %c0_1 = arith.constant 0 : index
    %c0_2 = arith.constant 0 : index
    %1 = vector.load %arg2[%c0_1, %c0_2] : memref<128x2048xbf16, #tpu.memory_space<vmem>>, vector<128x2048xbf16>
    %cst = arith.constant dense<0.000000e+00> : vector<16x2048xf32>
    %2 = tpu.matmul %0, %1, %cst {dimension_numbers = #tpu.dot_dimension_numbers<[1], [0], [0], [1], [0, 0, 1, 1], [], []>} : vector<16x128xbf16>, vector<128x2048xbf16>, vector<16x2048xf32> -> vector<16x2048xf32>
    %c0_3 = arith.constant 0 : index
    %c0_4 = arith.constant 0 : index
    %3 = vector.load %arg3[%c0_3, %c0_4] : memref<16x1xf32, #tpu.memory_space<vmem>>, vector<16x1xf32>
    %4 = vector.broadcast %3 : vector<16x1xf32> to vector<16x2048xf32>
    %5 = arith.addf %2, %4 : vector<16x2048xf32>
    %cst_5 = arith.constant 0.000000e+00 : f32
    %6 = vector.broadcast %cst_5 : f32 to vector<16x2048xf32>
    %7 = arith.cmpf ogt, %5, %6 : vector<16x2048xf32>
    %cst_6 = arith.constant 2.000000e-01 : f32
    %8 = vector.broadcast %cst_6 : f32 to vector<16x2048xf32>
    %9 = arith.mulf %8, %5 : vector<16x2048xf32>
    %10 = arith.select %7, %5, %9 : vector<16x2048xi1>, vector<16x2048xf32>
    %11 = arith.truncf %10 : vector<16x2048xf32> to vector<16x2048xbf16>
    %c0_7 = arith.constant 0 : index
    %c0_8 = arith.constant 0 : index
    %12 = vector.load %arg4[%c0_7, %c0_8] : memref<16x2048xbf16, #tpu.memory_space<vmem>>, vector<16x2048xbf16>
    tpu.vector_store %arg4[%c0_7, %c0_8], %11 {strides = array<i32>} : memref<16x2048xbf16, #tpu.memory_space<vmem>>, vector<16x2048xbf16>,
    return
  }
  func.func @transform_0(%arg0: i32) -> (i32, i32) {
    %c0_i32 = arith.constant 0 : i32
    %c0_i32_0 = arith.constant 0 : i32
    %c0_i32_1 = arith.constant 0 : i32
    return %c0_i32, %c0_i32_0 : i32, i32
  }
  func.func @transform_1(%arg0: i32) -> (i32, i32) {
    %c0_i32 = arith.constant 0 : i32
    %c0_i32_0 = arith.constant 0 : i32
    return %c0_i32, %arg0 : i32, i32
  }
  func.func @transform_2(%arg0: i32) -> (i32, i32) {
    %c0_i32 = arith.constant 0 : i32
    %c0_i32_0 = arith.constant 0 : i32
    %c0_i32_1 = arith.constant 0 : i32
    return %c0_i32, %c0_i32_0 : i32, i32
  }
  func.func @transform_3(%arg0: i32) -> (i32, i32) {
    %c0_i32 = arith.constant 0 : i32
    %c0_i32_0 = arith.constant 0 : i32
    return %c0_i32, %arg0 : i32, i32
  }
}

module attributes {stable_mosaic.version = 11 : i64} {
  func.func @_gemm_act_kernel(%arg0: i32, %arg1: memref<32x256xbf16, #tpu.memory_space<vmem>>, %arg2: memref<256x512xbf16, #tpu.memory_space<vmem>>, %arg3: memref<32x1xf32, #tpu.memory_space<vmem>>, %arg4: memref<32x512xbf16, #tpu.memory_space<vmem>>) attributes {dimension_semantics = [#tpu.dimension_semantics<parallel>], iteration_bounds = array<i64: 1>, scalar_prefetch = 0 : i64, scratch_operands = 0 : i64, tpu.core_type = #tpu.core_type<tc>, window_params = [{pipeline_mode = #tpu.pipeline_mode<synchronous>, transform_indices = @transform_0, window_bounds = array<i64: 32, 256>}, {transform_indices = @transform_1, window_bounds = array<i64: 256, 512>}, {pipeline_mode = #tpu.pipeline_mode<synchronous>, transform_indices = @transform_2, window_bounds = array<i64: 32, 1>}, {transform_indices = @transform_3, window_bounds = array<i64: 32, 512>}]} {
    %c0 = arith.constant 0 : index
    %c0_0 = arith.constant 0 : index
    %0 = vector.load %arg1[%c0, %c0_0] : memref<32x256xbf16, #tpu.memory_space<vmem>>, vector<32x256xbf16>
    %c0_1 = arith.constant 0 : index
    %c0_2 = arith.constant 0 : index
    %1 = vector.load %arg2[%c0_1, %c0_2] : memref<256x512xbf16, #tpu.memory_space<vmem>>, vector<256x512xbf16>
    %cst = arith.constant dense<0.000000e+00> : vector<32x512xf32>
    %2 = tpu.matmul %0, %1, %cst {dimension_numbers = #tpu.dot_dimension_numbers<[1], [0], [0], [1], [0, 0, 1, 1], [], []>} : vector<32x256xbf16>, vector<256x512xbf16>, vector<32x512xf32> -> vector<32x512xf32>
    %c0_3 = arith.constant 0 : index
    %c0_4 = arith.constant 0 : index
    %3 = vector.load %arg3[%c0_3, %c0_4] : memref<32x1xf32, #tpu.memory_space<vmem>>, vector<32x1xf32>
    %4 = vector.broadcast %3 : vector<32x1xf32> to vector<32x512xf32>
    %5 = arith.addf %2, %4 : vector<32x512xf32>
    %cst_5 = arith.constant 0.000000e+00 : f32
    %6 = vector.broadcast %cst_5 : f32 to vector<32x512xf32>
    %7 = arith.cmpf ogt, %5, %6 : vector<32x512xf32>
    %cst_6 = arith.constant 2.000000e-01 : f32
    %8 = vector.broadcast %cst_6 : f32 to vector<32x512xf32>
    %9 = arith.mulf %8, %5 : vector<32x512xf32>
    %10 = arith.select %7, %5, %9 : vector<32x512xi1>, vector<32x512xf32>
    %11 = arith.truncf %10 : vector<32x512xf32> to vector<32x512xbf16>
    %c0_7 = arith.constant 0 : index
    %c0_8 = arith.constant 0 : index
    %12 = vector.load %arg4[%c0_7, %c0_8] : memref<32x512xbf16, #tpu.memory_space<vmem>>, vector<32x512xbf16>
    tpu.vector_store %arg4[%c0_7, %c0_8], %11 {strides = array<i32>} : memref<32x512xbf16, #tpu.memory_space<vmem>>, vector<32x512xbf16>,
    return
  }
  func.func @transform_0(%arg0: i32) -> (i32, i32) {
    %c0_i32 = arith.constant 0 : i32
    %c0_i32_0 = arith.constant 0 : i32
    %c0_i32_1 = arith.constant 0 : i32
    return %c0_i32, %c0_i32_0 : i32, i32
  }
  func.func @transform_1(%arg0: i32) -> (i32, i32) {
    %c0_i32 = arith.constant 0 : i32
    %c0_i32_0 = arith.constant 0 : i32
    return %c0_i32, %arg0 : i32, i32
  }
  func.func @transform_2(%arg0: i32) -> (i32, i32) {
    %c0_i32 = arith.constant 0 : i32
    %c0_i32_0 = arith.constant 0 : i32
    %c0_i32_1 = arith.constant 0 : i32
    return %c0_i32, %c0_i32_0 : i32, i32
  }
  func.func @transform_3(%arg0: i32) -> (i32, i32) {
    %c0_i32 = arith.constant 0 : i32
    %c0_i32_0 = arith.constant 0 : i32
    return %c0_i32, %arg0 : i32, i32
  }
}

module attributes {stable_mosaic.version = 11 : i64} {
  func.func @_fc_fused_kernel(%arg0: i32, %arg1: memref<32x512xbf16, #tpu.memory_space<vmem>>, %arg2: memref<16x32xbf16, #tpu.memory_space<vmem>>, %arg3: memref<16x1xf32, #tpu.memory_space<vmem>>, %arg4: memref<8x512xf32, #tpu.memory_space<vmem>>, %arg5: memref<8x8xbf16, #tpu.memory_space<vmem>>, %arg6: memref<8x1xf32, #tpu.memory_space<vmem>>, %arg7: memref<8x512xf32, #tpu.memory_space<vmem>>, %arg8: memref<8x512xf32, #tpu.memory_space<vmem>>, %arg9: memref<8x512xbf16, #tpu.memory_space<vmem>>) attributes {dimension_semantics = [#tpu.dimension_semantics<arbitrary>], iteration_bounds = array<i64: 1>, scalar_prefetch = 0 : i64, scratch_operands = 0 : i64, tpu.core_type = #tpu.core_type<tc>, window_params = [{pipeline_mode = #tpu.pipeline_mode<synchronous>, transform_indices = @transform_0, window_bounds = array<i64: 32, 512>}, {pipeline_mode = #tpu.pipeline_mode<synchronous>, transform_indices = @transform_1, window_bounds = array<i64: 16, 32>}, {pipeline_mode = #tpu.pipeline_mode<synchronous>, transform_indices = @transform_2, window_bounds = array<i64: 16, 1>}, {pipeline_mode = #tpu.pipeline_mode<synchronous>, transform_indices = @transform_3, window_bounds = array<i64: 8, 512>}, {pipeline_mode = #tpu.pipeline_mode<synchronous>, transform_indices = @transform_4, window_bounds = array<i64: 8, 8>}, {pipeline_mode = #tpu.pipeline_mode<synchronous>, transform_indices = @transform_5, window_bounds = array<i64: 8, 1>}, {pipeline_mode = #tpu.pipeline_mode<synchronous>, transform_indices = @transform_6, window_bounds = array<i64: 8, 512>}, {pipeline_mode = #tpu.pipeline_mode<synchronous>, transform_indices = @transform_7, window_bounds = array<i64: 8, 512>}, {pipeline_mode = #tpu.pipeline_mode<synchronous>, transform_indices = @transform_8, window_bounds = array<i64: 8, 512>}]} {
    %c0 = arith.constant 0 : index
    %c0_0 = arith.constant 0 : index
    %0 = vector.load %arg1[%c0, %c0_0] : memref<32x512xbf16, #tpu.memory_space<vmem>>, vector<32x512xbf16>
    %c0_1 = arith.constant 0 : index
    %c0_2 = arith.constant 0 : index
    %1 = vector.load %arg2[%c0_1, %c0_2] : memref<16x32xbf16, #tpu.memory_space<vmem>>, vector<16x32xbf16>
    %cst = arith.constant dense<0.000000e+00> : vector<16x512xf32>
    %2 = tpu.matmul %1, %0, %cst {dimension_numbers = #tpu.dot_dimension_numbers<[1], [0], [0], [1], [0, 0, 1, 1], [], []>} : vector<16x32xbf16>, vector<32x512xbf16>, vector<16x512xf32> -> vector<16x512xf32>
    %c0_3 = arith.constant 0 : index
    %c0_4 = arith.constant 0 : index
    %3 = vector.load %arg3[%c0_3, %c0_4] : memref<16x1xf32, #tpu.memory_space<vmem>>, vector<16x1xf32>
    %4 = vector.broadcast %3 : vector<16x1xf32> to vector<16x512xf32>
    %5 = arith.addf %2, %4 : vector<16x512xf32>
    %6 = vector.extract_strided_slice %5 {offsets = [0, 0], sizes = [8, 512], strides = [1, 1]} : vector<16x512xf32> to vector<8x512xf32>
    %7 = vector.extract_strided_slice %5 {offsets = [8, 0], sizes = [8, 512], strides = [1, 1]} : vector<16x512xf32> to vector<8x512xf32>
    %c0_5 = arith.constant 0 : index
    %c0_6 = arith.constant 0 : index
    %8 = vector.load %arg4[%c0_5, %c0_6] : memref<8x512xf32, #tpu.memory_space<vmem>>, vector<8x512xf32>
    %cst_7 = arith.constant 5.000000e-01 : f32
    %9 = vector.broadcast %cst_7 : f32 to vector<8x512xf32>
    %10 = arith.mulf %9, %7 : vector<8x512xf32>
    %11 = math.exp %10 : vector<8x512xf32>
    %12 = arith.mulf %8, %11 : vector<8x512xf32>
    %13 = arith.addf %6, %12 : vector<8x512xf32>
    %c0_8 = arith.constant 0 : index
    %c0_9 = arith.constant 0 : index
    %14 = vector.load %arg5[%c0_8, %c0_9] : memref<8x8xbf16, #tpu.memory_space<vmem>>, vector<8x8xbf16>
    %15 = arith.truncf %13 : vector<8x512xf32> to vector<8x512xbf16>
    %cst_10 = arith.constant dense<0.000000e+00> : vector<8x512xf32>
    %16 = tpu.matmul %14, %15, %cst_10 {dimension_numbers = #tpu.dot_dimension_numbers<[1], [0], [0], [1], [0, 0, 1, 1], [], []>} : vector<8x8xbf16>, vector<8x512xbf16>, vector<8x512xf32> -> vector<8x512xf32>
    %c0_11 = arith.constant 0 : index
    %c0_12 = arith.constant 0 : index
    %17 = vector.load %arg6[%c0_11, %c0_12] : memref<8x1xf32, #tpu.memory_space<vmem>>, vector<8x1xf32>
    %18 = vector.broadcast %17 : vector<8x1xf32> to vector<8x512xf32>
    %19 = arith.addf %16, %18 : vector<8x512xf32>
    %cst_13 = arith.constant 0.000000e+00 : f32
    %20 = vector.broadcast %cst_13 : f32 to vector<8x512xf32>
    %21 = arith.cmpf ogt, %19, %20 : vector<8x512xf32>
    %cst_14 = arith.constant 0.00999999977 : f32
    %22 = vector.broadcast %cst_14 : f32 to vector<8x512xf32>
    %23 = arith.mulf %22, %19 : vector<8x512xf32>
    %24 = arith.select %21, %19, %23 : vector<8x512xi1>, vector<8x512xf32>
    %c0_15 = arith.constant 0 : index
    %c0_16 = arith.constant 0 : index
    %25 = vector.load %arg7[%c0_15, %c0_16] : memref<8x512xf32, #tpu.memory_space<vmem>>, vector<8x512xf32>
    tpu.vector_store %arg7[%c0_15, %c0_16], %6 {strides = array<i32>} : memref<8x512xf32, #tpu.memory_space<vmem>>, vector<8x512xf32>,
    %c0_17 = arith.constant 0 : index
    %c0_18 = arith.constant 0 : index
    %26 = vector.load %arg8[%c0_17, %c0_18] : memref<8x512xf32, #tpu.memory_space<vmem>>, vector<8x512xf32>
    tpu.vector_store %arg8[%c0_17, %c0_18], %7 {strides = array<i32>} : memref<8x512xf32, #tpu.memory_space<vmem>>, vector<8x512xf32>,
    %27 = arith.truncf %24 : vector<8x512xf32> to vector<8x512xbf16>
    %c0_19 = arith.constant 0 : index
    %c0_20 = arith.constant 0 : index
    %28 = vector.load %arg9[%c0_19, %c0_20] : memref<8x512xbf16, #tpu.memory_space<vmem>>, vector<8x512xbf16>
    tpu.vector_store %arg9[%c0_19, %c0_20], %27 {strides = array<i32>} : memref<8x512xbf16, #tpu.memory_space<vmem>>, vector<8x512xbf16>,
    return
  }
  func.func @transform_0(%arg0: i32) -> (i32, i32) {
    %c0_i32 = arith.constant 0 : i32
    %c0_i32_0 = arith.constant 0 : i32
    %c0_i32_1 = arith.constant 0 : i32
    return %c0_i32, %c0_i32_0 : i32, i32
  }
  func.func @transform_1(%arg0: i32) -> (i32, i32) {
    %c0_i32 = arith.constant 0 : i32
    %c0_i32_0 = arith.constant 0 : i32
    %c0_i32_1 = arith.constant 0 : i32
    return %c0_i32, %c0_i32_0 : i32, i32
  }
  func.func @transform_2(%arg0: i32) -> (i32, i32) {
    %c0_i32 = arith.constant 0 : i32
    %c0_i32_0 = arith.constant 0 : i32
    %c0_i32_1 = arith.constant 0 : i32
    return %c0_i32, %c0_i32_0 : i32, i32
  }
  func.func @transform_3(%arg0: i32) -> (i32, i32) {
    %c0_i32 = arith.constant 0 : i32
    %c0_i32_0 = arith.constant 0 : i32
    %c0_i32_1 = arith.constant 0 : i32
    return %c0_i32, %c0_i32_0 : i32, i32
  }
  func.func @transform_4(%arg0: i32) -> (i32, i32) {
    %c0_i32 = arith.constant 0 : i32
    %c0_i32_0 = arith.constant 0 : i32
    %c0_i32_1 = arith.constant 0 : i32
    return %c0_i32, %c0_i32_0 : i32, i32
  }
  func.func @transform_5(%arg0: i32) -> (i32, i32) {
    %c0_i32 = arith.constant 0 : i32
    %c0_i32_0 = arith.constant 0 : i32
    %c0_i32_1 = arith.constant 0 : i32
    return %c0_i32, %c0_i32_0 : i32, i32
  }
  func.func @transform_6(%arg0: i32) -> (i32, i32) {
    %c0_i32 = arith.constant 0 : i32
    %c0_i32_0 = arith.constant 0 : i32
    %c0_i32_1 = arith.constant 0 : i32
    return %c0_i32, %c0_i32_0 : i32, i32
  }
  func.func @transform_7(%arg0: i32) -> (i32, i32) {
    %c0_i32 = arith.constant 0 : i32
    %c0_i32_0 = arith.constant 0 : i32
    %c0_i32_1 = arith.constant 0 : i32
    return %c0_i32, %c0_i32_0 : i32, i32
  }
  func.func @transform_8(%arg0: i32) -> (i32, i32) {
    %c0_i32 = arith.constant 0 : i32
    %c0_i32_0 = arith.constant 0 : i32
    %c0_i32_1 = arith.constant 0 : i32
    return %c0_i32, %c0_i32_0 : i32, i32
  }
}

module attributes {stable_mosaic.version = 11 : i64} {
  func.func @_convt_bn_relu_kernel(%arg0: i32, %arg1: memref<64x72xbf16, #tpu.memory_space<vmem>>, %arg2: memref<72x512xbf16, #tpu.memory_space<vmem>>, %arg3: memref<16x1xf32, #tpu.memory_space<vmem>>, %arg4: memref<16x1xf32, #tpu.memory_space<vmem>>, %arg5: memref<16x1xf32, #tpu.memory_space<vmem>>, %arg6: memref<64x512xbf16, #tpu.memory_space<vmem>>, %arg7: memref<64x512xf32, #tpu.memory_space<vmem>>) attributes {dimension_semantics = [#tpu.dimension_semantics<arbitrary>], iteration_bounds = array<i64: 1>, scalar_prefetch = 0 : i64, scratch_operands = 1 : i64, tpu.core_type = #tpu.core_type<tc>, window_params = [{pipeline_mode = #tpu.pipeline_mode<synchronous>, transform_indices = @transform_0, window_bounds = array<i64: 64, 72>}, {pipeline_mode = #tpu.pipeline_mode<synchronous>, transform_indices = @transform_1, window_bounds = array<i64: 72, 512>}, {pipeline_mode = #tpu.pipeline_mode<synchronous>, transform_indices = @transform_2, window_bounds = array<i64: 16, 1>}, {pipeline_mode = #tpu.pipeline_mode<synchronous>, transform_indices = @transform_3, window_bounds = array<i64: 16, 1>}, {pipeline_mode = #tpu.pipeline_mode<synchronous>, transform_indices = @transform_4, window_bounds = array<i64: 16, 1>}, {pipeline_mode = #tpu.pipeline_mode<synchronous>, transform_indices = @transform_5, window_bounds = array<i64: 64, 512>}]} {
    %c0 = arith.constant 0 : index
    %c0_0 = arith.constant 0 : index
    %0 = vector.load %arg2[%c0, %c0_0] : memref<72x512xbf16, #tpu.memory_space<vmem>>, vector<72x512xbf16>
    %cst = arith.constant 0.000000e+00 : f32
    %1 = vector.broadcast %cst : f32 to vector<16x1xf32>
    %cst_1 = arith.constant 0.000000e+00 : f32
    %2 = vector.broadcast %cst_1 : f32 to vector<16x1xf32>
    %c0_2 = arith.constant 0 : index
    %c0_3 = arith.constant 0 : index
    %3 = vector.load %arg1[%c0_2, %c0_3] : memref<64x72xbf16, #tpu.memory_space<vmem>>, vector<16x72xbf16>
    %cst_4 = arith.constant dense<0.000000e+00> : vector<16x512xf32>
    %4 = tpu.matmul %3, %0, %cst_4 {dimension_numbers = #tpu.dot_dimension_numbers<[1], [0], [0], [1], [0, 0, 1, 1], [], []>} : vector<16x72xbf16>, vector<72x512xbf16>, vector<16x512xf32> -> vector<16x512xf32>
    %c0_5 = arith.constant 0 : index
    %c0_6 = arith.constant 0 : index
    %5 = vector.load %arg3[%c0_5, %c0_6] : memref<16x1xf32, #tpu.memory_space<vmem>>, vector<16x1xf32>
    %6 = vector.broadcast %5 : vector<16x1xf32> to vector<16x512xf32>
    %7 = arith.addf %4, %6 : vector<16x512xf32>
    %c0_7 = arith.constant 0 : index
    %c0_8 = arith.constant 0 : index
    %8 = vector.load %arg7[%c0_7, %c0_8] : memref<64x512xf32, #tpu.memory_space<vmem>>, vector<16x512xf32>
    tpu.vector_store %arg7[%c0_7, %c0_8], %7 {strides = array<i32>} : memref<64x512xf32, #tpu.memory_space<vmem>>, vector<16x512xf32>,
    %cst_9 = arith.constant dense<0.000000e+00> : vector<16xf32>
    %9 = vector.multi_reduction <add>, %7, %cst_9 [1] : vector<16x512xf32> to vector<16xf32>
    %10 = vector.shape_cast %9 : vector<16xf32> to vector<16x1xf32>
    %11 = arith.addf %1, %10 : vector<16x1xf32>
    %12 = arith.mulf %7, %7 : vector<16x512xf32>
    %cst_10 = arith.constant dense<0.000000e+00> : vector<16xf32>
    %13 = vector.multi_reduction <add>, %12, %cst_10 [1] : vector<16x512xf32> to vector<16xf32>
    %14 = vector.shape_cast %13 : vector<16xf32> to vector<16x1xf32>
    %15 = arith.addf %2, %14 : vector<16x1xf32>
    %c16 = arith.constant 16 : index
    %c0_11 = arith.constant 0 : index
    %16 = vector.load %arg1[%c16, %c0_11] : memref<64x72xbf16, #tpu.memory_space<vmem>>, vector<16x72xbf16>
    %cst_12 = arith.constant dense<0.000000e+00> : vector<16x512xf32>
    %17 = tpu.matmul %16, %0, %cst_12 {dimension_numbers = #tpu.dot_dimension_numbers<[1], [0], [0], [1], [0, 0, 1, 1], [], []>} : vector<16x72xbf16>, vector<72x512xbf16>, vector<16x512xf32> -> vector<16x512xf32>
    %c0_13 = arith.constant 0 : index
    %c0_14 = arith.constant 0 : index
    %18 = vector.load %arg3[%c0_13, %c0_14] : memref<16x1xf32, #tpu.memory_space<vmem>>, vector<16x1xf32>
    %19 = vector.broadcast %18 : vector<16x1xf32> to vector<16x512xf32>
    %20 = arith.addf %17, %19 : vector<16x512xf32>
    %c16_15 = arith.constant 16 : index
    %c0_16 = arith.constant 0 : index
    %21 = vector.load %arg7[%c16_15, %c0_16] : memref<64x512xf32, #tpu.memory_space<vmem>>, vector<16x512xf32>
    tpu.vector_store %arg7[%c16_15, %c0_16], %20 {strides = array<i32>} : memref<64x512xf32, #tpu.memory_space<vmem>>, vector<16x512xf32>,
    %cst_17 = arith.constant dense<0.000000e+00> : vector<16xf32>
    %22 = vector.multi_reduction <add>, %20, %cst_17 [1] : vector<16x512xf32> to vector<16xf32>
    %23 = vector.shape_cast %22 : vector<16xf32> to vector<16x1xf32>
    %24 = arith.addf %11, %23 : vector<16x1xf32>
    %25 = arith.mulf %20, %20 : vector<16x512xf32>
    %cst_18 = arith.constant dense<0.000000e+00> : vector<16xf32>
    %26 = vector.multi_reduction <add>, %25, %cst_18 [1] : vector<16x512xf32> to vector<16xf32>
    %27 = vector.shape_cast %26 : vector<16xf32> to vector<16x1xf32>
    %28 = arith.addf %15, %27 : vector<16x1xf32>
    %c32 = arith.constant 32 : index
    %c0_19 = arith.constant 0 : index
    %29 = vector.load %arg1[%c32, %c0_19] : memref<64x72xbf16, #tpu.memory_space<vmem>>, vector<16x72xbf16>
    %cst_20 = arith.constant dense<0.000000e+00> : vector<16x512xf32>
    %30 = tpu.matmul %29, %0, %cst_20 {dimension_numbers = #tpu.dot_dimension_numbers<[1], [0], [0], [1], [0, 0, 1, 1], [], []>} : vector<16x72xbf16>, vector<72x512xbf16>, vector<16x512xf32> -> vector<16x512xf32>
    %c0_21 = arith.constant 0 : index
    %c0_22 = arith.constant 0 : index
    %31 = vector.load %arg3[%c0_21, %c0_22] : memref<16x1xf32, #tpu.memory_space<vmem>>, vector<16x1xf32>
    %32 = vector.broadcast %31 : vector<16x1xf32> to vector<16x512xf32>
    %33 = arith.addf %30, %32 : vector<16x512xf32>
    %c32_23 = arith.constant 32 : index
    %c0_24 = arith.constant 0 : index
    %34 = vector.load %arg7[%c32_23, %c0_24] : memref<64x512xf32, #tpu.memory_space<vmem>>, vector<16x512xf32>
    tpu.vector_store %arg7[%c32_23, %c0_24], %33 {strides = array<i32>} : memref<64x512xf32, #tpu.memory_space<vmem>>, vector<16x512xf32>,
    %cst_25 = arith.constant dense<0.000000e+00> : vector<16xf32>
    %35 = vector.multi_reduction <add>, %33, %cst_25 [1] : vector<16x512xf32> to vector<16xf32>
    %36 = vector.shape_cast %35 : vector<16xf32> to vector<16x1xf32>
    %37 = arith.addf %24, %36 : vector<16x1xf32>
    %38 = arith.mulf %33, %33 : vector<16x512xf32>
    %cst_26 = arith.constant dense<0.000000e+00> : vector<16xf32>
    %39 = vector.multi_reduction <add>, %38, %cst_26 [1] : vector<16x512xf32> to vector<16xf32>
    %40 = vector.shape_cast %39 : vector<16xf32> to vector<16x1xf32>
    %41 = arith.addf %28, %40 : vector<16x1xf32>
    %c48 = arith.constant 48 : index
    %c0_27 = arith.constant 0 : index
    %42 = vector.load %arg1[%c48, %c0_27] : memref<64x72xbf16, #tpu.memory_space<vmem>>, vector<16x72xbf16>
    %cst_28 = arith.constant dense<0.000000e+00> : vector<16x512xf32>
    %43 = tpu.matmul %42, %0, %cst_28 {dimension_numbers = #tpu.dot_dimension_numbers<[1], [0], [0], [1], [0, 0, 1, 1], [], []>} : vector<16x72xbf16>, vector<72x512xbf16>, vector<16x512xf32> -> vector<16x512xf32>
    %c0_29 = arith.constant 0 : index
    %c0_30 = arith.constant 0 : index
    %44 = vector.load %arg3[%c0_29, %c0_30] : memref<16x1xf32, #tpu.memory_space<vmem>>, vector<16x1xf32>
    %45 = vector.broadcast %44 : vector<16x1xf32> to vector<16x512xf32>
    %46 = arith.addf %43, %45 : vector<16x512xf32>
    %c48_31 = arith.constant 48 : index
    %c0_32 = arith.constant 0 : index
    %47 = vector.load %arg7[%c48_31, %c0_32] : memref<64x512xf32, #tpu.memory_space<vmem>>, vector<16x512xf32>
    tpu.vector_store %arg7[%c48_31, %c0_32], %46 {strides = array<i32>} : memref<64x512xf32, #tpu.memory_space<vmem>>, vector<16x512xf32>,
    %cst_33 = arith.constant dense<0.000000e+00> : vector<16xf32>
    %48 = vector.multi_reduction <add>, %46, %cst_33 [1] : vector<16x512xf32> to vector<16xf32>
    %49 = vector.shape_cast %48 : vector<16xf32> to vector<16x1xf32>
    %50 = arith.addf %37, %49 : vector<16x1xf32>
    %51 = arith.mulf %46, %46 : vector<16x512xf32>
    %cst_34 = arith.constant dense<0.000000e+00> : vector<16xf32>
    %52 = vector.multi_reduction <add>, %51, %cst_34 [1] : vector<16x512xf32> to vector<16xf32>
    %53 = vector.shape_cast %52 : vector<16xf32> to vector<16x1xf32>
    %54 = arith.addf %41, %53 : vector<16x1xf32>
    %cst_35 = arith.constant 4.8828125E-4 : f32
    %55 = vector.broadcast %cst_35 : f32 to vector<16x1xf32>
    %56 = arith.mulf %50, %55 : vector<16x1xf32>
    %cst_36 = arith.constant 4.8828125E-4 : f32
    %57 = vector.broadcast %cst_36 : f32 to vector<16x1xf32>
    %58 = arith.mulf %54, %57 : vector<16x1xf32>
    %59 = arith.mulf %56, %56 : vector<16x1xf32>
    %60 = arith.subf %58, %59 : vector<16x1xf32>
    %c0_37 = arith.constant 0 : index
    %c0_38 = arith.constant 0 : index
    %61 = vector.load %arg4[%c0_37, %c0_38] : memref<16x1xf32, #tpu.memory_space<vmem>>, vector<16x1xf32>
    %cst_39 = arith.constant 9.99999974E-6 : f32
    %62 = vector.broadcast %cst_39 : f32 to vector<16x1xf32>
    %63 = arith.addf %60, %62 : vector<16x1xf32>
    %64 = math.rsqrt %63 : vector<16x1xf32>
    %65 = arith.mulf %61, %64 : vector<16x1xf32>
    %c0_40 = arith.constant 0 : index
    %c0_41 = arith.constant 0 : index
    %66 = vector.load %arg5[%c0_40, %c0_41] : memref<16x1xf32, #tpu.memory_space<vmem>>, vector<16x1xf32>
    %67 = arith.mulf %56, %65 : vector<16x1xf32>
    %68 = arith.subf %66, %67 : vector<16x1xf32>
    %c0_42 = arith.constant 0 : index
    %c0_43 = arith.constant 0 : index
    %69 = vector.load %arg7[%c0_42, %c0_43] : memref<64x512xf32, #tpu.memory_space<vmem>>, vector<16x512xf32>
    %70 = vector.broadcast %65 : vector<16x1xf32> to vector<16x512xf32>
    %71 = arith.mulf %69, %70 : vector<16x512xf32>
    %72 = vector.broadcast %68 : vector<16x1xf32> to vector<16x512xf32>
    %73 = arith.addf %71, %72 : vector<16x512xf32>
    %cst_44 = arith.constant 0.000000e+00 : f32
    %74 = vector.broadcast %cst_44 : f32 to vector<16x512xf32>
    %75 = arith.maximumf %73, %74 : vector<16x512xf32>
    %76 = arith.truncf %75 : vector<16x512xf32> to vector<16x512xbf16>
    %c0_45 = arith.constant 0 : index
    %c0_46 = arith.constant 0 : index
    %77 = vector.load %arg6[%c0_45, %c0_46] : memref<64x512xbf16, #tpu.memory_space<vmem>>, vector<16x512xbf16>
    tpu.vector_store %arg6[%c0_45, %c0_46], %76 {strides = array<i32>} : memref<64x512xbf16, #tpu.memory_space<vmem>>, vector<16x512xbf16>,
    %c16_47 = arith.constant 16 : index
    %c0_48 = arith.constant 0 : index
    %78 = vector.load %arg7[%c16_47, %c0_48] : memref<64x512xf32, #tpu.memory_space<vmem>>, vector<16x512xf32>
    %79 = vector.broadcast %65 : vector<16x1xf32> to vector<16x512xf32>
    %80 = arith.mulf %78, %79 : vector<16x512xf32>
    %81 = vector.broadcast %68 : vector<16x1xf32> to vector<16x512xf32>
    %82 = arith.addf %80, %81 : vector<16x512xf32>
    %cst_49 = arith.constant 0.000000e+00 : f32
    %83 = vector.broadcast %cst_49 : f32 to vector<16x512xf32>
    %84 = arith.maximumf %82, %83 : vector<16x512xf32>
    %85 = arith.truncf %84 : vector<16x512xf32> to vector<16x512xbf16>
    %c16_50 = arith.constant 16 : index
    %c0_51 = arith.constant 0 : index
    %86 = vector.load %arg6[%c16_50, %c0_51] : memref<64x512xbf16, #tpu.memory_space<vmem>>, vector<16x512xbf16>
    tpu.vector_store %arg6[%c16_50, %c0_51], %85 {strides = array<i32>} : memref<64x512xbf16, #tpu.memory_space<vmem>>, vector<16x512xbf16>,
    %c32_52 = arith.constant 32 : index
    %c0_53 = arith.constant 0 : index
    %87 = vector.load %arg7[%c32_52, %c0_53] : memref<64x512xf32, #tpu.memory_space<vmem>>, vector<16x512xf32>
    %88 = vector.broadcast %65 : vector<16x1xf32> to vector<16x512xf32>
    %89 = arith.mulf %87, %88 : vector<16x512xf32>
    %90 = vector.broadcast %68 : vector<16x1xf32> to vector<16x512xf32>
    %91 = arith.addf %89, %90 : vector<16x512xf32>
    %cst_54 = arith.constant 0.000000e+00 : f32
    %92 = vector.broadcast %cst_54 : f32 to vector<16x512xf32>
    %93 = arith.maximumf %91, %92 : vector<16x512xf32>
    %94 = arith.truncf %93 : vector<16x512xf32> to vector<16x512xbf16>
    %c32_55 = arith.constant 32 : index
    %c0_56 = arith.constant 0 : index
    %95 = vector.load %arg6[%c32_55, %c0_56] : memref<64x512xbf16, #tpu.memory_space<vmem>>, vector<16x512xbf16>
    tpu.vector_store %arg6[%c32_55, %c0_56], %94 {strides = array<i32>} : memref<64x512xbf16, #tpu.memory_space<vmem>>, vector<16x512xbf16>,
    %c48_57 = arith.constant 48 : index
    %c0_58 = arith.constant 0 : index
    %96 = vector.load %arg7[%c48_57, %c0_58] : memref<64x512xf32, #tpu.memory_space<vmem>>, vector<16x512xf32>
    %97 = vector.broadcast %65 : vector<16x1xf32> to vector<16x512xf32>
    %98 = arith.mulf %96, %97 : vector<16x512xf32>
    %99 = vector.broadcast %68 : vector<16x1xf32> to vector<16x512xf32>
    %100 = arith.addf %98, %99 : vector<16x512xf32>
    %cst_59 = arith.constant 0.000000e+00 : f32
    %101 = vector.broadcast %cst_59 : f32 to vector<16x512xf32>
    %102 = arith.maximumf %100, %101 : vector<16x512xf32>
    %103 = arith.truncf %102 : vector<16x512xf32> to vector<16x512xbf16>
    %c48_60 = arith.constant 48 : index
    %c0_61 = arith.constant 0 : index
    %104 = vector.load %arg6[%c48_60, %c0_61] : memref<64x512xbf16, #tpu.memory_space<vmem>>, vector<16x512xbf16>
    tpu.vector_store %arg6[%c48_60, %c0_61], %103 {strides = array<i32>} : memref<64x512xbf16, #tpu.memory_space<vmem>>, vector<16x512xbf16>,
    return
  }
  func.func @transform_0(%arg0: i32) -> (i32, i32) {
    %c0_i32 = arith.constant 0 : i32
    %c0_i32_0 = arith.constant 0 : i32
    %c0_i32_1 = arith.constant 0 : i32
    return %c0_i32, %c0_i32_0 : i32, i32
  }
  func.func @transform_1(%arg0: i32) -> (i32, i32) {
    %c0_i32 = arith.constant 0 : i32
    %c0_i32_0 = arith.constant 0 : i32
    %c0_i32_1 = arith.constant 0 : i32
    return %c0_i32, %c0_i32_0 : i32, i32
  }
  func.func @transform_2(%arg0: i32) -> (i32, i32) {
    %c0_i32 = arith.constant 0 : i32
    %c0_i32_0 = arith.constant 0 : i32
    %c0_i32_1 = arith.constant 0 : i32
    return %c0_i32, %c0_i32_0 : i32, i32
  }
  func.func @transform_3(%arg0: i32) -> (i32, i32) {
    %c0_i32 = arith.constant 0 : i32
    %c0_i32_0 = arith.constant 0 : i32
    %c0_i32_1 = arith.constant 0 : i32
    return %c0_i32, %c0_i32_0 : i32, i32
  }
  func.func @transform_4(%arg0: i32) -> (i32, i32) {
    %c0_i32 = arith.constant 0 : i32
    %c0_i32_0 = arith.constant 0 : i32
    %c0_i32_1 = arith.constant 0 : i32
    return %c0_i32, %c0_i32_0 : i32, i32
  }
  func.func @transform_5(%arg0: i32) -> (i32, i32) {
    %c0_i32 = arith.constant 0 : i32
    %c0_i32_0 = arith.constant 0 : i32
    %c0_i32_1 = arith.constant 0 : i32
    return %c0_i32, %c0_i32_0 : i32, i32
  }
}

module attributes {stable_mosaic.version = 11 : i64} {
  func.func @_convt_bn_relu_kernel(%arg0: i32, %arg1: memref<32x144xbf16, #tpu.memory_space<vmem>>, %arg2: memref<144x2048xbf16, #tpu.memory_space<vmem>>, %arg3: memref<8x1xf32, #tpu.memory_space<vmem>>, %arg4: memref<8x1xf32, #tpu.memory_space<vmem>>, %arg5: memref<8x1xf32, #tpu.memory_space<vmem>>, %arg6: memref<32x2048xbf16, #tpu.memory_space<vmem>>, %arg7: memref<32x2048xf32, #tpu.memory_space<vmem>>) attributes {dimension_semantics = [#tpu.dimension_semantics<arbitrary>], iteration_bounds = array<i64: 1>, scalar_prefetch = 0 : i64, scratch_operands = 1 : i64, tpu.core_type = #tpu.core_type<tc>, window_params = [{pipeline_mode = #tpu.pipeline_mode<synchronous>, transform_indices = @transform_0, window_bounds = array<i64: 32, 144>}, {pipeline_mode = #tpu.pipeline_mode<synchronous>, transform_indices = @transform_1, window_bounds = array<i64: 144, 2048>}, {pipeline_mode = #tpu.pipeline_mode<synchronous>, transform_indices = @transform_2, window_bounds = array<i64: 8, 1>}, {pipeline_mode = #tpu.pipeline_mode<synchronous>, transform_indices = @transform_3, window_bounds = array<i64: 8, 1>}, {pipeline_mode = #tpu.pipeline_mode<synchronous>, transform_indices = @transform_4, window_bounds = array<i64: 8, 1>}, {pipeline_mode = #tpu.pipeline_mode<synchronous>, transform_indices = @transform_5, window_bounds = array<i64: 32, 2048>}]} {
    %c0 = arith.constant 0 : index
    %c0_0 = arith.constant 0 : index
    %0 = vector.load %arg2[%c0, %c0_0] : memref<144x2048xbf16, #tpu.memory_space<vmem>>, vector<144x2048xbf16>
    %cst = arith.constant 0.000000e+00 : f32
    %1 = vector.broadcast %cst : f32 to vector<8x1xf32>
    %cst_1 = arith.constant 0.000000e+00 : f32
    %2 = vector.broadcast %cst_1 : f32 to vector<8x1xf32>
    %c0_2 = arith.constant 0 : index
    %c0_3 = arith.constant 0 : index
    %3 = vector.load %arg1[%c0_2, %c0_3] : memref<32x144xbf16, #tpu.memory_space<vmem>>, vector<8x144xbf16>
    %cst_4 = arith.constant dense<0.000000e+00> : vector<8x2048xf32>
    %4 = tpu.matmul %3, %0, %cst_4 {dimension_numbers = #tpu.dot_dimension_numbers<[1], [0], [0], [1], [0, 0, 1, 1], [], []>} : vector<8x144xbf16>, vector<144x2048xbf16>, vector<8x2048xf32> -> vector<8x2048xf32>
    %c0_5 = arith.constant 0 : index
    %c0_6 = arith.constant 0 : index
    %5 = vector.load %arg3[%c0_5, %c0_6] : memref<8x1xf32, #tpu.memory_space<vmem>>, vector<8x1xf32>
    %6 = vector.broadcast %5 : vector<8x1xf32> to vector<8x2048xf32>
    %7 = arith.addf %4, %6 : vector<8x2048xf32>
    %c0_7 = arith.constant 0 : index
    %c0_8 = arith.constant 0 : index
    %8 = vector.load %arg7[%c0_7, %c0_8] : memref<32x2048xf32, #tpu.memory_space<vmem>>, vector<8x2048xf32>
    tpu.vector_store %arg7[%c0_7, %c0_8], %7 {strides = array<i32>} : memref<32x2048xf32, #tpu.memory_space<vmem>>, vector<8x2048xf32>,
    %cst_9 = arith.constant dense<0.000000e+00> : vector<8xf32>
    %9 = vector.multi_reduction <add>, %7, %cst_9 [1] : vector<8x2048xf32> to vector<8xf32>
    %10 = vector.shape_cast %9 : vector<8xf32> to vector<8x1xf32>
    %11 = arith.addf %1, %10 : vector<8x1xf32>
    %12 = arith.mulf %7, %7 : vector<8x2048xf32>
    %cst_10 = arith.constant dense<0.000000e+00> : vector<8xf32>
    %13 = vector.multi_reduction <add>, %12, %cst_10 [1] : vector<8x2048xf32> to vector<8xf32>
    %14 = vector.shape_cast %13 : vector<8xf32> to vector<8x1xf32>
    %15 = arith.addf %2, %14 : vector<8x1xf32>
    %c8 = arith.constant 8 : index
    %c0_11 = arith.constant 0 : index
    %16 = vector.load %arg1[%c8, %c0_11] : memref<32x144xbf16, #tpu.memory_space<vmem>>, vector<8x144xbf16>
    %cst_12 = arith.constant dense<0.000000e+00> : vector<8x2048xf32>
    %17 = tpu.matmul %16, %0, %cst_12 {dimension_numbers = #tpu.dot_dimension_numbers<[1], [0], [0], [1], [0, 0, 1, 1], [], []>} : vector<8x144xbf16>, vector<144x2048xbf16>, vector<8x2048xf32> -> vector<8x2048xf32>
    %c0_13 = arith.constant 0 : index
    %c0_14 = arith.constant 0 : index
    %18 = vector.load %arg3[%c0_13, %c0_14] : memref<8x1xf32, #tpu.memory_space<vmem>>, vector<8x1xf32>
    %19 = vector.broadcast %18 : vector<8x1xf32> to vector<8x2048xf32>
    %20 = arith.addf %17, %19 : vector<8x2048xf32>
    %c8_15 = arith.constant 8 : index
    %c0_16 = arith.constant 0 : index
    %21 = vector.load %arg7[%c8_15, %c0_16] : memref<32x2048xf32, #tpu.memory_space<vmem>>, vector<8x2048xf32>
    tpu.vector_store %arg7[%c8_15, %c0_16], %20 {strides = array<i32>} : memref<32x2048xf32, #tpu.memory_space<vmem>>, vector<8x2048xf32>,
    %cst_17 = arith.constant dense<0.000000e+00> : vector<8xf32>
    %22 = vector.multi_reduction <add>, %20, %cst_17 [1] : vector<8x2048xf32> to vector<8xf32>
    %23 = vector.shape_cast %22 : vector<8xf32> to vector<8x1xf32>
    %24 = arith.addf %11, %23 : vector<8x1xf32>
    %25 = arith.mulf %20, %20 : vector<8x2048xf32>
    %cst_18 = arith.constant dense<0.000000e+00> : vector<8xf32>
    %26 = vector.multi_reduction <add>, %25, %cst_18 [1] : vector<8x2048xf32> to vector<8xf32>
    %27 = vector.shape_cast %26 : vector<8xf32> to vector<8x1xf32>
    %28 = arith.addf %15, %27 : vector<8x1xf32>
    %c16 = arith.constant 16 : index
    %c0_19 = arith.constant 0 : index
    %29 = vector.load %arg1[%c16, %c0_19] : memref<32x144xbf16, #tpu.memory_space<vmem>>, vector<8x144xbf16>
    %cst_20 = arith.constant dense<0.000000e+00> : vector<8x2048xf32>
    %30 = tpu.matmul %29, %0, %cst_20 {dimension_numbers = #tpu.dot_dimension_numbers<[1], [0], [0], [1], [0, 0, 1, 1], [], []>} : vector<8x144xbf16>, vector<144x2048xbf16>, vector<8x2048xf32> -> vector<8x2048xf32>
    %c0_21 = arith.constant 0 : index
    %c0_22 = arith.constant 0 : index
    %31 = vector.load %arg3[%c0_21, %c0_22] : memref<8x1xf32, #tpu.memory_space<vmem>>, vector<8x1xf32>
    %32 = vector.broadcast %31 : vector<8x1xf32> to vector<8x2048xf32>
    %33 = arith.addf %30, %32 : vector<8x2048xf32>
    %c16_23 = arith.constant 16 : index
    %c0_24 = arith.constant 0 : index
    %34 = vector.load %arg7[%c16_23, %c0_24] : memref<32x2048xf32, #tpu.memory_space<vmem>>, vector<8x2048xf32>
    tpu.vector_store %arg7[%c16_23, %c0_24], %33 {strides = array<i32>} : memref<32x2048xf32, #tpu.memory_space<vmem>>, vector<8x2048xf32>,
    %cst_25 = arith.constant dense<0.000000e+00> : vector<8xf32>
    %35 = vector.multi_reduction <add>, %33, %cst_25 [1] : vector<8x2048xf32> to vector<8xf32>
    %36 = vector.shape_cast %35 : vector<8xf32> to vector<8x1xf32>
    %37 = arith.addf %24, %36 : vector<8x1xf32>
    %38 = arith.mulf %33, %33 : vector<8x2048xf32>
    %cst_26 = arith.constant dense<0.000000e+00> : vector<8xf32>
    %39 = vector.multi_reduction <add>, %38, %cst_26 [1] : vector<8x2048xf32> to vector<8xf32>
    %40 = vector.shape_cast %39 : vector<8xf32> to vector<8x1xf32>
    %41 = arith.addf %28, %40 : vector<8x1xf32>
    %c24 = arith.constant 24 : index
    %c0_27 = arith.constant 0 : index
    %42 = vector.load %arg1[%c24, %c0_27] : memref<32x144xbf16, #tpu.memory_space<vmem>>, vector<8x144xbf16>
    %cst_28 = arith.constant dense<0.000000e+00> : vector<8x2048xf32>
    %43 = tpu.matmul %42, %0, %cst_28 {dimension_numbers = #tpu.dot_dimension_numbers<[1], [0], [0], [1], [0, 0, 1, 1], [], []>} : vector<8x144xbf16>, vector<144x2048xbf16>, vector<8x2048xf32> -> vector<8x2048xf32>
    %c0_29 = arith.constant 0 : index
    %c0_30 = arith.constant 0 : index
    %44 = vector.load %arg3[%c0_29, %c0_30] : memref<8x1xf32, #tpu.memory_space<vmem>>, vector<8x1xf32>
    %45 = vector.broadcast %44 : vector<8x1xf32> to vector<8x2048xf32>
    %46 = arith.addf %43, %45 : vector<8x2048xf32>
    %c24_31 = arith.constant 24 : index
    %c0_32 = arith.constant 0 : index
    %47 = vector.load %arg7[%c24_31, %c0_32] : memref<32x2048xf32, #tpu.memory_space<vmem>>, vector<8x2048xf32>
    tpu.vector_store %arg7[%c24_31, %c0_32], %46 {strides = array<i32>} : memref<32x2048xf32, #tpu.memory_space<vmem>>, vector<8x2048xf32>,
    %cst_33 = arith.constant dense<0.000000e+00> : vector<8xf32>
    %48 = vector.multi_reduction <add>, %46, %cst_33 [1] : vector<8x2048xf32> to vector<8xf32>
    %49 = vector.shape_cast %48 : vector<8xf32> to vector<8x1xf32>
    %50 = arith.addf %37, %49 : vector<8x1xf32>
    %51 = arith.mulf %46, %46 : vector<8x2048xf32>
    %cst_34 = arith.constant dense<0.000000e+00> : vector<8xf32>
    %52 = vector.multi_reduction <add>, %51, %cst_34 [1] : vector<8x2048xf32> to vector<8xf32>
    %53 = vector.shape_cast %52 : vector<8xf32> to vector<8x1xf32>
    %54 = arith.addf %41, %53 : vector<8x1xf32>
    %cst_35 = arith.constant 1.22070313E-4 : f32
    %55 = vector.broadcast %cst_35 : f32 to vector<8x1xf32>
    %56 = arith.mulf %50, %55 : vector<8x1xf32>
    %cst_36 = arith.constant 1.22070313E-4 : f32
    %57 = vector.broadcast %cst_36 : f32 to vector<8x1xf32>
    %58 = arith.mulf %54, %57 : vector<8x1xf32>
    %59 = arith.mulf %56, %56 : vector<8x1xf32>
    %60 = arith.subf %58, %59 : vector<8x1xf32>
    %c0_37 = arith.constant 0 : index
    %c0_38 = arith.constant 0 : index
    %61 = vector.load %arg4[%c0_37, %c0_38] : memref<8x1xf32, #tpu.memory_space<vmem>>, vector<8x1xf32>
    %cst_39 = arith.constant 9.99999974E-6 : f32
    %62 = vector.broadcast %cst_39 : f32 to vector<8x1xf32>
    %63 = arith.addf %60, %62 : vector<8x1xf32>
    %64 = math.rsqrt %63 : vector<8x1xf32>
    %65 = arith.mulf %61, %64 : vector<8x1xf32>
    %c0_40 = arith.constant 0 : index
    %c0_41 = arith.constant 0 : index
    %66 = vector.load %arg5[%c0_40, %c0_41] : memref<8x1xf32, #tpu.memory_space<vmem>>, vector<8x1xf32>
    %67 = arith.mulf %56, %65 : vector<8x1xf32>
    %68 = arith.subf %66, %67 : vector<8x1xf32>
    %c0_42 = arith.constant 0 : index
    %c0_43 = arith.constant 0 : index
    %69 = vector.load %arg7[%c0_42, %c0_43] : memref<32x2048xf32, #tpu.memory_space<vmem>>, vector<8x2048xf32>
    %70 = vector.broadcast %65 : vector<8x1xf32> to vector<8x2048xf32>
    %71 = arith.mulf %69, %70 : vector<8x2048xf32>
    %72 = vector.broadcast %68 : vector<8x1xf32> to vector<8x2048xf32>
    %73 = arith.addf %71, %72 : vector<8x2048xf32>
    %cst_44 = arith.constant 0.000000e+00 : f32
    %74 = vector.broadcast %cst_44 : f32 to vector<8x2048xf32>
    %75 = arith.maximumf %73, %74 : vector<8x2048xf32>
    %76 = arith.truncf %75 : vector<8x2048xf32> to vector<8x2048xbf16>
    %c0_45 = arith.constant 0 : index
    %c0_46 = arith.constant 0 : index
    %77 = vector.load %arg6[%c0_45, %c0_46] : memref<32x2048xbf16, #tpu.memory_space<vmem>>, vector<8x2048xbf16>
    tpu.vector_store %arg6[%c0_45, %c0_46], %76 {strides = array<i32>} : memref<32x2048xbf16, #tpu.memory_space<vmem>>, vector<8x2048xbf16>,
    %c8_47 = arith.constant 8 : index
    %c0_48 = arith.constant 0 : index
    %78 = vector.load %arg7[%c8_47, %c0_48] : memref<32x2048xf32, #tpu.memory_space<vmem>>, vector<8x2048xf32>
    %79 = vector.broadcast %65 : vector<8x1xf32> to vector<8x2048xf32>
    %80 = arith.mulf %78, %79 : vector<8x2048xf32>
    %81 = vector.broadcast %68 : vector<8x1xf32> to vector<8x2048xf32>
    %82 = arith.addf %80, %81 : vector<8x2048xf32>
    %cst_49 = arith.constant 0.000000e+00 : f32
    %83 = vector.broadcast %cst_49 : f32 to vector<8x2048xf32>
    %84 = arith.maximumf %82, %83 : vector<8x2048xf32>
    %85 = arith.truncf %84 : vector<8x2048xf32> to vector<8x2048xbf16>
    %c8_50 = arith.constant 8 : index
    %c0_51 = arith.constant 0 : index
    %86 = vector.load %arg6[%c8_50, %c0_51] : memref<32x2048xbf16, #tpu.memory_space<vmem>>, vector<8x2048xbf16>
    tpu.vector_store %arg6[%c8_50, %c0_51], %85 {strides = array<i32>} : memref<32x2048xbf16, #tpu.memory_space<vmem>>, vector<8x2048xbf16>,
    %c16_52 = arith.constant 16 : index
    %c0_53 = arith.constant 0 : index
    %87 = vector.load %arg7[%c16_52, %c0_53] : memref<32x2048xf32, #tpu.memory_space<vmem>>, vector<8x2048xf32>
    %88 = vector.broadcast %65 : vector<8x1xf32> to vector<8x2048xf32>
    %89 = arith.mulf %87, %88 : vector<8x2048xf32>
    %90 = vector.broadcast %68 : vector<8x1xf32> to vector<8x2048xf32>
    %91 = arith.addf %89, %90 : vector<8x2048xf32>
    %cst_54 = arith.constant 0.000000e+00 : f32
    %92 = vector.broadcast %cst_54 : f32 to vector<8x2048xf32>
    %93 = arith.maximumf %91, %92 : vector<8x2048xf32>
    %94 = arith.truncf %93 : vector<8x2048xf32> to vector<8x2048xbf16>
    %c16_55 = arith.constant 16 : index
    %c0_56 = arith.constant 0 : index
    %95 = vector.load %arg6[%c16_55, %c0_56] : memref<32x2048xbf16, #tpu.memory_space<vmem>>, vector<8x2048xbf16>
    tpu.vector_store %arg6[%c16_55, %c0_56], %94 {strides = array<i32>} : memref<32x2048xbf16, #tpu.memory_space<vmem>>, vector<8x2048xbf16>,
    %c24_57 = arith.constant 24 : index
    %c0_58 = arith.constant 0 : index
    %96 = vector.load %arg7[%c24_57, %c0_58] : memref<32x2048xf32, #tpu.memory_space<vmem>>, vector<8x2048xf32>
    %97 = vector.broadcast %65 : vector<8x1xf32> to vector<8x2048xf32>
    %98 = arith.mulf %96, %97 : vector<8x2048xf32>
    %99 = vector.broadcast %68 : vector<8x1xf32> to vector<8x2048xf32>
    %100 = arith.addf %98, %99 : vector<8x2048xf32>
    %cst_59 = arith.constant 0.000000e+00 : f32
    %101 = vector.broadcast %cst_59 : f32 to vector<8x2048xf32>
    %102 = arith.maximumf %100, %101 : vector<8x2048xf32>
    %103 = arith.truncf %102 : vector<8x2048xf32> to vector<8x2048xbf16>
    %c24_60 = arith.constant 24 : index
    %c0_61 = arith.constant 0 : index
    %104 = vector.load %arg6[%c24_60, %c0_61] : memref<32x2048xbf16, #tpu.memory_space<vmem>>, vector<8x2048xbf16>
    tpu.vector_store %arg6[%c24_60, %c0_61], %103 {strides = array<i32>} : memref<32x2048xbf16, #tpu.memory_space<vmem>>, vector<8x2048xbf16>,
    return
  }
  func.func @transform_0(%arg0: i32) -> (i32, i32) {
    %c0_i32 = arith.constant 0 : i32
    %c0_i32_0 = arith.constant 0 : i32
    %c0_i32_1 = arith.constant 0 : i32
    return %c0_i32, %c0_i32_0 : i32, i32
  }
  func.func @transform_1(%arg0: i32) -> (i32, i32) {
    %c0_i32 = arith.constant 0 : i32
    %c0_i32_0 = arith.constant 0 : i32
    %c0_i32_1 = arith.constant 0 : i32
    return %c0_i32, %c0_i32_0 : i32, i32
  }
  func.func @transform_2(%arg0: i32) -> (i32, i32) {
    %c0_i32 = arith.constant 0 : i32
    %c0_i32_0 = arith.constant 0 : i32
    %c0_i32_1 = arith.constant 0 : i32
    return %c0_i32, %c0_i32_0 : i32, i32
  }
  func.func @transform_3(%arg0: i32) -> (i32, i32) {
    %c0_i32 = arith.constant 0 : i32
    %c0_i32_0 = arith.constant 0 : i32
    %c0_i32_1 = arith.constant 0 : i32
    return %c0_i32, %c0_i32_0 : i32, i32
  }
  func.func @transform_4(%arg0: i32) -> (i32, i32) {
    %c0_i32 = arith.constant 0 : i32
    %c0_i32_0 = arith.constant 0 : i32
    %c0_i32_1 = arith.constant 0 : i32
    return %c0_i32, %c0_i32_0 : i32, i32
  }
  func.func @transform_5(%arg0: i32) -> (i32, i32) {
    %c0_i32 = arith.constant 0 : i32
    %c0_i32_0 = arith.constant 0 : i32
    %c0_i32_1 = arith.constant 0 : i32
    return %c0_i32, %c0_i32_0 : i32, i32
  }
}

module attributes {stable_mosaic.version = 11 : i64} {
  func.func @_gemm_act_kernel(%arg0: i32, %arg1: memref<4x72xbf16, #tpu.memory_space<vmem>>, %arg2: memref<72x4096xbf16, #tpu.memory_space<vmem>>, %arg3: memref<4x1xf32, #tpu.memory_space<vmem>>, %arg4: memref<4x4096xf32, #tpu.memory_space<vmem>>) attributes {dimension_semantics = [#tpu.dimension_semantics<parallel>], iteration_bounds = array<i64: 2>, scalar_prefetch = 0 : i64, scratch_operands = 0 : i64, tpu.core_type = #tpu.core_type<tc>, window_params = [{pipeline_mode = #tpu.pipeline_mode<synchronous>, transform_indices = @transform_0, window_bounds = array<i64: 4, 72>}, {transform_indices = @transform_1, window_bounds = array<i64: 72, 4096>}, {pipeline_mode = #tpu.pipeline_mode<synchronous>, transform_indices = @transform_2, window_bounds = array<i64: 4, 1>}, {transform_indices = @transform_3, window_bounds = array<i64: 4, 4096>}]} {
    %c0 = arith.constant 0 : index
    %c0_0 = arith.constant 0 : index
    %0 = vector.load %arg1[%c0, %c0_0] : memref<4x72xbf16, #tpu.memory_space<vmem>>, vector<4x72xbf16>
    %c0_1 = arith.constant 0 : index
    %c0_2 = arith.constant 0 : index
    %1 = vector.load %arg2[%c0_1, %c0_2] : memref<72x4096xbf16, #tpu.memory_space<vmem>>, vector<72x4096xbf16>
    %cst = arith.constant dense<0.000000e+00> : vector<4x4096xf32>
    %2 = tpu.matmul %0, %1, %cst {dimension_numbers = #tpu.dot_dimension_numbers<[1], [0], [0], [1], [0, 0, 1, 1], [], []>} : vector<4x72xbf16>, vector<72x4096xbf16>, vector<4x4096xf32> -> vector<4x4096xf32>
    %c0_3 = arith.constant 0 : index
    %c0_4 = arith.constant 0 : index
    %3 = vector.load %arg3[%c0_3, %c0_4] : memref<4x1xf32, #tpu.memory_space<vmem>>, vector<4x1xf32>
    %4 = vector.broadcast %3 : vector<4x1xf32> to vector<4x4096xf32>
    %5 = arith.addf %2, %4 : vector<4x4096xf32>
    %6 = math.tanh %5 : vector<4x4096xf32>
    %c0_5 = arith.constant 0 : index
    %c0_6 = arith.constant 0 : index
    %7 = vector.load %arg4[%c0_5, %c0_6] : memref<4x4096xf32, #tpu.memory_space<vmem>>, vector<4x4096xf32>
    tpu.vector_store %arg4[%c0_5, %c0_6], %6 {strides = array<i32>} : memref<4x4096xf32, #tpu.memory_space<vmem>>, vector<4x4096xf32>,
    return
  }
  func.func @transform_0(%arg0: i32) -> (i32, i32) {
    %c0_i32 = arith.constant 0 : i32
    %c0_i32_0 = arith.constant 0 : i32
    %c0_i32_1 = arith.constant 0 : i32
    return %c0_i32, %c0_i32_0 : i32, i32
  }
  func.func @transform_1(%arg0: i32) -> (i32, i32) {
    %c0_i32 = arith.constant 0 : i32
    %c0_i32_0 = arith.constant 0 : i32
    return %c0_i32, %arg0 : i32, i32
  }
  func.func @transform_2(%arg0: i32) -> (i32, i32) {
    %c0_i32 = arith.constant 0 : i32
    %c0_i32_0 = arith.constant 0 : i32
    %c0_i32_1 = arith.constant 0 : i32
    return %c0_i32, %c0_i32_0 : i32, i32
  }
  func.func @transform_3(%arg0: i32) -> (i32, i32) {
    %c0_i32 = arith.constant 0 : i32
    %c0_i32_0 = arith.constant 0 : i32
    return %c0_i32, %arg0 : i32, i32
  }
}

</mosaic_0001>

<bundles_post_ra>
// kernel: vae_forward.7
= control target key start
LH: loop header
LB: loop body
LE: loop exit
PB: predicated region body
PF: predicated region fallthrough
CT: control target
= control target key end

     0   :  { %s1582_s12 = smov 0   ;;  %s1584_s13 = smov 0   ;;  %s1845_s0 = inlined_call_operand.vmem [shape: bf16[8,16], index: 0, kind: input, shape index: {}]   ;;  %s1846_s1 = inlined_call_operand.vmem [shape: bf16[16,8192], index: 1, kind: input, shape index: {}]   ;;  %s1847_s2 = inlined_call_operand.vmem [shape: f32[8,1], index: 2, kind: input, shape index: {}]   ;;  %s1848_s3 = inlined_call_operand.vmem [shape: bf16[8,8192], index: 3, kind: output, shape index: {}]  }
   0x1   :  { %s1586_s14 = smov 0  }
   0x2 LB: > { %s1417_s15 = sadd.s32 4294967295, %s1559_s14   ;;  %s1599_s16 = sadd.s32 1, %s1559_s14   ;;  %s1559_s14 = sphi %s1586_s14, %s1851_s14   ;;  %s1555_s13 = sphi %s1584_s13, %s1850_s13   ;;  %s1551_s12 = sphi %s1582_s12, %s1849_s12  }
   0x3   : > { %s38_s17 = ssub.s32 %s1559_s14, %s1599_s16  ;;  %s41_s18 = sadd.s32 1, %s1555_s13 }
   0x4   : > { %p39_p0 = scmp.eq.s32.totalorder %s38_s17, 0  ;;  %p48_p1 = scmp.ne.s32.totalorder %s1555_s13, %s1551_s12 }
   0x5   : > { %p49_p2 = scmp.eq.s32.totalorder %s1559_s14, 0  ;;  %p1420_p4 = scmp.ge.s32.totalorder %s1559_s14, 2 }
   0x6   : > { %s1608_s19 = scalar_select %p39_p0, %s1555_s13, %s41_s18  }
   0x7   : > { %p50_p3 = por %p49_p2, %p48_p1  ;;  %127 = sbr.rel (%p1420_p4) target bundleno = 32 (0x20), region = 24 }
   0xc   : > { %130 = sbr.rel (!%p50_p3) target bundleno = 32 (0x20), region = 28  ;;  %s132_s20 = sand.u32 (%p50_p3), 1, %s1555_s13  }
   0xd   : > { %s1494_s21 = sshll.u32 (%p50_p3), %s1559_s14, 7  ;;  %s1421_s22 = sshll.u32 (%p50_p3), %s132_s20, 8 }
   0xe   : > { %s1616_s25 = scalar_lea.vmem (%p50_p3), %s1846_s1, %s1494_s21  ;;  %s1621_s26 = scalar_lea.vmem (%p50_p3), [#allocation2], %s1421_s22 }
   0xf   : > { %v150_v0 = vld [vmem:[%s1616_s25] sm:$0xff] (%p50_p3)  ;;  %v152_v1 = vld [vmem:[%s1616_s25 + $0x8] sm:$0xff] (%p50_p3)  ;;  %v154_v2 = vld [vmem:[%s1616_s25 + $0x10] sm:$0xff] (%p50_p3) }
  0x10   : > { %151 = vst [vmem:[%s1621_s26] sm:$0xff] (%p50_p3), %v150_v0  ;;  %153 = vst [vmem:[%s1621_s26 + $0x8] sm:$0xff] (%p50_p3), %v152_v1  ;;  %v156_v3 = vld [vmem:[%s1616_s25 + $0x18] sm:$0xff] (%p50_p3)  ;;  %v158_v4 = vld [vmem:[%s1616_s25 + $0x20] sm:$0xff] (%p50_p3) }
  0x11   : > { %155 = vst [vmem:[%s1621_s26 + $0x10] sm:$0xff] %v154_v2  ;;  %v160_v5 = vld [vmem:[%s1616_s25 + $0x28] sm:$0xff]  ;;  %157 = vst [vmem:[%s1621_s26 + $0x18] sm:$0xff] %v156_v3  ;;  %v162_v6 = vld [vmem:[%s1616_s25 + $0x30] sm:$0xff] }
  0x12   : > { %159 = vst [vmem:[%s1621_s26 + $0x20] sm:$0xff] %v158_v4  ;;  %161 = vst [vmem:[%s1621_s26 + $0x28] sm:$0xff] %v160_v5  ;;  %v164_v7 = vld [vmem:[%s1616_s25 + $0x38] sm:$0xff]  ;;  %v166_v8 = vld [vmem:[%s1616_s25 + $0x40] sm:$0xff] }
  0x13   : > { %163 = vst [vmem:[%s1621_s26 + $0x30] sm:$0xff] %v162_v6  ;;  %165 = vst [vmem:[%s1621_s26 + $0x38] sm:$0xff] %v164_v7  ;;  %v168_v9 = vld [vmem:[%s1616_s25 + $0x48] sm:$0xff]  ;;  %v170_v10 = vld [vmem:[%s1616_s25 + $0x50] sm:$0xff] }
  0x14   : > { %167 = vst [vmem:[%s1621_s26 + $0x40] sm:$0xff] %v166_v8  ;;  %v172_v11 = vld [vmem:[%s1616_s25 + $0x58] sm:$0xff]  ;;  %169 = vst [vmem:[%s1621_s26 + $0x48] sm:$0xff] %v168_v9  ;;  %v174_v12 = vld [vmem:[%s1616_s25 + $0x60] sm:$0xff] }
  0x15   : > { %171 = vst [vmem:[%s1621_s26 + $0x50] sm:$0xff] %v170_v10  ;;  %173 = vst [vmem:[%s1621_s26 + $0x58] sm:$0xff] %v172_v11  ;;  %v176_v13 = vld [vmem:[%s1616_s25 + $0x68] sm:$0xff]  ;;  %v178_v14 = vld [vmem:[%s1616_s25 + $0x70] sm:$0xff] }
  0x16   : > { %175 = vst [vmem:[%s1621_s26 + $0x60] sm:$0xff] %v174_v12  ;;  %177 = vst [vmem:[%s1621_s26 + $0x68] sm:$0xff] %v176_v13  ;;  %v180_v15 = vld [vmem:[%s1616_s25 + $0x78] sm:$0xff]  ;;  %v182_v16 = vld [vmem:[%s1616_s25 + $0x100] sm:$0xff] }
  0x17   : > { %179 = vst [vmem:[%s1621_s26 + $0x70] sm:$0xff] %v178_v14  ;;  %v184_v17 = vld [vmem:[%s1616_s25 + $0x108] sm:$0xff]  ;;  %181 = vst [vmem:[%s1621_s26 + $0x78] sm:$0xff] %v180_v15  ;;  %v186_v18 = vld [vmem:[%s1616_s25 + $0x110] sm:$0xff] }
  0x18   : > { %183 = vst [vmem:[%s1621_s26 + $0x80] sm:$0xff] %v182_v16  ;;  %185 = vst [vmem:[%s1621_s26 + $0x88] sm:$0xff] %v184_v17  ;;  %v188_v19 = vld [vmem:[%s1616_s25 + $0x118] sm:$0xff]  ;;  %v190_v20 = vld [vmem:[%s1616_s25 + $0x120] sm:$0xff] }
  0x19   : > { %187 = vst [vmem:[%s1621_s26 + $0x90] sm:$0xff] %v186_v18  ;;  %189 = vst [vmem:[%s1621_s26 + $0x98] sm:$0xff] %v188_v19  ;;  %v192_v21 = vld [vmem:[%s1616_s25 + $0x128] sm:$0xff]  ;;  %v194_v22 = vld [vmem:[%s1616_s25 + $0x130] sm:$0xff] }
  0x1a   : > { %191 = vst [vmem:[%s1621_s26 + $0xa0] sm:$0xff] %v190_v20  ;;  %v196_v23 = vld [vmem:[%s1616_s25 + $0x138] sm:$0xff]  ;;  %193 = vst [vmem:[%s1621_s26 + $0xa8] sm:$0xff] %v192_v21  ;;  %v198_v24 = vld [vmem:[%s1616_s25 + $0x140] sm:$0xff] }
  0x1b   : > { %195 = vst [vmem:[%s1621_s26 + $0xb0] sm:$0xff] %v194_v22  ;;  %197 = vst [vmem:[%s1621_s26 + $0xb8] sm:$0xff] %v196_v23  ;;  %v200_v25 = vld [vmem:[%s1616_s25 + $0x148] sm:$0xff]  ;;  %v202_v26 = vld [vmem:[%s1616_s25 + $0x150] sm:$0xff] }
  0x1c   : > { %199 = vst [vmem:[%s1621_s26 + $0xc0] sm:$0xff] %v198_v24  ;;  %201 = vst [vmem:[%s1621_s26 + $0xc8] sm:$0xff] %v200_v25  ;;  %v204_v27 = vld [vmem:[%s1616_s25 + $0x158] sm:$0xff]  ;;  %v206_v28 = vld [vmem:[%s1616_s25 + $0x160] sm:$0xff] }
  0x1d   : > { %203 = vst [vmem:[%s1621_s26 + $0xd0] sm:$0xff] %v202_v26  ;;  %v208_v29 = vld [vmem:[%s1616_s25 + $0x168] sm:$0xff]  ;;  %205 = vst [vmem:[%s1621_s26 + $0xd8] sm:$0xff] %v204_v27  ;;  %v210_v30 = vld [vmem:[%s1616_s25 + $0x170] sm:$0xff] }
  0x1e   : > { %207 = vst [vmem:[%s1621_s26 + $0xe0] sm:$0xff] %v206_v28  ;;  %209 = vst [vmem:[%s1621_s26 + $0xe8] sm:$0xff] %v208_v29  ;;  %v212_v31 = vld [vmem:[%s1616_s25 + $0x178] sm:$0xff] }
  0x1f   : > { %211 = vst [vmem:[%s1621_s26 + $0xf0] sm:$0xff] %v210_v30  ;;  %213 = vst [vmem:[%s1621_s26 + $0xf8] sm:$0xff] %v212_v31 }
  0x20 PF: > { %p1424_p5 = scmp.ge.s32.totalorder %s1559_s14, 1  ;;  %p218_p6 = scmp.lt.s32.totalorder %s1559_s14, 3 }
  0x22   : > { %p219_p7 = pnand %p1424_p5, %p218_p6 }
  0x23   : > { %s225_s27 = sand.u32 (!%p219_p7), 1, %s1551_s12   ;;  %s1426_s7 = sshll.u32 (!%p219_p7), %s1417_s15, 5 }
  0x24   : > { %222 = sbr.rel (%p219_p7) target bundleno = 309 (0x135), region = 51  ;;  %s1425_s30 = sshll.u32 (!%p219_p7), %s225_s27, 8 }
  0x25   : > { %s1693_s4 = scalar_lea.vmem (!%p219_p7), [#allocation2], %s1425_s30  ;;  %p250_p8 = scmp.lt.s32.totalorder (!%p219_p7), %s1426_s7, 63 }
  0x29   : > { %v289_v32 = vld [vmem:[%s1847_s2] sm:$0xff]  ;;  %v1561_v33 = vmov 0   ;;  %v258_v36 = vld [vmem:[%s1693_s4 + $0x8] sm:$0xff]  ;;  %v259_v40 = vld [vmem:[%s1693_s4 + $0x10] sm:$0xff]  ;;  %vm455_vm0 = vcmask 130048   ;;  %s1853_s7 = smov (!%p250_p8, %s1426_s7), 63 }
  0x2a   : > { %491 = vmatprep.mubr.bf16.mxu0 %v1561_v33  ;;  %532 = vmatprep.mubr.bf16.mxu1 %v1561_v33  ;;  %v257_v34 = vld [vmem:[%s1693_s4] sm:$0xff]  ;;  %v274_v38 = vld [vmem:[%s1693_s4 + $0x88] sm:$0xff]  ;;  %v275_v41 = vld [vmem:[%s1693_s4 + $0x90] sm:$0xff]  ;;  %s1427_s8 = sshll.u32 %s1853_s7, 2 }
  0x2b   : > { %1536 = vset.pattern.permute.xlu0 %v1561_v33  ;;  %v273_v35 = vld [vmem:[%s1693_s4 + $0x80] sm:$0xff]  ;;  %v1431_v42 = vcombine.high %v258_v36, %v274_v38  ;;  %v1430_v43 = vcombine.low %v258_v36, %v274_v38  ;;  %v1433_v44 = vcombine.high %v259_v40, %v275_v41  ;;  %v260_v45 = vld [vmem:[%s1693_s4 + $0x18] sm:$0xff]  ;;  %v1432_v51 = vcombine.low %v259_v40, %v275_v41  ;;  %v262_v52 = vld [vmem:[%s1693_s4 + $0x28] sm:$0xff]  ;;  %s1789_s11 = scalar_lea.vmem %s1848_s3, %s1427_s8 }
  0x2c   : > { %292 = vperm.xlu0 %1536, %v289_v32   ;;  %v1429_v37 = vcombine.high %v257_v34, %v273_v35  ;;  %v1428_v39 = vcombine.low %v257_v34, %v273_v35  ;;  %v276_v46 = vld [vmem:[%s1693_s4 + $0x98] sm:$0xff]  ;;  %v261_v48 = vld [vmem:[%s1693_s4 + $0x20] sm:$0xff]  ;;  %v278_v53 = vld [vmem:[%s1693_s4 + $0xa8] sm:$0xff] }
  0x2d   : > { %v1435_v47 = vcombine.high %v260_v45, %v276_v46  ;;  %v277_v49 = vld [vmem:[%s1693_s4 + $0xa0] sm:$0xff]  ;;  %514 = vmatprep.subr.bf16.mxu1 %v1431_v42  ;;  %v1434_v54 = vcombine.low %v260_v45, %v276_v46  ;;  %v1439_v56 = vcombine.high %v262_v52, %v278_v53  ;;  %v263_v57 = vld [vmem:[%s1693_s4 + $0x30] sm:$0xff]  ;;  %v264_v60 = vld [vmem:[%s1693_s4 + $0x38] sm:$0xff]  ;;  %v1438_v62 = vcombine.low %v262_v52, %v278_v53 }
  0x2e   : > { %473 = vmatprep.subr.bf16.mxu0 %v1429_v37  ;;  %v1708_v50 = vld [vmem:[%s1845_s0] sm:$0xf]  ;;  %515 = vmatpush1.bf16.msra.mxu1 %v1430_v43  ;;  %v1437_v55 = vcombine.high %v261_v48, %v277_v49  ;;  %v279_v58 = vld [vmem:[%s1693_s4 + $0xb0] sm:$0xff]  ;;  %v1436_v59 = vcombine.low %v261_v48, %v277_v49  ;;  %v280_v61 = vld [vmem:[%s1693_s4 + $0xb8] sm:$0xff] }
  0x2f   : > { %474 = vmatpush1.bf16.msra.mxu0 %v1428_v39  ;;  %596 = vmatprep.subr.bf16.mxu1 %v1435_v47  ;;  %v1441_v63 = vcombine.high %v263_v57, %v279_v58  ;;  %v1443_v0 = vcombine.high %v264_v60, %v280_v61  ;;  %v265_v1 = vld [vmem:[%s1693_s4 + $0x40] sm:$0xff]  ;;  %v1440_v3 = vcombine.low %v263_v57, %v279_v58  ;;  %v266_v4 = vld [vmem:[%s1693_s4 + $0x48] sm:$0xff]  ;;  %v267_v9 = vld [vmem:[%s1693_s4 + $0x50] sm:$0xff] }
  0x30   : > { %555 = vmatprep.subr.bf16.mxu0 %v1433_v44  ;;  %v281_v2 = vld [vmem:[%s1693_s4 + $0xc0] sm:$0xff]  ;;  %v282_v5 = vld [vmem:[%s1693_s4 + $0xc8] sm:$0xff]  ;;  %v1442_v6 = vcombine.low %v264_v60, %v280_v61  ;;  %v283_v10 = vld [vmem:[%s1693_s4 + $0xd0] sm:$0xff] }
  0x31   : > { %1461 = vmatmul.mubr.msk.bf16.vlgmr.msra.gmra.mxu1 %vm455_vm0, %v1708_v50  ;;  %v1445_v7 = vcombine.high %v265_v1, %v281_v2  ;;  %v1447_v8 = vcombine.high %v266_v4, %v282_v5  ;;  %v1444_v11 = vcombine.low %v265_v1, %v281_v2  ;;  %v268_v12 = vld [vmem:[%s1693_s4 + $0x58] sm:$0xff]  ;;  %v1446_v14 = vcombine.low %v266_v4, %v282_v5  ;;  %v269_v17 = vld [vmem:[%s1693_s4 + $0x60] sm:$0xff]  ;;  %v270_v20 = vld [vmem:[%s1693_s4 + $0x68] sm:$0xff] }
  0x32   : > { %1460 = vmatmul.mubr.msk.bf16.vlgmr.msra.gmra.mxu0 %vm455_vm0, %v1708_v50  ;;  %597 = vmatpush1.bf16.msra.mxu1 %v1434_v54  ;;  %v284_v13 = vld [vmem:[%s1693_s4 + $0xd8] sm:$0xff]  ;;  %v1449_v15 = vcombine.high %v267_v9, %v283_v10  ;;  %v285_v18 = vld [vmem:[%s1693_s4 + $0xe0] sm:$0xff]  ;;  %v1448_v19 = vcombine.low %v267_v9, %v283_v10  ;;  %v286_v21 = vld [vmem:[%s1693_s4 + $0xe8] sm:$0xff] }
  0x33   : > { %556 = vmatpush1.bf16.msra.mxu0 %v1432_v51  ;;  %573 = vmatprep.mubr.bf16.mxu0 %v1561_v33  ;;  %v1451_v16 = vcombine.high %v268_v12, %v284_v13  ;;  %v1450_v22 = vcombine.low %v268_v12, %v284_v13  ;;  %v1453_v23 = vcombine.high %v269_v17, %v285_v18  ;;  %v271_v25 = vld [vmem:[%s1693_s4 + $0x70] sm:$0xff]  ;;  %v272_v28 = vld [vmem:[%s1693_s4 + $0x78] sm:$0xff] }
  0x34   : > { %614 = vmatprep.mubr.bf16.mxu1 %v1561_v33  ;;  %637 = vmatprep.subr.bf16.mxu0 %v1437_v55  ;;  %v1455_v24 = vcombine.high %v270_v20, %v286_v21  ;;  %v287_v26 = vld [vmem:[%s1693_s4 + $0xf0] sm:$0xff]  ;;  %v1452_v27 = vcombine.low %v269_v17, %v285_v18  ;;  %v288_v29 = vld [vmem:[%s1693_s4 + $0xf8] sm:$0xff]  ;;  %v1454_v30 = vcombine.low %v270_v20, %v286_v21 }
  0x35   : > { %678 = vmatprep.subr.bf16.mxu1 %v1439_v56  ;;  %v1457_v31 = vcombine.high %v271_v25, %v287_v26  ;;  %v1459_v32 = vcombine.high %v272_v28, %v288_v29  ;;  %v1456_v34 = vcombine.low %v271_v25, %v287_v26  ;;  %v1458_v35 = vcombine.low %v272_v28, %v288_v29 }
  0x39   : > { %1463 = vmatmul.mubr.msk.bf16.vlgmr.msra.gmra.mxu1 %vm455_vm0, %v1708_v50 }
  0x3a   : > { %1462 = vmatmul.mubr.msk.bf16.vlgmr.msra.gmra.mxu0 %vm455_vm0, %v1708_v50  ;;  %679 = vmatpush1.bf16.msra.mxu1 %v1438_v62 }
  0x3b   : > { %638 = vmatpush1.bf16.msra.mxu0 %v1436_v59  ;;  %655 = vmatprep.mubr.bf16.mxu0 %v1561_v33 }
  0x3c   : > { %696 = vmatprep.mubr.bf16.mxu1 %v1561_v33  ;;  %719 = vmatprep.subr.bf16.mxu0 %v1441_v63 }
  0x3d   : > { %760 = vmatprep.subr.bf16.mxu1 %v1443_v0 }
  0x41   : > { %1465 = vmatmul.mubr.msk.bf16.vlgmr.msra.gmra.mxu1 %vm455_vm0, %v1708_v50 }
  0x42   : > { %1464 = vmatmul.mubr.msk.bf16.vlgmr.msra.gmra.mxu0 %vm455_vm0, %v1708_v50  ;;  %761 = vmatpush1.bf16.msra.mxu1 %v1442_v6 }
  0x43   : > { %720 = vmatpush1.bf16.msra.mxu0 %v1440_v3  ;;  %737 = vmatprep.mubr.bf16.mxu0 %v1561_v33 }
  0x44   : > { %778 = vmatprep.mubr.bf16.mxu1 %v1561_v33  ;;  %801 = vmatprep.subr.bf16.mxu0 %v1445_v7 }
  0x45   : > { %842 = vmatprep.subr.bf16.mxu1 %v1447_v8 }
  0x49   : > { %1467 = vmatmul.mubr.msk.bf16.vlgmr.msra.gmra.mxu1 %vm455_vm0, %v1708_v50 }
  0x4a   : > { %1466 = vmatmul.mubr.msk.bf16.vlgmr.msra.gmra.mxu0 %vm455_vm0, %v1708_v50  ;;  %843 = vmatpush1.bf16.msra.mxu1 %v1446_v14 }
  0x4b   : > { %802 = vmatpush1.bf16.msra.mxu0 %v1444_v11  ;;  %819 = vmatprep.mubr.bf16.mxu0 %v1561_v33 }
  0x4c   : > { %860 = vmatprep.mubr.bf16.mxu1 %v1561_v33  ;;  %883 = vmatprep.subr.bf16.mxu0 %v1449_v15 }
  0x4d   : > { %924 = vmatprep.subr.bf16.mxu1 %v1451_v16 }
  0x51   : > { %1469 = vmatmul.mubr.msk.bf16.vlgmr.msra.gmra.mxu1 %vm455_vm0, %v1708_v50 }
  0x52   : > { %1468 = vmatmul.mubr.msk.bf16.vlgmr.msra.gmra.mxu0 %vm455_vm0, %v1708_v50  ;;  %925 = vmatpush1.bf16.msra.mxu1 %v1450_v22 }
  0x53   : > { %884 = vmatpush1.bf16.msra.mxu0 %v1448_v19  ;;  %901 = vmatprep.mubr.bf16.mxu0 %v1561_v33 }
  0x54   : > { %942 = vmatprep.mubr.bf16.mxu1 %v1561_v33  ;;  %965 = vmatprep.subr.bf16.mxu0 %v1453_v23 }
  0x55   : > { %1006 = vmatprep.subr.bf16.mxu1 %v1455_v24 }
  0x59   : > { %1471 = vmatmul.mubr.msk.bf16.vlgmr.msra.gmra.mxu1 %vm455_vm0, %v1708_v50 }
  0x5a   : > { %1470 = vmatmul.mubr.msk.bf16.vlgmr.msra.gmra.mxu0 %vm455_vm0, %v1708_v50  ;;  %1007 = vmatpush1.bf16.msra.mxu1 %v1454_v30 }
  0x5b   : > { %966 = vmatpush1.bf16.msra.mxu0 %v1452_v27  ;;  %983 = vmatprep.mubr.bf16.mxu0 %v1561_v33 }
  0x5c   : > { %1024 = vmatprep.mubr.bf16.mxu1 %v1561_v33  ;;  %1047 = vmatprep.subr.bf16.mxu0 %v1457_v31 }
  0x5d   : > { %1088 = vmatprep.subr.bf16.mxu1 %v1459_v32 }
  0x61   : > { %1473 = vmatmul.mubr.msk.bf16.vlgmr.msra.gmra.mxu1 %vm455_vm0, %v1708_v50 }
  0x62   : > { %1472 = vmatmul.mubr.msk.bf16.vlgmr.msra.gmra.mxu0 %vm455_vm0, %v1708_v50  ;;  %1089 = vmatpush1.bf16.msra.mxu1 %v1458_v35 }
  0x63   : > { %1048 = vmatpush1.bf16.msra.mxu0 %v1456_v34  ;;  %1065 = vmatprep.mubr.bf16.mxu0 %v1561_v33 }
  0x64   : > { %1106 = vmatprep.mubr.bf16.mxu1 %v1561_v33 }
  0x69   : > { %1475 = vmatmul.mubr.msk.bf16.vlgmr.msra.gmra.mxu1 %vm455_vm0, %v1708_v50 }
  0x6a   : > { %1474 = vmatmul.mubr.msk.bf16.vlgmr.msra.gmra.mxu0 %vm455_vm0, %v1708_v50 }
  0xa7   : > { %v1780_v36 = vpop.permute.xlu0 %292 }
  0xf1   : > { %v534_v39 = vpop.f32.mrf.mxu1 }
  0xf2   : > { %v493_v37 = vpop.f32.mrf.mxu0  ;;  %v535_v40 = vadd.f32 %v534_v39, %v1780_v36 }
  0xf3   : > { %v494_v38 = vadd.f32 %v493_v37, %v1780_v36  ;;  %v536_v43 = vpop.f32.mrf.mxu1 }
  0xf4   : > { %v495_v41 = vpop.f32.mrf.mxu0  ;;  %v1149_v44 = vmul.f32 0.2, %v535_v40  ;;  %v537_v45 = vadd.f32 %v536_v43, %v1780_v36  ;;  %vm1117_vm2 = vcmp.gt.f32.partialorder %v535_v40, 0.0 }
  0xf5   : > { %v1147_v33 = vmul.f32 0.2, %v494_v38  ;;  %v496_v42 = vadd.f32 %v495_v41, %v1780_v36  ;;  %vm1115_vm1 = vcmp.gt.f32.partialorder %v494_v38, 0.0  ;;  %v538_v48 = vpop.f32.mrf.mxu1 }
  0xf6   : > { %v497_v46 = vpop.f32.mrf.mxu0  ;;  %vm1118_vm4 = vcmp.gt.f32.partialorder %v537_v45, 0.0  ;;  %v1150_v49 = vmul.f32 0.2, %v537_v45  ;;  %v1181_v54 = vsel %vm1117_vm2, %v535_v40, %v1149_v44 }
  0xf7   : > { %vm1116_vm3 = vcmp.gt.f32.partialorder %v496_v42, 0.0  ;;  %v1148_v47 = vmul.f32 0.2, %v496_v42  ;;  %v1179_v51 = vsel %vm1115_vm1, %v494_v38, %v1147_v33  ;;  %v539_v53 = vpop.f32.mrf.mxu1 }
  0xf8   : > { %v498_v50 = vpop.f32.mrf.mxu0  ;;  %v1182_v56 = vsel %vm1118_vm4, %v537_v45, %v1150_v49 }
  0xf9   : > { %v1180_v52 = vsel %vm1116_vm3, %v496_v42, %v1148_v47  ;;  %v1496_v58 = vpack.c.bf16 %v1182_v56, %v1181_v54  ;;  %v616_v60 = vpop.f32.mrf.mxu1 }
  0xfa   : > { %v1495_v55 = vpack.c.bf16 %v1180_v52, %v1179_v51  ;;  %v575_v57 = vpop.f32.mrf.mxu0  ;;  %v617_v61 = vadd.f32 %v616_v60, %v1780_v36 }
  0xfb   : > { %v576_v59 = vadd.f32 %v575_v57, %v1780_v36  ;;  %1340 = vst [vmem:[%s1789_s11 + $0x8] sm:$0xff] %v1496_v58  ;;  %v618_v1 = vpop.f32.mrf.mxu1 }
  0xfc   : > { %1339 = vst [vmem:[%s1789_s11] sm:$0xff] %v1495_v55  ;;  %v577_v62 = vpop.f32.mrf.mxu0  ;;  %v1153_v2 = vmul.f32 0.2, %v617_v61  ;;  %v619_v3 = vadd.f32 %v618_v1, %v1780_v36  ;;  %vm1121_vm6 = vcmp.gt.f32.partialorder %v617_v61, 0.0 }
  0xfd   : > { %v1151_v63 = vmul.f32 0.2, %v576_v59  ;;  %v578_v0 = vadd.f32 %v577_v62, %v1780_v36  ;;  %vm1119_vm5 = vcmp.gt.f32.partialorder %v576_v59, 0.0  ;;  %v620_v6 = vpop.f32.mrf.mxu1 }
  0xfe   : > { %v579_v4 = vpop.f32.mrf.mxu0  ;;  %vm1122_vm8 = vcmp.gt.f32.partialorder %v619_v3, 0.0  ;;  %v1154_v7 = vmul.f32 0.2, %v619_v3  ;;  %v1185_v12 = vsel %vm1121_vm6, %v617_v61, %v1153_v2 }
  0xff   : > { %vm1120_vm7 = vcmp.gt.f32.partialorder %v578_v0, 0.0  ;;  %v1152_v5 = vmul.f32 0.2, %v578_v0  ;;  %v1183_v9 = vsel %vm1119_vm5, %v576_v59, %v1151_v63  ;;  %v621_v11 = vpop.f32.mrf.mxu1 }
 0x100   : > { %v580_v8 = vpop.f32.mrf.mxu0  ;;  %v1186_v14 = vsel %vm1122_vm8, %v619_v3, %v1154_v7 }
 0x101   : > { %v1184_v10 = vsel %vm1120_vm7, %v578_v0, %v1152_v5  ;;  %v1498_v16 = vpack.c.bf16 %v1186_v14, %v1185_v12  ;;  %v698_v18 = vpop.f32.mrf.mxu1 }
 0x102   : > { %v1497_v13 = vpack.c.bf16 %v1184_v10, %v1183_v9  ;;  %v657_v15 = vpop.f32.mrf.mxu0  ;;  %v699_v19 = vadd.f32 %v698_v18, %v1780_v36 }
 0x103   : > { %v658_v17 = vadd.f32 %v657_v15, %v1780_v36  ;;  %1342 = vst [vmem:[%s1789_s11 + $0x18] sm:$0xff] %v1498_v16  ;;  %v700_v23 = vpop.f32.mrf.mxu1 }
 0x104   : > { %1341 = vst [vmem:[%s1789_s11 + $0x10] sm:$0xff] %v1497_v13  ;;  %v659_v20 = vpop.f32.mrf.mxu0  ;;  %v1157_v24 = vmul.f32 0.2, %v699_v19  ;;  %v701_v25 = vadd.f32 %v700_v23, %v1780_v36  ;;  %vm1125_vm10 = vcmp.gt.f32.partialorder %v699_v19, 0.0 }
 0x105   : > { %v1155_v21 = vmul.f32 0.2, %v658_v17  ;;  %v660_v22 = vadd.f32 %v659_v20, %v1780_v36  ;;  %vm1123_vm9 = vcmp.gt.f32.partialorder %v658_v17, 0.0  ;;  %v702_v28 = vpop.f32.mrf.mxu1 }
 0x106   : > { %v661_v26 = vpop.f32.mrf.mxu0  ;;  %vm1126_vm12 = vcmp.gt.f32.partialorder %v701_v25, 0.0  ;;  %v1158_v29 = vmul.f32 0.2, %v701_v25  ;;  %v1189_v35 = vsel %vm1125_vm10, %v699_v19, %v1157_v24 }
 0x107   : > { %vm1124_vm11 = vcmp.gt.f32.partialorder %v660_v22, 0.0  ;;  %v1156_v27 = vmul.f32 0.2, %v660_v22  ;;  %v1187_v31 = vsel %vm1123_vm9, %v658_v17, %v1155_v21  ;;  %v703_v34 = vpop.f32.mrf.mxu1 }
 0x108   : > { %v662_v30 = vpop.f32.mrf.mxu0  ;;  %v1190_v38 = vsel %vm1126_vm12, %v701_v25, %v1158_v29 }
 0x109   : > { %v1188_v32 = vsel %vm1124_vm11, %v660_v22, %v1156_v27  ;;  %v1500_v40 = vpack.c.bf16 %v1190_v38, %v1189_v35  ;;  %v780_v33 = vpop.f32.mrf.mxu1 }
 0x10a   : > { %v1499_v37 = vpack.c.bf16 %v1188_v32, %v1187_v31  ;;  %v739_v39 = vpop.f32.mrf.mxu0  ;;  %v781_v42 = vadd.f32 %v780_v33, %v1780_v36 }
 0x10b   : > { %v740_v41 = vadd.f32 %v739_v39, %v1780_v36  ;;  %1344 = vst [vmem:[%s1789_s11 + $0x28] sm:$0xff] %v1500_v40  ;;  %v782_v46 = vpop.f32.mrf.mxu1 }
 0x10c   : > { %1343 = vst [vmem:[%s1789_s11 + $0x20] sm:$0xff] %v1499_v37  ;;  %v741_v43 = vpop.f32.mrf.mxu0  ;;  %v1161_v47 = vmul.f32 0.2, %v781_v42  ;;  %v783_v48 = vadd.f32 %v782_v46, %v1780_v36  ;;  %vm1129_vm14 = vcmp.gt.f32.partialorder %v781_v42, 0.0 }
 0x10d   : > { %v1159_v44 = vmul.f32 0.2, %v740_v41  ;;  %v742_v45 = vadd.f32 %v741_v43, %v1780_v36  ;;  %vm1127_vm13 = vcmp.gt.f32.partialorder %v740_v41, 0.0  ;;  %v784_v51 = vpop.f32.mrf.mxu1 }
 0x10e   : > { %v743_v49 = vpop.f32.mrf.mxu0  ;;  %vm1130_vm0 = vcmp.gt.f32.partialorder %v783_v48, 0.0  ;;  %v1162_v52 = vmul.f32 0.2, %v783_v48  ;;  %v1193_v57 = vsel %vm1129_vm14, %v781_v42, %v1161_v47 }
 0x10f   : > { %vm1128_vm15 = vcmp.gt.f32.partialorder %v742_v45, 0.0  ;;  %v1160_v50 = vmul.f32 0.2, %v742_v45  ;;  %v1191_v54 = vsel %vm1127_vm13, %v740_v41, %v1159_v44  ;;  %v785_v56 = vpop.f32.mrf.mxu1 }
 0x110   : > { %v744_v53 = vpop.f32.mrf.mxu0  ;;  %v1194_v59 = vsel %vm1130_vm0, %v783_v48, %v1162_v52 }
 0x111   : > { %v1192_v55 = vsel %vm1128_vm15, %v742_v45, %v1160_v50  ;;  %v1502_v61 = vpack.c.bf16 %v1194_v59, %v1193_v57  ;;  %v862_v63 = vpop.f32.mrf.mxu1 }
 0x112   : > { %v1501_v58 = vpack.c.bf16 %v1192_v55, %v1191_v54  ;;  %v821_v60 = vpop.f32.mrf.mxu0  ;;  %v863_v0 = vadd.f32 %v862_v63, %v1780_v36 }
 0x113   : > { %v822_v62 = vadd.f32 %v821_v60, %v1780_v36  ;;  %1346 = vst [vmem:[%s1789_s11 + $0x38] sm:$0xff] %v1502_v61  ;;  %v864_v4 = vpop.f32.mrf.mxu1 }
 0x114   : > { %1345 = vst [vmem:[%s1789_s11 + $0x30] sm:$0xff] %v1501_v58  ;;  %v823_v1 = vpop.f32.mrf.mxu0  ;;  %v1165_v5 = vmul.f32 0.2, %v863_v0  ;;  %v865_v6 = vadd.f32 %v864_v4, %v1780_v36  ;;  %vm1133_vm2 = vcmp.gt.f32.partialorder %v863_v0, 0.0 }
 0x115   : > { %v1163_v2 = vmul.f32 0.2, %v822_v62  ;;  %v824_v3 = vadd.f32 %v823_v1, %v1780_v36  ;;  %vm1131_vm1 = vcmp.gt.f32.partialorder %v822_v62, 0.0  ;;  %v866_v9 = vpop.f32.mrf.mxu1 }
 0x116   : > { %v825_v7 = vpop.f32.mrf.mxu0  ;;  %vm1134_vm4 = vcmp.gt.f32.partialorder %v865_v6, 0.0  ;;  %v1166_v10 = vmul.f32 0.2, %v865_v6  ;;  %v1197_v15 = vsel %vm1133_vm2, %v863_v0, %v1165_v5 }
 0x117   : > { %vm1132_vm3 = vcmp.gt.f32.partialorder %v824_v3, 0.0  ;;  %v1164_v8 = vmul.f32 0.2, %v824_v3  ;;  %v1195_v12 = vsel %vm1131_vm1, %v822_v62, %v1163_v2  ;;  %v867_v14 = vpop.f32.mrf.mxu1 }
 0x118   : > { %v826_v11 = vpop.f32.mrf.mxu0  ;;  %v1198_v17 = vsel %vm1134_vm4, %v865_v6, %v1166_v10 }
 0x119   : > { %v1196_v13 = vsel %vm1132_vm3, %v824_v3, %v1164_v8  ;;  %v1504_v19 = vpack.c.bf16 %v1198_v17, %v1197_v15  ;;  %v944_v21 = vpop.f32.mrf.mxu1 }
 0x11a   : > { %v1503_v16 = vpack.c.bf16 %v1196_v13, %v1195_v12  ;;  %v903_v18 = vpop.f32.mrf.mxu0  ;;  %v945_v22 = vadd.f32 %v944_v21, %v1780_v36 }
 0x11b   : > { %v904_v20 = vadd.f32 %v903_v18, %v1780_v36  ;;  %1348 = vst [vmem:[%s1789_s11 + $0x48] sm:$0xff] %v1504_v19  ;;  %v946_v26 = vpop.f32.mrf.mxu1 }
 0x11c   : > { %1347 = vst [vmem:[%s1789_s11 + $0x40] sm:$0xff] %v1503_v16  ;;  %v905_v23 = vpop.f32.mrf.mxu0  ;;  %v1169_v27 = vmul.f32 0.2, %v945_v22  ;;  %v947_v28 = vadd.f32 %v946_v26, %v1780_v36  ;;  %vm1137_vm6 = vcmp.gt.f32.partialorder %v945_v22, 0.0 }
 0x11d   : > { %v1167_v24 = vmul.f32 0.2, %v904_v20  ;;  %v906_v25 = vadd.f32 %v905_v23, %v1780_v36  ;;  %vm1135_vm5 = vcmp.gt.f32.partialorder %v904_v20, 0.0  ;;  %v948_v31 = vpop.f32.mrf.mxu1 }
 0x11e   : > { %v907_v29 = vpop.f32.mrf.mxu0  ;;  %vm1138_vm8 = vcmp.gt.f32.partialorder %v947_v28, 0.0  ;;  %v1170_v32 = vmul.f32 0.2, %v947_v28  ;;  %v1201_v39 = vsel %vm1137_vm6, %v945_v22, %v1169_v27 }
 0x11f   : > { %vm1136_vm7 = vcmp.gt.f32.partialorder %v906_v25, 0.0  ;;  %v1168_v30 = vmul.f32 0.2, %v906_v25  ;;  %v1199_v35 = vsel %vm1135_vm5, %v904_v20, %v1167_v24  ;;  %v949_v38 = vpop.f32.mrf.mxu1 }
 0x120   : > { %v908_v34 = vpop.f32.mrf.mxu0  ;;  %v1202_v41 = vsel %vm1138_vm8, %v947_v28, %v1170_v32 }
 0x121   : > { %v1200_v37 = vsel %vm1136_vm7, %v906_v25, %v1168_v30  ;;  %v1506_v42 = vpack.c.bf16 %v1202_v41, %v1201_v39  ;;  %v1026_v44 = vpop.f32.mrf.mxu1 }
 0x122   : > { %v1505_v40 = vpack.c.bf16 %v1200_v37, %v1199_v35  ;;  %v985_v33 = vpop.f32.mrf.mxu0  ;;  %v1027_v45 = vadd.f32 %v1026_v44, %v1780_v36 }
 0x123   : > { %v986_v43 = vadd.f32 %v985_v33, %v1780_v36  ;;  %1350 = vst [vmem:[%s1789_s11 + $0x58] sm:$0xff] %v1506_v42  ;;  %v1028_v49 = vpop.f32.mrf.mxu1 }
 0x124   : > { %1349 = vst [vmem:[%s1789_s11 + $0x50] sm:$0xff] %v1505_v40  ;;  %v987_v46 = vpop.f32.mrf.mxu0  ;;  %v1173_v50 = vmul.f32 0.2, %v1027_v45  ;;  %v1029_v51 = vadd.f32 %v1028_v49, %v1780_v36  ;;  %vm1141_vm10 = vcmp.gt.f32.partialorder %v1027_v45, 0.0 }
 0x125   : > { %v1171_v47 = vmul.f32 0.2, %v986_v43  ;;  %v988_v48 = vadd.f32 %v987_v46, %v1780_v36  ;;  %vm1139_vm9 = vcmp.gt.f32.partialorder %v986_v43, 0.0  ;;  %v1030_v54 = vpop.f32.mrf.mxu1 }
 0x126   : > { %v989_v52 = vpop.f32.mrf.mxu0  ;;  %vm1142_vm12 = vcmp.gt.f32.partialorder %v1029_v51, 0.0  ;;  %v1174_v55 = vmul.f32 0.2, %v1029_v51  ;;  %v1205_v60 = vsel %vm1141_vm10, %v1027_v45, %v1173_v50 }
 0x127   : > { %vm1140_vm11 = vcmp.gt.f32.partialorder %v988_v48, 0.0  ;;  %v1172_v53 = vmul.f32 0.2, %v988_v48  ;;  %v1203_v57 = vsel %vm1139_vm9, %v986_v43, %v1171_v47  ;;  %v1031_v59 = vpop.f32.mrf.mxu1 }
 0x128   : > { %v990_v56 = vpop.f32.mrf.mxu0  ;;  %v1206_v62 = vsel %vm1142_vm12, %v1029_v51, %v1174_v55 }
 0x129   : > { %v1204_v58 = vsel %vm1140_vm11, %v988_v48, %v1172_v53  ;;  %v1508_v0 = vpack.c.bf16 %v1206_v62, %v1205_v60  ;;  %v1108_v2 = vpop.f32.mrf.mxu1 }
 0x12a   : > { %v1507_v61 = vpack.c.bf16 %v1204_v58, %v1203_v57  ;;  %v1067_v63 = vpop.f32.mrf.mxu0  ;;  %v1109_v3 = vadd.f32 %v1108_v2, %v1780_v36 }
 0x12b   : > { %v1068_v1 = vadd.f32 %v1067_v63, %v1780_v36  ;;  %1352 = vst [vmem:[%s1789_s11 + $0x68] sm:$0xff] %v1508_v0  ;;  %v1110_v7 = vpop.f32.mrf.mxu1 }
 0x12c   : > { %1351 = vst [vmem:[%s1789_s11 + $0x60] sm:$0xff] %v1507_v61  ;;  %v1069_v4 = vpop.f32.mrf.mxu0  ;;  %v1177_v8 = vmul.f32 0.2, %v1109_v3  ;;  %v1111_v9 = vadd.f32 %v1110_v7, %v1780_v36  ;;  %vm1145_vm14 = vcmp.gt.f32.partialorder %v1109_v3, 0.0 }
 0x12d   : > { %v1175_v5 = vmul.f32 0.2, %v1068_v1  ;;  %v1070_v6 = vadd.f32 %v1069_v4, %v1780_v36  ;;  %vm1143_vm13 = vcmp.gt.f32.partialorder %v1068_v1, 0.0  ;;  %v1112_v12 = vpop.f32.mrf.mxu1 }
 0x12e   : > { %v1071_v10 = vpop.f32.mrf.mxu0  ;;  %vm1146_vm0 = vcmp.gt.f32.partialorder %v1111_v9, 0.0  ;;  %v1178_v13 = vmul.f32 0.2, %v1111_v9  ;;  %v1209_v18 = vsel %vm1145_vm14, %v1109_v3, %v1177_v8 }
 0x12f   : > { %vm1144_vm15 = vcmp.gt.f32.partialorder %v1070_v6, 0.0  ;;  %v1176_v11 = vmul.f32 0.2, %v1070_v6  ;;  %v1207_v15 = vsel %vm1143_vm13, %v1068_v1, %v1175_v5  ;;  %v1113_v17 = vpop.f32.mrf.mxu1 }
 0x130   : > { %v1072_v14 = vpop.f32.mrf.mxu0  ;;  %v1210_v20 = vsel %vm1146_vm0, %v1111_v9, %v1178_v13 }
 0x131   : > { %v1208_v16 = vsel %vm1144_vm15, %v1070_v6, %v1176_v11  ;;  %v1510_v21 = vpack.c.bf16 %v1210_v20, %v1209_v18 }
 0x132   : > { %v1509_v19 = vpack.c.bf16 %v1208_v16, %v1207_v15 }
 0x133   : > { %1354 = vst [vmem:[%s1789_s11 + $0x78] sm:$0xff] %v1510_v21 }
 0x134   : > { %1353 = vst [vmem:[%s1789_s11 + $0x70] sm:$0xff] %v1509_v19 }
 0x135 PF: > { %p10_p9 = scmp.ge.s32.totalorder %s1599_s16, 4   ;;  %s1849_s12 = smov %s1555_s13 }
 0x136   : > { %s1850_s13 = smov %s1608_s19  ;;  %s1851_s14 = smov %s1599_s16 }
 0x137   :  { %12 = sbr.rel (!%p10_p9) target bundleno = 2 (0x2), region = 90 }

// kernel: vae_forward.8
= control target key start
LH: loop header
LB: loop body
LE: loop exit
PB: predicated region body
PF: predicated region fallthrough
CT: control target
= control target key end

     0   :  { %v1523_v3 = vmov 0   ;;  %s2040_s1 = inlined_call_operand.vmem [shape: bf16[128,2048], index: 1, kind: input, shape index: {}]   ;;  %s2041_s0 = inlined_call_operand.vmem [shape: bf16[16,128], index: 0, kind: input, shape index: {}]   ;;  %s2042_s2 = inlined_call_operand.vmem [shape: f32[16,1], index: 2, kind: input, shape index: {}]   ;;  %s2043_s3 = inlined_call_operand.vmem [shape: bf16[16,2048], index: 3, kind: output, shape index: {}]  }
   0x1   :  { %v129_v0 = vld [vmem:[%s2040_s1 + $0x380] sm:$0xff]  ;;  %v130_v2 = vld [vmem:[%s2040_s1 + $0x388] sm:$0xff]  ;;  %835 = vmatprep.mubr.bf16.mxu0 %v1523_v3  ;;  %878 = vmatprep.mubr.bf16.mxu1 %v1523_v3  ;;  %v131_v63 = vld [vmem:[%s2040_s1 + $0x390] sm:$0xff] }
   0x2   :  { %v137_v1 = vld [vmem:[%s2040_s1 + $0x3c0] sm:$0xff]  ;;  %v138_v5 = vld [vmem:[%s2040_s1 + $0x3c8] sm:$0xff]  ;;  %1521 = vset.pattern.permute.xlu0 %v1523_v3 }
   0x3   :  { %v1473_v4 = vcombine.high %v129_v0, %v137_v1  ;;  %v1472_v6 = vcombine.low %v129_v0, %v137_v1  ;;  %v113_v7 = vld [vmem:[%s2040_s1 + $0x300] sm:$0xff]  ;;  %v1475_v9 = vcombine.high %v130_v2, %v138_v5  ;;  %v1474_v10 = vcombine.low %v130_v2, %v138_v5  ;;  %v114_v12 = vld [vmem:[%s2040_s1 + $0x308] sm:$0xff]  ;;  %v139_v0 = vld [vmem:[%s2040_s1 + $0x3d0] sm:$0xff] }
   0x4   :  { %v121_v8 = vld [vmem:[%s2040_s1 + $0x340] sm:$0xff]  ;;  %v122_v13 = vld [vmem:[%s2040_s1 + $0x348] sm:$0xff]  ;;  %v132_v1 = vld [vmem:[%s2040_s1 + $0x398] sm:$0xff] }
   0x5   :  { %v1457_v11 = vcombine.high %v113_v7, %v121_v8  ;;  %v97_v14 = vld [vmem:[%s2040_s1 + $0x280] sm:$0xff]  ;;  %803 = vmatprep.subr.bf16.mxu0 %v1473_v4  ;;  %v1459_v15 = vcombine.high %v114_v12, %v122_v13  ;;  %v98_v17 = vld [vmem:[%s2040_s1 + $0x288] sm:$0xff]  ;;  %846 = vmatprep.subr.bf16.mxu1 %v1475_v9  ;;  %v1456_v19 = vcombine.low %v113_v7, %v121_v8  ;;  %v140_v2 = vld [vmem:[%s2040_s1 + $0x3d8] sm:$0xff] }
   0x6   :  { %v105_v16 = vld [vmem:[%s2040_s1 + $0x2c0] sm:$0xff]  ;;  %v106_v18 = vld [vmem:[%s2040_s1 + $0x2c8] sm:$0xff]  ;;  %804 = vmatpush1.bf16.msra.mxu0 %v1472_v6  ;;  %847 = vmatpush1.bf16.msra.mxu1 %v1474_v10  ;;  %v1458_v20 = vcombine.low %v114_v12, %v122_v13  ;;  %v1477_v6 = vcombine.high %v131_v63, %v139_v0  ;;  %v1479_v7 = vcombine.high %v132_v1, %v140_v2  ;;  %v115_v8 = vld [vmem:[%s2040_s1 + $0x310] sm:$0xff] }
   0x7   :  { %805 = vmatprep.subr.bf16.mxu0 %v1457_v11  ;;  %v1441_v21 = vcombine.high %v97_v14, %v105_v16  ;;  %848 = vmatprep.subr.bf16.mxu1 %v1459_v15  ;;  %v1443_v22 = vcombine.high %v98_v17, %v106_v18  ;;  %v81_v23 = vld [vmem:[%s2040_s1 + $0x200] sm:$0xff]  ;;  %v82_v25 = vld [vmem:[%s2040_s1 + $0x208] sm:$0xff]  ;;  %v1440_v27 = vcombine.low %v97_v14, %v105_v16  ;;  %v123_v9 = vld [vmem:[%s2040_s1 + $0x350] sm:$0xff] }
   0x8   :  { %v89_v24 = vld [vmem:[%s2040_s1 + $0x240] sm:$0xff]  ;;  %v90_v26 = vld [vmem:[%s2040_s1 + $0x248] sm:$0xff]  ;;  %v1442_v28 = vcombine.low %v98_v17, %v106_v18  ;;  %v116_v11 = vld [vmem:[%s2040_s1 + $0x318] sm:$0xff]  ;;  %v1476_v13 = vcombine.low %v131_v63, %v139_v0  ;;  %v1478_v14 = vcombine.low %v132_v1, %v140_v2  ;;  %v1461_v15 = vcombine.high %v115_v8, %v123_v9 }
   0x9   :  { %v1425_v29 = vcombine.high %v81_v23, %v89_v24  ;;  %v1427_v30 = vcombine.high %v82_v25, %v90_v26  ;;  %v65_v31 = vld [vmem:[%s2040_s1 + $0x180] sm:$0xff]  ;;  %v66_v33 = vld [vmem:[%s2040_s1 + $0x188] sm:$0xff]  ;;  %v1424_v35 = vcombine.low %v81_v23, %v89_v24  ;;  %v1426_v36 = vcombine.low %v82_v25, %v90_v26  ;;  %v124_v12 = vld [vmem:[%s2040_s1 + $0x358] sm:$0xff] }
   0xa   :  { %806 = vmatpush1.bf16.msra.mxu0 %v1456_v19  ;;  %849 = vmatpush1.bf16.msra.mxu1 %v1458_v20  ;;  %v73_v32 = vld [vmem:[%s2040_s1 + $0x1c0] sm:$0xff]  ;;  %v74_v34 = vld [vmem:[%s2040_s1 + $0x1c8] sm:$0xff]  ;;  %v1463_v16 = vcombine.high %v116_v11, %v124_v12  ;;  %v99_v17 = vld [vmem:[%s2040_s1 + $0x290] sm:$0xff]  ;;  %v1462_v23 = vcombine.low %v116_v11, %v124_v12 }
   0xb   :  { %807 = vmatprep.subr.bf16.mxu0 %v1441_v21  ;;  %850 = vmatprep.subr.bf16.mxu1 %v1443_v22  ;;  %v1409_v37 = vcombine.high %v65_v31, %v73_v32  ;;  %v1411_v38 = vcombine.high %v66_v33, %v74_v34  ;;  %v49_v39 = vld [vmem:[%s2040_s1 + $0x100] sm:$0xff]  ;;  %v50_v41 = vld [vmem:[%s2040_s1 + $0x108] sm:$0xff]  ;;  %v1408_v43 = vcombine.low %v65_v31, %v73_v32  ;;  %v107_v18 = vld [vmem:[%s2040_s1 + $0x2d0] sm:$0xff] }
   0xc   :  { %v57_v40 = vld [vmem:[%s2040_s1 + $0x140] sm:$0xff]  ;;  %v58_v42 = vld [vmem:[%s2040_s1 + $0x148] sm:$0xff]  ;;  %v1410_v44 = vcombine.low %v66_v33, %v74_v34  ;;  %v100_v19 = vld [vmem:[%s2040_s1 + $0x298] sm:$0xff]  ;;  %v1460_v21 = vcombine.low %v115_v8, %v123_v9  ;;  %v1445_v24 = vcombine.high %v99_v17, %v107_v18 }
   0xd   :  { %v1393_v45 = vcombine.high %v49_v39, %v57_v40  ;;  %v1395_v46 = vcombine.high %v50_v41, %v58_v42  ;;  %v33_v47 = vld [vmem:[%s2040_s1 + $0x80] sm:$0xff]  ;;  %v34_v49 = vld [vmem:[%s2040_s1 + $0x88] sm:$0xff]  ;;  %v1392_v51 = vcombine.low %v49_v39, %v57_v40  ;;  %v1394_v52 = vcombine.low %v50_v41, %v58_v42  ;;  %v108_v20 = vld [vmem:[%s2040_s1 + $0x2d8] sm:$0xff] }
   0xe   :  { %808 = vmatpush1.bf16.msra.mxu0 %v1440_v27  ;;  %851 = vmatpush1.bf16.msra.mxu1 %v1442_v28  ;;  %v41_v48 = vld [vmem:[%s2040_s1 + $0xc0] sm:$0xff]  ;;  %v42_v50 = vld [vmem:[%s2040_s1 + $0xc8] sm:$0xff]  ;;  %v1447_v25 = vcombine.high %v100_v19, %v108_v20  ;;  %v83_v26 = vld [vmem:[%s2040_s1 + $0x210] sm:$0xff]  ;;  %v1446_v32 = vcombine.low %v100_v19, %v108_v20 }
   0xf   :  { %809 = vmatprep.subr.bf16.mxu0 %v1425_v29  ;;  %852 = vmatprep.subr.bf16.mxu1 %v1427_v30  ;;  %v1377_v53 = vcombine.high %v33_v47, %v41_v48  ;;  %v1379_v54 = vcombine.high %v34_v49, %v42_v50  ;;  %v17_v55 = vld [vmem:[%s2040_s1] sm:$0xff]  ;;  %v18_v57 = vld [vmem:[%s2040_s1 + $0x8] sm:$0xff]  ;;  %v1376_v59 = vcombine.low %v33_v47, %v41_v48  ;;  %v91_v27 = vld [vmem:[%s2040_s1 + $0x250] sm:$0xff] }
  0x10   :  { %v25_v56 = vld [vmem:[%s2040_s1 + $0x40] sm:$0xff]  ;;  %v26_v58 = vld [vmem:[%s2040_s1 + $0x48] sm:$0xff]  ;;  %v1378_v60 = vcombine.low %v34_v49, %v42_v50  ;;  %v84_v28 = vld [vmem:[%s2040_s1 + $0x218] sm:$0xff]  ;;  %v1444_v30 = vcombine.low %v99_v17, %v107_v18  ;;  %v1429_v33 = vcombine.high %v83_v26, %v91_v27  ;;  %v1428_v39 = vcombine.low %v83_v26, %v91_v27 }
  0x11   :  { %v1361_v61 = vcombine.high %v17_v55, %v25_v56  ;;  %v1363_v62 = vcombine.high %v18_v57, %v26_v58  ;;  %v1360_v4 = vcombine.low %v17_v55, %v25_v56  ;;  %v1362_v5 = vcombine.low %v18_v57, %v26_v58  ;;  %v1664_v10 = vld [vmem:[%s2041_s0] sm:$0xff]   ;;  %v92_v29 = vld [vmem:[%s2040_s1 + $0x258] sm:$0xff]  ;;  %v146_v31 = vld [vmem:[%s2042_s2 + $0x8] sm:$0xff] }
  0x12   :  { %810 = vmatpush1.bf16.msra.mxu0 %v1424_v35  ;;  %853 = vmatpush1.bf16.msra.mxu1 %v1426_v36  ;;  %v145_v22 = vld [vmem:[%s2042_s2] sm:$0xff]  ;;  %v1431_v34 = vcombine.high %v84_v28, %v92_v29  ;;  %v67_v35 = vld [vmem:[%s2040_s1 + $0x190] sm:$0xff]  ;;  %v1430_v40 = vcombine.low %v84_v28, %v92_v29 }
  0x13   :  { %811 = vmatprep.subr.bf16.mxu0 %v1409_v37  ;;  %854 = vmatprep.subr.bf16.mxu1 %v1411_v38  ;;  %v75_v36 = vld [vmem:[%s2040_s1 + $0x1d0] sm:$0xff]  ;;  %v68_v37 = vld [vmem:[%s2040_s1 + $0x198] sm:$0xff]  ;;  %v85_v29 = vld [vmem:[%s2040_s1 + $0x220] sm:$0xff] }
  0x14   :  { %149 = vperm.xlu0 %1521, %v145_v22   ;;  %v76_v38 = vld [vmem:[%s2040_s1 + $0x1d8] sm:$0xff]  ;;  %v1413_v41 = vcombine.high %v67_v35, %v75_v36  ;;  %v1412_v47 = vcombine.low %v67_v35, %v75_v36  ;;  %v109_v22 = vld [vmem:[%s2040_s1 + $0x2e0] sm:$0xff] }
  0x15   :  { %v1415_v42 = vcombine.high %v68_v37, %v76_v38  ;;  %v1414_v48 = vcombine.low %v68_v37, %v76_v38  ;;  %v69_v37 = vld [vmem:[%s2040_s1 + $0x1a0] sm:$0xff] }
  0x16   :  { %812 = vmatpush1.bf16.msra.mxu0 %v1408_v43  ;;  %855 = vmatpush1.bf16.msra.mxu1 %v1410_v44  ;;  %v51_v43 = vld [vmem:[%s2040_s1 + $0x110] sm:$0xff]  ;;  %v77_v38 = vld [vmem:[%s2040_s1 + $0x1e0] sm:$0xff] }
  0x17   :  { %813 = vmatprep.subr.bf16.mxu0 %v1393_v45  ;;  %856 = vmatprep.subr.bf16.mxu1 %v1395_v46  ;;  %v59_v44 = vld [vmem:[%s2040_s1 + $0x150] sm:$0xff]  ;;  %v52_v45 = vld [vmem:[%s2040_s1 + $0x118] sm:$0xff] }
  0x18   :  { %154 = vperm.xlu0 %1521, %v146_v31   ;;  %v60_v46 = vld [vmem:[%s2040_s1 + $0x158] sm:$0xff]  ;;  %v1397_v49 = vcombine.high %v51_v43, %v59_v44  ;;  %v1396_v55 = vcombine.low %v51_v43, %v59_v44  ;;  %v86_v31 = vld [vmem:[%s2040_s1 + $0x228] sm:$0xff]  ;;  %v1417_v43 = vcombine.high %v69_v37, %v77_v38 }
  0x19   :  { %v1399_v50 = vcombine.high %v52_v45, %v60_v46  ;;  %v1398_v56 = vcombine.low %v52_v45, %v60_v46  ;;  %v53_v45 = vld [vmem:[%s2040_s1 + $0x120] sm:$0xff] }
  0x1a   :  { %814 = vmatpush1.bf16.msra.mxu0 %v1392_v51  ;;  %857 = vmatpush1.bf16.msra.mxu1 %v1394_v52  ;;  %v35_v51 = vld [vmem:[%s2040_s1 + $0x90] sm:$0xff]  ;;  %v61_v46 = vld [vmem:[%s2040_s1 + $0x160] sm:$0xff] }
  0x1b   :  { %815 = vmatprep.subr.bf16.mxu0 %v1377_v53  ;;  %858 = vmatprep.subr.bf16.mxu1 %v1379_v54  ;;  %v43_v52 = vld [vmem:[%s2040_s1 + $0xd0] sm:$0xff]  ;;  %v36_v53 = vld [vmem:[%s2040_s1 + $0x98] sm:$0xff] }
  0x1c   :  { %v44_v54 = vld [vmem:[%s2040_s1 + $0xd8] sm:$0xff]  ;;  %v1381_v57 = vcombine.high %v35_v51, %v43_v52  ;;  %v1380_v63 = vcombine.low %v35_v51, %v43_v52  ;;  %v1401_v51 = vcombine.high %v53_v45, %v61_v46 }
  0x1d   :  { %v1383_v58 = vcombine.high %v36_v53, %v44_v54  ;;  %v1382_v0 = vcombine.low %v36_v53, %v44_v54  ;;  %v37_v53 = vld [vmem:[%s2040_s1 + $0xa0] sm:$0xff] }
  0x1e   :  { %816 = vmatpush1.bf16.msra.mxu0 %v1376_v59  ;;  %859 = vmatpush1.bf16.msra.mxu1 %v1378_v60  ;;  %v19_v59 = vld [vmem:[%s2040_s1 + $0x10] sm:$0xff]  ;;  %v45_v54 = vld [vmem:[%s2040_s1 + $0xe0] sm:$0xff] }
  0x1f   :  { %817 = vmatprep.subr.bf16.mxu0 %v1361_v61  ;;  %860 = vmatprep.subr.bf16.mxu1 %v1363_v62  ;;  %v27_v60 = vld [vmem:[%s2040_s1 + $0x50] sm:$0xff]  ;;  %v20_v61 = vld [vmem:[%s2040_s1 + $0x18] sm:$0xff] }
  0x20   :  { %v28_v62 = vld [vmem:[%s2040_s1 + $0x58] sm:$0xff]  ;;  %v1365_v1 = vcombine.high %v19_v59, %v27_v60  ;;  %v1364_v8 = vcombine.low %v19_v59, %v27_v60  ;;  %v1385_v59 = vcombine.high %v37_v53, %v45_v54 }
  0x21   :  { %v1367_v2 = vcombine.high %v20_v61, %v28_v62  ;;  %v1366_v9 = vcombine.low %v20_v61, %v28_v62  ;;  %v21_v61 = vld [vmem:[%s2040_s1 + $0x20] sm:$0xff] }
  0x22   :  { %818 = vmatpush1.bf16.msra.mxu0 %v1360_v4  ;;  %861 = vmatpush1.bf16.msra.mxu1 %v1362_v5  ;;  %v133_v4 = vld [vmem:[%s2040_s1 + $0x3a0] sm:$0xff] }
  0x23   :  { %889 = vmatprep.subr.bf16.mxu0 %v1477_v6  ;;  %932 = vmatprep.subr.bf16.mxu1 %v1479_v7  ;;  %v141_v5 = vld [vmem:[%s2040_s1 + $0x3e0] sm:$0xff]  ;;  %v134_v6 = vld [vmem:[%s2040_s1 + $0x3a8] sm:$0xff] }
  0x24   :  { %v142_v7 = vld [vmem:[%s2040_s1 + $0x3e8] sm:$0xff]  ;;  %v1481_v11 = vcombine.high %v133_v4, %v141_v5  ;;  %v1480_v17 = vcombine.low %v133_v4, %v141_v5  ;;  %v29_v62 = vld [vmem:[%s2040_s1 + $0x60] sm:$0xff] }
  0x25   :  { %836 = vmatmul.mubr.bf16.vlgmr.msra.gmra.mxu0 %v1664_v10  ;;  %879 = vmatmul.mubr.bf16.vlgmr.msra.gmra.mxu1 %v1664_v10  ;;  %v1483_v12 = vcombine.high %v134_v6, %v142_v7  ;;  %v1482_v18 = vcombine.low %v134_v6, %v142_v7  ;;  %v1369_v4 = vcombine.high %v21_v61, %v29_v62  ;;  %v135_v6 = vld [vmem:[%s2040_s1 + $0x3b0] sm:$0xff] }
  0x26   :  { %890 = vmatpush1.bf16.msra.mxu0 %v1476_v13  ;;  %933 = vmatpush1.bf16.msra.mxu1 %v1478_v14  ;;  %v117_v13 = vld [vmem:[%s2040_s1 + $0x320] sm:$0xff]  ;;  %v143_v7 = vld [vmem:[%s2040_s1 + $0x3f0] sm:$0xff] }
  0x27   :  { %891 = vmatprep.subr.bf16.mxu0 %v1461_v15  ;;  %934 = vmatprep.subr.bf16.mxu1 %v1463_v16  ;;  %v125_v14 = vld [vmem:[%s2040_s1 + $0x360] sm:$0xff]  ;;  %v118_v15 = vld [vmem:[%s2040_s1 + $0x328] sm:$0xff] }
  0x28   :  { %921 = vmatprep.mubr.bf16.mxu0 %v1523_v3  ;;  %964 = vmatprep.mubr.bf16.mxu1 %v1523_v3  ;;  %v126_v16 = vld [vmem:[%s2040_s1 + $0x368] sm:$0xff]  ;;  %v1465_v19 = vcombine.high %v117_v13, %v125_v14 }
  0x29   :  { %v1467_v20 = vcombine.high %v118_v15, %v126_v16  ;;  %v1466_v26 = vcombine.low %v118_v15, %v126_v16  ;;  %v119_v15 = vld [vmem:[%s2040_s1 + $0x330] sm:$0xff] }
  0x2a   :  { %892 = vmatpush1.bf16.msra.mxu0 %v1460_v21  ;;  %935 = vmatpush1.bf16.msra.mxu1 %v1462_v23  ;;  %v101_v21 = vld [vmem:[%s2040_s1 + $0x2a0] sm:$0xff]  ;;  %v102_v23 = vld [vmem:[%s2040_s1 + $0x2a8] sm:$0xff]  ;;  %v127_v16 = vld [vmem:[%s2040_s1 + $0x370] sm:$0xff] }
  0x2b   :  { %893 = vmatprep.subr.bf16.mxu0 %v1445_v24  ;;  %936 = vmatprep.subr.bf16.mxu1 %v1447_v25  ;;  %v110_v24 = vld [vmem:[%s2040_s1 + $0x2e8] sm:$0xff]  ;;  %v1464_v25 = vcombine.low %v117_v13, %v125_v14  ;;  %v1449_v27 = vcombine.high %v101_v21, %v109_v22  ;;  %v1485_v13 = vcombine.high %v135_v6, %v143_v7 }
  0x2c   :  { %v1451_v28 = vcombine.high %v102_v23, %v110_v24 }
  0x2e   :  { %894 = vmatpush1.bf16.msra.mxu0 %v1444_v30  ;;  %937 = vmatpush1.bf16.msra.mxu1 %v1446_v32  ;;  %v93_v30 = vld [vmem:[%s2040_s1 + $0x260] sm:$0xff]  ;;  %v94_v32 = vld [vmem:[%s2040_s1 + $0x268] sm:$0xff] }
  0x2f   :  { %895 = vmatprep.subr.bf16.mxu0 %v1429_v33  ;;  %938 = vmatprep.subr.bf16.mxu1 %v1431_v34  ;;  %v1448_v33 = vcombine.low %v101_v21, %v109_v22  ;;  %v1450_v34 = vcombine.low %v102_v23, %v110_v24  ;;  %v1433_v35 = vcombine.high %v85_v29, %v93_v30  ;;  %v103_v23 = vld [vmem:[%s2040_s1 + $0x2b0] sm:$0xff] }
  0x30   :  { %v1435_v36 = vcombine.high %v86_v31, %v94_v32  ;;  %v1469_v21 = vcombine.high %v119_v15, %v127_v16  ;;  %v111_v24 = vld [vmem:[%s2040_s1 + $0x2f0] sm:$0xff] }
  0x32   :  { %896 = vmatpush1.bf16.msra.mxu0 %v1428_v39  ;;  %939 = vmatpush1.bf16.msra.mxu1 %v1430_v40  ;;  %v70_v39 = vld [vmem:[%s2040_s1 + $0x1a8] sm:$0xff] }
  0x33   :  { %897 = vmatprep.subr.bf16.mxu0 %v1413_v41  ;;  %940 = vmatprep.subr.bf16.mxu1 %v1415_v42  ;;  %v78_v40 = vld [vmem:[%s2040_s1 + $0x1e8] sm:$0xff]  ;;  %v1432_v41 = vcombine.low %v85_v29, %v93_v30  ;;  %v1434_v42 = vcombine.low %v86_v31, %v94_v32  ;;  %v1453_v29 = vcombine.high %v103_v23, %v111_v24  ;;  %v87_v31 = vld [vmem:[%s2040_s1 + $0x230] sm:$0xff] }
  0x34   :  { %v1419_v44 = vcombine.high %v70_v39, %v78_v40  ;;  %v95_v32 = vld [vmem:[%s2040_s1 + $0x270] sm:$0xff] }
  0x36   :  { %898 = vmatpush1.bf16.msra.mxu0 %v1412_v47  ;;  %941 = vmatpush1.bf16.msra.mxu1 %v1414_v48  ;;  %v54_v47 = vld [vmem:[%s2040_s1 + $0x128] sm:$0xff] }
  0x37   :  { %899 = vmatprep.subr.bf16.mxu0 %v1397_v49  ;;  %942 = vmatprep.subr.bf16.mxu1 %v1399_v50  ;;  %v62_v48 = vld [vmem:[%s2040_s1 + $0x168] sm:$0xff]  ;;  %v1416_v49 = vcombine.low %v69_v37, %v77_v38  ;;  %v1418_v50 = vcombine.low %v70_v39, %v78_v40  ;;  %v1437_v37 = vcombine.high %v87_v31, %v95_v32  ;;  %v71_v39 = vld [vmem:[%s2040_s1 + $0x1b0] sm:$0xff] }
  0x38   :  { %v1403_v52 = vcombine.high %v54_v47, %v62_v48  ;;  %v79_v40 = vld [vmem:[%s2040_s1 + $0x1f0] sm:$0xff] }
  0x3a   :  { %900 = vmatpush1.bf16.msra.mxu0 %v1396_v55  ;;  %943 = vmatpush1.bf16.msra.mxu1 %v1398_v56  ;;  %v38_v55 = vld [vmem:[%s2040_s1 + $0xa8] sm:$0xff] }
  0x3b   :  { %901 = vmatprep.subr.bf16.mxu0 %v1381_v57  ;;  %944 = vmatprep.subr.bf16.mxu1 %v1383_v58  ;;  %v46_v56 = vld [vmem:[%s2040_s1 + $0xe8] sm:$0xff]  ;;  %v1400_v57 = vcombine.low %v53_v45, %v61_v46  ;;  %v1402_v58 = vcombine.low %v54_v47, %v62_v48  ;;  %v55_v46 = vld [vmem:[%s2040_s1 + $0x130] sm:$0xff]  ;;  %v56_v48 = vld [vmem:[%s2040_s1 + $0x138] sm:$0xff] }
  0x3c   :  { %v1387_v60 = vcombine.high %v38_v55, %v46_v56  ;;  %v63_v47 = vld [vmem:[%s2040_s1 + $0x170] sm:$0xff] }
  0x3e   :  { %902 = vmatpush1.bf16.msra.mxu0 %v1380_v63  ;;  %945 = vmatpush1.bf16.msra.mxu1 %v1382_v0  ;;  %v22_v63 = vld [vmem:[%s2040_s1 + $0x28] sm:$0xff] }
  0x3f   :  { %903 = vmatprep.subr.bf16.mxu0 %v1365_v1  ;;  %946 = vmatprep.subr.bf16.mxu1 %v1367_v2  ;;  %v30_v0 = vld [vmem:[%s2040_s1 + $0x68] sm:$0xff]  ;;  %v1384_v1 = vcombine.low %v37_v53, %v45_v54  ;;  %v1386_v2 = vcombine.low %v38_v55, %v46_v56  ;;  %v39_v54 = vld [vmem:[%s2040_s1 + $0xb0] sm:$0xff]  ;;  %v40_v56 = vld [vmem:[%s2040_s1 + $0xb8] sm:$0xff] }
  0x40   :  { %v1371_v5 = vcombine.high %v22_v63, %v30_v0  ;;  %v47_v55 = vld [vmem:[%s2040_s1 + $0xf0] sm:$0xff] }
  0x42   :  { %904 = vmatpush1.bf16.msra.mxu0 %v1364_v8  ;;  %947 = vmatpush1.bf16.msra.mxu1 %v1366_v9  ;;  %v136_v8 = vld [vmem:[%s2040_s1 + $0x3b8] sm:$0xff] }
  0x43   :  { %975 = vmatprep.subr.bf16.mxu0 %v1481_v11  ;;  %1018 = vmatprep.subr.bf16.mxu1 %v1483_v12  ;;  %v144_v9 = vld [vmem:[%s2040_s1 + $0x3f8] sm:$0xff]  ;;  %v1368_v11 = vcombine.low %v21_v61, %v29_v62  ;;  %v1370_v12 = vcombine.low %v22_v63, %v30_v0  ;;  %v23_v62 = vld [vmem:[%s2040_s1 + $0x30] sm:$0xff] }
  0x44   :  { %v1487_v14 = vcombine.high %v136_v8, %v144_v9  ;;  %v31_v63 = vld [vmem:[%s2040_s1 + $0x70] sm:$0xff]  ;;  %v24_v0 = vld [vmem:[%s2040_s1 + $0x38] sm:$0xff] }
  0x45   :  { %922 = vmatmul.mubr.bf16.vlgmr.msra.gmra.mxu0 %v1664_v10  ;;  %965 = vmatmul.mubr.bf16.vlgmr.msra.gmra.mxu1 %v1664_v10 }
  0x46   :  { %976 = vmatpush1.bf16.msra.mxu0 %v1480_v17  ;;  %1019 = vmatpush1.bf16.msra.mxu1 %v1482_v18  ;;  %v120_v17 = vld [vmem:[%s2040_s1 + $0x338] sm:$0xff] }
  0x47   :  { %977 = vmatprep.subr.bf16.mxu0 %v1465_v19  ;;  %1020 = vmatprep.subr.bf16.mxu1 %v1467_v20  ;;  %v128_v18 = vld [vmem:[%s2040_s1 + $0x378] sm:$0xff]  ;;  %v1484_v19 = vcombine.low %v135_v6, %v143_v7  ;;  %v1486_v20 = vcombine.low %v136_v8, %v144_v9  ;;  %v1372_v7 = vcombine.low %v23_v62, %v31_v63 }
  0x48   :  { %1007 = vmatprep.mubr.bf16.mxu0 %v1523_v3  ;;  %1050 = vmatprep.mubr.bf16.mxu1 %v1523_v3  ;;  %v1471_v22 = vcombine.high %v120_v17, %v128_v18 }
  0x4a   :  { %978 = vmatpush1.bf16.msra.mxu0 %v1464_v25  ;;  %1021 = vmatpush1.bf16.msra.mxu1 %v1466_v26  ;;  %v104_v25 = vld [vmem:[%s2040_s1 + $0x2b8] sm:$0xff] }
  0x4b   :  { %979 = vmatprep.subr.bf16.mxu0 %v1449_v27  ;;  %1022 = vmatprep.subr.bf16.mxu1 %v1451_v28  ;;  %v112_v26 = vld [vmem:[%s2040_s1 + $0x2f8] sm:$0xff]  ;;  %v1468_v27 = vcombine.low %v119_v15, %v127_v16  ;;  %v1470_v28 = vcombine.low %v120_v17, %v128_v18 }
  0x4c   :  { %v1455_v30 = vcombine.high %v104_v25, %v112_v26 }
  0x4e   :  { %980 = vmatpush1.bf16.msra.mxu0 %v1448_v33  ;;  %1023 = vmatpush1.bf16.msra.mxu1 %v1450_v34  ;;  %v88_v33 = vld [vmem:[%s2040_s1 + $0x238] sm:$0xff] }
  0x4f   :  { %981 = vmatprep.subr.bf16.mxu0 %v1433_v35  ;;  %1024 = vmatprep.subr.bf16.mxu1 %v1435_v36  ;;  %v96_v34 = vld [vmem:[%s2040_s1 + $0x278] sm:$0xff]  ;;  %v1452_v35 = vcombine.low %v103_v23, %v111_v24  ;;  %v1454_v36 = vcombine.low %v104_v25, %v112_v26 }
  0x50   :  { %v1439_v38 = vcombine.high %v88_v33, %v96_v34 }
  0x52   :  { %982 = vmatpush1.bf16.msra.mxu0 %v1432_v41  ;;  %1025 = vmatpush1.bf16.msra.mxu1 %v1434_v42  ;;  %v80_v41 = vld [vmem:[%s2040_s1 + $0x1f8] sm:$0xff]  ;;  %v1436_v42 = vcombine.low %v87_v31, %v95_v32 }
  0x53   :  { %983 = vmatprep.subr.bf16.mxu0 %v1417_v43  ;;  %1026 = vmatprep.subr.bf16.mxu1 %v1419_v44  ;;  %v1438_v43 = vcombine.low %v88_v33, %v96_v34  ;;  %v1421_v44 = vcombine.high %v71_v39, %v79_v40 }
  0x56   :  { %984 = vmatpush1.bf16.msra.mxu0 %v1416_v49  ;;  %1027 = vmatpush1.bf16.msra.mxu1 %v1418_v50  ;;  %v64_v49 = vld [vmem:[%s2040_s1 + $0x178] sm:$0xff]  ;;  %v1420_v50 = vcombine.low %v71_v39, %v79_v40 }
  0x57   :  { %985 = vmatprep.subr.bf16.mxu0 %v1401_v51  ;;  %1028 = vmatprep.subr.bf16.mxu1 %v1403_v52  ;;  %v1405_v52 = vcombine.high %v55_v46, %v63_v47  ;;  %v1407_v53 = vcombine.high %v56_v48, %v64_v49 }
  0x5a   :  { %986 = vmatpush1.bf16.msra.mxu0 %v1400_v57  ;;  %1029 = vmatpush1.bf16.msra.mxu1 %v1402_v58  ;;  %v48_v57 = vld [vmem:[%s2040_s1 + $0xf8] sm:$0xff]  ;;  %v1404_v58 = vcombine.low %v55_v46, %v63_v47 }
  0x5b   :  { %987 = vmatprep.subr.bf16.mxu0 %v1385_v59  ;;  %1030 = vmatprep.subr.bf16.mxu1 %v1387_v60  ;;  %v1406_v59 = vcombine.low %v56_v48, %v64_v49  ;;  %v1389_v60 = vcombine.high %v39_v54, %v47_v55  ;;  %v1391_v61 = vcombine.high %v40_v56, %v48_v57 }
  0x5e   :  { %988 = vmatpush1.bf16.msra.mxu0 %v1384_v1  ;;  %1031 = vmatpush1.bf16.msra.mxu1 %v1386_v2  ;;  %v32_v1 = vld [vmem:[%s2040_s1 + $0x78] sm:$0xff]  ;;  %v1388_v2 = vcombine.low %v39_v54, %v47_v55 }
  0x5f   :  { %989 = vmatprep.subr.bf16.mxu0 %v1369_v4  ;;  %1032 = vmatprep.subr.bf16.mxu1 %v1371_v5  ;;  %v1390_v4 = vcombine.low %v40_v56, %v48_v57  ;;  %v1373_v5 = vcombine.high %v23_v62, %v31_v63  ;;  %v1375_v6 = vcombine.high %v24_v0, %v32_v1 }
  0x60   :  { %v1374_v8 = vcombine.low %v24_v0, %v32_v1 }
  0x62   :  { %990 = vmatpush1.bf16.msra.mxu0 %v1368_v11  ;;  %1033 = vmatpush1.bf16.msra.mxu1 %v1370_v12 }
  0x63   :  { %1061 = vmatprep.subr.bf16.mxu0 %v1485_v13  ;;  %1104 = vmatprep.subr.bf16.mxu1 %v1487_v14 }
  0x65   :  { %1008 = vmatmul.mubr.bf16.vlgmr.msra.gmra.mxu0 %v1664_v10  ;;  %1051 = vmatmul.mubr.bf16.vlgmr.msra.gmra.mxu1 %v1664_v10 }
  0x66   :  { %1062 = vmatpush1.bf16.msra.mxu0 %v1484_v19  ;;  %1105 = vmatpush1.bf16.msra.mxu1 %v1486_v20 }
  0x67   :  { %1063 = vmatprep.subr.bf16.mxu0 %v1469_v21  ;;  %1106 = vmatprep.subr.bf16.mxu1 %v1471_v22 }
  0x68   :  { %1093 = vmatprep.mubr.bf16.mxu0 %v1523_v3  ;;  %1136 = vmatprep.mubr.bf16.mxu1 %v1523_v3  ;;  %v72_v3 = vld [vmem:[%s2040_s1 + $0x1b8] sm:$0xff] }
  0x69   :  { %v1423_v45 = vcombine.high %v72_v3, %v80_v41  ;;  %v1422_v51 = vcombine.low %v72_v3, %v80_v41 }
  0x6a   :  { %1064 = vmatpush1.bf16.msra.mxu0 %v1468_v27  ;;  %1107 = vmatpush1.bf16.msra.mxu1 %v1470_v28 }
  0x6b   :  { %1065 = vmatprep.subr.bf16.mxu0 %v1453_v29  ;;  %1108 = vmatprep.subr.bf16.mxu1 %v1455_v30 }
  0x6e   :  { %1066 = vmatpush1.bf16.msra.mxu0 %v1452_v35  ;;  %1109 = vmatpush1.bf16.msra.mxu1 %v1454_v36 }
  0x6f   :  { %1067 = vmatprep.subr.bf16.mxu0 %v1437_v37  ;;  %1110 = vmatprep.subr.bf16.mxu1 %v1439_v38 }
  0x72   :  { %1068 = vmatpush1.bf16.msra.mxu0 %v1436_v42  ;;  %1111 = vmatpush1.bf16.msra.mxu1 %v1438_v43 }
  0x73   :  { %1069 = vmatprep.subr.bf16.mxu0 %v1421_v44  ;;  %1112 = vmatprep.subr.bf16.mxu1 %v1423_v45 }
  0x76   :  { %1070 = vmatpush1.bf16.msra.mxu0 %v1420_v50  ;;  %1113 = vmatpush1.bf16.msra.mxu1 %v1422_v51 }
  0x77   :  { %1071 = vmatprep.subr.bf16.mxu0 %v1405_v52  ;;  %1114 = vmatprep.subr.bf16.mxu1 %v1407_v53 }
  0x7a   :  { %1072 = vmatpush1.bf16.msra.mxu0 %v1404_v58  ;;  %1115 = vmatpush1.bf16.msra.mxu1 %v1406_v59 }
  0x7b   :  { %1073 = vmatprep.subr.bf16.mxu0 %v1389_v60  ;;  %1116 = vmatprep.subr.bf16.mxu1 %v1391_v61 }
  0x7e   :  { %1074 = vmatpush1.bf16.msra.mxu0 %v1388_v2  ;;  %1117 = vmatpush1.bf16.msra.mxu1 %v1390_v4 }
  0x7f   :  { %1075 = vmatprep.subr.bf16.mxu0 %v1373_v5  ;;  %1118 = vmatprep.subr.bf16.mxu1 %v1375_v6 }
  0x82   :  { %1076 = vmatpush1.bf16.msra.mxu0 %v1372_v7  ;;  %1119 = vmatpush1.bf16.msra.mxu1 %v1374_v8 }
  0x85   :  { %1094 = vmatmul.mubr.bf16.vlgmr.msra.gmra.mxu0 %v1664_v10  ;;  %1137 = vmatmul.mubr.bf16.vlgmr.msra.gmra.mxu1 %v1664_v10 }
  0x8f   :  { %v1956_v9 = vpop.permute.xlu0 %149 }
  0x93   :  { %v1960_v16 = vpop.permute.xlu0 %154 }
  0xe5   :  { %v837_v11 = vpop.f32.mrf.mxu0  ;;  %v880_v13 = vpop.f32.mrf.mxu1 }
  0xe6   :  { %v838_v12 = vadd.f32 %v837_v11, %v1956_v9  ;;  %v881_v14 = vadd.f32 %v880_v13, %v1956_v9 }
  0xe7   :  { %v839_v15 = vpop.f32.mrf.mxu0  ;;  %v882_v19 = vpop.f32.mrf.mxu1 }
  0xe8   :  { %v1179_v17 = vmul.f32 0.2, %v838_v12  ;;  %v840_v18 = vadd.f32 %v839_v15, %v1956_v9  ;;  %vm1147_vm0 = vcmp.gt.f32.partialorder %v838_v12, 0.0  ;;  %v1181_v20 = vmul.f32 0.2, %v881_v14 }
  0xe9   :  { %v883_v21 = vadd.f32 %v882_v19, %v1956_v9  ;;  %v841_v10 = vpop.f32.mrf.mxu0  ;;  %vm1149_vm1 = vcmp.gt.f32.partialorder %v881_v14, 0.0  ;;  %v884_v24 = vpop.f32.mrf.mxu1 }
  0xea   :  { %vm1148_vm2 = vcmp.gt.f32.partialorder %v840_v18, 0.0  ;;  %v1180_v22 = vmul.f32 0.2, %v840_v18  ;;  %v842_v23 = vadd.f32 %v841_v10, %v1960_v16  ;;  %v885_v26 = vadd.f32 %v884_v24, %v1960_v16 }
  0xeb   :  { %vm1150_vm3 = vcmp.gt.f32.partialorder %v883_v21, 0.0  ;;  %v1182_v25 = vmul.f32 0.2, %v883_v21  ;;  %v843_v27 = vpop.f32.mrf.mxu0  ;;  %v1211_v28 = vsel %vm1147_vm0, %v838_v12, %v1179_v17  ;;  %v886_v32 = vpop.f32.mrf.mxu1  ;;  %v1213_v33 = vsel %vm1149_vm1, %v881_v14, %v1181_v20 }
  0xec   :  { %v1212_v29 = vsel %vm1148_vm2, %v840_v18, %v1180_v22  ;;  %v1195_v30 = vmul.f32 0.2, %v842_v23  ;;  %v844_v31 = vadd.f32 %v843_v27, %v1960_v16  ;;  %vm1163_vm4 = vcmp.gt.f32.partialorder %v842_v23, 0.0 }
  0xed   :  { %v1504_v34 = vpack.c.bf16 %v1212_v29, %v1211_v28  ;;  %v1214_v35 = vsel %vm1150_vm3, %v883_v21, %v1182_v25  ;;  %v1197_v38 = vmul.f32 0.2, %v885_v26  ;;  %v887_v39 = vadd.f32 %v886_v32, %v1960_v16 }
  0xee   :  { %v1505_v36 = vpack.c.bf16 %v1214_v35, %v1213_v33  ;;  %vm1164_vm5 = vcmp.gt.f32.partialorder %v844_v31, 0.0  ;;  %v1196_v37 = vmul.f32 0.2, %v844_v31  ;;  %v1227_v40 = vsel %vm1163_vm4, %v842_v23, %v1195_v30 }
  0xef   :  { %1339 = vst [vmem:[%s2043_s3] sm:$0xff] %v1504_v34  ;;  %vm1165_vm6 = vcmp.gt.f32.partialorder %v885_v26, 0.0  ;;  %vm1166_vm7 = vcmp.gt.f32.partialorder %v887_v39, 0.0  ;;  %v1198_v42 = vmul.f32 0.2, %v887_v39 }
  0xf0   :  { %1340 = vst [vmem:[%s2043_s3 + $0x8] sm:$0xff] %v1505_v36  ;;  %v1228_v3 = vsel %vm1164_vm5, %v844_v31, %v1196_v37  ;;  %v1229_v43 = vsel %vm1165_vm6, %v885_v26, %v1197_v38 }
  0xf1   :  { %v1512_v41 = vpack.c.bf16 %v1228_v3, %v1227_v40  ;;  %v1230_v44 = vsel %vm1166_vm7, %v887_v39, %v1198_v42 }
  0xf2   :  { %v1513_v45 = vpack.c.bf16 %v1230_v44, %v1229_v43 }
  0xf3   :  { %1347 = vst [vmem:[%s2043_s3 + $0x40] sm:$0xff] %v1512_v41 }
  0xf4   :  { %1348 = vst [vmem:[%s2043_s3 + $0x48] sm:$0xff] %v1513_v45 }
 0x105   :  { %v923_v46 = vpop.f32.mrf.mxu0  ;;  %v966_v48 = vpop.f32.mrf.mxu1 }
 0x106   :  { %v924_v47 = vadd.f32 %v923_v46, %v1956_v9  ;;  %v967_v49 = vadd.f32 %v966_v48, %v1956_v9 }
 0x107   :  { %v925_v50 = vpop.f32.mrf.mxu0  ;;  %v968_v53 = vpop.f32.mrf.mxu1 }
 0x108   :  { %v1183_v51 = vmul.f32 0.2, %v924_v47  ;;  %v926_v52 = vadd.f32 %v925_v50, %v1956_v9  ;;  %vm1151_vm8 = vcmp.gt.f32.partialorder %v924_v47, 0.0  ;;  %v1185_v54 = vmul.f32 0.2, %v967_v49 }
 0x109   :  { %v969_v55 = vadd.f32 %v968_v53, %v1956_v9  ;;  %v927_v56 = vpop.f32.mrf.mxu0  ;;  %vm1153_vm9 = vcmp.gt.f32.partialorder %v967_v49, 0.0  ;;  %v970_v59 = vpop.f32.mrf.mxu1 }
 0x10a   :  { %vm1152_vm10 = vcmp.gt.f32.partialorder %v926_v52, 0.0  ;;  %v1184_v57 = vmul.f32 0.2, %v926_v52  ;;  %v928_v58 = vadd.f32 %v927_v56, %v1960_v16  ;;  %v971_v61 = vadd.f32 %v970_v59, %v1960_v16 }
 0x10b   :  { %vm1154_vm11 = vcmp.gt.f32.partialorder %v969_v55, 0.0  ;;  %v1186_v60 = vmul.f32 0.2, %v969_v55  ;;  %v929_v62 = vpop.f32.mrf.mxu0  ;;  %v1215_v63 = vsel %vm1151_vm8, %v924_v47, %v1183_v51  ;;  %v972_v4 = vpop.f32.mrf.mxu1  ;;  %v1217_v5 = vsel %vm1153_vm9, %v967_v49, %v1185_v54 }
 0x10c   :  { %v1216_v0 = vsel %vm1152_vm10, %v926_v52, %v1184_v57  ;;  %v1199_v1 = vmul.f32 0.2, %v928_v58  ;;  %v930_v2 = vadd.f32 %v929_v62, %v1960_v16  ;;  %vm1167_vm12 = vcmp.gt.f32.partialorder %v928_v58, 0.0 }
 0x10d   :  { %v1506_v6 = vpack.c.bf16 %v1216_v0, %v1215_v63  ;;  %v1218_v7 = vsel %vm1154_vm11, %v969_v55, %v1186_v60  ;;  %v1201_v12 = vmul.f32 0.2, %v971_v61  ;;  %v973_v13 = vadd.f32 %v972_v4, %v1960_v16 }
 0x10e   :  { %v1507_v8 = vpack.c.bf16 %v1218_v7, %v1217_v5  ;;  %vm1168_vm13 = vcmp.gt.f32.partialorder %v930_v2, 0.0  ;;  %v1200_v11 = vmul.f32 0.2, %v930_v2  ;;  %v1231_v14 = vsel %vm1167_vm12, %v928_v58, %v1199_v1 }
 0x10f   :  { %1341 = vst [vmem:[%s2043_s3 + $0x10] sm:$0xff] %v1506_v6  ;;  %vm1169_vm14 = vcmp.gt.f32.partialorder %v971_v61, 0.0  ;;  %vm1170_vm15 = vcmp.gt.f32.partialorder %v973_v13, 0.0  ;;  %v1202_v18 = vmul.f32 0.2, %v973_v13 }
 0x110   :  { %1342 = vst [vmem:[%s2043_s3 + $0x18] sm:$0xff] %v1507_v8  ;;  %v1232_v15 = vsel %vm1168_vm13, %v930_v2, %v1200_v11  ;;  %v1233_v19 = vsel %vm1169_vm14, %v971_v61, %v1201_v12 }
 0x111   :  { %v1514_v17 = vpack.c.bf16 %v1232_v15, %v1231_v14  ;;  %v1234_v20 = vsel %vm1170_vm15, %v973_v13, %v1202_v18 }
 0x112   :  { %v1515_v21 = vpack.c.bf16 %v1234_v20, %v1233_v19 }
 0x113   :  { %1349 = vst [vmem:[%s2043_s3 + $0x50] sm:$0xff] %v1514_v17 }
 0x114   :  { %1350 = vst [vmem:[%s2043_s3 + $0x58] sm:$0xff] %v1515_v21 }
 0x125   :  { %v1009_v10 = vpop.f32.mrf.mxu0  ;;  %v1052_v23 = vpop.f32.mrf.mxu1 }
 0x126   :  { %v1010_v22 = vadd.f32 %v1009_v10, %v1956_v9  ;;  %v1053_v24 = vadd.f32 %v1052_v23, %v1956_v9 }
 0x127   :  { %v1011_v25 = vpop.f32.mrf.mxu0  ;;  %v1054_v28 = vpop.f32.mrf.mxu1 }
 0x128   :  { %v1187_v26 = vmul.f32 0.2, %v1010_v22  ;;  %v1012_v27 = vadd.f32 %v1011_v25, %v1956_v9  ;;  %vm1155_vm0 = vcmp.gt.f32.partialorder %v1010_v22, 0.0  ;;  %v1189_v29 = vmul.f32 0.2, %v1053_v24 }
 0x129   :  { %v1055_v30 = vadd.f32 %v1054_v28, %v1956_v9  ;;  %v1013_v31 = vpop.f32.mrf.mxu0  ;;  %vm1157_vm1 = vcmp.gt.f32.partialorder %v1053_v24, 0.0  ;;  %v1056_v34 = vpop.f32.mrf.mxu1 }
 0x12a   :  { %vm1156_vm2 = vcmp.gt.f32.partialorder %v1012_v27, 0.0  ;;  %v1188_v32 = vmul.f32 0.2, %v1012_v27  ;;  %v1014_v33 = vadd.f32 %v1013_v31, %v1960_v16  ;;  %v1057_v36 = vadd.f32 %v1056_v34, %v1960_v16 }
 0x12b   :  { %vm1158_vm3 = vcmp.gt.f32.partialorder %v1055_v30, 0.0  ;;  %v1190_v35 = vmul.f32 0.2, %v1055_v30  ;;  %v1015_v37 = vpop.f32.mrf.mxu0  ;;  %v1219_v38 = vsel %vm1155_vm0, %v1010_v22, %v1187_v26  ;;  %v1058_v41 = vpop.f32.mrf.mxu1  ;;  %v1221_v42 = vsel %vm1157_vm1, %v1053_v24, %v1189_v29 }
 0x12c   :  { %v1220_v39 = vsel %vm1156_vm2, %v1012_v27, %v1188_v32  ;;  %v1203_v40 = vmul.f32 0.2, %v1014_v33  ;;  %v1016_v3 = vadd.f32 %v1015_v37, %v1960_v16  ;;  %vm1171_vm4 = vcmp.gt.f32.partialorder %v1014_v33, 0.0 }
 0x12d   :  { %v1508_v43 = vpack.c.bf16 %v1220_v39, %v1219_v38  ;;  %v1222_v44 = vsel %vm1158_vm3, %v1055_v30, %v1190_v35  ;;  %v1205_v47 = vmul.f32 0.2, %v1057_v36  ;;  %v1059_v48 = vadd.f32 %v1058_v41, %v1960_v16 }
 0x12e   :  { %v1509_v45 = vpack.c.bf16 %v1222_v44, %v1221_v42  ;;  %vm1172_vm5 = vcmp.gt.f32.partialorder %v1016_v3, 0.0  ;;  %v1204_v46 = vmul.f32 0.2, %v1016_v3  ;;  %v1235_v49 = vsel %vm1171_vm4, %v1014_v33, %v1203_v40 }
 0x12f   :  { %1343 = vst [vmem:[%s2043_s3 + $0x20] sm:$0xff] %v1508_v43  ;;  %vm1173_vm6 = vcmp.gt.f32.partialorder %v1057_v36, 0.0  ;;  %vm1174_vm7 = vcmp.gt.f32.partialorder %v1059_v48, 0.0  ;;  %v1206_v52 = vmul.f32 0.2, %v1059_v48 }
 0x130   :  { %1344 = vst [vmem:[%s2043_s3 + $0x28] sm:$0xff] %v1509_v45  ;;  %v1236_v50 = vsel %vm1172_vm5, %v1016_v3, %v1204_v46  ;;  %v1237_v53 = vsel %vm1173_vm6, %v1057_v36, %v1205_v47 }
 0x131   :  { %v1516_v51 = vpack.c.bf16 %v1236_v50, %v1235_v49  ;;  %v1238_v54 = vsel %vm1174_vm7, %v1059_v48, %v1206_v52 }
 0x132   :  { %v1517_v55 = vpack.c.bf16 %v1238_v54, %v1237_v53 }
 0x133   :  { %1351 = vst [vmem:[%s2043_s3 + $0x60] sm:$0xff] %v1516_v51 }
 0x134   :  { %1352 = vst [vmem:[%s2043_s3 + $0x68] sm:$0xff] %v1517_v55 }
 0x145   :  { %v1095_v56 = vpop.f32.mrf.mxu0  ;;  %v1138_v58 = vpop.f32.mrf.mxu1 }
 0x146   :  { %v1096_v57 = vadd.f32 %v1095_v56, %v1956_v9  ;;  %v1139_v59 = vadd.f32 %v1138_v58, %v1956_v9 }
 0x147   :  { %v1097_v60 = vpop.f32.mrf.mxu0  ;;  %v1140_v63 = vpop.f32.mrf.mxu1 }
 0x148   :  { %v1191_v61 = vmul.f32 0.2, %v1096_v57  ;;  %v1098_v62 = vadd.f32 %v1097_v60, %v1956_v9  ;;  %vm1159_vm8 = vcmp.gt.f32.partialorder %v1096_v57, 0.0  ;;  %v1193_v0 = vmul.f32 0.2, %v1139_v59 }
 0x149   :  { %v1141_v1 = vadd.f32 %v1140_v63, %v1956_v9  ;;  %v1099_v2 = vpop.f32.mrf.mxu0  ;;  %vm1161_vm9 = vcmp.gt.f32.partialorder %v1139_v59, 0.0  ;;  %v1142_v6 = vpop.f32.mrf.mxu1 }
 0x14a   :  { %vm1160_vm10 = vcmp.gt.f32.partialorder %v1098_v62, 0.0  ;;  %v1192_v4 = vmul.f32 0.2, %v1098_v62  ;;  %v1100_v5 = vadd.f32 %v1099_v2, %v1960_v16  ;;  %v1143_v8 = vadd.f32 %v1142_v6, %v1960_v16 }
 0x14b   :  { %vm1162_vm11 = vcmp.gt.f32.partialorder %v1141_v1, 0.0  ;;  %v1194_v7 = vmul.f32 0.2, %v1141_v1  ;;  %v1101_v11 = vpop.f32.mrf.mxu0  ;;  %v1223_v12 = vsel %vm1159_vm8, %v1096_v57, %v1191_v61  ;;  %v1144_v17 = vpop.f32.mrf.mxu1  ;;  %v1225_v18 = vsel %vm1161_vm9, %v1139_v59, %v1193_v0 }
 0x14c   :  { %v1224_v13 = vsel %vm1160_vm10, %v1098_v62, %v1192_v4  ;;  %v1207_v14 = vmul.f32 0.2, %v1100_v5  ;;  %v1102_v15 = vadd.f32 %v1101_v11, %v1960_v16  ;;  %vm1175_vm12 = vcmp.gt.f32.partialorder %v1100_v5, 0.0 }
 0x14d   :  { %v1510_v9 = vpack.c.bf16 %v1224_v13, %v1223_v12  ;;  %v1226_v19 = vsel %vm1162_vm11, %v1141_v1, %v1194_v7  ;;  %v1209_v10 = vmul.f32 0.2, %v1143_v8  ;;  %v1145_v22 = vadd.f32 %v1144_v17, %v1960_v16 }
 0x14e   :  { %v1511_v20 = vpack.c.bf16 %v1226_v19, %v1225_v18  ;;  %vm1176_vm13 = vcmp.gt.f32.partialorder %v1102_v15, 0.0  ;;  %v1208_v21 = vmul.f32 0.2, %v1102_v15  ;;  %v1239_v23 = vsel %vm1175_vm12, %v1100_v5, %v1207_v14 }
 0x14f   :  { %1345 = vst [vmem:[%s2043_s3 + $0x30] sm:$0xff] %v1510_v9  ;;  %vm1177_vm14 = vcmp.gt.f32.partialorder %v1143_v8, 0.0  ;;  %vm1178_vm15 = vcmp.gt.f32.partialorder %v1145_v22, 0.0  ;;  %v1210_v26 = vmul.f32 0.2, %v1145_v22 }
 0x150   :  { %1346 = vst [vmem:[%s2043_s3 + $0x38] sm:$0xff] %v1511_v20  ;;  %v1240_v24 = vsel %vm1176_vm13, %v1102_v15, %v1208_v21  ;;  %v1241_v27 = vsel %vm1177_vm14, %v1143_v8, %v1209_v10 }
 0x151   :  { %v1518_v25 = vpack.c.bf16 %v1240_v24, %v1239_v23  ;;  %v1242_v28 = vsel %vm1178_vm15, %v1145_v22, %v1210_v26 }
 0x152   :  { %v1519_v29 = vpack.c.bf16 %v1242_v28, %v1241_v27 }
 0x153   :  { %1353 = vst [vmem:[%s2043_s3 + $0x70] sm:$0xff] %v1518_v25 }
 0x154   :  { %1354 = vst [vmem:[%s2043_s3 + $0x78] sm:$0xff] %v1519_v29 }

// kernel: vae_forward.10
= control target key start
LH: loop header
LB: loop body
LE: loop exit
PB: predicated region body
PF: predicated region fallthrough
CT: control target
= control target key end

     0   :  { %14 = vsyncpa [#allocation3], 0  ;;  %v479_v2 = vmov 0   ;;  %s590_s0 = inlined_call_operand.vmem [shape: bf16[32,512], index: 0, kind: input, shape index: {}]   ;;  %s591_s1 = inlined_call_operand.vmem [shape: bf16[16,32], index: 1, kind: input, shape index: {}]   ;;  %s592_s2 = inlined_call_operand.vmem [shape: f32[16,1], index: 2, kind: input, shape index: {}]   ;;  %s593_s3 = inlined_call_operand.vmem [shape: f32[8,512], index: 3, kind: input, shape index: {}]   ;;  %s594_s4 = inlined_call_operand.vmem [shape: bf16[8,8], index: 4, kind: input, shape index: {}]   ;;  %s595_s5 = inlined_call_operand.vmem [shape: f32[8,1], index: 5, kind: input, shape index: {}]   ;;  %s596_s6 = inlined_call_operand.hbm [shape: f32[8,512], index: 6, kind: output, shape index: {0}]   ;;  %s597_s7 = inlined_call_operand.hbm [shape: f32[8,512], index: 7, kind: output, shape index: {1}]   ;;  %s598_s8 = inlined_call_operand.vmem [shape: bf16[8,512], index: 8, kind: output, shape index: {2}]  }
   0x1   :  { %v414_v0 = vld [vmem:[%s590_s0 + $0x24] ss:$16 sps:$4 sm:$0xff]   ;;  %v416_v1 = vld [vmem:[%s590_s0 + $0x2c] ss:$16 sps:$4 sm:$0xff]   ;;  %132 = vmatprep.mubr.bf16.mxu0 %v479_v2  ;;  %175 = vmatprep.mubr.bf16.mxu1 %v479_v2  ;;  %v418_v3 = vld [vmem:[%s590_s0 + $0x20] ss:$16 sps:$4 sm:$0xff]  }
   0x2   :  { %112 = vmatprep.subr.bf16.mxu0 %v414_v0  ;;  %v419_v4 = vld [vmem:[%s590_s0 + $0x28] ss:$16 sps:$4 sm:$0xff]   ;;  %412 = vset.pattern.permute.xlu0 %v479_v2  ;;  %v420_v5 = vld [vmem:[%s590_s0 + $0x4] ss:$16 sps:$4 sm:$0xff]   ;;  %v422_v6 = vld [vmem:[%s590_s0 + $0xc] ss:$16 sps:$4 sm:$0xff]  }
   0x3   :  { %155 = vmatprep.subr.bf16.mxu1 %v416_v1  ;;  %413 = vset.pattern.permute.xlu1 %v479_v2  ;;  %v424_v7 = vld [vmem:[%s590_s0] ss:$16 sps:$4 sm:$0xff]   ;;  %v425_v8 = vld [vmem:[%s590_s0 + $0x8] ss:$16 sps:$4 sm:$0xff]  }
   0x4   :  { %113 = vmatpush1.bf16.msra.mxu0 %v418_v3  ;;  %156 = vmatpush1.bf16.msra.mxu1 %v419_v4  ;;  %v40_v9 = vld [vmem:[%s592_s2 + $0x8] sm:$0xff]  ;;  %v426_v10 = vld [vmem:[%s591_s1] sm:$0xff]  }
   0x5   :  { %114 = vmatprep.subr.bf16.mxu0 %v420_v5  ;;  %157 = vmatprep.subr.bf16.mxu1 %v422_v6 }
   0x6   :  { %48 = vperm.xlu0 %412, %v40_v9  }
   0x7   :  { %15 = vsyncpa [#allocation5], 0  ;;  %vm96_vm0 = vcmask 261120   ;;  %v39_v11 = vld [vmem:[%s592_s2] sm:$0xff]  ;;  %v188_v40 = vld [vmem:[%s593_s3 + $0x10] sm:$0xff]  ;;  %vm225_vm1 = vcmask 1043456  }
   0x8   :  { %115 = vmatpush1.bf16.msra.mxu0 %v424_v7  ;;  %158 = vmatpush1.bf16.msra.mxu1 %v425_v8  ;;  %v215_v12 = vld [vmem:[%s595_s5] sm:$0xff]  ;;  %v187_v42 = vld [vmem:[%s593_s3 + $0x8] sm:$0xff]  ;;  %v189_v44 = vld [vmem:[%s593_s3 + $0x18] sm:$0xff]  ;;  %vm221_vm2 = vcmask 64512   ;;  %s480_s12 = smov [#allocation2]   ;;  %s481_s14 = smov [#allocation4]  }
   0x9   :  { %218 = vperm.xlu1 %413, %v215_v12   ;;  %v186_v39 = vld [vmem:[%s593_s3] sm:$0xff]  ;;  %s364_s13 = sshll.u32 %s480_s12, 4  ;;  %s374_s15 = sshll.u32 %s481_s14, 4  ;;  %s365_s13 = int_to_ptr.vmem [resolvable:$true] %s364_s13  ;;  %s375_s15 = int_to_ptr.vmem [resolvable:$true] %s374_s15 }
   0xa   :  { %43 = vperm.xlu0 %412, %v39_v11   ;;  %v210_v61 = vld [vmem:[%s594_s4] sm:$0xf]  ;;  %s435_s16 = scalar_lea.vmem %s365_s13, 512  ;;  %p440_p1 = scmp.lt.s32.totalorder %s365_s13, %s365_s13 }
   0xb   :  { %399 = vmatmul.mubr.msk.bf16.vlgmr.msra.gmra.mxu0 %vm96_vm0, %v426_v10  ;;  %400 = vmatmul.mubr.msk.bf16.vlgmr.msra.gmra.mxu1 %vm96_vm0, %v426_v10  ;;  %p436_p0 = scmp.ne.s32.totalorder %s365_s13, %s435_s16  ;;  %p441_p2 = scmp.lt.s32.totalorder %s435_s16, %s435_s16 }
   0xc   :  { %270 = vmatprep.mubr.bf16.mxu0 %v479_v2  ;;  %311 = vmatprep.mubr.bf16.mxu1 %v479_v2 }
   0xd   :  { %p442_p3 = por %p441_p2, %p440_p1 }
   0xf   :  { %p443_p4 = pnand %p442_p3, %p436_p0 }
  0x81   :  { %v49_v13 = vpop.permute.xlu0 %48 }
  0x85   :  { %v44_v14 = vpop.permute.xlu0 %43 }
  0xcb   :  { %v134_v15 = vpop.f32.mrf.mxu0  ;;  %v177_v16 = vpop.f32.mrf.mxu1 }
  0xcc   :  { %v135_v17 = vadd.f32 %v134_v15, %v44_v14  ;;  %v178_v18 = vadd.f32 %v177_v16, %v44_v14 }
  0xcd   :  { %v136_v19 = vpop.f32.mrf.mxu0  ;;  %v179_v20 = vpop.f32.mrf.mxu1 }
  0xce   :  { %332 = vst [vmem:[#allocation2] sm:$0xff] %v135_v17  ;;  %334 = vst [vmem:[#allocation2 + $0x10] sm:$0xff] %v178_v18  ;;  %v137_v21 = vadd.f32 %v136_v19, %v44_v14  ;;  %v180_v22 = vadd.f32 %v179_v20, %v44_v14 }
  0xcf   :  { %v138_v23 = vpop.f32.mrf.mxu0  ;;  %v181_v24 = vpop.f32.mrf.mxu1 }
  0xd0   :  { %333 = vst [vmem:[#allocation2 + $0x8] sm:$0xff] %v137_v21  ;;  %335 = vst [vmem:[#allocation2 + $0x18] sm:$0xff] %v180_v22  ;;  %v139_v25 = vadd.f32 %v138_v23, %v49_v13  ;;  %v182_v26 = vadd.f32 %v181_v24, %v49_v13 }
  0xd1   :  { %v140_v27 = vpop.f32.mrf.mxu0  ;;  %v183_v28 = vpop.f32.mrf.mxu1 }
  0xd2   :  { %v190_v29 = vmul.f32 0.5, %v139_v25  ;;  %336 = vst [vmem:[#allocation4] sm:$0xff] %v139_v25  ;;  %v192_v30 = vmul.f32 0.5, %v182_v26  ;;  %338 = vst [vmem:[#allocation4 + $0x10] sm:$0xff] %v182_v26  ;;  %v141_v31 = vadd.f32 %v140_v27, %v49_v13  ;;  %v184_v32 = vadd.f32 %v183_v28, %v49_v13 }
  0xd4   :  { %v194_v33 = vmul.f32 1.442695, %v190_v29  ;;  %v198_v34 = vmul.f32 1.442695, %v192_v30  ;;  %v191_v35 = vmul.f32 0.5, %v141_v31  ;;  %337 = vst [vmem:[#allocation4 + $0x8] sm:$0xff] %v141_v31 }
  0xd5   :  { %v193_v36 = vmul.f32 0.5, %v184_v32  ;;  %339 = vst [vmem:[#allocation4 + $0x18] sm:$0xff] %v184_v32 }
  0xd6   :  { %427 = vpow2.f32 %v194_v33  ;;  %v196_v37 = vmul.f32 1.442695, %v191_v35 }
  0xd7   :  { %v200_v38 = vmul.f32 1.442695, %v193_v36  ;;  %429 = vpow2.f32 %v198_v34 }
  0xd8   :  { %431 = vpow2.f32 %v196_v37 }
  0xd9   :  { %433 = vpow2.f32 %v200_v38 }
  0xe3   :  { %v428_v41 = vpop.eup %427 }
  0xe4   :  { %v430_v43 = vpop.eup %429  ;;  %v202_v45 = vmul.f32 %v428_v41, %v186_v39 }
  0xe5   :  { %v432_v46 = vpop.eup %431  ;;  %v204_v47 = vmul.f32 %v430_v43, %v188_v40 }
  0xe6   :  { %v434_v48 = vpop.eup %433  ;;  %v203_v49 = vmul.f32 %v432_v46, %v187_v42  ;;  %v206_v50 = vadd.f32 %v202_v45, %v135_v17 }
  0xe7   :  { %v205_v51 = vmul.f32 %v434_v48, %v189_v44  ;;  %v208_v52 = vadd.f32 %v204_v47, %v178_v18 }
  0xe8   :  { %v207_v53 = vadd.f32 %v203_v49, %v137_v21  ;;  %v211_v54 = vpack.c.bf16 %v206_v50, %v206_v50 }
  0xe9   :  { %v209_v55 = vadd.f32 %v205_v51, %v180_v22  ;;  %v213_v56 = vpack.c.bf16 %v208_v52, %v208_v52 }
  0xea   :  { %v212_v57 = vpack.c.bf16 %v207_v53, %v207_v53  ;;  %v227_v59 = vsel %vm225_vm1, %v211_v54, 0 }
  0xeb   :  { %v214_v58 = vpack.c.bf16 %v209_v55, %v209_v55  ;;  %v233_v60 = vsel %vm225_vm1, %v213_v56, 0 }
  0xec   :  { %401 = vmatprep.subr.msk.bf16.mxu0 %vm225_vm1, %v212_v57 }
  0xed   :  { %403 = vmatprep.subr.msk.bf16.mxu1 %vm225_vm1, %v214_v58  ;;  %253 = vmatpush1.bf16.msra.mxu0 %v227_v59 }
  0xee   :  { %294 = vmatpush1.bf16.msra.mxu1 %v233_v60 }
  0xf0   :  { %402 = vmatmul.mubr.msk.bf16.vlgmr.msra.gmra.mxu0 %vm221_vm2, %v210_v61 }
  0xf1   :  { %404 = vmatmul.mubr.msk.bf16.vlgmr.msra.gmra.mxu1 %vm221_vm2, %v210_v61 }
  0xf2   :  { %446 = shalt.err (!%p443_p4)
}
  0xf3   :  { %367 = dma.vmem_to_hbm [thread:$0]  %s365_s13, 512, %s596_s6, [#allocation3]  }
  0xf4   :  { %s455_s4 = scalar_lea.vmem %s375_s15, 512  ;;  %p460_p6 = scmp.lt.s32.totalorder %s375_s15, %s375_s15 }
  0xf5   :  { %p456_p5 = scmp.ne.s32.totalorder %s375_s15, %s455_s4  ;;  %p461_p7 = scmp.lt.s32.totalorder %s455_s4, %s455_s4 }
  0xf7   :  { %p462_p8 = por %p461_p7, %p460_p6 }
  0xf9   :  { %p463_p9 = pnand %p462_p8, %p456_p5 }
  0xfb   :  { %466 = shalt.err (!%p463_p9)
}
  0xfc   :  { %377 = dma.vmem_to_hbm [thread:$0]  %s375_s15, 512, %s597_s7, [#allocation5]   ;;  %v219_v62 = vpop.permute.xlu1 %218 }
 0x1b0   :  { %v272_v63 = vpop.f32.mrf.mxu0 }
 0x1b1   :  { %v313_v0 = vpop.f32.mrf.mxu1  ;;  %v273_v1 = vadd.f32 %v272_v63, %v219_v62 }
 0x1b2   :  { %v274_v2 = vpop.f32.mrf.mxu0  ;;  %v314_v3 = vadd.f32 %v313_v0, %v219_v62 }
 0x1b3   :  { %v315_v4 = vpop.f32.mrf.mxu1  ;;  %v275_v5 = vadd.f32 %v274_v2, %v219_v62  ;;  %v324_v6 = vmul.f32 0.01, %v273_v1  ;;  %vm320_vm3 = vcmp.gt.f32.partialorder %v273_v1, 0.0 }
 0x1b4   :  { %v316_v7 = vadd.f32 %v315_v4, %v219_v62  ;;  %v326_v8 = vmul.f32 0.01, %v314_v3  ;;  %v276_v9 = vpop.f32.mrf.mxu0  ;;  %vm322_vm5 = vcmp.gt.f32.partialorder %v314_v3, 0.0 }
 0x1b5   :  { %vm321_vm4 = vcmp.gt.f32.partialorder %v275_v5, 0.0  ;;  %v325_v10 = vmul.f32 0.01, %v275_v5  ;;  %v317_v11 = vpop.f32.mrf.mxu1  ;;  %v328_v14 = vsel %vm320_vm3, %v273_v1, %v324_v6 }
 0x1b6   :  { %vm323_vm6 = vcmp.gt.f32.partialorder %v316_v7, 0.0  ;;  %v327_v12 = vmul.f32 0.01, %v316_v7  ;;  %v277_v13 = vpop.f32.mrf.mxu0  ;;  %v330_v17 = vsel %vm322_vm5, %v314_v3, %v326_v8 }
 0x1b7   :  { %v329_v15 = vsel %vm321_vm4, %v275_v5, %v325_v10  ;;  %v318_v16 = vpop.f32.mrf.mxu1 }
 0x1b8   :  { %v331_v18 = vsel %vm323_vm6, %v316_v7, %v327_v12  ;;  %v407_v19 = vpack.c.bf16 %v329_v15, %v328_v14 }
 0x1b9   :  { %v408_v20 = vpack.c.bf16 %v331_v18, %v330_v17 }
 0x1ba   :  { %356 = vst [vmem:[%s598_s8] sm:$0xff] %v407_v19 }
 0x1bb   :  { %357 = vst [vmem:[%s598_s8 + $0x8] sm:$0xff] %v408_v20 }
 0x1bc   :  { %475 = dma.done.wait [#allocation3], 512  }
 0x1bd   :  { %476 = vsyncadd [#allocation3], 4294966784 }
 0x1be   :  { %477 = dma.done.wait [#allocation5], 512  }
 0x1bf   :  { %478 = vsyncadd [#allocation5], 4294966784 }
 0x1c0   :  { %388 = vsyncpa [#allocation3], 1 }
 0x1c1   :  { %389 = vsyncpa [#allocation5], 1 }

// kernel: vae_forward.9
= control target key start
LH: loop header
LB: loop body
LE: loop exit
PB: predicated region body
PF: predicated region fallthrough
CT: control target
= control target key end

     0   :  { %v849_v1 = vmov 0   ;;  %s1111_s1 = inlined_call_operand.vmem [shape: bf16[256,512], index: 1, kind: input, shape index: {}]   ;;  %s1112_s0 = inlined_call_operand.vmem [shape: bf16[32,256], index: 0, kind: input, shape index: {}]   ;;  %s1113_s2 = inlined_call_operand.vmem [shape: f32[32,1], index: 2, kind: input, shape index: {}]   ;;  %s1114_s3 = inlined_call_operand.vmem [shape: bf16[32,512], index: 3, kind: output, shape index: {}]  }
   0x1   :  { %v747_v0 = vld [vmem:[%s1111_s1 + $0xe4] ss:$16 sps:$4 sm:$0xff]   ;;  %745 = vset.pattern.permute.xlu0 %v849_v1  ;;  %746 = vset.pattern.permute.xlu1 %v849_v1  ;;  %v749_v2 = vld [vmem:[%s1111_s1 + $0xec] ss:$16 sps:$4 sm:$0xff]   ;;  %v751_v3 = vld [vmem:[%s1111_s1 + $0xe0] ss:$16 sps:$4 sm:$0xff]  }
   0x2   :  { %446 = vmatprep.subr.bf16.mxu0 %v747_v0  ;;  %v752_v4 = vld [vmem:[%s1111_s1 + $0xe8] ss:$16 sps:$4 sm:$0xff]   ;;  %499 = vmatprep.subr.bf16.mxu1 %v749_v2  ;;  %v753_v5 = vld [vmem:[%s1111_s1 + $0xc4] ss:$16 sps:$4 sm:$0xff]   ;;  %v755_v6 = vld [vmem:[%s1111_s1 + $0xcc] ss:$16 sps:$4 sm:$0xff]  }
   0x3   :  { %447 = vmatpush1.bf16.msra.mxu0 %v751_v3  ;;  %500 = vmatpush1.bf16.msra.mxu1 %v752_v4  ;;  %v757_v7 = vld [vmem:[%s1111_s1 + $0xc0] ss:$16 sps:$4 sm:$0xff]   ;;  %v758_v8 = vld [vmem:[%s1111_s1 + $0xc8] ss:$16 sps:$4 sm:$0xff]   ;;  %v759_v9 = vld [vmem:[%s1111_s1 + $0xa4] ss:$16 sps:$4 sm:$0xff]  }
   0x4   :  { %448 = vmatprep.subr.bf16.mxu0 %v753_v5  ;;  %501 = vmatprep.subr.bf16.mxu1 %v755_v6  ;;  %v761_v10 = vld [vmem:[%s1111_s1 + $0xac] ss:$16 sps:$4 sm:$0xff]   ;;  %v763_v11 = vld [vmem:[%s1111_s1 + $0xa0] ss:$16 sps:$4 sm:$0xff]   ;;  %v764_v12 = vld [vmem:[%s1111_s1 + $0xa8] ss:$16 sps:$4 sm:$0xff]  }
   0x5   :  { %v765_v13 = vld [vmem:[%s1111_s1 + $0x84] ss:$16 sps:$4 sm:$0xff]   ;;  %v767_v14 = vld [vmem:[%s1111_s1 + $0x8c] ss:$16 sps:$4 sm:$0xff]   ;;  %v769_v15 = vld [vmem:[%s1111_s1 + $0x80] ss:$16 sps:$4 sm:$0xff]  }
   0x6   :  { %v770_v16 = vld [vmem:[%s1111_s1 + $0x88] ss:$16 sps:$4 sm:$0xff]   ;;  %v771_v17 = vld [vmem:[%s1111_s1 + $0x64] ss:$16 sps:$4 sm:$0xff]   ;;  %v773_v18 = vld [vmem:[%s1111_s1 + $0x6c] ss:$16 sps:$4 sm:$0xff]  }
   0x7   :  { %449 = vmatpush1.bf16.msra.mxu0 %v757_v7  ;;  %502 = vmatpush1.bf16.msra.mxu1 %v758_v8  ;;  %v775_v19 = vld [vmem:[%s1111_s1 + $0x60] ss:$16 sps:$4 sm:$0xff]   ;;  %v776_v20 = vld [vmem:[%s1111_s1 + $0x68] ss:$16 sps:$4 sm:$0xff]   ;;  %v777_v21 = vld [vmem:[%s1111_s1 + $0x44] ss:$16 sps:$4 sm:$0xff]  }
   0x8   :  { %450 = vmatprep.subr.bf16.mxu0 %v759_v9  ;;  %503 = vmatprep.subr.bf16.mxu1 %v761_v10  ;;  %v779_v22 = vld [vmem:[%s1111_s1 + $0x4c] ss:$16 sps:$4 sm:$0xff]   ;;  %v781_v23 = vld [vmem:[%s1111_s1 + $0x40] ss:$16 sps:$4 sm:$0xff]   ;;  %v782_v24 = vld [vmem:[%s1111_s1 + $0x48] ss:$16 sps:$4 sm:$0xff]  }
   0x9   :  { %v783_v25 = vld [vmem:[%s1111_s1 + $0x24] ss:$16 sps:$4 sm:$0xff]   ;;  %v785_v26 = vld [vmem:[%s1111_s1 + $0x2c] ss:$16 sps:$4 sm:$0xff]   ;;  %v787_v27 = vld [vmem:[%s1111_s1 + $0x20] ss:$16 sps:$4 sm:$0xff]  }
   0xa   :  { %v788_v28 = vld [vmem:[%s1111_s1 + $0x28] ss:$16 sps:$4 sm:$0xff]   ;;  %v789_v29 = vld [vmem:[%s1111_s1 + $0x4] ss:$16 sps:$4 sm:$0xff]   ;;  %v791_v30 = vld [vmem:[%s1111_s1 + $0xc] ss:$16 sps:$4 sm:$0xff]  }
   0xb   :  { %451 = vmatpush1.bf16.msra.mxu0 %v763_v11  ;;  %504 = vmatpush1.bf16.msra.mxu1 %v764_v12  ;;  %v793_v31 = vld [vmem:[%s1111_s1] ss:$16 sps:$4 sm:$0xff]   ;;  %v794_v32 = vld [vmem:[%s1111_s1 + $0x8] ss:$16 sps:$4 sm:$0xff]   ;;  %v795_v33 = vld [vmem:[%s1111_s1 + $0x1e4] ss:$16 sps:$4 sm:$0xff]  }
   0xc   :  { %452 = vmatprep.subr.bf16.mxu0 %v765_v13  ;;  %505 = vmatprep.subr.bf16.mxu1 %v767_v14  ;;  %v797_v34 = vld [vmem:[%s1111_s1 + $0x1ec] ss:$16 sps:$4 sm:$0xff]   ;;  %v799_v35 = vld [vmem:[%s1111_s1 + $0x1e0] ss:$16 sps:$4 sm:$0xff]   ;;  %v800_v36 = vld [vmem:[%s1111_s1 + $0x1e8] ss:$16 sps:$4 sm:$0xff]  }
   0xd   :  { %v801_v37 = vld [vmem:[%s1111_s1 + $0x1c4] ss:$16 sps:$4 sm:$0xff]   ;;  %v803_v38 = vld [vmem:[%s1111_s1 + $0x1cc] ss:$16 sps:$4 sm:$0xff]   ;;  %v805_v39 = vld [vmem:[%s1111_s1 + $0x1c0] ss:$16 sps:$4 sm:$0xff]  }
   0xe   :  { %v806_v40 = vld [vmem:[%s1111_s1 + $0x1c8] ss:$16 sps:$4 sm:$0xff]   ;;  %v807_v41 = vld [vmem:[%s1111_s1 + $0x1a4] ss:$16 sps:$4 sm:$0xff]   ;;  %v809_v42 = vld [vmem:[%s1111_s1 + $0x1ac] ss:$16 sps:$4 sm:$0xff]  }
   0xf   :  { %453 = vmatpush1.bf16.msra.mxu0 %v769_v15  ;;  %506 = vmatpush1.bf16.msra.mxu1 %v770_v16  ;;  %v811_v43 = vld [vmem:[%s1111_s1 + $0x1a0] ss:$16 sps:$4 sm:$0xff]   ;;  %v812_v44 = vld [vmem:[%s1111_s1 + $0x1a8] ss:$16 sps:$4 sm:$0xff]   ;;  %v813_v45 = vld [vmem:[%s1111_s1 + $0x184] ss:$16 sps:$4 sm:$0xff]  }
  0x10   :  { %454 = vmatprep.subr.bf16.mxu0 %v771_v17  ;;  %507 = vmatprep.subr.bf16.mxu1 %v773_v18  ;;  %v815_v46 = vld [vmem:[%s1111_s1 + $0x18c] ss:$16 sps:$4 sm:$0xff]   ;;  %v817_v47 = vld [vmem:[%s1111_s1 + $0x180] ss:$16 sps:$4 sm:$0xff]   ;;  %v818_v49 = vld [vmem:[%s1111_s1 + $0x188] ss:$16 sps:$4 sm:$0xff]  }
  0x11   :  { %v845_v48 = vld [vmem:[%s1112_s0 + $0x4] ss:$8 sps:$4 sm:$0xff]   ;;  %v84_v53 = vld [vmem:[%s1113_s2 + $0x10] sm:$0xff]  ;;  %v824_v55 = vld [vmem:[%s1111_s1 + $0x168] ss:$16 sps:$4 sm:$0xff]  }
  0x12   :  { %v819_v50 = vld [vmem:[%s1111_s1 + $0x164] ss:$16 sps:$4 sm:$0xff]   ;;  %v821_v51 = vld [vmem:[%s1111_s1 + $0x16c] ss:$16 sps:$4 sm:$0xff]   ;;  %478 = vmatprep.mubr.bf16.mxu0 %v845_v48  ;;  %531 = vmatprep.mubr.bf16.mxu1 %v845_v48  ;;  %v823_v54 = vld [vmem:[%s1111_s1 + $0x160] ss:$16 sps:$4 sm:$0xff]  }
  0x13   :  { %455 = vmatpush1.bf16.msra.mxu0 %v775_v19  ;;  %508 = vmatpush1.bf16.msra.mxu1 %v776_v20  ;;  %v82_v52 = vld [vmem:[%s1113_s2] sm:$0xff]  ;;  %v83_v56 = vld [vmem:[%s1113_s2 + $0x8] sm:$0xff]  ;;  %v85_v57 = vld [vmem:[%s1113_s2 + $0x18] sm:$0xff] }
  0x14   :  { %456 = vmatprep.subr.bf16.mxu0 %v777_v21  ;;  %509 = vmatprep.subr.bf16.mxu1 %v779_v22  ;;  %v825_v58 = vld [vmem:[%s1111_s1 + $0x144] ss:$16 sps:$4 sm:$0xff]   ;;  %v827_v59 = vld [vmem:[%s1111_s1 + $0x14c] ss:$16 sps:$4 sm:$0xff]   ;;  %v829_v60 = vld [vmem:[%s1111_s1 + $0x140] ss:$16 sps:$4 sm:$0xff]  }
  0x15   :  { %88 = vperm.xlu0 %745, %v82_v52   ;;  %98 = vperm.xlu1 %746, %v84_v53   ;;  %v830_v61 = vld [vmem:[%s1111_s1 + $0x148] ss:$16 sps:$4 sm:$0xff]   ;;  %v831_v62 = vld [vmem:[%s1111_s1 + $0x124] ss:$16 sps:$4 sm:$0xff]   ;;  %v833_v63 = vld [vmem:[%s1111_s1 + $0x12c] ss:$16 sps:$4 sm:$0xff]  }
  0x16   :  { %v835_v0 = vld [vmem:[%s1111_s1 + $0x120] ss:$16 sps:$4 sm:$0xff]   ;;  %v836_v1 = vld [vmem:[%s1111_s1 + $0x128] ss:$16 sps:$4 sm:$0xff]   ;;  %v837_v2 = vld [vmem:[%s1111_s1 + $0x104] ss:$16 sps:$4 sm:$0xff]  }
  0x17   :  { %457 = vmatpush1.bf16.msra.mxu0 %v781_v23  ;;  %510 = vmatpush1.bf16.msra.mxu1 %v782_v24  ;;  %v839_v3 = vld [vmem:[%s1111_s1 + $0x10c] ss:$16 sps:$4 sm:$0xff]   ;;  %v841_v4 = vld [vmem:[%s1111_s1 + $0x100] ss:$16 sps:$4 sm:$0xff]   ;;  %v842_v5 = vld [vmem:[%s1111_s1 + $0x108] ss:$16 sps:$4 sm:$0xff]  }
  0x18   :  { %458 = vmatprep.subr.bf16.mxu0 %v783_v25  ;;  %511 = vmatprep.subr.bf16.mxu1 %v785_v26  ;;  %v843_v6 = vld [vmem:[%s1112_s0] ss:$8 sps:$4 sm:$0xff]   ;;  %v846_v7 = vld [vmem:[%s1112_s0 + $0x14] ss:$8 sps:$4 sm:$0xff]   ;;  %v848_v8 = vld [vmem:[%s1112_s0 + $0x10] ss:$8 sps:$4 sm:$0xff]  }
  0x19   :  { %93 = vperm.xlu0 %745, %v83_v56   ;;  %103 = vperm.xlu1 %746, %v85_v57  }
  0x1b   :  { %459 = vmatpush1.bf16.msra.mxu0 %v787_v27  ;;  %512 = vmatpush1.bf16.msra.mxu1 %v788_v28 }
  0x1c   :  { %460 = vmatprep.subr.bf16.mxu0 %v789_v29  ;;  %513 = vmatprep.subr.bf16.mxu1 %v791_v30 }
  0x1f   :  { %461 = vmatpush1.bf16.msra.mxu0 %v793_v31  ;;  %514 = vmatpush1.bf16.msra.mxu1 %v794_v32 }
  0x20   :  { %462 = vmatprep.subr.bf16.mxu0 %v795_v33  ;;  %515 = vmatprep.subr.bf16.mxu1 %v797_v34 }
  0x23   :  { %463 = vmatpush2.bf16.msra.mxu0 %v799_v35  ;;  %516 = vmatpush2.bf16.msra.mxu1 %v800_v36 }
  0x24   :  { %464 = vmatprep.subr.bf16.mxu0 %v801_v37  ;;  %517 = vmatprep.subr.bf16.mxu1 %v803_v38 }
  0x27   :  { %465 = vmatpush2.bf16.msra.mxu0 %v805_v39  ;;  %518 = vmatpush2.bf16.msra.mxu1 %v806_v40 }
  0x28   :  { %466 = vmatprep.subr.bf16.mxu0 %v807_v41  ;;  %519 = vmatprep.subr.bf16.mxu1 %v809_v42 }
  0x2b   :  { %467 = vmatpush2.bf16.msra.mxu0 %v811_v43  ;;  %520 = vmatpush2.bf16.msra.mxu1 %v812_v44 }
  0x2c   :  { %468 = vmatprep.subr.bf16.mxu0 %v813_v45  ;;  %521 = vmatprep.subr.bf16.mxu1 %v815_v46 }
  0x2f   :  { %469 = vmatpush2.bf16.msra.mxu0 %v817_v47  ;;  %522 = vmatpush2.bf16.msra.mxu1 %v818_v49 }
  0x30   :  { %470 = vmatprep.subr.bf16.mxu0 %v819_v50  ;;  %523 = vmatprep.subr.bf16.mxu1 %v821_v51 }
  0x33   :  { %471 = vmatpush2.bf16.msra.mxu0 %v823_v54  ;;  %524 = vmatpush2.bf16.msra.mxu1 %v824_v55 }
  0x34   :  { %472 = vmatprep.subr.bf16.mxu0 %v825_v58  ;;  %525 = vmatprep.subr.bf16.mxu1 %v827_v59 }
  0x37   :  { %473 = vmatpush2.bf16.msra.mxu0 %v829_v60  ;;  %526 = vmatpush2.bf16.msra.mxu1 %v830_v61 }
  0x38   :  { %474 = vmatprep.subr.bf16.mxu0 %v831_v62  ;;  %527 = vmatprep.subr.bf16.mxu1 %v833_v63 }
  0x3b   :  { %475 = vmatpush2.bf16.msra.mxu0 %v835_v0  ;;  %528 = vmatpush2.bf16.msra.mxu1 %v836_v1 }
  0x3c   :  { %476 = vmatprep.subr.bf16.mxu0 %v837_v2  ;;  %529 = vmatprep.subr.bf16.mxu1 %v839_v3 }
  0x3f   :  { %477 = vmatpush2.bf16.msra.mxu0 %v841_v4  ;;  %530 = vmatpush2.bf16.msra.mxu1 %v842_v5 }
  0x42   :  { %479 = vmatmul.mubr.bf16.vlgmr.msra.gmra.mxu0 %v843_v6  ;;  %532 = vmatmul.mubr.bf16.vlgmr.msra.gmra.mxu1 %v843_v6 }
  0x43   :  { %488 = vmatprep.mubr.bf16.mxu0 %v846_v7  ;;  %541 = vmatprep.mubr.bf16.mxu1 %v846_v7 }
  0x4a   :  { %489 = vmatmul.mubr.bf16.gmra.mxu0 %v848_v8  ;;  %542 = vmatmul.mubr.bf16.gmra.mxu1 %v848_v8 }
  0x90   :  { %v89_v9 = vpop.permute.xlu0 %88  ;;  %v99_v33 = vpop.permute.xlu1 %98 }
  0x94   :  { %v94_v14 = vpop.permute.xlu0 %93  ;;  %v104_v60 = vpop.permute.xlu1 %103 }
 0x102   :  { %v480_v10 = vpop.f32.mrf.mxu0  ;;  %v533_v11 = vpop.f32.mrf.mxu1 }
 0x103   :  { %v481_v12 = vadd.f32 %v480_v10, %v89_v9  ;;  %v534_v13 = vadd.f32 %v533_v11, %v89_v9 }
 0x104   :  { %v482_v15 = vpop.f32.mrf.mxu0  ;;  %v535_v16 = vpop.f32.mrf.mxu1 }
 0x105   :  { %v568_v17 = vmul.f32 0.2, %v481_v12  ;;  %v570_v18 = vmul.f32 0.2, %v534_v13  ;;  %vm552_vm0 = vcmp.gt.f32.partialorder %v481_v12, 0.0  ;;  %vm554_vm1 = vcmp.gt.f32.partialorder %v534_v13, 0.0 }
 0x106   :  { %v483_v19 = vadd.f32 %v482_v15, %v89_v9  ;;  %v536_v20 = vadd.f32 %v535_v16, %v89_v9  ;;  %v484_v21 = vpop.f32.mrf.mxu0  ;;  %v537_v22 = vpop.f32.mrf.mxu1 }
 0x107   :  { %v485_v23 = vadd.f32 %v484_v21, %v94_v14  ;;  %v538_v24 = vadd.f32 %v537_v22, %v94_v14  ;;  %v584_v29 = vsel %vm552_vm0, %v481_v12, %v568_v17  ;;  %v586_v30 = vsel %vm554_vm1, %v534_v13, %v570_v18 }
 0x108   :  { %vm553_vm2 = vcmp.gt.f32.partialorder %v483_v19, 0.0  ;;  %v569_v25 = vmul.f32 0.2, %v483_v19  ;;  %vm555_vm3 = vcmp.gt.f32.partialorder %v536_v20, 0.0  ;;  %v571_v26 = vmul.f32 0.2, %v536_v20  ;;  %v486_v27 = vpop.f32.mrf.mxu0  ;;  %v539_v28 = vpop.f32.mrf.mxu1 }
 0x109   :  { %v572_v31 = vmul.f32 0.2, %v485_v23  ;;  %v574_v32 = vmul.f32 0.2, %v538_v24  ;;  %v487_v36 = vadd.f32 %v486_v27, %v94_v14  ;;  %v540_v37 = vadd.f32 %v539_v28, %v94_v14 }
 0x10a   :  { %v585_v34 = vsel %vm553_vm2, %v483_v19, %v569_v25  ;;  %v587_v35 = vsel %vm555_vm3, %v536_v20, %v571_v26  ;;  %v490_v38 = vpop.f32.mrf.mxu0  ;;  %v543_v39 = vpop.f32.mrf.mxu1  ;;  %vm556_vm4 = vcmp.gt.f32.partialorder %v485_v23, 0.0  ;;  %vm558_vm5 = vcmp.gt.f32.partialorder %v538_v24, 0.0 }
 0x10b   :  { %v736_v40 = vpack.c.bf16 %v585_v34, %v584_v29  ;;  %v737_v41 = vpack.c.bf16 %v587_v35, %v586_v30  ;;  %vm557_vm6 = vcmp.gt.f32.partialorder %v487_v36, 0.0  ;;  %v573_v42 = vmul.f32 0.2, %v487_v36 }
 0x10c   :  { %vm559_vm7 = vcmp.gt.f32.partialorder %v540_v37, 0.0  ;;  %v575_v43 = vmul.f32 0.2, %v540_v37  ;;  %v492_v44 = vpop.f32.mrf.mxu0  ;;  %v545_v45 = vpop.f32.mrf.mxu1  ;;  %v491_v46 = vadd.f32 %v490_v38, %v99_v33  ;;  %v544_v47 = vadd.f32 %v543_v39, %v99_v33 }
 0x10d   :  { %648 = vst [vmem:[%s1114_s3] sm:$0xff] %v736_v40  ;;  %649 = vst [vmem:[%s1114_s3 + $0x8] sm:$0xff] %v737_v41  ;;  %v493_v48 = vadd.f32 %v492_v44, %v99_v33  ;;  %v546_v49 = vadd.f32 %v545_v45, %v99_v33  ;;  %v588_v50 = vsel %vm556_vm4, %v485_v23, %v572_v31 }
 0x10e   :  { %v590_v51 = vsel %vm558_vm5, %v538_v24, %v574_v32  ;;  %v589_v52 = vsel %vm557_vm6, %v487_v36, %v573_v42  ;;  %v591_v53 = vsel %vm559_vm7, %v540_v37, %v575_v43  ;;  %v494_v54 = vpop.f32.mrf.mxu0  ;;  %v547_v55 = vpop.f32.mrf.mxu1  ;;  %vm560_vm8 = vcmp.gt.f32.partialorder %v491_v46, 0.0 }
 0x10f   :  { %v738_v56 = vpack.c.bf16 %v589_v52, %v588_v50  ;;  %v739_v57 = vpack.c.bf16 %v591_v53, %v590_v51  ;;  %v576_v58 = vmul.f32 0.2, %v491_v46  ;;  %vm562_vm9 = vcmp.gt.f32.partialorder %v544_v47, 0.0 }
 0x110   :  { %v578_v59 = vmul.f32 0.2, %v544_v47  ;;  %vm561_vm10 = vcmp.gt.f32.partialorder %v493_v48, 0.0  ;;  %v577_v61 = vmul.f32 0.2, %v493_v48  ;;  %v496_v62 = vpop.f32.mrf.mxu0  ;;  %vm563_vm11 = vcmp.gt.f32.partialorder %v546_v49, 0.0  ;;  %v549_v5 = vpop.f32.mrf.mxu1 }
 0x111   :  { %650 = vst [vmem:[%s1114_s3 + $0x10] sm:$0xff] %v738_v56  ;;  %651 = vst [vmem:[%s1114_s3 + $0x18] sm:$0xff] %v739_v57  ;;  %v579_v63 = vmul.f32 0.2, %v546_v49  ;;  %v495_v0 = vadd.f32 %v494_v54, %v104_v60  ;;  %v592_v1 = vsel %vm560_vm8, %v491_v46, %v576_v58  ;;  %v548_v3 = vadd.f32 %v547_v55, %v104_v60 }
 0x112   :  { %v593_v2 = vsel %vm561_vm10, %v493_v48, %v577_v61  ;;  %v497_v4 = vadd.f32 %v496_v62, %v104_v60  ;;  %v594_v6 = vsel %vm562_vm9, %v544_v47, %v578_v59  ;;  %v550_v13 = vadd.f32 %v549_v5, %v104_v60 }
 0x113   :  { %v740_v7 = vpack.c.bf16 %v593_v2, %v592_v1  ;;  %v595_v8 = vsel %vm563_vm11, %v546_v49, %v579_v63  ;;  %v580_v9 = vmul.f32 0.2, %v495_v0  ;;  %vm564_vm12 = vcmp.gt.f32.partialorder %v495_v0, 0.0 }
 0x114   :  { %v741_v10 = vpack.c.bf16 %v595_v8, %v594_v6  ;;  %vm565_vm13 = vcmp.gt.f32.partialorder %v497_v4, 0.0  ;;  %v582_v11 = vmul.f32 0.2, %v548_v3  ;;  %v581_v12 = vmul.f32 0.2, %v497_v4 }
 0x115   :  { %652 = vst [vmem:[%s1114_s3 + $0x20] sm:$0xff] %v740_v7  ;;  %vm566_vm14 = vcmp.gt.f32.partialorder %v548_v3, 0.0  ;;  %v596_v14 = vsel %vm564_vm12, %v495_v0, %v580_v9  ;;  %vm567_vm15 = vcmp.gt.f32.partialorder %v550_v13, 0.0  ;;  %v583_v16 = vmul.f32 0.2, %v550_v13 }
 0x116   :  { %653 = vst [vmem:[%s1114_s3 + $0x28] sm:$0xff] %v741_v10  ;;  %v597_v15 = vsel %vm565_vm13, %v497_v4, %v581_v12  ;;  %v598_v18 = vsel %vm566_vm14, %v548_v3, %v582_v11 }
 0x117   :  { %v742_v17 = vpack.c.bf16 %v597_v15, %v596_v14  ;;  %v599_v19 = vsel %vm567_vm15, %v550_v13, %v583_v16 }
 0x118   :  { %v743_v20 = vpack.c.bf16 %v599_v19, %v598_v18 }
 0x119   :  { %654 = vst [vmem:[%s1114_s3 + $0x30] sm:$0xff] %v742_v17 }
 0x11a   :  { %655 = vst [vmem:[%s1114_s3 + $0x38] sm:$0xff] %v743_v20 }

// kernel: vae_forward.11
= control target key start
LH: loop header
LB: loop body
LE: loop exit
PB: predicated region body
PF: predicated region fallthrough
CT: control target
= control target key end

     0   :  { %vm152_vm0 = vcmask 1043456   ;;  %v1132_v2 = vmov 0   ;;  %vm148_vm1 = vcmask 588800   ;;  %s1635_s1 = inlined_call_operand.vmem [shape: bf16[72,512], index: 1, kind: input, shape index: {}]   ;;  %s1636_s0 = inlined_call_operand.vmem [shape: bf16[64,72], index: 0, kind: input, shape index: {}]   ;;  %s1637_s2 = inlined_call_operand.vmem [shape: f32[16,1], index: 2, kind: input, shape index: {}]   ;;  %s1638_s3 = inlined_call_operand.vmem [shape: f32[16,1], index: 3, kind: input, shape index: {}]   ;;  %s1639_s4 = inlined_call_operand.vmem [shape: f32[16,1], index: 4, kind: input, shape index: {}]   ;;  %s1640_s5 = inlined_call_operand.vmem [shape: bf16[64,512], index: 5, kind: output, shape index: {}]  }
   0x1   :  { %v37_v0 = vld [vmem:[%s1635_s1 + $0x80] sm:$0xff]  ;;  %v38_v1 = vld [vmem:[%s1635_s1 + $0x88] sm:$0xff]  ;;  %197 = vmatprep.mubr.bf16.mxu0 %v1132_v2  ;;  %240 = vmatprep.mubr.bf16.mxu1 %v1132_v2  ;;  %v1126_v29 = vld [vmem:[%s1636_s0 + $0x10] sm:$0xff]  }
   0x2   :  { %v1171_v3 = vcombine.high %v37_v0, %v37_v0  ;;  %v1173_v4 = vcombine.high %v38_v1, %v38_v1  ;;  %v1038_v5 = vcombine.low %v37_v0, %v37_v0  ;;  %v1040_v6 = vcombine.low %v38_v1, %v38_v1  ;;  %v1178_v7 = vld [vmem:[%s1635_s1 + $0x64] ss:$16 sps:$4 sm:$0xff]   ;;  %1094 = vset.pattern.permute.xlu0 %v1132_v2  ;;  %v1184_v8 = vld [vmem:[%s1635_s1 + $0x6c] ss:$16 sps:$4 sm:$0xff]   ;;  %v1200_v11 = vld [vmem:[%s1635_s1 + $0x60] ss:$16 sps:$4 sm:$0xff]  }
   0x3   :  { %1095 = vset.pattern.permute.xlu1 %v1132_v2  ;;  %v1207_v12 = vld [vmem:[%s1635_s1 + $0x68] ss:$16 sps:$4 sm:$0xff]   ;;  %v1214_v13 = vld [vmem:[%s1635_s1 + $0x44] ss:$16 sps:$4 sm:$0xff]   ;;  %v1219_v14 = vld [vmem:[%s1635_s1 + $0x4c] ss:$16 sps:$4 sm:$0xff]  }
   0x4   :  { %1042 = vmatprep.subr.msk.bf16.mxu0 %vm152_vm0, %v1171_v3  ;;  %1044 = vmatprep.subr.msk.bf16.mxu1 %vm152_vm0, %v1173_v4  ;;  %v1192_v9 = vsel %vm152_vm0, %v1038_v5, 0  ;;  %v1195_v10 = vsel %vm152_vm0, %v1040_v6, 0  ;;  %v1224_v15 = vld [vmem:[%s1635_s1 + $0x40] ss:$16 sps:$4 sm:$0xff]   ;;  %v1231_v16 = vld [vmem:[%s1635_s1 + $0x48] ss:$16 sps:$4 sm:$0xff]  }
   0x5   :  { %172 = vmatpush1.bf16.msra.mxu0 %v1192_v9  ;;  %215 = vmatpush1.bf16.msra.mxu1 %v1195_v10  ;;  %v1236_v17 = vld [vmem:[%s1635_s1 + $0x24] ss:$16 sps:$4 sm:$0xff]   ;;  %v1243_v18 = vld [vmem:[%s1635_s1 + $0x2c] ss:$16 sps:$4 sm:$0xff]   ;;  %v1248_v19 = vld [vmem:[%s1635_s1 + $0x20] ss:$16 sps:$4 sm:$0xff]  }
   0x6   :  { %173 = vmatprep.subr.bf16.mxu0 %v1178_v7  ;;  %216 = vmatprep.subr.bf16.mxu1 %v1184_v8  ;;  %v1253_v20 = vld [vmem:[%s1635_s1 + $0x28] ss:$16 sps:$4 sm:$0xff]   ;;  %v1260_v21 = vld [vmem:[%s1635_s1 + $0x4] ss:$16 sps:$4 sm:$0xff]   ;;  %v1267_v22 = vld [vmem:[%s1635_s1 + $0xc] ss:$16 sps:$4 sm:$0xff]  }
   0x7   :  { %v41_v23 = vld [vmem:[%s1637_s2] sm:$0xff]  ;;  %v1282_v25 = vld [vmem:[%s1635_s1 + $0x8] ss:$16 sps:$4 sm:$0xff]  }
   0x8   :  { %v1277_v24 = vld [vmem:[%s1635_s1] ss:$16 sps:$4 sm:$0xff]   ;;  %45 = vperm.xlu0 %1094, %v41_v23   ;;  %297 = vperm.xlu1 %1095, %v41_v23   ;;  %v42_v27 = vld [vmem:[%s1637_s2 + $0x8] sm:$0xff]  ;;  %v1127_v30 = vld [vmem:[%s1636_s0 + $0x18] sm:$0xff]  }
   0x9   :  { %174 = vmatpush1.bf16.msra.mxu0 %v1200_v11  ;;  %217 = vmatpush1.bf16.msra.mxu1 %v1207_v12  ;;  %v1124_v26 = vld [vmem:[%s1636_s0] sm:$0xff]   ;;  %v1125_v28 = vld [vmem:[%s1636_s0 + $0x8] sm:$0xff]  }
   0xa   :  { %175 = vmatprep.subr.bf16.mxu0 %v1214_v13  ;;  %218 = vmatprep.subr.bf16.mxu1 %v1219_v14 }
   0xc   :  { %50 = vperm.xlu0 %1094, %v42_v27   ;;  %302 = vperm.xlu1 %1095, %v42_v27  }
   0xd   :  { %176 = vmatpush1.bf16.msra.mxu0 %v1224_v15  ;;  %219 = vmatpush1.bf16.msra.mxu1 %v1231_v16 }
   0xe   :  { %177 = vmatprep.subr.bf16.mxu0 %v1236_v17  ;;  %220 = vmatprep.subr.bf16.mxu1 %v1243_v18 }
  0x10   :  { %445 = vperm.xlu0 %1094, %v41_v23   ;;  %450 = vperm.xlu1 %1095, %v42_v27  }
  0x11   :  { %178 = vmatpush1.bf16.msra.mxu0 %v1248_v19  ;;  %221 = vmatpush1.bf16.msra.mxu1 %v1253_v20 }
  0x12   :  { %179 = vmatprep.subr.bf16.mxu0 %v1260_v21  ;;  %222 = vmatprep.subr.bf16.mxu1 %v1267_v22 }
  0x14   :  { %593 = vperm.xlu0 %1094, %v41_v23   ;;  %598 = vperm.xlu1 %1095, %v42_v27  }
  0x15   :  { %180 = vmatpush1.bf16.msra.mxu0 %v1277_v24  ;;  %223 = vmatpush1.bf16.msra.mxu1 %v1282_v25 }
  0x16   :  { %1047 = vmatprep.subr.msk.bf16.mxu0 %vm152_vm0, %v1171_v3  ;;  %1049 = vmatprep.subr.msk.bf16.mxu1 %vm152_vm0, %v1173_v4 }
  0x18   :  { %1043 = vmatmul.mubr.msk.bf16.vlgmr.msra.gmra.mxu0 %vm148_vm1, %v1124_v26  ;;  %1045 = vmatmul.mubr.msk.bf16.vlgmr.msra.gmra.mxu1 %vm148_vm1, %v1124_v26 }
  0x19   :  { %320 = vmatpush1.bf16.msra.mxu0 %v1192_v9  ;;  %363 = vmatpush1.bf16.msra.mxu1 %v1195_v10 }
  0x1a   :  { %321 = vmatprep.subr.bf16.mxu0 %v1178_v7  ;;  %364 = vmatprep.subr.bf16.mxu1 %v1184_v8 }
  0x1b   :  { %345 = vmatprep.mubr.bf16.mxu0 %v1132_v2  ;;  %388 = vmatprep.mubr.bf16.mxu1 %v1132_v2 }
  0x1d   :  { %322 = vmatpush1.bf16.msra.mxu0 %v1200_v11  ;;  %365 = vmatpush1.bf16.msra.mxu1 %v1207_v12 }
  0x1e   :  { %323 = vmatprep.subr.bf16.mxu0 %v1214_v13  ;;  %366 = vmatprep.subr.bf16.mxu1 %v1219_v14 }
  0x21   :  { %324 = vmatpush1.bf16.msra.mxu0 %v1224_v15  ;;  %367 = vmatpush1.bf16.msra.mxu1 %v1231_v16 }
  0x22   :  { %325 = vmatprep.subr.bf16.mxu0 %v1236_v17  ;;  %368 = vmatprep.subr.bf16.mxu1 %v1243_v18 }
  0x25   :  { %326 = vmatpush1.bf16.msra.mxu0 %v1248_v19  ;;  %369 = vmatpush1.bf16.msra.mxu1 %v1253_v20 }
  0x26   :  { %327 = vmatprep.subr.bf16.mxu0 %v1260_v21  ;;  %370 = vmatprep.subr.bf16.mxu1 %v1267_v22 }
  0x29   :  { %328 = vmatpush1.bf16.msra.mxu0 %v1277_v24  ;;  %371 = vmatpush1.bf16.msra.mxu1 %v1282_v25 }
  0x2a   :  { %1052 = vmatprep.subr.msk.bf16.mxu0 %vm152_vm0, %v1171_v3  ;;  %1054 = vmatprep.subr.msk.bf16.mxu1 %vm152_vm0, %v1173_v4 }
  0x2c   :  { %1048 = vmatmul.mubr.msk.bf16.vlgmr.msra.gmra.mxu0 %vm148_vm1, %v1125_v28  ;;  %1050 = vmatmul.mubr.msk.bf16.vlgmr.msra.gmra.mxu1 %vm148_vm1, %v1125_v28 }
  0x2d   :  { %468 = vmatpush1.bf16.msra.mxu0 %v1192_v9  ;;  %511 = vmatpush1.bf16.msra.mxu1 %v1195_v10 }
  0x2e   :  { %469 = vmatprep.subr.bf16.mxu0 %v1178_v7  ;;  %512 = vmatprep.subr.bf16.mxu1 %v1184_v8 }
  0x2f   :  { %493 = vmatprep.mubr.bf16.mxu0 %v1132_v2  ;;  %536 = vmatprep.mubr.bf16.mxu1 %v1132_v2 }
  0x31   :  { %470 = vmatpush1.bf16.msra.mxu0 %v1200_v11  ;;  %513 = vmatpush1.bf16.msra.mxu1 %v1207_v12 }
  0x32   :  { %471 = vmatprep.subr.bf16.mxu0 %v1214_v13  ;;  %514 = vmatprep.subr.bf16.mxu1 %v1219_v14 }
  0x35   :  { %472 = vmatpush1.bf16.msra.mxu0 %v1224_v15  ;;  %515 = vmatpush1.bf16.msra.mxu1 %v1231_v16 }
  0x36   :  { %473 = vmatprep.subr.bf16.mxu0 %v1236_v17  ;;  %516 = vmatprep.subr.bf16.mxu1 %v1243_v18 }
  0x39   :  { %474 = vmatpush1.bf16.msra.mxu0 %v1248_v19  ;;  %517 = vmatpush1.bf16.msra.mxu1 %v1253_v20 }
  0x3a   :  { %475 = vmatprep.subr.bf16.mxu0 %v1260_v21  ;;  %518 = vmatprep.subr.bf16.mxu1 %v1267_v22 }
  0x3d   :  { %476 = vmatpush1.bf16.msra.mxu0 %v1277_v24  ;;  %519 = vmatpush1.bf16.msra.mxu1 %v1282_v25 }
  0x3e   :  { %1057 = vmatprep.subr.msk.bf16.mxu0 %vm152_vm0, %v1171_v3  ;;  %1059 = vmatprep.subr.msk.bf16.mxu1 %vm152_vm0, %v1173_v4 }
  0x40   :  { %1053 = vmatmul.mubr.msk.bf16.vlgmr.msra.gmra.mxu0 %vm148_vm1, %v1126_v29  ;;  %1055 = vmatmul.mubr.msk.bf16.vlgmr.msra.gmra.mxu1 %vm148_vm1, %v1126_v29 }
  0x41   :  { %616 = vmatpush1.bf16.msra.mxu0 %v1192_v9  ;;  %659 = vmatpush1.bf16.msra.mxu1 %v1195_v10 }
  0x42   :  { %617 = vmatprep.subr.bf16.mxu0 %v1178_v7  ;;  %660 = vmatprep.subr.bf16.mxu1 %v1184_v8 }
  0x43   :  { %641 = vmatprep.mubr.bf16.mxu0 %v1132_v2  ;;  %684 = vmatprep.mubr.bf16.mxu1 %v1132_v2 }
  0x45   :  { %618 = vmatpush1.bf16.msra.mxu0 %v1200_v11  ;;  %661 = vmatpush1.bf16.msra.mxu1 %v1207_v12 }
  0x46   :  { %619 = vmatprep.subr.bf16.mxu0 %v1214_v13  ;;  %662 = vmatprep.subr.bf16.mxu1 %v1219_v14 }
  0x49   :  { %620 = vmatpush1.bf16.msra.mxu0 %v1224_v15  ;;  %663 = vmatpush1.bf16.msra.mxu1 %v1231_v16 }
  0x4a   :  { %621 = vmatprep.subr.bf16.mxu0 %v1236_v17  ;;  %664 = vmatprep.subr.bf16.mxu1 %v1243_v18 }
  0x4d   :  { %622 = vmatpush1.bf16.msra.mxu0 %v1248_v19  ;;  %665 = vmatpush1.bf16.msra.mxu1 %v1253_v20 }
  0x4e   :  { %623 = vmatprep.subr.bf16.mxu0 %v1260_v21  ;;  %666 = vmatprep.subr.bf16.mxu1 %v1267_v22 }
  0x51   :  { %624 = vmatpush1.bf16.msra.mxu0 %v1277_v24  ;;  %667 = vmatpush1.bf16.msra.mxu1 %v1282_v25 }
  0x54   :  { %1058 = vmatmul.mubr.msk.bf16.vlgmr.msra.gmra.mxu0 %vm148_vm1, %v1127_v30  ;;  %1060 = vmatmul.mubr.msk.bf16.vlgmr.msra.gmra.mxu1 %vm148_vm1, %v1127_v30 }
  0x83   :  { %v46_v31 = vpop.permute.xlu0 %45  ;;  %v298_v4 = vpop.permute.xlu1 %297 }
  0x87   :  { %v51_v35 = vpop.permute.xlu0 %50  ;;  %v303_v9 = vpop.permute.xlu1 %302 }
  0xd8   :  { %v199_v32 = vpop.f32.mrf.mxu0  ;;  %v242_v33 = vpop.f32.mrf.mxu1 }
  0xd9   :  { %v1383_v34 = vadd.f32 %v199_v32, %v46_v31  ;;  %v1385_v36 = vadd.f32 %v242_v33, %v46_v31 }
  0xda   :  { %v201_v37 = vpop.f32.mrf.mxu0  ;;  %v244_v38 = vpop.f32.mrf.mxu1 }
  0xdb   :  { %v1387_v39 = vadd.f32 %v201_v37, %v46_v31  ;;  %v271_v40 = vmul.f32 %v1383_v34, %v1383_v34  ;;  %v1391_v41 = vadd.f32 %v244_v38, %v46_v31  ;;  %v273_v47 = vmul.f32 %v1385_v36, %v1385_v36 }
  0xdc   :  { %v203_v42 = vpop.f32.mrf.mxu0  ;;  %v246_v43 = vpop.f32.mrf.mxu1 }
  0xdd   :  { %v259_v44 = vadd.f32 %v1387_v39, %v1383_v34  ;;  %v272_v45 = vmul.f32 %v1387_v39, %v1387_v39  ;;  %v1397_v46 = vadd.f32 %v203_v42, %v51_v35  ;;  %v1401_v50 = vadd.f32 %v246_v43, %v51_v35 }
  0xde   :  { %v205_v48 = vpop.f32.mrf.mxu0  ;;  %v248_v49 = vpop.f32.mrf.mxu1  ;;  %v274_v53 = vmul.f32 %v1391_v41, %v1391_v41 }
  0xdf   :  { %v1403_v51 = vadd.f32 %v205_v48, %v51_v35  ;;  %v260_v52 = vadd.f32 %v259_v44, %v1385_v36  ;;  %v279_v54 = vadd.f32 %v272_v45, %v271_v40  ;;  %v275_v55 = vmul.f32 %v1397_v46, %v1397_v46 }
  0xe0   :  { %v1414_v58 = vadd.f32 %v248_v49, %v51_v35  ;;  %v277_v61 = vmul.f32 %v1401_v50, %v1401_v50 }
  0xe1   :  { %v264_v56 = vadd.f32 %v1403_v51, %v1397_v46  ;;  %v276_v57 = vmul.f32 %v1403_v51, %v1403_v51  ;;  %v261_v59 = vadd.f32 %v260_v52, %v1391_v41  ;;  %v280_v60 = vadd.f32 %v279_v54, %v273_v47  ;;  %v446_v52 = vpop.permute.xlu0 %445 }
  0xe2   :  { %v278_v1 = vmul.f32 %v1414_v58, %v1414_v58 }
  0xe3   :  { %v284_v62 = vadd.f32 %v276_v57, %v275_v55  ;;  %262 = vadd.xlane.f32.xlu0 %v261_v59  ;;  %v281_v63 = vadd.f32 %v280_v60, %v274_v53  ;;  %v265_v0 = vadd.f32 %v264_v56, %v1401_v50  ;;  %v451_v56 = vpop.permute.xlu1 %450 }
  0xe5   :  { %v285_v2 = vadd.f32 %v284_v62, %v277_v61  ;;  %282 = vadd.xlane.f32.xlu1 %v281_v63  ;;  %v266_v5 = vadd.f32 %v265_v0, %v1414_v58 }
  0xe7   :  { %v286_v3 = vadd.f32 %v285_v2, %v278_v1 }
  0xe9   :  { %287 = vadd.xlane.f32.xlu0 %v286_v3  ;;  %267 = vadd.xlane.f32.xlu1 %v266_v5 }
  0xec   :  { %v347_v6 = vpop.f32.mrf.mxu0  ;;  %v390_v7 = vpop.f32.mrf.mxu1 }
  0xed   :  { %v1423_v8 = vadd.f32 %v347_v6, %v298_v4  ;;  %v1425_v10 = vadd.f32 %v390_v7, %v298_v4 }
  0xee   :  { %v349_v11 = vpop.f32.mrf.mxu0  ;;  %v392_v12 = vpop.f32.mrf.mxu1 }
  0xef   :  { %v1427_v13 = vadd.f32 %v349_v11, %v298_v4  ;;  %v419_v14 = vmul.f32 %v1423_v8, %v1423_v8  ;;  %v1431_v15 = vadd.f32 %v392_v12, %v298_v4  ;;  %v421_v21 = vmul.f32 %v1425_v10, %v1425_v10 }
  0xf0   :  { %v351_v16 = vpop.f32.mrf.mxu0  ;;  %v394_v17 = vpop.f32.mrf.mxu1 }
  0xf1   :  { %v407_v18 = vadd.f32 %v1427_v13, %v1423_v8  ;;  %v420_v19 = vmul.f32 %v1427_v13, %v1427_v13  ;;  %v1437_v20 = vadd.f32 %v351_v16, %v303_v9  ;;  %v1443_v24 = vadd.f32 %v394_v17, %v303_v9 }
  0xf2   :  { %v353_v22 = vpop.f32.mrf.mxu0  ;;  %v396_v25 = vpop.f32.mrf.mxu1  ;;  %v422_v27 = vmul.f32 %v1431_v15, %v1431_v15 }
  0xf3   :  { %v1441_v23 = vadd.f32 %v353_v22, %v303_v9  ;;  %v408_v26 = vadd.f32 %v407_v18, %v1425_v10  ;;  %v427_v28 = vadd.f32 %v420_v19, %v419_v14  ;;  %v423_v29 = vmul.f32 %v1437_v20, %v1437_v20 }
  0xf4   :  { %v1455_v35 = vadd.f32 %v396_v25, %v303_v9  ;;  %v425_v40 = vmul.f32 %v1443_v24, %v1443_v24 }
  0xf5   :  { %v412_v30 = vadd.f32 %v1441_v23, %v1437_v20  ;;  %v424_v31 = vmul.f32 %v1441_v23, %v1441_v23  ;;  %v409_v32 = vadd.f32 %v408_v26, %v1431_v15  ;;  %v428_v33 = vadd.f32 %v427_v28, %v421_v21 }
  0xf6   :  { %v426_v45 = vmul.f32 %v1455_v35, %v1455_v35 }
  0xf7   :  { %v413_v37 = vadd.f32 %v412_v30, %v1443_v24  ;;  %v432_v38 = vadd.f32 %v424_v31, %v423_v29  ;;  %410 = vadd.xlane.f32.xlu0 %v409_v32  ;;  %v429_v42 = vadd.f32 %v428_v33, %v422_v27 }
  0xf9   :  { %v414_v43 = vadd.f32 %v413_v37, %v1455_v35  ;;  %430 = vadd.xlane.f32.xlu1 %v429_v42  ;;  %v433_v44 = vadd.f32 %v432_v38, %v425_v40  ;;  %v594_v37 = vpop.permute.xlu0 %593 }
  0xfb   :  { %415 = vadd.xlane.f32.xlu0 %v414_v43  ;;  %v434_v47 = vadd.f32 %v433_v44, %v426_v45  ;;  %v599_v43 = vpop.permute.xlu1 %598 }
  0xff   :  { %435 = vadd.xlane.f32.xlu0 %v434_v47 }
 0x100   :  { %v495_v48 = vpop.f32.mrf.mxu0  ;;  %v538_v49 = vpop.f32.mrf.mxu1 }
 0x101   :  { %v1463_v53 = vadd.f32 %v495_v48, %v446_v52  ;;  %v1467_v59 = vadd.f32 %v538_v49, %v446_v52 }
 0x102   :  { %v497_v54 = vpop.f32.mrf.mxu0  ;;  %v540_v55 = vpop.f32.mrf.mxu1 }
 0x103   :  { %v1465_v57 = vadd.f32 %v497_v54, %v446_v52  ;;  %v567_v1 = vmul.f32 %v1463_v53, %v1463_v53  ;;  %v569_v5 = vmul.f32 %v1467_v59, %v1467_v59  ;;  %v1483_v6 = vadd.f32 %v540_v55, %v446_v52 }
 0x104   :  { %v499_v60 = vpop.f32.mrf.mxu0  ;;  %v542_v61 = vpop.f32.mrf.mxu1 }
 0x105   :  { %v555_v62 = vadd.f32 %v1465_v57, %v1463_v53  ;;  %v568_v63 = vmul.f32 %v1465_v57, %v1465_v57  ;;  %v1473_v0 = vadd.f32 %v499_v60, %v451_v56  ;;  %v1477_v3 = vadd.f32 %v542_v61, %v451_v56 }
 0x106   :  { %v501_v2 = vpop.f32.mrf.mxu0  ;;  %v544_v7 = vpop.f32.mrf.mxu1  ;;  %v570_v26 = vmul.f32 %v1483_v6, %v1483_v6 }
 0x107   :  { %v1479_v4 = vadd.f32 %v501_v2, %v451_v56  ;;  %v556_v9 = vadd.f32 %v555_v62, %v1467_v59  ;;  %v575_v11 = vadd.f32 %v568_v63, %v567_v1  ;;  %v571_v12 = vmul.f32 %v1473_v0, %v1473_v0 }
 0x108   :  { %v573_v19 = vmul.f32 %v1477_v3, %v1477_v3  ;;  %v1495_v21 = vadd.f32 %v544_v7, %v451_v56 }
 0x109   :  { %v560_v14 = vadd.f32 %v1479_v4, %v1473_v0  ;;  %v572_v16 = vmul.f32 %v1479_v4, %v1479_v4  ;;  %v557_v17 = vadd.f32 %v556_v9, %v1483_v6  ;;  %v576_v18 = vadd.f32 %v575_v11, %v569_v5 }
 0x10a   :  { %v574_v30 = vmul.f32 %v1495_v21, %v1495_v21 }
 0x10b   :  { %v561_v22 = vadd.f32 %v560_v14, %v1477_v3  ;;  %v580_v25 = vadd.f32 %v572_v16, %v571_v12  ;;  %558 = vadd.xlane.f32.xlu1 %v557_v17  ;;  %v577_v29 = vadd.f32 %v576_v18, %v570_v26 }
 0x10d   :  { %v562_v27 = vadd.f32 %v561_v22, %v1495_v21  ;;  %v581_v28 = vadd.f32 %v580_v25, %v573_v19 }
 0x10f   :  { %563 = vadd.xlane.f32.xlu0 %v562_v27  ;;  %578 = vadd.xlane.f32.xlu1 %v577_v29  ;;  %v582_v31 = vadd.f32 %v581_v28, %v574_v30 }
 0x113   :  { %583 = vadd.xlane.f32.xlu0 %v582_v31 }
 0x114   :  { %v643_v32 = vpop.f32.mrf.mxu0  ;;  %v686_v33 = vpop.f32.mrf.mxu1 }
 0x115   :  { %v1503_v38 = vadd.f32 %v643_v32, %v594_v37  ;;  %v1507_v45 = vadd.f32 %v686_v33, %v594_v37 }
 0x116   :  { %v645_v40 = vpop.f32.mrf.mxu0  ;;  %v688_v42 = vpop.f32.mrf.mxu1 }
 0x117   :  { %v1505_v44 = vadd.f32 %v645_v40, %v594_v37  ;;  %v715_v55 = vmul.f32 %v1503_v38, %v1503_v38  ;;  %v717_v62 = vmul.f32 %v1507_v45, %v1507_v45  ;;  %v1523_v63 = vadd.f32 %v688_v42, %v594_v37 }
 0x118   :  { %v647_v47 = vpop.f32.mrf.mxu0  ;;  %v690_v48 = vpop.f32.mrf.mxu1 }
 0x119   :  { %v703_v49 = vadd.f32 %v1505_v44, %v1503_v38  ;;  %v716_v52 = vmul.f32 %v1505_v44, %v1505_v44  ;;  %v1513_v54 = vadd.f32 %v647_v47, %v599_v43  ;;  %v1517_v60 = vadd.f32 %v690_v48, %v599_v43 }
 0x11a   :  { %v649_v56 = vpop.f32.mrf.mxu0  ;;  %v692_v1 = vpop.f32.mrf.mxu1  ;;  %v718_v22 = vmul.f32 %v1523_v63, %v1523_v63 }
 0x11b   :  { %v1519_v61 = vadd.f32 %v649_v56, %v599_v43  ;;  %v704_v2 = vadd.f32 %v703_v49, %v1507_v45  ;;  %v723_v5 = vadd.f32 %v716_v52, %v715_v55  ;;  %v719_v7 = vmul.f32 %v1513_v54, %v1513_v54 }
 0x11c   :  { %v721_v16 = vmul.f32 %v1517_v60, %v1517_v60  ;;  %v1535_v17 = vadd.f32 %v692_v1, %v599_v43 }
 0x11d   :  { %v708_v9 = vadd.f32 %v1519_v61, %v1513_v54  ;;  %v720_v11 = vmul.f32 %v1519_v61, %v1519_v61  ;;  %v705_v12 = vadd.f32 %v704_v2, %v1523_v63  ;;  %v724_v14 = vadd.f32 %v723_v5, %v717_v62 }
 0x11e   :  { %v722_v28 = vmul.f32 %v1535_v17, %v1535_v17 }
 0x11f   :  { %v709_v18 = vadd.f32 %v708_v9, %v1517_v60  ;;  %v728_v19 = vadd.f32 %v720_v11, %v719_v7  ;;  %706 = vadd.xlane.f32.xlu1 %v705_v12  ;;  %v725_v27 = vadd.f32 %v724_v14, %v718_v22 }
 0x121   :  { %v710_v25 = vadd.f32 %v709_v18, %v1535_v17  ;;  %v729_v26 = vadd.f32 %v728_v19, %v721_v16 }
 0x123   :  { %711 = vadd.xlane.f32.xlu0 %v710_v25  ;;  %726 = vadd.xlane.f32.xlu1 %v725_v27  ;;  %v730_v29 = vadd.f32 %v729_v26, %v722_v28 }
 0x127   :  { %731 = vadd.xlane.f32.xlu0 %v730_v29 }
 0x16c   :  { %v263_v30 = vpop.xlane.xlu0 %262 }
 0x16e   :  { %v283_v32 = vpop.xlane.xlu1 %282 }
 0x172   :  { %v288_v31 = vpop.xlane.xlu0 %287  ;;  %v268_v37 = vpop.xlane.xlu1 %267 }
 0x180   :  { %v411_v33 = vpop.xlane.xlu0 %410 }
 0x181   :  { %v417_v52 = vadd.f32 %v411_v33, %v263_v30 }
 0x182   :  { %v431_v42 = vpop.xlane.xlu1 %430 }
 0x183   :  { %v437_v2 = vadd.f32 %v431_v42, %v283_v32 }
 0x184   :  { %v416_v40 = vpop.xlane.xlu0 %415 }
 0x185   :  { %v418_v62 = vadd.f32 %v416_v40, %v268_v37 }
 0x188   :  { %v436_v43 = vpop.xlane.xlu0 %435 }
 0x189   :  { %v438_v14 = vadd.f32 %v436_v43, %v288_v31  ;;  %v743_v31 = vld [vmem:[%s1638_s3] sm:$0xff] }
 0x194   :  { %v559_v47 = vpop.xlane.xlu1 %558 }
 0x195   :  { %v565_v55 = vadd.f32 %v559_v47, %v417_v52 }
 0x198   :  { %v564_v48 = vpop.xlane.xlu0 %563  ;;  %v579_v49 = vpop.xlane.xlu1 %578 }
 0x199   :  { %v566_v7 = vadd.f32 %v564_v48, %v418_v62  ;;  %v585_v9 = vadd.f32 %v579_v49, %v437_v2  ;;  %v744_v48 = vld [vmem:[%s1638_s3 + $0x8] sm:$0xff]  ;;  %v751_v49 = vld [vmem:[%s1639_s4] sm:$0xff] }
 0x19c   :  { %v584_v56 = vpop.xlane.xlu0 %583 }
 0x19d   :  { %v586_v22 = vadd.f32 %v584_v56, %v438_v14 }
 0x1a8   :  { %v707_v1 = vpop.xlane.xlu1 %706 }
 0x1a9   :  { %v713_v5 = vadd.f32 %v707_v1, %v565_v55  ;;  %v752_v1 = vld [vmem:[%s1639_s4 + $0x8] sm:$0xff] }
 0x1ab   :  { %v735_v11 = vmul.f32 0.00048828125, %v713_v5 }
 0x1ac   :  { %v712_v12 = vpop.xlane.xlu0 %711  ;;  %v727_v16 = vpop.xlane.xlu1 %726 }
 0x1ad   :  { %v714_v18 = vadd.f32 %v712_v12, %v566_v7  ;;  %v733_v19 = vadd.f32 %v727_v16, %v585_v9  ;;  %v739_v26 = vmul.f32 %v735_v11, %v735_v11 }
 0x1af   :  { %v736_v25 = vmul.f32 0.00048828125, %v714_v18  ;;  %v737_v27 = vmul.f32 0.00048828125, %v733_v19 }
 0x1b0   :  { %v732_v28 = vpop.xlane.xlu0 %731 }
 0x1b1   :  { %v734_v29 = vadd.f32 %v732_v28, %v586_v22  ;;  %v741_v30 = vsub.f32 %v737_v27, %v739_v26  ;;  %v740_v33 = vmul.f32 %v736_v25, %v736_v25 }
 0x1b3   :  { %v738_v37 = vmul.f32 0.00048828125, %v734_v29  ;;  %v745_v40 = vadd.f32 1e-05, %v741_v30 }
 0x1b5   :  { %v742_v32 = vsub.f32 %v738_v37, %v740_v33  ;;  %1128 = vrsqrt.f32 %v745_v40 }
 0x1b7   :  { %v746_v42 = vadd.f32 1e-05, %v742_v32 }
 0x1b9   :  { %1130 = vrsqrt.f32 %v746_v42 }
 0x1c2   :  { %v1129_v43 = vpop.eup %1128 }
 0x1c3   :  { %v749_v47 = vmul.f32 %v1129_v43, %v743_v31 }
 0x1c5   :  { %767 = vperm.xlu1 %1095, %v749_v47   ;;  %v753_v55 = vmul.f32 %v749_v47, %v735_v11 }
 0x1c6   :  { %v1131_v52 = vpop.eup %1130 }
 0x1c7   :  { %v750_v56 = vmul.f32 %v1131_v52, %v744_v48  ;;  %v755_v62 = vsub.f32 %v751_v49, %v753_v55 }
 0x1c9   :  { %772 = vperm.xlu0 %1094, %v750_v56   ;;  %v754_v2 = vmul.f32 %v750_v56, %v736_v25  ;;  %785 = vperm.xlu1 %1095, %v755_v62  }
 0x1cb   :  { %v756_v5 = vsub.f32 %v752_v1, %v754_v2 }
 0x1cd   :  { %790 = vperm.xlu1 %1095, %v756_v5  }
 0x240   :  { %v768_v7 = vpop.permute.xlu1 %767 }
 0x241   :  { %v775_v9 = vmul.f32 %v768_v7, %v1383_v34  ;;  %v776_v12 = vmul.f32 %v768_v7, %v1387_v39  ;;  %v777_v14 = vmul.f32 %v768_v7, %v1385_v36  ;;  %v778_v11 = vmul.f32 %v768_v7, %v1391_v41 }
 0x242   :  { %v845_v16 = vmul.f32 %v768_v7, %v1423_v8  ;;  %v846_v18 = vmul.f32 %v768_v7, %v1427_v13  ;;  %v847_v19 = vmul.f32 %v768_v7, %v1425_v10  ;;  %v848_v22 = vmul.f32 %v768_v7, %v1431_v15 }
 0x243   :  { %v905_v25 = vmul.f32 %v768_v7, %v1463_v53  ;;  %v906_v26 = vmul.f32 %v768_v7, %v1465_v57  ;;  %v907_v34 = vmul.f32 %v768_v7, %v1467_v59  ;;  %v908_v39 = vmul.f32 %v768_v7, %v1483_v6 }
 0x244   :  { %v965_v36 = vmul.f32 %v768_v7, %v1503_v38  ;;  %v966_v41 = vmul.f32 %v768_v7, %v1505_v44  ;;  %v967_v8 = vmul.f32 %v768_v7, %v1507_v45  ;;  %v968_v13 = vmul.f32 %v768_v7, %v1523_v63  ;;  %v786_v27 = vpop.permute.xlu1 %785  ;;  %v773_v55 = vpop.permute.xlu0 %772 }
 0x245   :  { %v793_v10 = vadd.f32 %v786_v27, %v775_v9  ;;  %v794_v28 = vadd.f32 %v786_v27, %v776_v12  ;;  %v795_v15 = vadd.f32 %v786_v27, %v777_v14  ;;  %v796_v29 = vadd.f32 %v786_v27, %v778_v11 }
 0x246   :  { %v853_v53 = vadd.f32 %v845_v16, %v786_v27  ;;  %v854_v30 = vadd.f32 %v846_v18, %v786_v27  ;;  %v855_v57 = vadd.f32 %v847_v19, %v786_v27  ;;  %v856_v33 = vadd.f32 %v848_v22, %v786_v27 }
 0x247   :  { %v801_v59 = vmax.f32 %v793_v10, 0.0  ;;  %v802_v37 = vmax.f32 %v794_v28, 0.0  ;;  %v803_v6 = vmax.f32 %v795_v15, 0.0  ;;  %v804_v40 = vmax.f32 %v796_v29, 0.0 }
 0x248   :  { %v861_v38 = vmax.f32 %v853_v53, 0.0  ;;  %v862_v32 = vmax.f32 %v854_v30, 0.0  ;;  %v863_v44 = vmax.f32 %v855_v57, 0.0  ;;  %v864_v42 = vmax.f32 %v856_v33, 0.0 }
 0x249   :  { %v1077_v45 = vpack.c.bf16 %v802_v37, %v801_v59  ;;  %v1078_v31 = vpack.c.bf16 %v804_v40, %v803_v6  ;;  %v913_v63 = vadd.f32 %v905_v25, %v786_v27  ;;  %v914_v43 = vadd.f32 %v906_v26, %v786_v27 }
 0x24a   :  { %v1081_v47 = vpack.c.bf16 %v862_v32, %v861_v38  ;;  %v1082_v48 = vpack.c.bf16 %v864_v42, %v863_v44  ;;  %v915_v49 = vadd.f32 %v907_v34, %v786_v27  ;;  %v916_v52 = vadd.f32 %v908_v39, %v786_v27 }
 0x24b   :  { %833 = vst [vmem:[%s1640_s5] sm:$0xff] %v1077_v45  ;;  %834 = vst [vmem:[%s1640_s5 + $0x8] sm:$0xff] %v1078_v31  ;;  %v921_v56 = vmax.f32 %v913_v63, 0.0  ;;  %v922_v62 = vmax.f32 %v914_v43, 0.0  ;;  %v973_v1 = vadd.f32 %v965_v36, %v786_v27  ;;  %v974_v2 = vadd.f32 %v966_v41, %v786_v27 }
 0x24c   :  { %893 = vst [vmem:[%s1640_s5 + $0x20] sm:$0xff] %v1081_v47  ;;  %894 = vst [vmem:[%s1640_s5 + $0x28] sm:$0xff] %v1082_v48  ;;  %v923_v5 = vmax.f32 %v915_v49, 0.0  ;;  %v924_v7 = vmax.f32 %v916_v52, 0.0  ;;  %v975_v9 = vadd.f32 %v967_v8, %v786_v27  ;;  %v976_v12 = vadd.f32 %v968_v13, %v786_v27  ;;  %v791_v27 = vpop.permute.xlu1 %790 }
 0x24d   :  { %v1085_v14 = vpack.c.bf16 %v922_v62, %v921_v56  ;;  %v981_v11 = vmax.f32 %v973_v1, 0.0  ;;  %v982_v16 = vmax.f32 %v974_v2, 0.0  ;;  %v779_v18 = vmul.f32 %v773_v55, %v1397_v46 }
 0x24e   :  { %v1086_v19 = vpack.c.bf16 %v924_v7, %v923_v5  ;;  %v983_v22 = vmax.f32 %v975_v9, 0.0  ;;  %v984_v25 = vmax.f32 %v976_v12, 0.0  ;;  %v780_v26 = vmul.f32 %v773_v55, %v1403_v51 }
 0x24f   :  { %953 = vst [vmem:[%s1640_s5 + $0x40] sm:$0xff] %v1085_v14  ;;  %v1089_v34 = vpack.c.bf16 %v982_v16, %v981_v11  ;;  %v781_v39 = vmul.f32 %v773_v55, %v1401_v50  ;;  %v782_v36 = vmul.f32 %v773_v55, %v1414_v58  ;;  %v849_v41 = vmul.f32 %v773_v55, %v1437_v20 }
 0x250   :  { %954 = vst [vmem:[%s1640_s5 + $0x48] sm:$0xff] %v1086_v19  ;;  %v1090_v46 = vpack.c.bf16 %v984_v25, %v983_v22  ;;  %v850_v8 = vmul.f32 %v773_v55, %v1441_v23  ;;  %v851_v51 = vmul.f32 %v773_v55, %v1443_v24  ;;  %v852_v13 = vmul.f32 %v773_v55, %v1455_v35 }
 0x251   :  { %1013 = vst [vmem:[%s1640_s5 + $0x60] sm:$0xff] %v1089_v34  ;;  %v909_v50 = vmul.f32 %v773_v55, %v1473_v0  ;;  %v910_v58 = vmul.f32 %v773_v55, %v1479_v4  ;;  %v911_v20 = vmul.f32 %v773_v55, %v1477_v3  ;;  %v912_v10 = vmul.f32 %v773_v55, %v1495_v21 }
 0x252   :  { %1014 = vst [vmem:[%s1640_s5 + $0x68] sm:$0xff] %v1090_v46  ;;  %v969_v23 = vmul.f32 %v773_v55, %v1513_v54  ;;  %v970_v24 = vmul.f32 %v773_v55, %v1519_v61  ;;  %v971_v35 = vmul.f32 %v773_v55, %v1517_v60  ;;  %v972_v28 = vmul.f32 %v773_v55, %v1535_v17 }
 0x253   :  { %v797_v15 = vadd.f32 %v791_v27, %v779_v18  ;;  %v798_v0 = vadd.f32 %v791_v27, %v780_v26  ;;  %v799_v29 = vadd.f32 %v791_v27, %v781_v39  ;;  %v800_v4 = vadd.f32 %v791_v27, %v782_v36 }
 0x254   :  { %v857_v53 = vadd.f32 %v849_v41, %v791_v27  ;;  %v858_v3 = vadd.f32 %v850_v8, %v791_v27  ;;  %v859_v30 = vadd.f32 %v851_v51, %v791_v27  ;;  %v860_v21 = vadd.f32 %v852_v13, %v791_v27 }
 0x255   :  { %v805_v57 = vmax.f32 %v797_v15, 0.0  ;;  %v806_v33 = vmax.f32 %v798_v0, 0.0  ;;  %v807_v59 = vmax.f32 %v799_v29, 0.0  ;;  %v808_v37 = vmax.f32 %v800_v4, 0.0 }
 0x256   :  { %v865_v6 = vmax.f32 %v857_v53, 0.0  ;;  %v866_v54 = vmax.f32 %v858_v3, 0.0  ;;  %v867_v40 = vmax.f32 %v859_v30, 0.0  ;;  %v868_v61 = vmax.f32 %v860_v21, 0.0 }
 0x257   :  { %v1079_v38 = vpack.c.bf16 %v806_v33, %v805_v57  ;;  %v1080_v60 = vpack.c.bf16 %v808_v37, %v807_v59  ;;  %v917_v32 = vadd.f32 %v909_v50, %v791_v27  ;;  %v918_v17 = vadd.f32 %v910_v58, %v791_v27 }
 0x258   :  { %v1083_v44 = vpack.c.bf16 %v866_v54, %v865_v6  ;;  %v1084_v42 = vpack.c.bf16 %v868_v61, %v867_v40  ;;  %v919_v45 = vadd.f32 %v911_v20, %v791_v27  ;;  %v920_v31 = vadd.f32 %v912_v10, %v791_v27 }
 0x259   :  { %835 = vst [vmem:[%s1640_s5 + $0x10] sm:$0xff] %v1079_v38  ;;  %836 = vst [vmem:[%s1640_s5 + $0x18] sm:$0xff] %v1080_v60  ;;  %v925_v63 = vmax.f32 %v917_v32, 0.0  ;;  %v926_v43 = vmax.f32 %v918_v17, 0.0  ;;  %v977_v47 = vadd.f32 %v969_v23, %v791_v27  ;;  %v978_v48 = vadd.f32 %v970_v24, %v791_v27 }
 0x25a   :  { %895 = vst [vmem:[%s1640_s5 + $0x30] sm:$0xff] %v1083_v44  ;;  %896 = vst [vmem:[%s1640_s5 + $0x38] sm:$0xff] %v1084_v42  ;;  %v927_v49 = vmax.f32 %v919_v45, 0.0  ;;  %v928_v52 = vmax.f32 %v920_v31, 0.0  ;;  %v979_v55 = vadd.f32 %v971_v35, %v791_v27  ;;  %v980_v56 = vadd.f32 %v972_v28, %v791_v27 }
 0x25b   :  { %v1087_v62 = vpack.c.bf16 %v926_v43, %v925_v63  ;;  %v985_v1 = vmax.f32 %v977_v47, 0.0  ;;  %v986_v2 = vmax.f32 %v978_v48, 0.0 }
 0x25c   :  { %v1088_v5 = vpack.c.bf16 %v928_v52, %v927_v49  ;;  %v987_v7 = vmax.f32 %v979_v55, 0.0  ;;  %v988_v9 = vmax.f32 %v980_v56, 0.0 }
 0x25d   :  { %955 = vst [vmem:[%s1640_s5 + $0x50] sm:$0xff] %v1087_v62  ;;  %v1091_v12 = vpack.c.bf16 %v986_v2, %v985_v1 }
 0x25e   :  { %956 = vst [vmem:[%s1640_s5 + $0x58] sm:$0xff] %v1088_v5  ;;  %v1092_v14 = vpack.c.bf16 %v988_v9, %v987_v7 }
 0x25f   :  { %1015 = vst [vmem:[%s1640_s5 + $0x70] sm:$0xff] %v1091_v12 }
 0x260   :  { %1016 = vst [vmem:[%s1640_s5 + $0x78] sm:$0xff] %v1092_v14 }

// kernel: vae_forward.12
= control target key start
LH: loop header
LB: loop body
LE: loop exit
PB: predicated region body
PF: predicated region fallthrough
CT: control target
= control target key end

     0   :  { %v3364_v3 = vmov 0   ;;  %vm898_vm0 = vcmask 130048   ;;  %s5793_s1 = inlined_call_operand.vmem [shape: bf16[144,2048], index: 1, kind: input, shape index: {}]   ;;  %s5794_s0 = inlined_call_operand.vmem [shape: bf16[32,144], index: 0, kind: input, shape index: {}]   ;;  %s5795_s2 = inlined_call_operand.vmem [shape: f32[8,1], index: 2, kind: input, shape index: {}]   ;;  %s5796_s3 = inlined_call_operand.vmem [shape: f32[8,1], index: 3, kind: input, shape index: {}]   ;;  %s5797_s4 = inlined_call_operand.vmem [shape: f32[8,1], index: 4, kind: input, shape index: {}]   ;;  %s5798_s5 = inlined_call_operand.vmem [shape: bf16[32,2048], index: 5, kind: output, shape index: {}]  }
   0x1   :  { %v133_v0 = vld [vmem:[%s5793_s1 + $0x380] sm:$0xff]  ;;  %v134_v2 = vld [vmem:[%s5793_s1 + $0x388] sm:$0xff]  ;;  %3352 = vset.pattern.permute.xlu0 %v3364_v3  ;;  %3353 = vset.pattern.permute.xlu1 %v3364_v3 }
   0x2   :  { %v141_v1 = vld [vmem:[%s5793_s1 + $0x3c0] sm:$0xff]  ;;  %v142_v5 = vld [vmem:[%s5793_s1 + $0x3c8] sm:$0xff] }
   0x3   :  { %v3404_v4 = vcombine.high %v133_v0, %v141_v1  ;;  %v3409_v6 = vcombine.low %v133_v0, %v141_v1  ;;  %v117_v7 = vld [vmem:[%s5793_s1 + $0x300] sm:$0xff]  ;;  %v3417_v9 = vcombine.high %v134_v2, %v142_v5  ;;  %v3419_v10 = vcombine.low %v134_v2, %v142_v5  ;;  %v118_v12 = vld [vmem:[%s5793_s1 + $0x308] sm:$0xff] }
   0x4   :  { %v125_v8 = vld [vmem:[%s5793_s1 + $0x340] sm:$0xff]  ;;  %v126_v13 = vld [vmem:[%s5793_s1 + $0x348] sm:$0xff] }
   0x5   :  { %v3421_v11 = vcombine.high %v117_v7, %v125_v8  ;;  %v101_v14 = vld [vmem:[%s5793_s1 + $0x280] sm:$0xff]  ;;  %902 = vmatprep.subr.bf16.mxu0 %v3404_v4  ;;  %v3433_v15 = vcombine.high %v118_v12, %v126_v13  ;;  %v102_v17 = vld [vmem:[%s5793_s1 + $0x288] sm:$0xff]  ;;  %943 = vmatprep.subr.bf16.mxu1 %v3417_v9  ;;  %v3446_v19 = vcombine.low %v117_v7, %v125_v8 }
   0x6   :  { %v109_v16 = vld [vmem:[%s5793_s1 + $0x2c0] sm:$0xff]  ;;  %v110_v18 = vld [vmem:[%s5793_s1 + $0x2c8] sm:$0xff]  ;;  %903 = vmatpush1.bf16.msra.mxu0 %v3409_v6  ;;  %944 = vmatpush1.bf16.msra.mxu1 %v3419_v10  ;;  %v3450_v20 = vcombine.low %v118_v12, %v126_v13 }
   0x7   :  { %904 = vmatprep.subr.bf16.mxu0 %v3421_v11  ;;  %v3452_v21 = vcombine.high %v101_v14, %v109_v16  ;;  %945 = vmatprep.subr.bf16.mxu1 %v3433_v15  ;;  %v3455_v22 = vcombine.high %v102_v17, %v110_v18  ;;  %v85_v23 = vld [vmem:[%s5793_s1 + $0x200] sm:$0xff]  ;;  %v86_v25 = vld [vmem:[%s5793_s1 + $0x208] sm:$0xff]  ;;  %v3470_v27 = vcombine.low %v101_v14, %v109_v16  ;;  %v135_v14 = vld [vmem:[%s5793_s1 + $0x390] sm:$0xff] }
   0x8   :  { %6038 = vst [vmem:[#allocation3_spill] sm:$0xff] %v3450_v20  ;;  %v93_v24 = vld [vmem:[%s5793_s1 + $0x240] sm:$0xff]  ;;  %v94_v26 = vld [vmem:[%s5793_s1 + $0x248] sm:$0xff]  ;;  %v3474_v28 = vcombine.low %v102_v17, %v110_v18  ;;  %v143_v16 = vld [vmem:[%s5793_s1 + $0x3d0] sm:$0xff] }
   0x9   :  { %6039 = vst [vmem:[#allocation4_spill] sm:$0xff] %v3452_v21  ;;  %6040 = vst [vmem:[#allocation5_spill] sm:$0xff] %v3455_v22  ;;  %v3476_v29 = vcombine.high %v85_v23, %v93_v24  ;;  %v3479_v30 = vcombine.high %v86_v25, %v94_v26  ;;  %v69_v31 = vld [vmem:[%s5793_s1 + $0x180] sm:$0xff]  ;;  %v70_v33 = vld [vmem:[%s5793_s1 + $0x188] sm:$0xff]  ;;  %v3494_v35 = vcombine.low %v85_v23, %v93_v24 }
   0xa   :  { %905 = vmatpush1.bf16.msra.mxu0 %v3446_v19  ;;  %6041 = vst [vmem:[#allocation6_spill] sm:$0xff] %v3470_v27  ;;  %946 = vmatpush1.bf16.msra.mxu1 %v3450_v20  ;;  %6042 = vst [vmem:[#allocation7_spill] sm:$0xff] %v3474_v28  ;;  %v77_v32 = vld [vmem:[%s5793_s1 + $0x1c0] sm:$0xff]  ;;  %v78_v34 = vld [vmem:[%s5793_s1 + $0x1c8] sm:$0xff]  ;;  %v3503_v37 = vcombine.low %v86_v25, %v94_v26  ;;  %v3633_v25 = vcombine.high %v135_v14, %v143_v16 }
   0xb   :  { %906 = vmatprep.subr.bf16.mxu0 %v3452_v21  ;;  %6043 = vst [vmem:[#allocation8_spill] sm:$0xff] %v3476_v29  ;;  %947 = vmatprep.subr.bf16.mxu1 %v3455_v22  ;;  %6044 = vst [vmem:[#allocation9_spill] sm:$0xff] %v3479_v30  ;;  %v3499_v36 = vld [vmem:[%s5794_s0] sm:$0xff]  ;;  %v3505_v38 = vcombine.high %v69_v31, %v77_v32  ;;  %v3512_v40 = vcombine.high %v70_v33, %v78_v34  ;;  %v54_v43 = vld [vmem:[%s5793_s1 + $0x108] sm:$0xff] }
   0xc   :  { %6045 = vst [vmem:[#allocation10_spill] sm:$0xff] %v3503_v37  ;;  %v3509_v39 = vcombine.high %v3499_v36, %v3499_v36  ;;  %v53_v41 = vld [vmem:[%s5793_s1 + $0x100] sm:$0xff]  ;;  %v62_v44 = vld [vmem:[%s5793_s1 + $0x148] sm:$0xff]  ;;  %v3531_v45 = vcombine.low %v69_v31, %v77_v32  ;;  %v3535_v46 = vcombine.low %v70_v33, %v78_v34  ;;  %v136_v17 = vld [vmem:[%s5793_s1 + $0x398] sm:$0xff]  ;;  %v3646_v33 = vcombine.low %v3499_v36, %v3499_v36 }
   0xd   :  { %6046 = vst [vmem:[#allocation11_spill] sm:$0xff] %v3505_v38  ;;  %6047 = vst [vmem:[#allocation12_spill] sm:$0xff] %v3512_v40  ;;  %v61_v42 = vld [vmem:[%s5793_s1 + $0x140] sm:$0xff]  ;;  %v3540_v48 = vcombine.high %v54_v43, %v62_v44  ;;  %v38_v51 = vld [vmem:[%s5793_s1 + $0x88] sm:$0xff]  ;;  %v3559_v54 = vcombine.low %v54_v43, %v62_v44 }
   0xe   :  { %907 = vmatpush1.bf16.msra.mxu0 %v3470_v27  ;;  %948 = vmatpush1.bf16.msra.mxu1 %v3474_v28  ;;  %v3537_v47 = vcombine.high %v53_v41, %v61_v42  ;;  %v37_v49 = vld [vmem:[%s5793_s1 + $0x80] sm:$0xff]  ;;  %v46_v52 = vld [vmem:[%s5793_s1 + $0xc8] sm:$0xff]  ;;  %v3555_v53 = vcombine.low %v53_v41, %v61_v42  ;;  %v144_v18 = vld [vmem:[%s5793_s1 + $0x3d8] sm:$0xff]  ;;  %6052 = vst [vmem:[#allocation17_spill] sm:$0xff] %v3633_v25 }
   0xf   :  { %908 = vmatprep.subr.bf16.mxu0 %v3476_v29  ;;  %949 = vmatprep.subr.bf16.mxu1 %v3479_v30  ;;  %v45_v50 = vld [vmem:[%s5793_s1 + $0xc0] sm:$0xff]  ;;  %v3564_v56 = vcombine.high %v38_v51, %v46_v52  ;;  %v22_v59 = vld [vmem:[%s5793_s1 + $0x8] sm:$0xff]  ;;  %v3583_v62 = vcombine.low %v38_v51, %v46_v52  ;;  %v3636_v26 = vcombine.high %v136_v17, %v144_v18  ;;  %v119_v31 = vld [vmem:[%s5793_s1 + $0x310] sm:$0xff] }
  0x10   :  { %3249 = vmatprep.mubr.msk.bf16.mxu0 %vm898_vm0, %v3509_v39  ;;  %3250 = vmatprep.mubr.msk.bf16.mxu1 %vm898_vm0, %v3509_v39  ;;  %v3561_v55 = vcombine.high %v37_v49, %v45_v50  ;;  %v21_v57 = vld [vmem:[%s5793_s1] sm:$0xff]  ;;  %v30_v60 = vld [vmem:[%s5793_s1 + $0x48] sm:$0xff]  ;;  %v3579_v61 = vcombine.low %v37_v49, %v45_v50  ;;  %v127_v32 = vld [vmem:[%s5793_s1 + $0x350] sm:$0xff]  ;;  %v3655_v42 = vcombine.low %v135_v14, %v143_v16 }
  0x11   :  { %v29_v58 = vld [vmem:[%s5793_s1 + $0x40] sm:$0xff]  ;;  %v3588_v0 = vcombine.high %v22_v59, %v30_v60  ;;  %v150_v3 = vld [vmem:[%s5793_s1 + $0x408] sm:$0xff]  ;;  %v3607_v8 = vcombine.low %v22_v59, %v30_v60  ;;  %6053 = vst [vmem:[#allocation18_spill] sm:$0xff] %v3636_v26  ;;  %v120_v34 = vld [vmem:[%s5793_s1 + $0x318] sm:$0xff]  ;;  %v3662_v36 = vcombine.low %v136_v17, %v144_v18  ;;  %v3664_v44 = vcombine.high %v119_v31, %v127_v32 }
  0x12   :  { %909 = vmatpush1.bf16.msra.mxu0 %v3494_v35  ;;  %950 = vmatpush1.bf16.msra.mxu1 %v3503_v37  ;;  %v3585_v63 = vcombine.high %v21_v57, %v29_v58  ;;  %v149_v1 = vld [vmem:[%s5793_s1 + $0x400] sm:$0xff]  ;;  %v158_v5 = vld [vmem:[%s5793_s1 + $0x448] sm:$0xff]  ;;  %v3603_v7 = vcombine.low %v21_v57, %v29_v58  ;;  %v128_v41 = vld [vmem:[%s5793_s1 + $0x358] sm:$0xff]  ;;  %6054 = vst [vmem:[#allocation19_spill] sm:$0xff] %v3655_v42 }
  0x13   :  { %910 = vmatprep.subr.bf16.mxu0 %v3505_v38  ;;  %951 = vmatprep.subr.bf16.mxu1 %v3512_v40  ;;  %v157_v2 = vld [vmem:[%s5793_s1 + $0x440] sm:$0xff]  ;;  %v3612_v13 = vcombine.high %v150_v3, %v158_v5  ;;  %v3631_v24 = vcombine.low %v150_v3, %v158_v5  ;;  %6055 = vst [vmem:[#allocation20_spill] sm:$0xff] %v3662_v36  ;;  %6056 = vst [vmem:[#allocation21_spill] sm:$0xff] %v3664_v44  ;;  %v103_v50 = vld [vmem:[%s5793_s1 + $0x290] sm:$0xff] }
  0x14   :  { %v3609_v12 = vcombine.high %v149_v1, %v157_v2  ;;  %v3627_v23 = vcombine.low %v149_v1, %v157_v2  ;;  %v166_v43 = vld [vmem:[%s5795_s2] sm:$0xff]  ;;  %v3667_v49 = vcombine.high %v120_v34, %v128_v41  ;;  %v111_v51 = vld [vmem:[%s5793_s1 + $0x2d0] sm:$0xff]  ;;  %v104_v52 = vld [vmem:[%s5793_s1 + $0x298] sm:$0xff]  ;;  %v3684_v58 = vcombine.low %v119_v31, %v127_v32 }
  0x15   :  { %6049 = vst [vmem:[#allocation14_spill] sm:$0xff] %v3612_v13  ;;  %6051 = vst [vmem:[#allocation16_spill] sm:$0xff] %v3631_v24  ;;  %169 = vperm.xlu0 %3352, %v166_v43   ;;  %v112_v57 = vld [vmem:[%s5793_s1 + $0x2d8] sm:$0xff]  ;;  %v3688_v59 = vcombine.low %v120_v34, %v128_v41  ;;  %v3690_v60 = vcombine.high %v103_v50, %v111_v51  ;;  %v87_v2 = vld [vmem:[%s5793_s1 + $0x210] sm:$0xff]  ;;  %v3712_v16 = vcombine.low %v103_v50, %v111_v51 }
  0x16   :  { %911 = vmatpush1.bf16.msra.mxu0 %v3531_v45  ;;  %952 = vmatpush1.bf16.msra.mxu1 %v3535_v46  ;;  %6048 = vst [vmem:[#allocation13_spill] sm:$0xff] %v3609_v12  ;;  %6050 = vst [vmem:[#allocation15_spill] sm:$0xff] %v3627_v23  ;;  %v3693_v1 = vcombine.high %v104_v52, %v112_v57  ;;  %v95_v3 = vld [vmem:[%s5793_s1 + $0x250] sm:$0xff]  ;;  %v88_v5 = vld [vmem:[%s5793_s1 + $0x218] sm:$0xff]  ;;  %v3716_v17 = vcombine.low %v104_v52, %v112_v57 }
  0x17   :  { %912 = vmatprep.subr.bf16.mxu0 %v3537_v47  ;;  %953 = vmatprep.subr.bf16.mxu1 %v3540_v48  ;;  %6057 = vst [vmem:[#allocation22_spill] sm:$0xff] %v3667_v49  ;;  %6058 = vst [vmem:[#allocation23_spill] sm:$0xff] %v3684_v58  ;;  %v96_v14 = vld [vmem:[%s5793_s1 + $0x258] sm:$0xff]  ;;  %v3718_v18 = vcombine.high %v87_v2, %v95_v3  ;;  %v71_v32 = vld [vmem:[%s5793_s1 + $0x190] sm:$0xff]  ;;  %v3736_v50 = vcombine.low %v87_v2, %v95_v3 }
  0x18   :  { %6059 = vst [vmem:[#allocation24_spill] sm:$0xff] %v3688_v59  ;;  %6060 = vst [vmem:[#allocation25_spill] sm:$0xff] %v3690_v60  ;;  %v3721_v31 = vcombine.high %v88_v5, %v96_v14  ;;  %v79_v34 = vld [vmem:[%s5793_s1 + $0x1d0] sm:$0xff]  ;;  %v72_v41 = vld [vmem:[%s5793_s1 + $0x198] sm:$0xff]  ;;  %v3740_v51 = vcombine.low %v88_v5, %v96_v14 }
  0x19   :  { %6061 = vst [vmem:[#allocation26_spill] sm:$0xff] %v3693_v1  ;;  %1302 = vperm.xlu0 %3352, %v166_v43   ;;  %6062 = vst [vmem:[#allocation27_spill] sm:$0xff] %v3712_v16  ;;  %v80_v43 = vld [vmem:[%s5793_s1 + $0x1d8] sm:$0xff]  ;;  %v3742_v52 = vcombine.high %v71_v32, %v79_v34  ;;  %v63_v2 = vld [vmem:[%s5793_s1 + $0x150] sm:$0xff]  ;;  %v3760_v14 = vcombine.low %v71_v32, %v79_v34 }
  0x1a   :  { %913 = vmatpush1.bf16.msra.mxu0 %v3555_v53  ;;  %954 = vmatpush1.bf16.msra.mxu1 %v3559_v54  ;;  %6063 = vst [vmem:[#allocation28_spill] sm:$0xff] %v3716_v17  ;;  %6064 = vst [vmem:[#allocation29_spill] sm:$0xff] %v3718_v18  ;;  %v3745_v57 = vcombine.high %v72_v41, %v80_v43  ;;  %v56_v3 = vld [vmem:[%s5793_s1 + $0x118] sm:$0xff]  ;;  %v47_v32 = vld [vmem:[%s5793_s1 + $0xd0] sm:$0xff] }
  0x1b   :  { %914 = vmatprep.subr.bf16.mxu0 %v3561_v55  ;;  %955 = vmatprep.subr.bf16.mxu1 %v3564_v56  ;;  %6065 = vst [vmem:[#allocation30_spill] sm:$0xff] %v3721_v31  ;;  %6066 = vst [vmem:[#allocation31_spill] sm:$0xff] %v3736_v50  ;;  %v64_v5 = vld [vmem:[%s5793_s1 + $0x158] sm:$0xff] }
  0x1c   :  { %6067 = vst [vmem:[#allocation32_spill] sm:$0xff] %v3740_v51  ;;  %6068 = vst [vmem:[#allocation33_spill] sm:$0xff] %v3742_v52  ;;  %v40_v34 = vld [vmem:[%s5793_s1 + $0x98] sm:$0xff] }
  0x1d   :  { %6069 = vst [vmem:[#allocation34_spill] sm:$0xff] %v3745_v57  ;;  %6070 = vst [vmem:[#allocation35_spill] sm:$0xff] %v3760_v14 }
  0x1e   :  { %915 = vmatpush1.bf16.msra.mxu0 %v3579_v61  ;;  %956 = vmatpush1.bf16.msra.mxu1 %v3583_v62 }
  0x1f   :  { %916 = vmatprep.subr.bf16.mxu0 %v3585_v63  ;;  %957 = vmatprep.subr.bf16.mxu1 %v3588_v0 }
  0x22   :  { %917 = vmatpush1.bf16.msra.mxu0 %v3603_v7  ;;  %958 = vmatpush1.bf16.msra.mxu1 %v3607_v8 }
  0x23   :  { %932 = vmatprep.subr.bf16.mxu0 %v3609_v12  ;;  %973 = vmatprep.subr.bf16.mxu1 %v3612_v13 }
  0x26   :  { %933 = vmatpush2.bf16.msra.mxu0 %v3627_v23  ;;  %974 = vmatpush2.bf16.msra.mxu1 %v3631_v24 }
  0x27   :  { %984 = vmatprep.subr.bf16.mxu0 %v3633_v25  ;;  %1025 = vmatprep.subr.bf16.mxu1 %v3636_v26 }
  0x29   :  { %935 = vmatmul.mubr.bf16.vlgmr.msra.gmra.mxu0 %v3646_v33  ;;  %976 = vmatmul.mubr.bf16.vlgmr.msra.gmra.mxu1 %v3646_v33 }
  0x2a   :  { %985 = vmatpush1.bf16.msra.mxu0 %v3655_v42  ;;  %1026 = vmatpush1.bf16.msra.mxu1 %v3662_v36 }
  0x2b   :  { %986 = vmatprep.subr.bf16.mxu0 %v3664_v44  ;;  %1027 = vmatprep.subr.bf16.mxu1 %v3667_v49 }
  0x2c   :  { %3251 = vmatprep.mubr.msk.bf16.mxu0 %vm898_vm0, %v3509_v39  ;;  %3252 = vmatprep.mubr.msk.bf16.mxu1 %vm898_vm0, %v3509_v39 }
  0x2e   :  { %987 = vmatpush1.bf16.msra.mxu0 %v3684_v58  ;;  %1028 = vmatpush1.bf16.msra.mxu1 %v3688_v59 }
  0x2f   :  { %988 = vmatprep.subr.bf16.mxu0 %v3690_v60  ;;  %1029 = vmatprep.subr.bf16.mxu1 %v3693_v1  ;;  %v55_v1 = vld [vmem:[%s5793_s1 + $0x110] sm:$0xff] }
  0x32   :  { %989 = vmatpush1.bf16.msra.mxu0 %v3712_v16  ;;  %1030 = vmatpush1.bf16.msra.mxu1 %v3716_v17  ;;  %v3769_v17 = vcombine.high %v56_v3, %v64_v5  ;;  %v39_v16 = vld [vmem:[%s5793_s1 + $0x90] sm:$0xff] }
  0x33   :  { %990 = vmatprep.subr.bf16.mxu0 %v3718_v18  ;;  %1031 = vmatprep.subr.bf16.mxu1 %v3721_v31  ;;  %v3764_v31 = vcombine.low %v72_v41, %v80_v43  ;;  %v3766_v18 = vcombine.high %v55_v1, %v63_v2  ;;  %v48_v41 = vld [vmem:[%s5793_s1 + $0xd8] sm:$0xff]  ;;  %v3784_v43 = vcombine.low %v55_v1, %v63_v2  ;;  %v31_v1 = vld [vmem:[%s5793_s1 + $0x50] sm:$0xff] }
  0x34   :  { %6073 = vst [vmem:[#allocation38_spill] sm:$0xff] %v3769_v17  ;;  %v24_v2 = vld [vmem:[%s5793_s1 + $0x18] sm:$0xff] }
  0x35   :  { %6071 = vst [vmem:[#allocation36_spill] sm:$0xff] %v3764_v31  ;;  %6072 = vst [vmem:[#allocation37_spill] sm:$0xff] %v3766_v18 }
  0x36   :  { %991 = vmatpush1.bf16.msra.mxu0 %v3736_v50  ;;  %1032 = vmatpush1.bf16.msra.mxu1 %v3740_v51  ;;  %6074 = vst [vmem:[#allocation39_spill] sm:$0xff] %v3784_v43  ;;  %v3793_v51 = vcombine.high %v40_v34, %v48_v41  ;;  %v23_v50 = vld [vmem:[%s5793_s1 + $0x10] sm:$0xff] }
  0x37   :  { %992 = vmatprep.subr.bf16.mxu0 %v3742_v52  ;;  %1033 = vmatprep.subr.bf16.mxu1 %v3745_v57  ;;  %v3788_v57 = vcombine.low %v56_v3, %v64_v5  ;;  %v3790_v52 = vcombine.high %v39_v16, %v47_v32  ;;  %v32_v3 = vld [vmem:[%s5793_s1 + $0x58] sm:$0xff]  ;;  %v3808_v5 = vcombine.low %v39_v16, %v47_v32  ;;  %v159_v16 = vld [vmem:[%s5793_s1 + $0x450] sm:$0xff] }
  0x38   :  { %6077 = vst [vmem:[#allocation42_spill] sm:$0xff] %v3793_v51  ;;  %v152_v32 = vld [vmem:[%s5793_s1 + $0x418] sm:$0xff] }
  0x39   :  { %6075 = vst [vmem:[#allocation40_spill] sm:$0xff] %v3788_v57  ;;  %6076 = vst [vmem:[#allocation41_spill] sm:$0xff] %v3790_v52 }
  0x3a   :  { %993 = vmatpush1.bf16.msra.mxu0 %v3760_v14  ;;  %1034 = vmatpush1.bf16.msra.mxu1 %v3764_v31  ;;  %6078 = vst [vmem:[#allocation43_spill] sm:$0xff] %v3808_v5  ;;  %v3817_v31 = vcombine.high %v24_v2, %v32_v3  ;;  %v151_v14 = vld [vmem:[%s5793_s1 + $0x410] sm:$0xff] }
  0x3b   :  { %994 = vmatprep.subr.bf16.mxu0 %v3766_v18  ;;  %1035 = vmatprep.subr.bf16.mxu1 %v3769_v17  ;;  %v3812_v17 = vcombine.low %v40_v34, %v48_v41  ;;  %v3814_v18 = vcombine.high %v23_v50, %v31_v1  ;;  %v160_v34 = vld [vmem:[%s5793_s1 + $0x458] sm:$0xff]  ;;  %v3832_v41 = vcombine.low %v23_v50, %v31_v1  ;;  %v145_v50 = vld [vmem:[%s5793_s1 + $0x3e0] sm:$0xff]  ;;  %v138_v1 = vld [vmem:[%s5793_s1 + $0x3a8] sm:$0xff] }
  0x3c   :  { %6081 = vst [vmem:[#allocation46_spill] sm:$0xff] %v3817_v31 }
  0x3d   :  { %6079 = vst [vmem:[#allocation44_spill] sm:$0xff] %v3812_v17  ;;  %6080 = vst [vmem:[#allocation45_spill] sm:$0xff] %v3814_v18 }
  0x3e   :  { %995 = vmatpush1.bf16.msra.mxu0 %v3784_v43  ;;  %1036 = vmatpush1.bf16.msra.mxu1 %v3788_v57  ;;  %6082 = vst [vmem:[#allocation47_spill] sm:$0xff] %v3832_v41  ;;  %v3841_v57 = vcombine.high %v152_v32, %v160_v34  ;;  %v137_v43 = vld [vmem:[%s5793_s1 + $0x3a0] sm:$0xff] }
  0x3f   :  { %996 = vmatprep.subr.bf16.mxu0 %v3790_v52  ;;  %1037 = vmatprep.subr.bf16.mxu1 %v3793_v51  ;;  %v3836_v51 = vcombine.low %v24_v2, %v32_v3  ;;  %v3838_v52 = vcombine.high %v151_v14, %v159_v16  ;;  %v146_v2 = vld [vmem:[%s5793_s1 + $0x3e8] sm:$0xff]  ;;  %v3856_v3 = vcombine.low %v151_v14, %v159_v16  ;;  %v129_v14 = vld [vmem:[%s5793_s1 + $0x360] sm:$0xff] }
  0x40   :  { %6085 = vst [vmem:[#allocation50_spill] sm:$0xff] %v3841_v57  ;;  %v122_v16 = vld [vmem:[%s5793_s1 + $0x328] sm:$0xff] }
  0x41   :  { %6083 = vst [vmem:[#allocation48_spill] sm:$0xff] %v3836_v51  ;;  %6084 = vst [vmem:[#allocation49_spill] sm:$0xff] %v3838_v52 }
  0x42   :  { %997 = vmatpush1.bf16.msra.mxu0 %v3808_v5  ;;  %1038 = vmatpush1.bf16.msra.mxu1 %v3812_v17  ;;  %6086 = vst [vmem:[#allocation51_spill] sm:$0xff] %v3856_v3  ;;  %v3865_v17 = vcombine.high %v138_v1, %v146_v2  ;;  %v121_v5 = vld [vmem:[%s5793_s1 + $0x320] sm:$0xff] }
  0x43   :  { %998 = vmatprep.subr.bf16.mxu0 %v3814_v18  ;;  %1039 = vmatprep.subr.bf16.mxu1 %v3817_v31  ;;  %v3860_v31 = vcombine.low %v152_v32, %v160_v34  ;;  %v3862_v18 = vcombine.high %v137_v43, %v145_v50  ;;  %v130_v32 = vld [vmem:[%s5793_s1 + $0x368] sm:$0xff]  ;;  %v3880_v34 = vcombine.low %v137_v43, %v145_v50  ;;  %v113_v43 = vld [vmem:[%s5793_s1 + $0x2e0] sm:$0xff] }
  0x44   :  { %6089 = vst [vmem:[#allocation54_spill] sm:$0xff] %v3865_v17  ;;  %v106_v50 = vld [vmem:[%s5793_s1 + $0x2a8] sm:$0xff] }
  0x45   :  { %6087 = vst [vmem:[#allocation52_spill] sm:$0xff] %v3860_v31  ;;  %6088 = vst [vmem:[#allocation53_spill] sm:$0xff] %v3862_v18 }
  0x46   :  { %999 = vmatpush1.bf16.msra.mxu0 %v3832_v41  ;;  %1040 = vmatpush1.bf16.msra.mxu1 %v3836_v51  ;;  %6090 = vst [vmem:[#allocation55_spill] sm:$0xff] %v3880_v34  ;;  %v3889_v51 = vcombine.high %v122_v16, %v130_v32  ;;  %v105_v41 = vld [vmem:[%s5793_s1 + $0x2a0] sm:$0xff] }
  0x47   :  { %1014 = vmatprep.subr.bf16.mxu0 %v3838_v52  ;;  %1055 = vmatprep.subr.bf16.mxu1 %v3841_v57  ;;  %v3884_v57 = vcombine.low %v138_v1, %v146_v2  ;;  %v3886_v52 = vcombine.high %v121_v5, %v129_v14  ;;  %v114_v1 = vld [vmem:[%s5793_s1 + $0x2e8] sm:$0xff]  ;;  %v3906_v2 = vcombine.low %v121_v5, %v129_v14  ;;  %v97_v5 = vld [vmem:[%s5793_s1 + $0x260] sm:$0xff] }
  0x48   :  { %6093 = vst [vmem:[#allocation58_spill] sm:$0xff] %v3889_v51  ;;  %v90_v14 = vld [vmem:[%s5793_s1 + $0x228] sm:$0xff] }
  0x49   :  { %6091 = vst [vmem:[#allocation56_spill] sm:$0xff] %v3884_v57  ;;  %6092 = vst [vmem:[#allocation57_spill] sm:$0xff] %v3886_v52 }
  0x4a   :  { %1015 = vmatpush2.bf16.msra.mxu0 %v3856_v3  ;;  %1056 = vmatpush2.bf16.msra.mxu1 %v3860_v31  ;;  %6094 = vst [vmem:[#allocation59_spill] sm:$0xff] %v3906_v2  ;;  %v3915_v31 = vcombine.high %v106_v50, %v114_v1  ;;  %v89_v3 = vld [vmem:[%s5793_s1 + $0x220] sm:$0xff] }
  0x4b   :  { %1066 = vmatprep.subr.bf16.mxu0 %v3862_v18  ;;  %1107 = vmatprep.subr.bf16.mxu1 %v3865_v17  ;;  %v3910_v17 = vcombine.low %v122_v16, %v130_v32  ;;  %v3912_v18 = vcombine.high %v105_v41, %v113_v43  ;;  %v98_v16 = vld [vmem:[%s5793_s1 + $0x268] sm:$0xff]  ;;  %v3934_v32 = vcombine.low %v105_v41, %v113_v43  ;;  %v81_v41 = vld [vmem:[%s5793_s1 + $0x1e0] sm:$0xff] }
  0x4c   :  { %6097 = vst [vmem:[#allocation62_spill] sm:$0xff] %v3915_v31  ;;  %v74_v43 = vld [vmem:[%s5793_s1 + $0x1a8] sm:$0xff] }
  0x4d   :  { %1017 = vmatmul.mubr.bf16.vlgmr.msra.gmra.mxu0 %v3646_v33  ;;  %1058 = vmatmul.mubr.bf16.vlgmr.msra.gmra.mxu1 %v3646_v33  ;;  %6095 = vst [vmem:[#allocation60_spill] sm:$0xff] %v3910_v17  ;;  %6096 = vst [vmem:[#allocation61_spill] sm:$0xff] %v3912_v18 }
  0x4e   :  { %1067 = vmatpush1.bf16.msra.mxu0 %v3880_v34  ;;  %1108 = vmatpush1.bf16.msra.mxu1 %v3884_v57  ;;  %6098 = vst [vmem:[#allocation63_spill] sm:$0xff] %v3934_v32  ;;  %v3943_v57 = vcombine.high %v90_v14, %v98_v16  ;;  %v73_v34 = vld [vmem:[%s5793_s1 + $0x1a0] sm:$0xff] }
  0x4f   :  { %1068 = vmatprep.subr.bf16.mxu0 %v3886_v52  ;;  %1109 = vmatprep.subr.bf16.mxu1 %v3889_v51  ;;  %v3938_v51 = vcombine.low %v106_v50, %v114_v1  ;;  %v3940_v52 = vcombine.high %v89_v3, %v97_v5  ;;  %v82_v50 = vld [vmem:[%s5793_s1 + $0x1e8] sm:$0xff]  ;;  %v3958_v1 = vcombine.low %v89_v3, %v97_v5  ;;  %v65_v3 = vld [vmem:[%s5793_s1 + $0x160] sm:$0xff] }
  0x50   :  { %3253 = vmatprep.mubr.msk.bf16.mxu0 %vm898_vm0, %v3509_v39  ;;  %3254 = vmatprep.mubr.msk.bf16.mxu1 %vm898_vm0, %v3509_v39  ;;  %6101 = vst [vmem:[#allocation66_spill] sm:$0xff] %v3943_v57  ;;  %v58_v5 = vld [vmem:[%s5793_s1 + $0x128] sm:$0xff] }
  0x51   :  { %6099 = vst [vmem:[#allocation64_spill] sm:$0xff] %v3938_v51  ;;  %6100 = vst [vmem:[#allocation65_spill] sm:$0xff] %v3940_v52 }
  0x52   :  { %1069 = vmatpush1.bf16.msra.mxu0 %v3906_v2  ;;  %1110 = vmatpush1.bf16.msra.mxu1 %v3910_v17  ;;  %6102 = vst [vmem:[#allocation67_spill] sm:$0xff] %v3958_v1  ;;  %v3967_v17 = vcombine.high %v74_v43, %v82_v50  ;;  %v57_v2 = vld [vmem:[%s5793_s1 + $0x120] sm:$0xff] }
  0x53   :  { %1070 = vmatprep.subr.bf16.mxu0 %v3912_v18  ;;  %1111 = vmatprep.subr.bf16.mxu1 %v3915_v31  ;;  %v3962_v31 = vcombine.low %v90_v14, %v98_v16  ;;  %v3964_v18 = vcombine.high %v73_v34, %v81_v41  ;;  %v66_v14 = vld [vmem:[%s5793_s1 + $0x168] sm:$0xff]  ;;  %v3982_v16 = vcombine.low %v73_v34, %v81_v41  ;;  %v49_v34 = vld [vmem:[%s5793_s1 + $0xe0] sm:$0xff] }
  0x54   :  { %6105 = vst [vmem:[#allocation70_spill] sm:$0xff] %v3967_v17  ;;  %v42_v41 = vld [vmem:[%s5793_s1 + $0xa8] sm:$0xff] }
  0x55   :  { %6103 = vst [vmem:[#allocation68_spill] sm:$0xff] %v3962_v31  ;;  %6104 = vst [vmem:[#allocation69_spill] sm:$0xff] %v3964_v18 }
  0x56   :  { %1071 = vmatpush1.bf16.msra.mxu0 %v3934_v32  ;;  %1112 = vmatpush1.bf16.msra.mxu1 %v3938_v51  ;;  %6106 = vst [vmem:[#allocation71_spill] sm:$0xff] %v3982_v16  ;;  %v3991_v51 = vcombine.high %v58_v5, %v66_v14  ;;  %v41_v32 = vld [vmem:[%s5793_s1 + $0xa0] sm:$0xff] }
  0x57   :  { %1072 = vmatprep.subr.bf16.mxu0 %v3940_v52  ;;  %1113 = vmatprep.subr.bf16.mxu1 %v3943_v57  ;;  %v3986_v57 = vcombine.low %v74_v43, %v82_v50  ;;  %v3988_v52 = vcombine.high %v57_v2, %v65_v3  ;;  %v50_v43 = vld [vmem:[%s5793_s1 + $0xe8] sm:$0xff]  ;;  %v4006_v50 = vcombine.low %v57_v2, %v65_v3  ;;  %v33_v2 = vld [vmem:[%s5793_s1 + $0x60] sm:$0xff] }
  0x58   :  { %6109 = vst [vmem:[#allocation74_spill] sm:$0xff] %v3991_v51  ;;  %v26_v3 = vld [vmem:[%s5793_s1 + $0x28] sm:$0xff] }
  0x59   :  { %6107 = vst [vmem:[#allocation72_spill] sm:$0xff] %v3986_v57  ;;  %6108 = vst [vmem:[#allocation73_spill] sm:$0xff] %v3988_v52 }
  0x5a   :  { %1073 = vmatpush1.bf16.msra.mxu0 %v3958_v1  ;;  %1114 = vmatpush1.bf16.msra.mxu1 %v3962_v31  ;;  %6110 = vst [vmem:[#allocation75_spill] sm:$0xff] %v4006_v50  ;;  %v4015_v31 = vcombine.high %v42_v41, %v50_v43  ;;  %v25_v1 = vld [vmem:[%s5793_s1 + $0x20] sm:$0xff] }
  0x5b   :  { %1074 = vmatprep.subr.bf16.mxu0 %v3964_v18  ;;  %1115 = vmatprep.subr.bf16.mxu1 %v3967_v17  ;;  %v4010_v17 = vcombine.low %v58_v5, %v66_v14  ;;  %v4012_v18 = vcombine.high %v41_v32, %v49_v34  ;;  %v34_v5 = vld [vmem:[%s5793_s1 + $0x68] sm:$0xff]  ;;  %v4030_v14 = vcombine.low %v41_v32, %v49_v34  ;;  %v161_v32 = vld [vmem:[%s5793_s1 + $0x460] sm:$0xff] }
  0x5c   :  { %6113 = vst [vmem:[#allocation78_spill] sm:$0xff] %v4015_v31  ;;  %v154_v34 = vld [vmem:[%s5793_s1 + $0x428] sm:$0xff] }
  0x5d   :  { %6111 = vst [vmem:[#allocation76_spill] sm:$0xff] %v4010_v17  ;;  %6112 = vst [vmem:[#allocation77_spill] sm:$0xff] %v4012_v18 }
  0x5e   :  { %1075 = vmatpush1.bf16.msra.mxu0 %v3982_v16  ;;  %1116 = vmatpush1.bf16.msra.mxu1 %v3986_v57  ;;  %6114 = vst [vmem:[#allocation79_spill] sm:$0xff] %v4030_v14  ;;  %v4039_v57 = vcombine.high %v26_v3, %v34_v5  ;;  %v153_v16 = vld [vmem:[%s5793_s1 + $0x420] sm:$0xff] }
  0x5f   :  { %1076 = vmatprep.subr.bf16.mxu0 %v3988_v52  ;;  %1117 = vmatprep.subr.bf16.mxu1 %v3991_v51  ;;  %v4034_v51 = vcombine.low %v42_v41, %v50_v43  ;;  %v4036_v52 = vcombine.high %v25_v1, %v33_v2  ;;  %v162_v41 = vld [vmem:[%s5793_s1 + $0x468] sm:$0xff]  ;;  %v4054_v43 = vcombine.low %v25_v1, %v33_v2  ;;  %v147_v1 = vld [vmem:[%s5793_s1 + $0x3f0] sm:$0xff]  ;;  %v140_v2 = vld [vmem:[%s5793_s1 + $0x3b8] sm:$0xff] }
  0x60   :  { %6117 = vst [vmem:[#allocation82_spill] sm:$0xff] %v4039_v57 }
  0x61   :  { %6115 = vst [vmem:[#allocation80_spill] sm:$0xff] %v4034_v51  ;;  %6116 = vst [vmem:[#allocation81_spill] sm:$0xff] %v4036_v52 }
  0x62   :  { %1077 = vmatpush1.bf16.msra.mxu0 %v4006_v50  ;;  %1118 = vmatpush1.bf16.msra.mxu1 %v4010_v17  ;;  %6118 = vst [vmem:[#allocation83_spill] sm:$0xff] %v4054_v43  ;;  %v4063_v17 = vcombine.high %v154_v34, %v162_v41  ;;  %v139_v50 = vld [vmem:[%s5793_s1 + $0x3b0] sm:$0xff] }
  0x63   :  { %1078 = vmatprep.subr.bf16.mxu0 %v4012_v18  ;;  %1119 = vmatprep.subr.bf16.mxu1 %v4015_v31  ;;  %v4058_v31 = vcombine.low %v26_v3, %v34_v5  ;;  %v4060_v18 = vcombine.high %v153_v16, %v161_v32  ;;  %v148_v3 = vld [vmem:[%s5793_s1 + $0x3f8] sm:$0xff]  ;;  %v4078_v5 = vcombine.low %v153_v16, %v161_v32  ;;  %v131_v16 = vld [vmem:[%s5793_s1 + $0x370] sm:$0xff] }
  0x64   :  { %6121 = vst [vmem:[#allocation86_spill] sm:$0xff] %v4063_v17  ;;  %v124_v32 = vld [vmem:[%s5793_s1 + $0x338] sm:$0xff] }
  0x65   :  { %6119 = vst [vmem:[#allocation84_spill] sm:$0xff] %v4058_v31  ;;  %6120 = vst [vmem:[#allocation85_spill] sm:$0xff] %v4060_v18 }
  0x66   :  { %1079 = vmatpush1.bf16.msra.mxu0 %v4030_v14  ;;  %1120 = vmatpush1.bf16.msra.mxu1 %v4034_v51  ;;  %6122 = vst [vmem:[#allocation87_spill] sm:$0xff] %v4078_v5  ;;  %v4087_v51 = vcombine.high %v140_v2, %v148_v3  ;;  %v123_v14 = vld [vmem:[%s5793_s1 + $0x330] sm:$0xff] }
  0x67   :  { %1080 = vmatprep.subr.bf16.mxu0 %v4036_v52  ;;  %1121 = vmatprep.subr.bf16.mxu1 %v4039_v57  ;;  %v4082_v57 = vcombine.low %v154_v34, %v162_v41  ;;  %v4084_v52 = vcombine.high %v139_v50, %v147_v1  ;;  %v132_v34 = vld [vmem:[%s5793_s1 + $0x378] sm:$0xff]  ;;  %v4102_v41 = vcombine.low %v139_v50, %v147_v1  ;;  %v115_v50 = vld [vmem:[%s5793_s1 + $0x2f0] sm:$0xff] }
  0x68   :  { %6125 = vst [vmem:[#allocation90_spill] sm:$0xff] %v4087_v51  ;;  %v108_v1 = vld [vmem:[%s5793_s1 + $0x2b8] sm:$0xff] }
  0x69   :  { %6123 = vst [vmem:[#allocation88_spill] sm:$0xff] %v4082_v57  ;;  %6124 = vst [vmem:[#allocation89_spill] sm:$0xff] %v4084_v52 }
  0x6a   :  { %1081 = vmatpush1.bf16.msra.mxu0 %v4054_v43  ;;  %1122 = vmatpush1.bf16.msra.mxu1 %v4058_v31  ;;  %6126 = vst [vmem:[#allocation91_spill] sm:$0xff] %v4102_v41  ;;  %v4111_v31 = vcombine.high %v124_v32, %v132_v34  ;;  %v107_v43 = vld [vmem:[%s5793_s1 + $0x2b0] sm:$0xff] }
  0x6b   :  { %1096 = vmatprep.subr.bf16.mxu0 %v4060_v18  ;;  %1137 = vmatprep.subr.bf16.mxu1 %v4063_v17  ;;  %v4106_v17 = vcombine.low %v140_v2, %v148_v3  ;;  %v4108_v18 = vcombine.high %v123_v14, %v131_v16  ;;  %v116_v2 = vld [vmem:[%s5793_s1 + $0x2f8] sm:$0xff]  ;;  %v4128_v3 = vcombine.low %v123_v14, %v131_v16  ;;  %v99_v14 = vld [vmem:[%s5793_s1 + $0x270] sm:$0xff] }
  0x6c   :  { %6129 = vst [vmem:[#allocation94_spill] sm:$0xff] %v4111_v31  ;;  %v92_v16 = vld [vmem:[%s5793_s1 + $0x238] sm:$0xff] }
  0x6d   :  { %6127 = vst [vmem:[#allocation92_spill] sm:$0xff] %v4106_v17  ;;  %6128 = vst [vmem:[#allocation93_spill] sm:$0xff] %v4108_v18 }
  0x6e   :  { %1097 = vmatpush2.bf16.msra.mxu0 %v4078_v5  ;;  %1138 = vmatpush2.bf16.msra.mxu1 %v4082_v57  ;;  %6130 = vst [vmem:[#allocation95_spill] sm:$0xff] %v4128_v3  ;;  %v4137_v57 = vcombine.high %v108_v1, %v116_v2  ;;  %v91_v5 = vld [vmem:[%s5793_s1 + $0x230] sm:$0xff] }
  0x6f   :  { %1148 = vmatprep.subr.bf16.mxu0 %v4084_v52  ;;  %1189 = vmatprep.subr.bf16.mxu1 %v4087_v51  ;;  %v4132_v51 = vcombine.low %v124_v32, %v132_v34  ;;  %v4134_v52 = vcombine.high %v107_v43, %v115_v50  ;;  %v100_v32 = vld [vmem:[%s5793_s1 + $0x278] sm:$0xff]  ;;  %v4156_v34 = vcombine.low %v107_v43, %v115_v50  ;;  %v83_v43 = vld [vmem:[%s5793_s1 + $0x1f0] sm:$0xff] }
  0x70   :  { %6133 = vst [vmem:[#allocation98_spill] sm:$0xff] %v4137_v57  ;;  %v76_v50 = vld [vmem:[%s5793_s1 + $0x1b8] sm:$0xff] }
  0x71   :  { %1099 = vmatmul.mubr.bf16.vlgmr.msra.gmra.mxu0 %v3646_v33  ;;  %1140 = vmatmul.mubr.bf16.vlgmr.msra.gmra.mxu1 %v3646_v33  ;;  %6131 = vst [vmem:[#allocation96_spill] sm:$0xff] %v4132_v51  ;;  %6132 = vst [vmem:[#allocation97_spill] sm:$0xff] %v4134_v52 }
  0x72   :  { %1149 = vmatpush1.bf16.msra.mxu0 %v4102_v41  ;;  %1190 = vmatpush1.bf16.msra.mxu1 %v4106_v17  ;;  %6134 = vst [vmem:[#allocation99_spill] sm:$0xff] %v4156_v34  ;;  %v4165_v17 = vcombine.high %v92_v16, %v100_v32 }
  0x73   :  { %1150 = vmatprep.subr.bf16.mxu0 %v4108_v18  ;;  %1191 = vmatprep.subr.bf16.mxu1 %v4111_v31  ;;  %v4160_v31 = vcombine.low %v108_v1, %v116_v2  ;;  %v4162_v18 = vcombine.high %v91_v5, %v99_v14  ;;  %v84_v1 = vld [vmem:[%s5793_s1 + $0x1f8] sm:$0xff]  ;;  %v4180_v2 = vcombine.low %v91_v5, %v99_v14  ;;  %v67_v5 = vld [vmem:[%s5793_s1 + $0x170] sm:$0xff] }
  0x74   :  { %3255 = vmatprep.mubr.msk.bf16.mxu0 %vm898_vm0, %v3509_v39  ;;  %3256 = vmatprep.mubr.msk.bf16.mxu1 %vm898_vm0, %v3509_v39  ;;  %6137 = vst [vmem:[#allocation102_spill] sm:$0xff] %v4165_v17  ;;  %v75_v39 = vld [vmem:[%s5793_s1 + $0x1b0] sm:$0xff]  ;;  %v60_v14 = vld [vmem:[%s5793_s1 + $0x138] sm:$0xff] }
  0x75   :  { %6135 = vst [vmem:[#allocation100_spill] sm:$0xff] %v4160_v31  ;;  %6136 = vst [vmem:[#allocation101_spill] sm:$0xff] %v4162_v18 }
  0x76   :  { %1151 = vmatpush1.bf16.msra.mxu0 %v4128_v3  ;;  %1192 = vmatpush1.bf16.msra.mxu1 %v4132_v51  ;;  %6138 = vst [vmem:[#allocation103_spill] sm:$0xff] %v4180_v2  ;;  %v4189_v51 = vcombine.high %v76_v50, %v84_v1  ;;  %v59_v3 = vld [vmem:[%s5793_s1 + $0x130] sm:$0xff] }
  0x77   :  { %1152 = vmatprep.subr.bf16.mxu0 %v4134_v52  ;;  %1193 = vmatprep.subr.bf16.mxu1 %v4137_v57  ;;  %v4184_v57 = vcombine.low %v92_v16, %v100_v32  ;;  %v4186_v52 = vcombine.high %v75_v39, %v83_v43  ;;  %v68_v16 = vld [vmem:[%s5793_s1 + $0x178] sm:$0xff]  ;;  %v4204_v32 = vcombine.low %v75_v39, %v83_v43  ;;  %v51_v39 = vld [vmem:[%s5793_s1 + $0xf0] sm:$0xff] }
  0x78   :  { %6141 = vst [vmem:[#allocation106_spill] sm:$0xff] %v4189_v51  ;;  %v44_v43 = vld [vmem:[%s5793_s1 + $0xb8] sm:$0xff] }
  0x79   :  { %6139 = vst [vmem:[#allocation104_spill] sm:$0xff] %v4184_v57  ;;  %6140 = vst [vmem:[#allocation105_spill] sm:$0xff] %v4186_v52 }
  0x7a   :  { %1153 = vmatpush1.bf16.msra.mxu0 %v4156_v34  ;;  %1194 = vmatpush1.bf16.msra.mxu1 %v4160_v31  ;;  %6142 = vst [vmem:[#allocation107_spill] sm:$0xff] %v4204_v32  ;;  %v4213_v31 = vcombine.high %v60_v14, %v68_v16  ;;  %v43_v34 = vld [vmem:[%s5793_s1 + $0xb0] sm:$0xff] }
  0x7b   :  { %1154 = vmatprep.subr.bf16.mxu0 %v4162_v18  ;;  %1195 = vmatprep.subr.bf16.mxu1 %v4165_v17  ;;  %v4208_v17 = vcombine.low %v76_v50, %v84_v1  ;;  %v4210_v18 = vcombine.high %v59_v3, %v67_v5  ;;  %v52_v50 = vld [vmem:[%s5793_s1 + $0xf8] sm:$0xff]  ;;  %v4228_v1 = vcombine.low %v59_v3, %v67_v5  ;;  %v35_v3 = vld [vmem:[%s5793_s1 + $0x70] sm:$0xff] }
  0x7c   :  { %6145 = vst [vmem:[#allocation110_spill] sm:$0xff] %v4213_v31  ;;  %v28_v5 = vld [vmem:[%s5793_s1 + $0x38] sm:$0xff] }
  0x7d   :  { %6143 = vst [vmem:[#allocation108_spill] sm:$0xff] %v4208_v17  ;;  %6144 = vst [vmem:[#allocation109_spill] sm:$0xff] %v4210_v18 }
  0x7e   :  { %1155 = vmatpush1.bf16.msra.mxu0 %v4180_v2  ;;  %1196 = vmatpush1.bf16.msra.mxu1 %v4184_v57  ;;  %6146 = vst [vmem:[#allocation111_spill] sm:$0xff] %v4228_v1  ;;  %v4237_v57 = vcombine.high %v44_v43, %v52_v50  ;;  %v27_v2 = vld [vmem:[%s5793_s1 + $0x30] sm:$0xff] }
  0x7f   :  { %1156 = vmatprep.subr.bf16.mxu0 %v4186_v52  ;;  %1197 = vmatprep.subr.bf16.mxu1 %v4189_v51  ;;  %v4232_v51 = vcombine.low %v60_v14, %v68_v16  ;;  %v4234_v52 = vcombine.high %v43_v34, %v51_v39  ;;  %v36_v14 = vld [vmem:[%s5793_s1 + $0x78] sm:$0xff]  ;;  %v4252_v16 = vcombine.low %v43_v34, %v51_v39  ;;  %v163_v34 = vld [vmem:[%s5793_s1 + $0x470] sm:$0xff] }
  0x80   :  { %6149 = vst [vmem:[#allocation114_spill] sm:$0xff] %v4237_v57  ;;  %v156_v39 = vld [vmem:[%s5793_s1 + $0x438] sm:$0xff] }
  0x81   :  { %6147 = vst [vmem:[#allocation112_spill] sm:$0xff] %v4232_v51  ;;  %6148 = vst [vmem:[#allocation113_spill] sm:$0xff] %v4234_v52 }
  0x82   :  { %1157 = vmatpush1.bf16.msra.mxu0 %v4204_v32  ;;  %1198 = vmatpush1.bf16.msra.mxu1 %v4208_v17  ;;  %v4261_v17 = vcombine.high %v28_v5, %v36_v14  ;;  %v155_v32 = vld [vmem:[%s5793_s1 + $0x430] sm:$0xff] }
  0x83   :  { %1158 = vmatprep.subr.bf16.mxu0 %v4210_v18  ;;  %1199 = vmatprep.subr.bf16.mxu1 %v4213_v31  ;;  %v4256_v31 = vcombine.low %v44_v43, %v52_v50  ;;  %v4258_v18 = vcombine.high %v27_v2, %v35_v3  ;;  %v164_v43 = vld [vmem:[%s5793_s1 + $0x478] sm:$0xff]  ;;  %v4276_v50 = vcombine.low %v27_v2, %v35_v3  ;;  %v1298_v3 = vld [vmem:[%s5794_s0 + $0x8] sm:$0xff] }
  0x84   :  { %v4292_v2 = vcombine.low %v156_v39, %v164_v43 }
  0x86   :  { %1159 = vmatpush1.bf16.msra.mxu0 %v4228_v1  ;;  %1200 = vmatpush1.bf16.msra.mxu1 %v4232_v51  ;;  %v4285_v51 = vcombine.high %v156_v39, %v164_v43  ;;  %v4288_v1 = vcombine.low %v155_v32, %v163_v34  ;;  %6152 = vst [vmem:[#allocation117_spill] sm:$0xff] %v4292_v2  ;;  %v6156_v39 = vld [vmem:[#allocation29_spill] sm:$0xff]  ;;  %v6157_v43 = vld [vmem:[#allocation30_spill] sm:$0xff] }
  0x87   :  { %1160 = vmatprep.subr.bf16.mxu0 %v4234_v52  ;;  %1201 = vmatprep.subr.bf16.mxu1 %v4237_v57  ;;  %v4280_v57 = vcombine.low %v28_v5, %v36_v14  ;;  %v4282_v52 = vcombine.high %v155_v32, %v163_v34  ;;  %v4302_v32 = vcombine.high %v1298_v3, %v1298_v3  ;;  %v6153_v5 = vld [vmem:[#allocation26_spill] sm:$0xff]  ;;  %v6154_v14 = vld [vmem:[#allocation27_spill] sm:$0xff]  ;;  %v6155_v34 = vld [vmem:[#allocation28_spill] sm:$0xff] }
  0x88   :  { %6150 = vst [vmem:[#allocation115_spill] sm:$0xff] %v4285_v51  ;;  %6151 = vst [vmem:[#allocation116_spill] sm:$0xff] %v4288_v1 }
  0x8a   :  { %1161 = vmatpush1.bf16.msra.mxu0 %v4252_v16  ;;  %1202 = vmatpush1.bf16.msra.mxu1 %v4256_v31 }
  0x8b   :  { %1162 = vmatprep.subr.bf16.mxu0 %v4258_v18  ;;  %1203 = vmatprep.subr.bf16.mxu1 %v4261_v17 }
  0x8e   :  { %1163 = vmatpush1.bf16.msra.mxu0 %v4276_v50  ;;  %1204 = vmatpush1.bf16.msra.mxu1 %v4280_v57 }
  0x8f   :  { %1178 = vmatprep.subr.bf16.mxu0 %v4282_v52  ;;  %1219 = vmatprep.subr.bf16.mxu1 %v4285_v51 }
  0x92   :  { %1179 = vmatpush2.bf16.msra.mxu0 %v4288_v1  ;;  %1220 = vmatpush2.bf16.msra.mxu1 %v4292_v2 }
  0x93   :  { %1314 = vmatprep.subr.bf16.mxu0 %v3404_v4  ;;  %1355 = vmatprep.subr.bf16.mxu1 %v3417_v9 }
  0x95   :  { %1181 = vmatmul.mubr.bf16.vlgmr.msra.gmra.mxu0 %v3646_v33  ;;  %1222 = vmatmul.mubr.bf16.vlgmr.msra.gmra.mxu1 %v3646_v33  ;;  %v4342_v33 = vcombine.low %v1298_v3, %v1298_v3  ;;  %v6158_v3 = vld [vmem:[#allocation31_spill] sm:$0xff] }
  0x96   :  { %1315 = vmatpush1.bf16.msra.mxu0 %v3409_v6  ;;  %1356 = vmatpush1.bf16.msra.mxu1 %v3419_v10 }
  0x97   :  { %1316 = vmatprep.subr.bf16.mxu0 %v3421_v11  ;;  %1357 = vmatprep.subr.bf16.mxu1 %v3433_v15 }
  0x98   :  { %3259 = vmatprep.mubr.msk.bf16.mxu0 %vm898_vm0, %v4302_v32  ;;  %3260 = vmatprep.mubr.msk.bf16.mxu1 %vm898_vm0, %v4302_v32 }
  0x9a   :  { %1317 = vmatpush1.bf16.msra.mxu0 %v3446_v19  ;;  %1358 = vmatpush1.bf16.msra.mxu1 %v3450_v20 }
  0x9b   :  { %1318 = vmatprep.subr.bf16.mxu0 %v3452_v21  ;;  %1359 = vmatprep.subr.bf16.mxu1 %v3455_v22 }
  0x9e   :  { %1319 = vmatpush1.bf16.msra.mxu0 %v3470_v27  ;;  %1360 = vmatpush1.bf16.msra.mxu1 %v3474_v28 }
  0x9f   :  { %1320 = vmatprep.subr.bf16.mxu0 %v3476_v29  ;;  %1361 = vmatprep.subr.bf16.mxu1 %v3479_v30 }
  0xa2   :  { %1321 = vmatpush1.bf16.msra.mxu0 %v3494_v35  ;;  %1362 = vmatpush1.bf16.msra.mxu1 %v3503_v37 }
  0xa3   :  { %1322 = vmatprep.subr.bf16.mxu0 %v3505_v38  ;;  %1363 = vmatprep.subr.bf16.mxu1 %v3512_v40 }
  0xa6   :  { %1323 = vmatpush1.bf16.msra.mxu0 %v3531_v45  ;;  %1364 = vmatpush1.bf16.msra.mxu1 %v3535_v46 }
  0xa7   :  { %1324 = vmatprep.subr.bf16.mxu0 %v3537_v47  ;;  %1365 = vmatprep.subr.bf16.mxu1 %v3540_v48 }
  0xaa   :  { %1325 = vmatpush1.bf16.msra.mxu0 %v3555_v53  ;;  %1366 = vmatpush1.bf16.msra.mxu1 %v3559_v54 }
  0xab   :  { %1326 = vmatprep.subr.bf16.mxu0 %v3561_v55  ;;  %1367 = vmatprep.subr.bf16.mxu1 %v3564_v56 }
  0xae   :  { %1327 = vmatpush1.bf16.msra.mxu0 %v3579_v61  ;;  %1368 = vmatpush1.bf16.msra.mxu1 %v3583_v62 }
  0xaf   :  { %1328 = vmatprep.subr.bf16.mxu0 %v3585_v63  ;;  %1369 = vmatprep.subr.bf16.mxu1 %v3588_v0 }
  0xb2   :  { %1329 = vmatpush1.bf16.msra.mxu0 %v3603_v7  ;;  %1370 = vmatpush1.bf16.msra.mxu1 %v3607_v8 }
  0xb3   :  { %1344 = vmatprep.subr.bf16.mxu0 %v3609_v12  ;;  %1385 = vmatprep.subr.bf16.mxu1 %v3612_v13  ;;  %v6238_v13 = vld [vmem:[#allocation112_spill] sm:$0xff]  ;;  %v6239_v12 = vld [vmem:[#allocation113_spill] sm:$0xff] }
  0xb6   :  { %1345 = vmatpush2.bf16.msra.mxu0 %v3627_v23  ;;  %1386 = vmatpush2.bf16.msra.mxu1 %v3631_v24  ;;  %v6203_v24 = vld [vmem:[#allocation76_spill] sm:$0xff]  ;;  %v6205_v23 = vld [vmem:[#allocation78_spill] sm:$0xff] }
  0xb7   :  { %1396 = vmatprep.subr.bf16.mxu0 %v3633_v25  ;;  %1437 = vmatprep.subr.bf16.mxu1 %v3636_v26  ;;  %v6200_v26 = vld [vmem:[#allocation73_spill] sm:$0xff]  ;;  %v6201_v25 = vld [vmem:[#allocation74_spill] sm:$0xff] }
  0xb9   :  { %1347 = vmatmul.mubr.bf16.vlgmr.msra.gmra.mxu0 %v4342_v33  ;;  %1388 = vmatmul.mubr.bf16.vlgmr.msra.gmra.mxu1 %v4342_v33 }
  0xba   :  { %1397 = vmatpush1.bf16.msra.mxu0 %v3655_v42  ;;  %1438 = vmatpush1.bf16.msra.mxu1 %v3662_v36  ;;  %v6198_v36 = vld [vmem:[#allocation71_spill] sm:$0xff] }
  0xbb   :  { %1398 = vmatprep.subr.bf16.mxu0 %v3664_v44  ;;  %1439 = vmatprep.subr.bf16.mxu1 %v3667_v49  ;;  %v6159_v49 = vld [vmem:[#allocation32_spill] sm:$0xff]  ;;  %v6160_v44 = vld [vmem:[#allocation33_spill] sm:$0xff] }
  0xbc   :  { %3261 = vmatprep.mubr.msk.bf16.mxu0 %vm898_vm0, %v4302_v32  ;;  %3262 = vmatprep.mubr.msk.bf16.mxu1 %vm898_vm0, %v4302_v32 }
  0xbe   :  { %1399 = vmatpush1.bf16.msra.mxu0 %v3684_v58  ;;  %1440 = vmatpush1.bf16.msra.mxu1 %v3688_v59  ;;  %v6161_v58 = vld [vmem:[#allocation34_spill] sm:$0xff]  ;;  %v6162_v59 = vld [vmem:[#allocation35_spill] sm:$0xff] }
  0xbf   :  { %1400 = vmatprep.subr.bf16.mxu0 %v3690_v60  ;;  %1441 = vmatprep.subr.bf16.mxu1 %v6153_v5  ;;  %v6163_v60 = vld [vmem:[#allocation36_spill] sm:$0xff]  ;;  %v6164_v5 = vld [vmem:[#allocation37_spill] sm:$0xff] }
  0xc2   :  { %1401 = vmatpush1.bf16.msra.mxu0 %v6154_v14  ;;  %1442 = vmatpush1.bf16.msra.mxu1 %v6155_v34  ;;  %v6165_v14 = vld [vmem:[#allocation38_spill] sm:$0xff]  ;;  %v6166_v34 = vld [vmem:[#allocation39_spill] sm:$0xff] }
  0xc3   :  { %1402 = vmatprep.subr.bf16.mxu0 %v6156_v39  ;;  %1443 = vmatprep.subr.bf16.mxu1 %v6157_v43  ;;  %v6167_v39 = vld [vmem:[#allocation40_spill] sm:$0xff]  ;;  %v6168_v43 = vld [vmem:[#allocation41_spill] sm:$0xff] }
  0xc6   :  { %1403 = vmatpush1.bf16.msra.mxu0 %v6158_v3  ;;  %1444 = vmatpush1.bf16.msra.mxu1 %v6159_v49  ;;  %v6169_v3 = vld [vmem:[#allocation42_spill] sm:$0xff]  ;;  %v6170_v49 = vld [vmem:[#allocation43_spill] sm:$0xff] }
  0xc7   :  { %1404 = vmatprep.subr.bf16.mxu0 %v6160_v44  ;;  %1445 = vmatprep.subr.bf16.mxu1 %v6161_v58  ;;  %v6171_v44 = vld [vmem:[#allocation44_spill] sm:$0xff]  ;;  %v6172_v58 = vld [vmem:[#allocation45_spill] sm:$0xff] }
  0xca   :  { %1405 = vmatpush1.bf16.msra.mxu0 %v6162_v59  ;;  %1446 = vmatpush1.bf16.msra.mxu1 %v6163_v60  ;;  %v6173_v59 = vld [vmem:[#allocation46_spill] sm:$0xff]  ;;  %v6174_v60 = vld [vmem:[#allocation47_spill] sm:$0xff] }
  0xcb   :  { %1406 = vmatprep.subr.bf16.mxu0 %v6164_v5  ;;  %1447 = vmatprep.subr.bf16.mxu1 %v6165_v14  ;;  %v6175_v5 = vld [vmem:[#allocation48_spill] sm:$0xff]  ;;  %v6176_v14 = vld [vmem:[#allocation49_spill] sm:$0xff] }
  0xce   :  { %1407 = vmatpush1.bf16.msra.mxu0 %v6166_v34  ;;  %1448 = vmatpush1.bf16.msra.mxu1 %v6167_v39  ;;  %v6177_v34 = vld [vmem:[#allocation50_spill] sm:$0xff]  ;;  %v6178_v39 = vld [vmem:[#allocation51_spill] sm:$0xff] }
  0xcf   :  { %1408 = vmatprep.subr.bf16.mxu0 %v6168_v43  ;;  %1449 = vmatprep.subr.bf16.mxu1 %v6169_v3  ;;  %v6179_v43 = vld [vmem:[#allocation52_spill] sm:$0xff]  ;;  %v6180_v3 = vld [vmem:[#allocation53_spill] sm:$0xff] }
  0xd2   :  { %1409 = vmatpush1.bf16.msra.mxu0 %v6170_v49  ;;  %1450 = vmatpush1.bf16.msra.mxu1 %v6171_v44  ;;  %v6181_v49 = vld [vmem:[#allocation54_spill] sm:$0xff]  ;;  %v6194_v44 = vld [vmem:[#allocation67_spill] sm:$0xff] }
  0xd3   :  { %1410 = vmatprep.subr.bf16.mxu0 %v6172_v58  ;;  %1451 = vmatprep.subr.bf16.mxu1 %v6173_v59  ;;  %v6182_v59 = vld [vmem:[#allocation55_spill] sm:$0xff] }
  0xd6   :  { %1411 = vmatpush1.bf16.msra.mxu0 %v6174_v60  ;;  %1452 = vmatpush1.bf16.msra.mxu1 %v6175_v5  ;;  %v6183_v60 = vld [vmem:[#allocation56_spill] sm:$0xff]  ;;  %v6184_v5 = vld [vmem:[#allocation57_spill] sm:$0xff] }
  0xd7   :  { %1426 = vmatprep.subr.bf16.mxu0 %v6176_v14  ;;  %1467 = vmatprep.subr.bf16.mxu1 %v6177_v34  ;;  %v6185_v14 = vld [vmem:[#allocation58_spill] sm:$0xff] }
  0xda   :  { %1427 = vmatpush2.bf16.msra.mxu0 %v6178_v39  ;;  %1468 = vmatpush2.bf16.msra.mxu1 %v6179_v43  ;;  %v6188_v43 = vld [vmem:[#allocation61_spill] sm:$0xff]  ;;  %v6189_v39 = vld [vmem:[#allocation62_spill] sm:$0xff] }
  0xdb   :  { %1478 = vmatprep.subr.bf16.mxu0 %v6180_v3  ;;  %1519 = vmatprep.subr.bf16.mxu1 %v6181_v49  ;;  %v6186_v3 = vld [vmem:[#allocation59_spill] sm:$0xff]  ;;  %v6187_v49 = vld [vmem:[#allocation60_spill] sm:$0xff] }
  0xdd   :  { %1429 = vmatmul.mubr.bf16.vlgmr.msra.gmra.mxu0 %v4342_v33  ;;  %1470 = vmatmul.mubr.bf16.vlgmr.msra.gmra.mxu1 %v4342_v33 }
  0xde   :  { %1479 = vmatpush1.bf16.msra.mxu0 %v6182_v59  ;;  %1520 = vmatpush1.bf16.msra.mxu1 %v6183_v60  ;;  %v6190_v59 = vld [vmem:[#allocation63_spill] sm:$0xff]  ;;  %v6191_v60 = vld [vmem:[#allocation64_spill] sm:$0xff] }
  0xdf   :  { %1480 = vmatprep.subr.bf16.mxu0 %v6184_v5  ;;  %1521 = vmatprep.subr.bf16.mxu1 %v6185_v14  ;;  %v6192_v5 = vld [vmem:[#allocation65_spill] sm:$0xff]  ;;  %v6193_v14 = vld [vmem:[#allocation66_spill] sm:$0xff] }
  0xe0   :  { %3263 = vmatprep.mubr.msk.bf16.mxu0 %vm898_vm0, %v4302_v32  ;;  %3264 = vmatprep.mubr.msk.bf16.mxu1 %vm898_vm0, %v4302_v32 }
  0xe2   :  { %1481 = vmatpush1.bf16.msra.mxu0 %v6186_v3  ;;  %1522 = vmatpush1.bf16.msra.mxu1 %v6187_v49  ;;  %v6195_v3 = vld [vmem:[#allocation68_spill] sm:$0xff] }
  0xe3   :  { %1482 = vmatprep.subr.bf16.mxu0 %v6188_v43  ;;  %1523 = vmatprep.subr.bf16.mxu1 %v6189_v39  ;;  %v6196_v43 = vld [vmem:[#allocation69_spill] sm:$0xff] }
  0xe6   :  { %1483 = vmatpush1.bf16.msra.mxu0 %v6190_v59  ;;  %1524 = vmatpush1.bf16.msra.mxu1 %v6191_v60  ;;  %v6197_v59 = vld [vmem:[#allocation70_spill] sm:$0xff] }
  0xe7   :  { %1484 = vmatprep.subr.bf16.mxu0 %v6192_v5  ;;  %1525 = vmatprep.subr.bf16.mxu1 %v6193_v14  ;;  %v6199_v14 = vld [vmem:[#allocation72_spill] sm:$0xff] }
  0xe9   :  { %v4408_v34 = vpop.f32.mrf.mxu0  ;;  %v4410_v58 = vpop.f32.mrf.mxu1 }
  0xea   :  { %1485 = vmatpush1.bf16.msra.mxu0 %v6194_v44  ;;  %1526 = vmatpush1.bf16.msra.mxu1 %v6195_v3  ;;  %v6202_v3 = vld [vmem:[#allocation75_spill] sm:$0xff] }
  0xeb   :  { %v4414_v49 = vpop.f32.mrf.mxu0  ;;  %1486 = vmatprep.subr.bf16.mxu0 %v6196_v43  ;;  %v4417_v39 = vpop.f32.mrf.mxu1  ;;  %1527 = vmatprep.subr.bf16.mxu1 %v6197_v59  ;;  %v6204_v43 = vld [vmem:[#allocation77_spill] sm:$0xff]  ;;  %v6237_v59 = vld [vmem:[#allocation111_spill] sm:$0xff] }
  0xed   :  { %v940_v60 = vpop.f32.mrf.mxu0  ;;  %v981_v5 = vpop.f32.mrf.mxu1 }
  0xee   :  { %1487 = vmatpush1.bf16.msra.mxu0 %v6198_v36  ;;  %1528 = vmatpush1.bf16.msra.mxu1 %v6199_v14  ;;  %v6206_v60 = vld [vmem:[#allocation79_spill] sm:$0xff]  ;;  %v6207_v5 = vld [vmem:[#allocation80_spill] sm:$0xff]  ;;  %v6208_v36 = vld [vmem:[#allocation81_spill] sm:$0xff] }
  0xef   :  { %v941_v42 = vpop.f32.mrf.mxu0  ;;  %1488 = vmatprep.subr.bf16.mxu0 %v6200_v26  ;;  %v982_v44 = vpop.f32.mrf.mxu1  ;;  %1529 = vmatprep.subr.bf16.mxu1 %v6201_v25  ;;  %v6210_v26 = vld [vmem:[#allocation83_spill] sm:$0xff]  ;;  %v6212_v25 = vld [vmem:[#allocation85_spill] sm:$0xff] }
  0xf0   :  { %v6209_v42 = vld [vmem:[#allocation82_spill] sm:$0xff]  ;;  %v6211_v44 = vld [vmem:[#allocation84_spill] sm:$0xff] }
  0xf2   :  { %1489 = vmatpush1.bf16.msra.mxu0 %v6202_v3  ;;  %1530 = vmatpush1.bf16.msra.mxu1 %v6203_v24  ;;  %v6213_v3 = vld [vmem:[#allocation86_spill] sm:$0xff]  ;;  %v6214_v24 = vld [vmem:[#allocation87_spill] sm:$0xff] }
  0xf3   :  { %1490 = vmatprep.subr.bf16.mxu0 %v6204_v43  ;;  %1531 = vmatprep.subr.bf16.mxu1 %v6205_v23  ;;  %v6215_v43 = vld [vmem:[#allocation88_spill] sm:$0xff]  ;;  %v6216_v23 = vld [vmem:[#allocation89_spill] sm:$0xff] }
  0xf6   :  { %1491 = vmatpush1.bf16.msra.mxu0 %v6206_v60  ;;  %1532 = vmatpush1.bf16.msra.mxu1 %v6207_v5  ;;  %v6217_v60 = vld [vmem:[#allocation90_spill] sm:$0xff]  ;;  %v6235_v5 = vld [vmem:[#allocation109_spill] sm:$0xff] }
  0xf7   :  { %1492 = vmatprep.subr.bf16.mxu0 %v6208_v36  ;;  %1533 = vmatprep.subr.bf16.mxu1 %v6209_v42  ;;  %v6233_v36 = vld [vmem:[#allocation107_spill] sm:$0xff] }
  0xfa   :  { %1493 = vmatpush1.bf16.msra.mxu0 %v6210_v26  ;;  %1534 = vmatpush1.bf16.msra.mxu1 %v6211_v44  ;;  %v6218_v26 = vld [vmem:[#allocation92_spill] sm:$0xff]  ;;  %v6219_v44 = vld [vmem:[#allocation93_spill] sm:$0xff] }
  0xfb   :  { %1508 = vmatprep.subr.bf16.mxu0 %v6212_v25  ;;  %1549 = vmatprep.subr.bf16.mxu1 %v6213_v3  ;;  %v6220_v25 = vld [vmem:[#allocation94_spill] sm:$0xff] }
  0xfe   :  { %1509 = vmatpush2.bf16.msra.mxu0 %v6214_v24  ;;  %1550 = vmatpush2.bf16.msra.mxu1 %v6215_v43  ;;  %v6223_v43 = vld [vmem:[#allocation97_spill] sm:$0xff]  ;;  %v6224_v24 = vld [vmem:[#allocation98_spill] sm:$0xff] }
  0xff   :  { %1560 = vmatprep.subr.bf16.mxu0 %v6216_v23  ;;  %1601 = vmatprep.subr.bf16.mxu1 %v6217_v60  ;;  %v6221_v23 = vld [vmem:[#allocation95_spill] sm:$0xff]  ;;  %v6222_v60 = vld [vmem:[#allocation96_spill] sm:$0xff] }
 0x101   :  { %1511 = vmatmul.mubr.bf16.vlgmr.msra.gmra.mxu0 %v4342_v33  ;;  %1552 = vmatmul.mubr.bf16.vlgmr.msra.gmra.mxu1 %v4342_v33 }
 0x102   :  { %1561 = vmatpush1.bf16.msra.mxu0 %v4102_v41  ;;  %1602 = vmatpush1.bf16.msra.mxu1 %v6218_v26  ;;  %v6225_v41 = vld [vmem:[#allocation99_spill] sm:$0xff]  ;;  %v6226_v26 = vld [vmem:[#allocation100_spill] sm:$0xff] }
 0x103   :  { %1562 = vmatprep.subr.bf16.mxu0 %v6219_v44  ;;  %1603 = vmatprep.subr.bf16.mxu1 %v6220_v25  ;;  %v6227_v44 = vld [vmem:[#allocation101_spill] sm:$0xff]  ;;  %v6228_v25 = vld [vmem:[#allocation102_spill] sm:$0xff] }
 0x104   :  { %3265 = vmatprep.mubr.msk.bf16.mxu0 %vm898_vm0, %v4302_v32  ;;  %3266 = vmatprep.mubr.msk.bf16.mxu1 %vm898_vm0, %v4302_v32  ;;  %v6229_v32 = vld [vmem:[#allocation103_spill] sm:$0xff] }
 0x106   :  { %1563 = vmatpush1.bf16.msra.mxu0 %v6221_v23  ;;  %1604 = vmatpush1.bf16.msra.mxu1 %v6222_v60  ;;  %v6230_v23 = vld [vmem:[#allocation104_spill] sm:$0xff] }
 0x107   :  { %1564 = vmatprep.subr.bf16.mxu0 %v6223_v43  ;;  %1605 = vmatprep.subr.bf16.mxu1 %v6224_v24  ;;  %v6231_v43 = vld [vmem:[#allocation105_spill] sm:$0xff] }
 0x10a   :  { %1565 = vmatpush1.bf16.msra.mxu0 %v6225_v41  ;;  %1606 = vmatpush1.bf16.msra.mxu1 %v6226_v26  ;;  %v1711_v26 = vld [vmem:[%s5795_s2] sm:$0xff] }
 0x10b   :  { %1566 = vmatprep.subr.bf16.mxu0 %v6227_v44  ;;  %1607 = vmatprep.subr.bf16.mxu1 %v6228_v25  ;;  %v6232_v44 = vld [vmem:[#allocation106_spill] sm:$0xff] }
 0x10c   :  { %1714 = vperm.xlu1 %3353, %v1711_v26  }
 0x10d   :  { %v4458_v3 = vpop.f32.mrf.mxu0  ;;  %v4460_v42 = vpop.f32.mrf.mxu1 }
 0x10e   :  { %1567 = vmatpush1.bf16.msra.mxu0 %v6229_v32  ;;  %1608 = vmatpush1.bf16.msra.mxu1 %v6230_v23  ;;  %v6234_v32 = vld [vmem:[#allocation108_spill] sm:$0xff] }
 0x10f   :  { %v4464_v60 = vpop.f32.mrf.mxu0  ;;  %1568 = vmatprep.subr.bf16.mxu0 %v6231_v43  ;;  %v4470_v41 = vpop.f32.mrf.mxu1  ;;  %1609 = vmatprep.subr.bf16.mxu1 %v6232_v44  ;;  %v6236_v43 = vld [vmem:[#allocation110_spill] sm:$0xff] }
 0x110   :  { %2126 = vperm.xlu1 %3353, %v1711_v26   ;;  %v6240_v44 = vld [vmem:[#allocation114_spill] sm:$0xff] }
 0x111   :  { %v1022_v25 = vpop.f32.mrf.mxu0  ;;  %v1063_v24 = vpop.f32.mrf.mxu1 }
 0x112   :  { %1569 = vmatpush1.bf16.msra.mxu0 %v6233_v36  ;;  %1610 = vmatpush1.bf16.msra.mxu1 %v6234_v32  ;;  %v4510_v25 = vpop.permute.xlu0 %169 }
 0x113   :  { %v1023_v23 = vpop.f32.mrf.mxu0  ;;  %1570 = vmatprep.subr.bf16.mxu0 %v6235_v5  ;;  %v1064_v14 = vpop.f32.mrf.mxu1  ;;  %1611 = vmatprep.subr.bf16.mxu1 %v6236_v43  ;;  %v4519_v26 = vadd.f32 %v4408_v34, %v4510_v25  ;;  %v4535_v34 = vadd.f32 %v4410_v58, %v4510_v25  ;;  %v4547_v58 = vadd.f32 %v4417_v39, %v4510_v25 }
 0x114   :  { %v4492_v23 = vld [vmem:[%s5794_s0 + $0x10] sm:$0xff] }
 0x115   :  { %v4500_v24 = vcombine.high %v4492_v23, %v4492_v23  ;;  %6241 = vst [vmem:[#allocation107_spill] sm:$0xff] %v4519_v26  ;;  %v1264_v14 = vmul.f32 %v4519_v26, %v4519_v26  ;;  %6243 = vst [vmem:[#allocation109_spill] sm:$0xff] %v4535_v34  ;;  %v1267_v39 = vmul.f32 %v4547_v58, %v4547_v58 }
 0x116   :  { %1571 = vmatpush1.bf16.msra.mxu0 %v6237_v59  ;;  %1612 = vmatpush1.bf16.msra.mxu1 %v6238_v13  ;;  %6244 = vst [vmem:[#allocation110_spill] sm:$0xff] %v4547_v58 }
 0x117   :  { %1572 = vmatprep.subr.bf16.mxu0 %v6239_v12  ;;  %1613 = vmatprep.subr.bf16.mxu1 %v6240_v44 }
 0x11a   :  { %1573 = vmatpush1.bf16.msra.mxu0 %v4252_v16  ;;  %1614 = vmatpush1.bf16.msra.mxu1 %v4256_v31 }
 0x11b   :  { %1574 = vmatprep.subr.bf16.mxu0 %v4258_v18  ;;  %1615 = vmatprep.subr.bf16.mxu1 %v4261_v17 }
 0x11e   :  { %1575 = vmatpush1.bf16.msra.mxu0 %v4276_v50  ;;  %1616 = vmatpush1.bf16.msra.mxu1 %v4280_v57 }
 0x11f   :  { %1590 = vmatprep.subr.bf16.mxu0 %v4282_v52  ;;  %1631 = vmatprep.subr.bf16.mxu1 %v4285_v51 }
 0x122   :  { %1591 = vmatpush2.bf16.msra.mxu0 %v4288_v1  ;;  %1632 = vmatpush2.bf16.msra.mxu1 %v4292_v2 }
 0x123   :  { %1726 = vmatprep.subr.bf16.mxu0 %v3404_v4  ;;  %1767 = vmatprep.subr.bf16.mxu1 %v3417_v9 }
 0x125   :  { %1593 = vmatmul.mubr.bf16.vlgmr.msra.gmra.mxu0 %v4342_v33  ;;  %1634 = vmatmul.mubr.bf16.vlgmr.msra.gmra.mxu1 %v4342_v33  ;;  %v4523_v33 = vadd.f32 %v4414_v49, %v4510_v25 }
 0x126   :  { %1727 = vmatpush1.bf16.msra.mxu0 %v3409_v6  ;;  %1768 = vmatpush1.bf16.msra.mxu1 %v3419_v10 }
 0x127   :  { %1728 = vmatprep.subr.bf16.mxu0 %v3421_v11  ;;  %1769 = vmatprep.subr.bf16.mxu1 %v3433_v15  ;;  %6242 = vst [vmem:[#allocation108_spill] sm:$0xff] %v4523_v33 }
 0x128   :  { %3269 = vmatprep.mubr.msk.bf16.mxu0 %vm898_vm0, %v4500_v24  ;;  %3270 = vmatprep.mubr.msk.bf16.mxu1 %vm898_vm0, %v4500_v24 }
 0x12a   :  { %1729 = vmatpush1.bf16.msra.mxu0 %v3446_v19  ;;  %1770 = vmatpush1.bf16.msra.mxu1 %v3450_v20 }
 0x12b   :  { %1730 = vmatprep.subr.bf16.mxu0 %v3452_v21  ;;  %1771 = vmatprep.subr.bf16.mxu1 %v3455_v22  ;;  %v1265_v21 = vmul.f32 %v4523_v33, %v4523_v33 }
 0x12e   :  { %1731 = vmatpush1.bf16.msra.mxu0 %v3470_v27  ;;  %1772 = vmatpush1.bf16.msra.mxu1 %v3474_v28  ;;  %v1246_v27 = vadd.f32 %v4523_v33, %v4519_v26  ;;  %v1280_v28 = vadd.f32 %v1265_v21, %v1264_v14 }
 0x12f   :  { %1732 = vmatprep.subr.bf16.mxu0 %v3476_v29  ;;  %1773 = vmatprep.subr.bf16.mxu1 %v3479_v30  ;;  %v1266_v30 = vmul.f32 %v4535_v34, %v4535_v34 }
 0x130   :  { %v1247_v26 = vadd.f32 %v1246_v27, %v4535_v34  ;;  %v6258_v34 = vld [vmem:[#allocation20_spill] sm:$0xff] }
 0x131   :  { %v1100_v49 = vpop.f32.mrf.mxu0  ;;  %v4540_v22 = vpop.f32.mrf.mxu1  ;;  %v1281_v14 = vadd.f32 %v1280_v28, %v1266_v30 }
 0x132   :  { %1733 = vmatpush1.bf16.msra.mxu0 %v3494_v35  ;;  %1774 = vmatpush1.bf16.msra.mxu1 %v3503_v37  ;;  %v4557_v37 = vadd.f32 %v4458_v3, %v4510_v25  ;;  %v1248_v27 = vadd.f32 %v1247_v26, %v4547_v58 }
 0x133   :  { %v1102_v29 = vpop.f32.mrf.mxu0  ;;  %1734 = vmatprep.subr.bf16.mxu0 %v3505_v38  ;;  %v4551_v20 = vpop.f32.mrf.mxu1  ;;  %1775 = vmatprep.subr.bf16.mxu1 %v3512_v40 }
 0x134   :  { %6245 = vst [vmem:[#allocation111_spill] sm:$0xff] %v4557_v37  ;;  %v1268_v3 = vmul.f32 %v4557_v37, %v4557_v37  ;;  %v1249_v28 = vadd.f32 %v1248_v27, %v4557_v37  ;;  %v6254_v37 = vld [vmem:[#allocation17_spill] sm:$0xff] }
 0x135   :  { %v1104_v33 = vpop.f32.mrf.mxu0  ;;  %v1145_v38 = vpop.f32.mrf.mxu1 }
 0x136   :  { %1735 = vmatpush1.bf16.msra.mxu0 %v3531_v45  ;;  %1776 = vmatpush1.bf16.msra.mxu1 %v3535_v46  ;;  %v4570_v38 = vadd.f32 %v4464_v60, %v4510_v25  ;;  %v1282_v33 = vadd.f32 %v1281_v14, %v1267_v39  ;;  %v6249_v14 = vld [vmem:[#allocation13_spill] sm:$0xff] }
 0x137   :  { %v1105_v21 = vpop.f32.mrf.mxu0  ;;  %1736 = vmatprep.subr.bf16.mxu0 %v3537_v47  ;;  %v1146_v40 = vpop.f32.mrf.mxu1  ;;  %1777 = vmatprep.subr.bf16.mxu1 %v3540_v48 }
 0x138   :  { %6246 = vst [vmem:[#allocation112_spill] sm:$0xff] %v4570_v38  ;;  %v1283_v30 = vadd.f32 %v1282_v33, %v1268_v3  ;;  %v4579_v40 = vadd.f32 %v4460_v42, %v4510_v25  ;;  %v1269_v60 = vmul.f32 %v4570_v38, %v4570_v38  ;;  %v1250_v26 = vadd.f32 %v1249_v28, %v4570_v38  ;;  %v6251_v33 = vld [vmem:[#allocation14_spill] sm:$0xff]  ;;  %v6253_v38 = vld [vmem:[#allocation16_spill] sm:$0xff] }
 0x139   :  { %v4592_v42 = vadd.f32 %v4470_v41, %v4510_v25  ;;  %v4599_v3 = vadd.f32 %v1100_v49, %v4510_v25  ;;  %v4604_v28 = vcombine.low %v4492_v23, %v4492_v23  ;;  %v6256_v23 = vld [vmem:[#allocation18_spill] sm:$0xff] }
 0x13a   :  { %1737 = vmatpush1.bf16.msra.mxu0 %v3555_v53  ;;  %1778 = vmatpush1.bf16.msra.mxu1 %v3559_v54  ;;  %6247 = vst [vmem:[#allocation113_spill] sm:$0xff] %v4579_v40  ;;  %v1270_v21 = vmul.f32 %v4579_v40, %v4579_v40  ;;  %v1284_v39 = vadd.f32 %v1283_v30, %v1269_v60  ;;  %v6252_v60 = vld [vmem:[#allocation15_spill] sm:$0xff] }
 0x13b   :  { %1738 = vmatprep.subr.bf16.mxu0 %v3561_v55  ;;  %1779 = vmatprep.subr.bf16.mxu1 %v3564_v56  ;;  %6248 = vst [vmem:[#allocation114_spill] sm:$0xff] %v4592_v42  ;;  %v1251_v27 = vadd.f32 %v1250_v26, %v4579_v40  ;;  %6250 = vst [vmem:[#allocation13_spill] sm:$0xff] %v4599_v3  ;;  %v1271_v41 = vmul.f32 %v4592_v42, %v4592_v42 }
 0x13c   :  { %v1285_v30 = vadd.f32 %v1284_v39, %v1270_v21  ;;  %v1272_v49 = vmul.f32 %v4599_v3, %v4599_v3  ;;  %v4615_v40 = vadd.f32 %v1102_v29, %v4510_v25  ;;  %v6257_v39 = vld [vmem:[#allocation19_spill] sm:$0xff]  ;;  %v4626_v29 = vadd.f32 %v4540_v22, %v4510_v25 }
 0x13d   :  { %v1252_v26 = vadd.f32 %v1251_v27, %v4592_v42  ;;  %v6259_v27 = vld [vmem:[#allocation21_spill] sm:$0xff] }
 0x13e   :  { %1739 = vmatpush1.bf16.msra.mxu0 %v3579_v61  ;;  %1780 = vmatpush1.bf16.msra.mxu1 %v3583_v62  ;;  %6255 = vst [vmem:[#allocation14_spill] sm:$0xff] %v4615_v40  ;;  %v1286_v58 = vadd.f32 %v1285_v30, %v1271_v41  ;;  %6260 = vst [vmem:[#allocation118_spill] sm:$0xff] %v4626_v29  ;;  %v6262_v30 = vld [vmem:[#allocation23_spill] sm:$0xff]  ;;  %v1274_v22 = vmul.f32 %v4626_v29, %v4626_v29 }
 0x13f   :  { %1740 = vmatprep.subr.bf16.mxu0 %v3585_v63  ;;  %1781 = vmatprep.subr.bf16.mxu1 %v3588_v0  ;;  %v1253_v21 = vadd.f32 %v1252_v26, %v4599_v3  ;;  %v6264_v26 = vld [vmem:[#allocation25_spill] sm:$0xff]  ;;  %v4643_v3 = vadd.f32 %v4551_v20, %v4510_v25 }
 0x140   :  { %v1287_v42 = vadd.f32 %v1286_v58, %v1272_v49  ;;  %v6263_v58 = vld [vmem:[#allocation24_spill] sm:$0xff] }
 0x141   :  { %v1254_v41 = vadd.f32 %v1253_v21, %v4615_v40  ;;  %6265 = vst [vmem:[#allocation119_spill] sm:$0xff] %v4643_v3  ;;  %v6268_v21 = vld [vmem:[#allocation28_spill] sm:$0xff] }
 0x142   :  { %1741 = vmatpush1.bf16.msra.mxu0 %v3603_v7  ;;  %1782 = vmatpush1.bf16.msra.mxu1 %v3607_v8 }
 0x143   :  { %1756 = vmatprep.subr.bf16.mxu0 %v6249_v14  ;;  %1797 = vmatprep.subr.bf16.mxu1 %v6251_v33 }
 0x146   :  { %1757 = vmatpush2.bf16.msra.mxu0 %v6252_v60  ;;  %1798 = vmatpush2.bf16.msra.mxu1 %v6253_v38  ;;  %v6282_v60 = vld [vmem:[#allocation38_spill] sm:$0xff] }
 0x147   :  { %1808 = vmatprep.subr.bf16.mxu0 %v6254_v37  ;;  %1849 = vmatprep.subr.bf16.mxu1 %v6256_v23  ;;  %v1273_v23 = vmul.f32 %v4615_v40, %v4615_v40  ;;  %v6261_v37 = vld [vmem:[#allocation22_spill] sm:$0xff]  ;;  %v6269_v40 = vld [vmem:[#allocation29_spill] sm:$0xff] }
 0x149   :  { %1759 = vmatmul.mubr.bf16.vlgmr.msra.gmra.mxu0 %v4604_v28  ;;  %1800 = vmatmul.mubr.bf16.vlgmr.msra.gmra.mxu1 %v4604_v28  ;;  %v1288_v49 = vadd.f32 %v1287_v42, %v1273_v23 }
 0x14a   :  { %1809 = vmatpush1.bf16.msra.mxu0 %v6257_v39  ;;  %1850 = vmatpush1.bf16.msra.mxu1 %v6258_v34  ;;  %v6267_v34 = vld [vmem:[#allocation27_spill] sm:$0xff] }
 0x14b   :  { %1810 = vmatprep.subr.bf16.mxu0 %v6259_v27  ;;  %1851 = vmatprep.subr.bf16.mxu1 %v6261_v37  ;;  %v6266_v37 = vld [vmem:[#allocation26_spill] sm:$0xff]  ;;  %v1255_v27 = vadd.f32 %v1254_v41, %v4626_v29  ;;  %v6272_v41 = vld [vmem:[#allocation31_spill] sm:$0xff] }
 0x14c   :  { %3271 = vmatprep.mubr.msk.bf16.mxu0 %vm898_vm0, %v4500_v24  ;;  %3272 = vmatprep.mubr.msk.bf16.mxu1 %vm898_vm0, %v4500_v24 }
 0x14d   :  { %v1256_v20 = vadd.f32 %v1255_v27, %v4643_v3 }
 0x14e   :  { %1811 = vmatpush1.bf16.msra.mxu0 %v6262_v30  ;;  %1852 = vmatpush1.bf16.msra.mxu1 %v6263_v58  ;;  %v1289_v58 = vadd.f32 %v1288_v49, %v1274_v22  ;;  %v6270_v30 = vld [vmem:[#allocation30_spill] sm:$0xff] }
 0x14f   :  { %1812 = vmatprep.subr.bf16.mxu0 %v6264_v26  ;;  %1853 = vmatprep.subr.bf16.mxu1 %v6266_v37  ;;  %v1275_v26 = vmul.f32 %v4643_v3, %v4643_v3 }
 0x151   :  { %v1290_v22 = vadd.f32 %v1289_v58, %v1275_v26 }
 0x152   :  { %1813 = vmatpush1.bf16.msra.mxu0 %v6267_v34  ;;  %1854 = vmatpush1.bf16.msra.mxu1 %v6268_v21  ;;  %v6274_v21 = vld [vmem:[#allocation32_spill] sm:$0xff]  ;;  %v6275_v34 = vld [vmem:[#allocation33_spill] sm:$0xff] }
 0x153   :  { %1814 = vmatprep.subr.bf16.mxu0 %v6269_v40  ;;  %1855 = vmatprep.subr.bf16.mxu1 %v6270_v30  ;;  %v6277_v30 = vld [vmem:[#allocation34_spill] sm:$0xff] }
 0x155   :  { %v1182_v42 = vpop.f32.mrf.mxu0  ;;  %v1223_v37 = vpop.f32.mrf.mxu1 }
 0x156   :  { %v4655_v23 = vadd.f32 %v1182_v42, %v4510_v25  ;;  %1815 = vmatpush1.bf16.msra.mxu0 %v6272_v41  ;;  %v4659_v29 = vadd.f32 %v1223_v37, %v4510_v25  ;;  %1856 = vmatpush1.bf16.msra.mxu1 %v6274_v21 }
 0x157   :  { %v1184_v40 = vpop.f32.mrf.mxu0  ;;  %1816 = vmatprep.subr.bf16.mxu0 %v6275_v34  ;;  %v1225_v3 = vpop.f32.mrf.mxu1  ;;  %1857 = vmatprep.subr.bf16.mxu1 %v6277_v30  ;;  %v6281_v30 = vld [vmem:[#allocation37_spill] sm:$0xff] }
 0x158   :  { %6271 = vst [vmem:[#allocation120_spill] sm:$0xff] %v4655_v23  ;;  %6273 = vst [vmem:[#allocation121_spill] sm:$0xff] %v4659_v29  ;;  %v1257_v49 = vadd.f32 %v1256_v20, %v4655_v23  ;;  %v1276_v27 = vmul.f32 %v4655_v23, %v4655_v23  ;;  %v4667_v42 = vadd.f32 %v1184_v40, %v4510_v25  ;;  %v6279_v23 = vld [vmem:[#allocation35_spill] sm:$0xff]  ;;  %v6280_v40 = vld [vmem:[#allocation36_spill] sm:$0xff] }
 0x159   :  { %v1278_v37 = vmul.f32 %v4659_v29, %v4659_v29  ;;  %v1186_v41 = vpop.f32.mrf.mxu0  ;;  %v4676_v26 = vadd.f32 %v1225_v3, %v4510_v25  ;;  %v1227_v20 = vpop.f32.mrf.mxu1 }
 0x15a   :  { %6276 = vst [vmem:[#allocation122_spill] sm:$0xff] %v4667_v42  ;;  %v1291_v21 = vadd.f32 %v1290_v22, %v1276_v27  ;;  %v1258_v39 = vadd.f32 %v1257_v49, %v4667_v42  ;;  %v1277_v58 = vmul.f32 %v4667_v42, %v4667_v42  ;;  %1817 = vmatpush1.bf16.msra.mxu0 %v6279_v23  ;;  %v6283_v49 = vld [vmem:[#allocation39_spill] sm:$0xff]  ;;  %v6284_v20 = vld [vmem:[#allocation40_spill] sm:$0xff]  ;;  %v6285_v42 = vld [vmem:[#allocation41_spill] sm:$0xff] }
 0x15b   :  { %6278 = vst [vmem:[#allocation123_spill] sm:$0xff] %v4676_v26  ;;  %1858 = vmatpush1.bf16.msra.mxu1 %v6280_v40  ;;  %v1187_v34 = vpop.f32.mrf.mxu0  ;;  %1818 = vmatprep.subr.bf16.mxu0 %v6281_v30  ;;  %v1228_v38 = vpop.f32.mrf.mxu1  ;;  %v1279_v25 = vmul.f32 %v4676_v26, %v4676_v26 }
 0x15c   :  { %1859 = vmatprep.subr.bf16.mxu1 %v6282_v60  ;;  %v1259_v41 = vadd.f32 %v1258_v39, %v4659_v29  ;;  %v1292_v22 = vadd.f32 %v1291_v21, %v1277_v58  ;;  %v6286_v34 = vld [vmem:[#allocation42_spill] sm:$0xff]  ;;  %v6287_v38 = vld [vmem:[#allocation43_spill] sm:$0xff]  ;;  %v6288_v39 = vld [vmem:[#allocation44_spill] sm:$0xff] }
 0x15d   :  { %v6289_v21 = vld [vmem:[#allocation45_spill] sm:$0xff]  ;;  %v6290_v58 = vld [vmem:[#allocation46_spill] sm:$0xff]  ;;  %v6296_v29 = vld [vmem:[#allocation52_spill] sm:$0xff] }
 0x15e   :  { %1819 = vmatpush1.bf16.msra.mxu0 %v6283_v49  ;;  %v1260_v27 = vadd.f32 %v1259_v41, %v4676_v26  ;;  %v1293_v3 = vadd.f32 %v1292_v22, %v1278_v37  ;;  %v6291_v41 = vld [vmem:[#allocation47_spill] sm:$0xff]  ;;  %v6292_v37 = vld [vmem:[#allocation48_spill] sm:$0xff]  ;;  %v6293_v22 = vld [vmem:[#allocation49_spill] sm:$0xff] }
 0x15f   :  { %1860 = vmatpush1.bf16.msra.mxu1 %v6284_v20  ;;  %1820 = vmatprep.subr.bf16.mxu0 %v6285_v42  ;;  %v6294_v26 = vld [vmem:[#allocation50_spill] sm:$0xff]  ;;  %v6320_v20 = vld [vmem:[#allocation76_spill] sm:$0xff] }
 0x160   :  { %1261 = vadd.xlane.f32.xlu0 %v1260_v27  ;;  %1861 = vmatprep.subr.bf16.mxu1 %v6286_v34  ;;  %v1294_v60 = vadd.f32 %v1293_v3, %v1279_v25  ;;  %v6295_v27 = vld [vmem:[#allocation51_spill] sm:$0xff]  ;;  %v6297_v25 = vld [vmem:[#allocation53_spill] sm:$0xff]  ;;  %v6298_v3 = vld [vmem:[#allocation54_spill] sm:$0xff] }
 0x161   :  { %v6317_v34 = vld [vmem:[#allocation73_spill] sm:$0xff]  ;;  %v6318_v42 = vld [vmem:[#allocation74_spill] sm:$0xff] }
 0x162   :  { %1821 = vmatpush1.bf16.msra.mxu0 %v6287_v38  ;;  %v6322_v49 = vld [vmem:[#allocation78_spill] sm:$0xff] }
 0x163   :  { %1862 = vmatpush1.bf16.msra.mxu1 %v6288_v39  ;;  %1822 = vmatprep.subr.bf16.mxu0 %v6289_v21  ;;  %v6311_v21 = vld [vmem:[#allocation67_spill] sm:$0xff] }
 0x164   :  { %1295 = vadd.xlane.f32.xlu0 %v1294_v60  ;;  %1863 = vmatprep.subr.bf16.mxu1 %v6290_v58  ;;  %v6299_v60 = vld [vmem:[#allocation55_spill] sm:$0xff] }
 0x165   :  { %v6315_v39 = vld [vmem:[#allocation71_spill] sm:$0xff] }
 0x166   :  { %1823 = vmatpush1.bf16.msra.mxu0 %v6291_v41  ;;  %v6300_v41 = vld [vmem:[#allocation56_spill] sm:$0xff] }
 0x167   :  { %1864 = vmatpush1.bf16.msra.mxu1 %v6292_v37  ;;  %1838 = vmatprep.subr.bf16.mxu0 %v6293_v22  ;;  %v6301_v37 = vld [vmem:[#allocation57_spill] sm:$0xff]  ;;  %v6302_v22 = vld [vmem:[#allocation58_spill] sm:$0xff] }
 0x168   :  { %1879 = vmatprep.subr.bf16.mxu1 %v6294_v26 }
 0x16a   :  { %1839 = vmatpush2.bf16.msra.mxu0 %v6295_v27  ;;  %v6306_v27 = vld [vmem:[#allocation62_spill] sm:$0xff] }
 0x16b   :  { %1880 = vmatpush2.bf16.msra.mxu1 %v6296_v29  ;;  %1890 = vmatprep.subr.bf16.mxu0 %v6297_v25  ;;  %v6303_v25 = vld [vmem:[#allocation59_spill] sm:$0xff]  ;;  %v6305_v29 = vld [vmem:[#allocation61_spill] sm:$0xff] }
 0x16c   :  { %1931 = vmatprep.subr.bf16.mxu1 %v6298_v3  ;;  %v6304_v3 = vld [vmem:[#allocation60_spill] sm:$0xff] }
 0x16d   :  { %1841 = vmatmul.mubr.bf16.vlgmr.msra.gmra.mxu0 %v4604_v28 }
 0x16e   :  { %1882 = vmatmul.mubr.bf16.vlgmr.msra.gmra.mxu1 %v4604_v28  ;;  %1891 = vmatpush1.bf16.msra.mxu0 %v6299_v60  ;;  %v6307_v60 = vld [vmem:[#allocation63_spill] sm:$0xff] }
 0x16f   :  { %1932 = vmatpush1.bf16.msra.mxu1 %v6300_v41  ;;  %1892 = vmatprep.subr.bf16.mxu0 %v6301_v37  ;;  %v6308_v41 = vld [vmem:[#allocation64_spill] sm:$0xff]  ;;  %v6309_v37 = vld [vmem:[#allocation65_spill] sm:$0xff] }
 0x170   :  { %1933 = vmatprep.subr.bf16.mxu1 %v6302_v22  ;;  %3273 = vmatprep.mubr.msk.bf16.mxu0 %vm898_vm0, %v4500_v24  ;;  %v6310_v22 = vld [vmem:[#allocation66_spill] sm:$0xff] }
 0x171   :  { %3274 = vmatprep.mubr.msk.bf16.mxu1 %vm898_vm0, %v4500_v24 }
 0x172   :  { %1893 = vmatpush1.bf16.msra.mxu0 %v6303_v25  ;;  %v6312_v25 = vld [vmem:[#allocation68_spill] sm:$0xff] }
 0x173   :  { %1934 = vmatpush1.bf16.msra.mxu1 %v6304_v3  ;;  %1894 = vmatprep.subr.bf16.mxu0 %v6305_v29  ;;  %v6313_v29 = vld [vmem:[#allocation69_spill] sm:$0xff] }
 0x174   :  { %1935 = vmatprep.subr.bf16.mxu1 %v6306_v27 }
 0x176   :  { %1895 = vmatpush1.bf16.msra.mxu0 %v6307_v60  ;;  %v6314_v60 = vld [vmem:[#allocation70_spill] sm:$0xff] }
 0x177   :  { %1936 = vmatpush1.bf16.msra.mxu1 %v6308_v41  ;;  %1896 = vmatprep.subr.bf16.mxu0 %v6309_v37 }
 0x178   :  { %1937 = vmatprep.subr.bf16.mxu1 %v6310_v22  ;;  %v6316_v22 = vld [vmem:[#allocation72_spill] sm:$0xff] }
 0x179   :  { %v4720_v26 = vpop.f32.mrf.mxu0  ;;  %v4722_v58 = vpop.f32.mrf.mxu1 }
 0x17a   :  { %1897 = vmatpush1.bf16.msra.mxu0 %v6311_v21 }
 0x17b   :  { %1938 = vmatpush1.bf16.msra.mxu1 %v6312_v25  ;;  %v4726_v3 = vpop.f32.mrf.mxu0  ;;  %1898 = vmatprep.subr.bf16.mxu0 %v6313_v29  ;;  %v4729_v27 = vpop.f32.mrf.mxu1  ;;  %v6319_v25 = vld [vmem:[#allocation75_spill] sm:$0xff]  ;;  %v6321_v29 = vld [vmem:[#allocation77_spill] sm:$0xff] }
 0x17c   :  { %1939 = vmatprep.subr.bf16.mxu1 %v6314_v60 }
 0x17d   :  { %v1352_v41 = vpop.f32.mrf.mxu0  ;;  %v1393_v37 = vpop.f32.mrf.mxu1 }
 0x17e   :  { %1899 = vmatpush1.bf16.msra.mxu0 %v6315_v39  ;;  %v6323_v41 = vld [vmem:[#allocation79_spill] sm:$0xff]  ;;  %v6324_v37 = vld [vmem:[#allocation80_spill] sm:$0xff]  ;;  %v6325_v39 = vld [vmem:[#allocation81_spill] sm:$0xff] }
 0x17f   :  { %1940 = vmatpush1.bf16.msra.mxu1 %v6316_v22  ;;  %v1353_v38 = vpop.f32.mrf.mxu0  ;;  %1900 = vmatprep.subr.bf16.mxu0 %v6317_v34  ;;  %v1394_v21 = vpop.f32.mrf.mxu1  ;;  %v6327_v34 = vld [vmem:[#allocation83_spill] sm:$0xff] }
 0x180   :  { %1941 = vmatprep.subr.bf16.mxu1 %v6318_v42  ;;  %v6326_v38 = vld [vmem:[#allocation82_spill] sm:$0xff]  ;;  %v6328_v21 = vld [vmem:[#allocation84_spill] sm:$0xff]  ;;  %v6329_v42 = vld [vmem:[#allocation85_spill] sm:$0xff] }
 0x182   :  { %1901 = vmatpush1.bf16.msra.mxu0 %v6319_v25  ;;  %v6330_v25 = vld [vmem:[#allocation86_spill] sm:$0xff] }
 0x183   :  { %1942 = vmatpush1.bf16.msra.mxu1 %v6320_v20  ;;  %1902 = vmatprep.subr.bf16.mxu0 %v6321_v29  ;;  %v6331_v20 = vld [vmem:[#allocation87_spill] sm:$0xff]  ;;  %v6332_v29 = vld [vmem:[#allocation88_spill] sm:$0xff] }
 0x184   :  { %1943 = vmatprep.subr.bf16.mxu1 %v6322_v49  ;;  %v6333_v49 = vld [vmem:[#allocation89_spill] sm:$0xff] }
 0x186   :  { %1903 = vmatpush1.bf16.msra.mxu0 %v6323_v41  ;;  %v6334_v41 = vld [vmem:[#allocation90_spill] sm:$0xff] }
 0x187   :  { %1944 = vmatpush1.bf16.msra.mxu1 %v6324_v37  ;;  %1904 = vmatprep.subr.bf16.mxu0 %v6325_v39 }
 0x188   :  { %1945 = vmatprep.subr.bf16.mxu1 %v6326_v38  ;;  %v6335_v38 = vld [vmem:[#allocation91_spill] sm:$0xff] }
 0x18a   :  { %1905 = vmatpush1.bf16.msra.mxu0 %v6327_v34  ;;  %v6336_v34 = vld [vmem:[#allocation92_spill] sm:$0xff] }
 0x18b   :  { %1946 = vmatpush1.bf16.msra.mxu1 %v6328_v21  ;;  %1920 = vmatprep.subr.bf16.mxu0 %v6329_v42  ;;  %v6337_v21 = vld [vmem:[#allocation93_spill] sm:$0xff]  ;;  %v6338_v42 = vld [vmem:[#allocation94_spill] sm:$0xff] }
 0x18c   :  { %1961 = vmatprep.subr.bf16.mxu1 %v6330_v25 }
 0x18e   :  { %1921 = vmatpush2.bf16.msra.mxu0 %v6331_v20  ;;  %v6342_v20 = vld [vmem:[#allocation98_spill] sm:$0xff] }
 0x18f   :  { %1962 = vmatpush2.bf16.msra.mxu1 %v6332_v29  ;;  %1972 = vmatprep.subr.bf16.mxu0 %v6333_v49  ;;  %v6339_v49 = vld [vmem:[#allocation95_spill] sm:$0xff]  ;;  %v6341_v29 = vld [vmem:[#allocation97_spill] sm:$0xff] }
 0x190   :  { %2013 = vmatprep.subr.bf16.mxu1 %v6334_v41  ;;  %v6340_v41 = vld [vmem:[#allocation96_spill] sm:$0xff] }
 0x191   :  { %1923 = vmatmul.mubr.bf16.vlgmr.msra.gmra.mxu0 %v4604_v28 }
 0x192   :  { %1964 = vmatmul.mubr.bf16.vlgmr.msra.gmra.mxu1 %v4604_v28  ;;  %1973 = vmatpush1.bf16.msra.mxu0 %v6335_v38  ;;  %v6343_v38 = vld [vmem:[#allocation99_spill] sm:$0xff] }
 0x193   :  { %2014 = vmatpush1.bf16.msra.mxu1 %v6336_v34  ;;  %1974 = vmatprep.subr.bf16.mxu0 %v6337_v21  ;;  %v6344_v34 = vld [vmem:[#allocation100_spill] sm:$0xff]  ;;  %v6345_v21 = vld [vmem:[#allocation101_spill] sm:$0xff] }
 0x194   :  { %2015 = vmatprep.subr.bf16.mxu1 %v6338_v42  ;;  %3275 = vmatprep.mubr.msk.bf16.mxu0 %vm898_vm0, %v4500_v24  ;;  %v6346_v42 = vld [vmem:[#allocation102_spill] sm:$0xff] }
 0x195   :  { %3276 = vmatprep.mubr.msk.bf16.mxu1 %vm898_vm0, %v4500_v24  ;;  %v6347_v24 = vld [vmem:[#allocation103_spill] sm:$0xff] }
 0x196   :  { %1975 = vmatpush1.bf16.msra.mxu0 %v6339_v49  ;;  %v6348_v49 = vld [vmem:[#allocation104_spill] sm:$0xff] }
 0x197   :  { %2016 = vmatpush1.bf16.msra.mxu1 %v6340_v41  ;;  %1976 = vmatprep.subr.bf16.mxu0 %v6341_v29  ;;  %v6349_v29 = vld [vmem:[#allocation105_spill] sm:$0xff] }
 0x198   :  { %2017 = vmatprep.subr.bf16.mxu1 %v6342_v20 }
 0x19a   :  { %1977 = vmatpush1.bf16.msra.mxu0 %v6343_v38  ;;  %v6350_v38 = vld [vmem:[#allocation106_spill] sm:$0xff] }
 0x19b   :  { %2018 = vmatpush1.bf16.msra.mxu1 %v6344_v34  ;;  %1978 = vmatprep.subr.bf16.mxu0 %v6345_v21 }
 0x19c   :  { %2019 = vmatprep.subr.bf16.mxu1 %v6346_v42 }
 0x19d   :  { %v4770_v25 = vpop.f32.mrf.mxu0  ;;  %v4772_v39 = vpop.f32.mrf.mxu1 }
 0x19e   :  { %1979 = vmatpush1.bf16.msra.mxu0 %v6347_v24 }
 0x19f   :  { %2020 = vmatpush1.bf16.msra.mxu1 %v6348_v49  ;;  %v4776_v41 = vpop.f32.mrf.mxu0  ;;  %1980 = vmatprep.subr.bf16.mxu0 %v6349_v29  ;;  %v4779_v20 = vpop.f32.mrf.mxu1 }
 0x1a0   :  { %2021 = vmatprep.subr.bf16.mxu1 %v6350_v38 }
 0x1a1   :  { %v1434_v34 = vpop.f32.mrf.mxu0  ;;  %v1475_v21 = vpop.f32.mrf.mxu1 }
 0x1a2   :  { %1981 = vmatpush1.bf16.msra.mxu0 %v6233_v36  ;;  %v6357_v21 = vld [vmem:[#allocation7_spill] sm:$0xff] }
 0x1a3   :  { %2022 = vmatpush1.bf16.msra.mxu1 %v6234_v32  ;;  %v1435_v42 = vpop.f32.mrf.mxu0  ;;  %1982 = vmatprep.subr.bf16.mxu0 %v6235_v5  ;;  %v1476_v24 = vpop.f32.mrf.mxu1 }
 0x1a4   :  { %2023 = vmatprep.subr.bf16.mxu1 %v6236_v43  ;;  %v4801_v42 = vld [vmem:[%s5794_s0 + $0x18] sm:$0xff]  ;;  %v6358_v24 = vld [vmem:[#allocation8_spill] sm:$0xff] }
 0x1a5   :  { %v4809_v34 = vcombine.high %v4801_v42, %v4801_v42 }
 0x1a6   :  { %1983 = vmatpush1.bf16.msra.mxu0 %v6237_v59 }
 0x1a7   :  { %2024 = vmatpush1.bf16.msra.mxu1 %v6238_v13  ;;  %1984 = vmatprep.subr.bf16.mxu0 %v6239_v12 }
 0x1a8   :  { %2025 = vmatprep.subr.bf16.mxu1 %v6240_v44 }
 0x1aa   :  { %1985 = vmatpush1.bf16.msra.mxu0 %v4252_v16 }
 0x1ab   :  { %2026 = vmatpush1.bf16.msra.mxu1 %v4256_v31  ;;  %1986 = vmatprep.subr.bf16.mxu0 %v4258_v18 }
 0x1ac   :  { %2027 = vmatprep.subr.bf16.mxu1 %v4261_v17 }
 0x1ae   :  { %1987 = vmatpush1.bf16.msra.mxu0 %v4276_v50 }
 0x1af   :  { %2028 = vmatpush1.bf16.msra.mxu1 %v4280_v57  ;;  %2002 = vmatprep.subr.bf16.mxu0 %v4282_v52 }
 0x1b0   :  { %2043 = vmatprep.subr.bf16.mxu1 %v4285_v51 }
 0x1b2   :  { %2003 = vmatpush2.bf16.msra.mxu0 %v4288_v1 }
 0x1b3   :  { %2044 = vmatpush2.bf16.msra.mxu1 %v4292_v2  ;;  %2138 = vmatprep.subr.bf16.mxu0 %v3404_v4  ;;  %v4819_v4 = vpop.permute.xlu0 %1302  ;;  %v6361_v2 = vld [vmem:[#allocation11_spill] sm:$0xff] }
 0x1b4   :  { %2179 = vmatprep.subr.bf16.mxu1 %v3417_v9  ;;  %v6351_v9 = vld [vmem:[#allocation3_spill] sm:$0xff] }
 0x1b5   :  { %2005 = vmatmul.mubr.bf16.vlgmr.msra.gmra.mxu0 %v4604_v28 }
 0x1b6   :  { %2046 = vmatmul.mubr.bf16.vlgmr.msra.gmra.mxu1 %v4604_v28  ;;  %2139 = vmatpush1.bf16.msra.mxu0 %v3409_v6  ;;  %v6352_v28 = vld [vmem:[#allocation4_spill] sm:$0xff]  ;;  %v4828_v6 = vadd.f32 %v4720_v26, %v4819_v4  ;;  %v4844_v26 = vadd.f32 %v4722_v58, %v4819_v4  ;;  %v4856_v58 = vadd.f32 %v4729_v27, %v4819_v4 }
 0x1b7   :  { %2180 = vmatpush1.bf16.msra.mxu1 %v3419_v10  ;;  %2140 = vmatprep.subr.bf16.mxu0 %v3421_v11  ;;  %v4832_v10 = vadd.f32 %v4726_v3, %v4819_v4  ;;  %v6355_v11 = vld [vmem:[#allocation5_spill] sm:$0xff] }
 0x1b8   :  { %2181 = vmatprep.subr.bf16.mxu1 %v3433_v15  ;;  %3279 = vmatprep.mubr.msk.bf16.mxu0 %vm898_vm0, %v4809_v34  ;;  %6353 = vst [vmem:[#allocation35_spill] sm:$0xff] %v4828_v6  ;;  %v6356_v15 = vld [vmem:[#allocation6_spill] sm:$0xff]  ;;  %v6359_v3 = vld [vmem:[#allocation9_spill] sm:$0xff] }
 0x1b9   :  { %3280 = vmatprep.mubr.msk.bf16.mxu1 %vm898_vm0, %v4809_v34  ;;  %6354 = vst [vmem:[#allocation36_spill] sm:$0xff] %v4832_v10 }
 0x1ba   :  { %2141 = vmatpush1.bf16.msra.mxu0 %v3446_v19  ;;  %v1676_v19 = vmul.f32 %v4828_v6, %v4828_v6 }
 0x1bb   :  { %2182 = vmatpush1.bf16.msra.mxu1 %v6351_v9  ;;  %2142 = vmatprep.subr.bf16.mxu0 %v6352_v28  ;;  %v1677_v9 = vmul.f32 %v4832_v10, %v4832_v10 }
 0x1bc   :  { %2183 = vmatprep.subr.bf16.mxu1 %v6355_v11  ;;  %v1658_v11 = vadd.f32 %v4832_v10, %v4828_v6  ;;  %v6362_v10 = vld [vmem:[#allocation12_spill] sm:$0xff] }
 0x1bd   :  { %v1692_v1 = vadd.f32 %v1677_v9, %v1676_v19  ;;  %v1679_v19 = vmul.f32 %v4856_v58, %v4856_v58 }
 0x1be   :  { %2143 = vmatpush1.bf16.msra.mxu0 %v6356_v15 }
 0x1bf   :  { %2184 = vmatpush1.bf16.msra.mxu1 %v6357_v21  ;;  %2144 = vmatprep.subr.bf16.mxu0 %v6358_v24  ;;  %v6360_v21 = vld [vmem:[#allocation10_spill] sm:$0xff] }
 0x1c0   :  { %2185 = vmatprep.subr.bf16.mxu1 %v6359_v3  ;;  %v1678_v3 = vmul.f32 %v4844_v26, %v4844_v26 }
 0x1c1   :  { %v1512_v28 = vpop.f32.mrf.mxu0  ;;  %v4849_v15 = vpop.f32.mrf.mxu1 }
 0x1c2   :  { %2145 = vmatpush1.bf16.msra.mxu0 %v3494_v35  ;;  %v1659_v35 = vadd.f32 %v1658_v11, %v4844_v26  ;;  %v1693_v9 = vadd.f32 %v1692_v1, %v1678_v3  ;;  %v4888_v1 = vadd.f32 %v4772_v39, %v4819_v4 }
 0x1c3   :  { %2186 = vmatpush1.bf16.msra.mxu1 %v6360_v21  ;;  %v1514_v24 = vpop.f32.mrf.mxu0  ;;  %2146 = vmatprep.subr.bf16.mxu0 %v6361_v2  ;;  %v4860_v51 = vpop.f32.mrf.mxu1  ;;  %v4866_v21 = vadd.f32 %v4770_v25, %v4819_v4 }
 0x1c4   :  { %2187 = vmatprep.subr.bf16.mxu1 %v6362_v10 }
 0x1c5   :  { %v1516_v6 = vpop.f32.mrf.mxu0  ;;  %v1557_v2 = vpop.f32.mrf.mxu1  ;;  %v1680_v25 = vmul.f32 %v4866_v21, %v4866_v21 }
 0x1c6   :  { %2147 = vmatpush1.bf16.msra.mxu0 %v3531_v45  ;;  %v1660_v6 = vadd.f32 %v1659_v35, %v4856_v58  ;;  %v4879_v45 = vadd.f32 %v4776_v41, %v4819_v4  ;;  %v6367_v35 = vld [vmem:[#allocation19_spill] sm:$0xff]  ;;  %v6368_v2 = vld [vmem:[#allocation20_spill] sm:$0xff] }
 0x1c7   :  { %2188 = vmatpush1.bf16.msra.mxu1 %v3535_v46  ;;  %v1517_v27 = vpop.f32.mrf.mxu0  ;;  %2148 = vmatprep.subr.bf16.mxu0 %v3537_v47  ;;  %v1558_v10 = vpop.f32.mrf.mxu1  ;;  %v1694_v46 = vadd.f32 %v1693_v9, %v1679_v19 }
 0x1c8   :  { %2189 = vmatprep.subr.bf16.mxu1 %v3540_v48  ;;  %v1661_v47 = vadd.f32 %v1660_v6, %v4866_v21  ;;  %v1681_v41 = vmul.f32 %v4879_v45, %v4879_v45  ;;  %v6369_v27 = vld [vmem:[#allocation21_spill] sm:$0xff]  ;;  %v6370_v10 = vld [vmem:[#allocation22_spill] sm:$0xff] }
 0x1c9   :  { %v1695_v48 = vadd.f32 %v1694_v46, %v1680_v25  ;;  %v6371_v25 = vld [vmem:[#allocation23_spill] sm:$0xff]  ;;  %v6372_v46 = vld [vmem:[#allocation24_spill] sm:$0xff] }
 0x1ca   :  { %2149 = vmatpush1.bf16.msra.mxu0 %v3555_v53  ;;  %v1662_v53 = vadd.f32 %v1661_v47, %v4879_v45  ;;  %v6373_v47 = vld [vmem:[#allocation25_spill] sm:$0xff] }
 0x1cb   :  { %2190 = vmatpush1.bf16.msra.mxu1 %v3559_v54  ;;  %2150 = vmatprep.subr.bf16.mxu0 %v3561_v55  ;;  %v1682_v54 = vmul.f32 %v4888_v1, %v4888_v1  ;;  %v1696_v55 = vadd.f32 %v1695_v48, %v1681_v41  ;;  %v4952_v41 = vadd.f32 %v4860_v51, %v4819_v4 }
 0x1cc   :  { %2191 = vmatprep.subr.bf16.mxu1 %v3564_v56  ;;  %v4901_v56 = vadd.f32 %v4779_v20, %v4819_v4 }
 0x1cd   :  { %v1697_v20 = vadd.f32 %v1696_v55, %v1682_v54  ;;  %v6375_v55 = vld [vmem:[#allocation27_spill] sm:$0xff] }
 0x1ce   :  { %2151 = vmatpush1.bf16.msra.mxu0 %v3579_v61  ;;  %v1663_v61 = vadd.f32 %v1662_v53, %v4888_v1  ;;  %v6374_v53 = vld [vmem:[#allocation26_spill] sm:$0xff] }
 0x1cf   :  { %2192 = vmatpush1.bf16.msra.mxu1 %v3583_v62  ;;  %2152 = vmatprep.subr.bf16.mxu0 %v3585_v63  ;;  %v4908_v62 = vadd.f32 %v1512_v28, %v4819_v4  ;;  %v4913_v63 = vcombine.low %v4801_v42, %v4801_v42  ;;  %v6366_v42 = vld [vmem:[#allocation18_spill] sm:$0xff] }
 0x1d0   :  { %2193 = vmatprep.subr.bf16.mxu1 %v3588_v0  ;;  %v1683_v0 = vmul.f32 %v4901_v56, %v4901_v56  ;;  %v1664_v39 = vadd.f32 %v1663_v61, %v4901_v56  ;;  %v6376_v61 = vld [vmem:[#allocation28_spill] sm:$0xff] }
 0x1d1   :  { %v1684_v28 = vmul.f32 %v4908_v62, %v4908_v62 }
 0x1d2   :  { %2153 = vmatpush1.bf16.msra.mxu0 %v3603_v7  ;;  %v6363_v7 = vld [vmem:[#allocation15_spill] sm:$0xff]  ;;  %v1698_v11 = vadd.f32 %v1697_v20, %v1683_v0  ;;  %v1665_v3 = vadd.f32 %v1664_v39, %v4908_v62  ;;  %v6377_v0 = vld [vmem:[#allocation29_spill] sm:$0xff]  ;;  %v1687_v20 = vmul.f32 %v4952_v41, %v4952_v41 }
 0x1d3   :  { %2194 = vmatpush1.bf16.msra.mxu1 %v3607_v8  ;;  %2168 = vmatprep.subr.bf16.mxu0 %v6249_v14  ;;  %v6364_v8 = vld [vmem:[#allocation16_spill] sm:$0xff]  ;;  %v6365_v14 = vld [vmem:[#allocation17_spill] sm:$0xff] }
 0x1d4   :  { %2209 = vmatprep.subr.bf16.mxu1 %v6251_v33  ;;  %v4924_v33 = vadd.f32 %v1514_v24, %v4819_v4  ;;  %v1699_v19 = vadd.f32 %v1698_v11, %v1684_v28  ;;  %v4935_v24 = vadd.f32 %v4849_v15, %v4819_v4 }
 0x1d6   :  { %2169 = vmatpush2.bf16.msra.mxu0 %v6363_v7  ;;  %v1685_v9 = vmul.f32 %v4924_v33, %v4924_v33  ;;  %v1666_v6 = vadd.f32 %v1665_v3, %v4924_v33  ;;  %v1686_v15 = vmul.f32 %v4935_v24, %v4935_v24  ;;  %v6380_v3 = vld [vmem:[#allocation32_spill] sm:$0xff] }
 0x1d7   :  { %2210 = vmatpush2.bf16.msra.mxu1 %v6364_v8  ;;  %2220 = vmatprep.subr.bf16.mxu0 %v6365_v14  ;;  %v6378_v8 = vld [vmem:[#allocation30_spill] sm:$0xff] }
 0x1d8   :  { %2261 = vmatprep.subr.bf16.mxu1 %v6366_v42  ;;  %v1700_v48 = vadd.f32 %v1699_v19, %v1685_v9  ;;  %v1667_v54 = vadd.f32 %v1666_v6, %v4935_v24  ;;  %v6379_v42 = vld [vmem:[#allocation31_spill] sm:$0xff] }
 0x1d9   :  { %2171 = vmatmul.mubr.bf16.vlgmr.msra.gmra.mxu0 %v4913_v63 }
 0x1da   :  { %2212 = vmatmul.mubr.bf16.vlgmr.msra.gmra.mxu1 %v4913_v63  ;;  %2221 = vmatpush1.bf16.msra.mxu0 %v6367_v35  ;;  %v1701_v7 = vadd.f32 %v1700_v48, %v1686_v15  ;;  %v1668_v51 = vadd.f32 %v1667_v54, %v4952_v41 }
 0x1db   :  { %2262 = vmatpush1.bf16.msra.mxu1 %v6368_v2  ;;  %2222 = vmatprep.subr.bf16.mxu0 %v6369_v27  ;;  %v6381_v2 = vld [vmem:[#allocation33_spill] sm:$0xff] }
 0x1dc   :  { %2263 = vmatprep.subr.bf16.mxu1 %v6370_v10  ;;  %3281 = vmatprep.mubr.msk.bf16.mxu0 %vm898_vm0, %v4809_v34  ;;  %v1702_v27 = vadd.f32 %v1701_v7, %v1687_v20 }
 0x1dd   :  { %3282 = vmatprep.mubr.msk.bf16.mxu1 %vm898_vm0, %v4809_v34 }
 0x1de   :  { %2223 = vmatpush1.bf16.msra.mxu0 %v6371_v25  ;;  %v6382_v25 = vld [vmem:[#allocation34_spill] sm:$0xff] }
 0x1df   :  { %2264 = vmatpush1.bf16.msra.mxu1 %v6372_v46  ;;  %2224 = vmatprep.subr.bf16.mxu0 %v6373_v47 }
 0x1e0   :  { %2265 = vmatprep.subr.bf16.mxu1 %v6374_v53 }
 0x1e2   :  { %2225 = vmatpush1.bf16.msra.mxu0 %v6375_v55 }
 0x1e3   :  { %2266 = vmatpush1.bf16.msra.mxu1 %v6376_v61  ;;  %2226 = vmatprep.subr.bf16.mxu0 %v6377_v0  ;;  %v6383_v0 = vld [vmem:[#allocation38_spill] sm:$0xff] }
 0x1e4   :  { %2267 = vmatprep.subr.bf16.mxu1 %v6378_v8 }
 0x1e5   :  { %v1594_v14 = vpop.f32.mrf.mxu0  ;;  %v1635_v28 = vpop.f32.mrf.mxu1 }
 0x1e6   :  { %v4964_v39 = vadd.f32 %v1594_v14, %v4819_v4  ;;  %2227 = vmatpush1.bf16.msra.mxu0 %v6379_v42  ;;  %v4968_v11 = vadd.f32 %v1635_v28, %v4819_v4  ;;  %v6384_v14 = vld [vmem:[#allocation39_spill] sm:$0xff] }
 0x1e7   :  { %2268 = vmatpush1.bf16.msra.mxu1 %v6380_v3  ;;  %v1596_v35 = vpop.f32.mrf.mxu0  ;;  %2228 = vmatprep.subr.bf16.mxu0 %v6381_v2  ;;  %v1637_v6 = vpop.f32.mrf.mxu1  ;;  %v6388_v3 = vld [vmem:[#allocation43_spill] sm:$0xff]  ;;  %v6390_v2 = vld [vmem:[#allocation45_spill] sm:$0xff] }
 0x1e8   :  { %v1669_v19 = vadd.f32 %v1668_v51, %v4964_v39  ;;  %v1688_v9 = vmul.f32 %v4964_v39, %v4964_v39  ;;  %v4976_v10 = vadd.f32 %v1596_v35, %v4819_v4  ;;  %2269 = vmatprep.subr.bf16.mxu1 %v6382_v25  ;;  %v4980_v46 = vadd.f32 %v1637_v6, %v4819_v4  ;;  %v6389_v35 = vld [vmem:[#allocation44_spill] sm:$0xff]  ;;  %v6394_v6 = vld [vmem:[#allocation49_spill] sm:$0xff]  ;;  %v6395_v25 = vld [vmem:[#allocation50_spill] sm:$0xff] }
 0x1e9   :  { %v1598_v47 = vpop.f32.mrf.mxu0  ;;  %v1690_v48 = vmul.f32 %v4968_v11, %v4968_v11  ;;  %v1639_v55 = vpop.f32.mrf.mxu1 }
 0x1ea   :  { %v1703_v15 = vadd.f32 %v1702_v27, %v1688_v9  ;;  %v1670_v53 = vadd.f32 %v1669_v19, %v4976_v10  ;;  %v1689_v54 = vmul.f32 %v4976_v10, %v4976_v10  ;;  %2229 = vmatpush1.bf16.msra.mxu0 %v6279_v23  ;;  %v1691_v7 = vmul.f32 %v4980_v46, %v4980_v46  ;;  %v6385_v23 = vld [vmem:[#allocation40_spill] sm:$0xff]  ;;  %v6391_v27 = vld [vmem:[#allocation46_spill] sm:$0xff]  ;;  %v6392_v19 = vld [vmem:[#allocation47_spill] sm:$0xff] }
 0x1eb   :  { %2270 = vmatpush1.bf16.msra.mxu1 %v6280_v40  ;;  %v1599_v61 = vpop.f32.mrf.mxu0  ;;  %2230 = vmatprep.subr.bf16.mxu0 %v6281_v30  ;;  %v1640_v4 = vpop.f32.mrf.mxu1  ;;  %v6386_v40 = vld [vmem:[#allocation41_spill] sm:$0xff]  ;;  %v6387_v30 = vld [vmem:[#allocation42_spill] sm:$0xff]  ;;  %v6393_v9 = vld [vmem:[#allocation48_spill] sm:$0xff] }
 0x1ec   :  { %2271 = vmatprep.subr.bf16.mxu1 %v6383_v0  ;;  %v1671_v20 = vadd.f32 %v1670_v53, %v4968_v11  ;;  %v1704_v8 = vadd.f32 %v1703_v15, %v1689_v54  ;;  %v6396_v47 = vld [vmem:[#allocation51_spill] sm:$0xff]  ;;  %v6397_v15 = vld [vmem:[#allocation52_spill] sm:$0xff]  ;;  %v6399_v53 = vld [vmem:[#allocation54_spill] sm:$0xff] }
 0x1ed   :  { %v6400_v54 = vld [vmem:[#allocation55_spill] sm:$0xff]  ;;  %v6401_v55 = vld [vmem:[#allocation56_spill] sm:$0xff]  ;;  %v6402_v61 = vld [vmem:[#allocation57_spill] sm:$0xff] }
 0x1ee   :  { %2231 = vmatpush1.bf16.msra.mxu0 %v6384_v14  ;;  %v1672_v51 = vadd.f32 %v1671_v20, %v4980_v46  ;;  %v1705_v28 = vadd.f32 %v1704_v8, %v1690_v48  ;;  %v6398_v48 = vld [vmem:[#allocation53_spill] sm:$0xff]  ;;  %v6403_v4 = vld [vmem:[#allocation58_spill] sm:$0xff]  ;;  %v6404_v0 = vld [vmem:[#allocation59_spill] sm:$0xff] }
 0x1ef   :  { %2272 = vmatpush1.bf16.msra.mxu1 %v6385_v23  ;;  %2232 = vmatprep.subr.bf16.mxu0 %v6386_v40  ;;  %v6405_v20 = vld [vmem:[#allocation60_spill] sm:$0xff]  ;;  %v6407_v8 = vld [vmem:[#allocation62_spill] sm:$0xff]  ;;  %v6408_v14 = vld [vmem:[#allocation63_spill] sm:$0xff] }
 0x1f0   :  { %1673 = vadd.xlane.f32.xlu1 %v1672_v51  ;;  %2273 = vmatprep.subr.bf16.mxu1 %v6387_v30  ;;  %v1706_v42 = vadd.f32 %v1705_v28, %v1691_v7  ;;  %v6406_v7 = vld [vmem:[#allocation61_spill] sm:$0xff]  ;;  %v6409_v51 = vld [vmem:[#allocation64_spill] sm:$0xff]  ;;  %v6411_v23 = vld [vmem:[#allocation66_spill] sm:$0xff] }
 0x1f1   :  { %v6410_v28 = vld [vmem:[#allocation65_spill] sm:$0xff] }
 0x1f2   :  { %2233 = vmatpush1.bf16.msra.mxu0 %v6388_v3  ;;  %1707 = vadd.xlane.f32.xlu0 %v1706_v42  ;;  %v6412_v42 = vld [vmem:[#allocation67_spill] sm:$0xff]  ;;  %v6413_v3 = vld [vmem:[#allocation68_spill] sm:$0xff] }
 0x1f3   :  { %2274 = vmatpush1.bf16.msra.mxu1 %v6389_v35  ;;  %2234 = vmatprep.subr.bf16.mxu0 %v6390_v2  ;;  %v6414_v2 = vld [vmem:[#allocation69_spill] sm:$0xff] }
 0x1f4   :  { %2275 = vmatprep.subr.bf16.mxu1 %v6391_v27 }
 0x1f6   :  { %2235 = vmatpush1.bf16.msra.mxu0 %v6392_v19 }
 0x1f7   :  { %2276 = vmatpush1.bf16.msra.mxu1 %v6393_v9  ;;  %2250 = vmatprep.subr.bf16.mxu0 %v6394_v6  ;;  %v6415_v6 = vld [vmem:[#allocation71_spill] sm:$0xff] }
 0x1f8   :  { %2291 = vmatprep.subr.bf16.mxu1 %v6395_v25 }
 0x1fa   :  { %2251 = vmatpush2.bf16.msra.mxu0 %v6396_v47  ;;  %v6416_v47 = vld [vmem:[#allocation73_spill] sm:$0xff] }
 0x1fb   :  { %2292 = vmatpush2.bf16.msra.mxu1 %v6397_v15  ;;  %2302 = vmatprep.subr.bf16.mxu0 %v6398_v48  ;;  %v6417_v48 = vld [vmem:[#allocation74_spill] sm:$0xff] }
 0x1fc   :  { %2343 = vmatprep.subr.bf16.mxu1 %v6399_v53  ;;  %v6418_v53 = vld [vmem:[#allocation75_spill] sm:$0xff] }
 0x1fd   :  { %2253 = vmatmul.mubr.bf16.vlgmr.msra.gmra.mxu0 %v4913_v63 }
 0x1fe   :  { %2294 = vmatmul.mubr.bf16.vlgmr.msra.gmra.mxu1 %v4913_v63  ;;  %2303 = vmatpush1.bf16.msra.mxu0 %v6400_v54  ;;  %v6419_v54 = vld [vmem:[#allocation76_spill] sm:$0xff] }
 0x1ff   :  { %2344 = vmatpush1.bf16.msra.mxu1 %v6401_v55  ;;  %2304 = vmatprep.subr.bf16.mxu0 %v6402_v61  ;;  %v6420_v55 = vld [vmem:[#allocation77_spill] sm:$0xff]  ;;  %v6421_v61 = vld [vmem:[#allocation78_spill] sm:$0xff] }
 0x200   :  { %2345 = vmatprep.subr.bf16.mxu1 %v6403_v4  ;;  %3283 = vmatprep.mubr.msk.bf16.mxu0 %vm898_vm0, %v4809_v34  ;;  %v6423_v4 = vld [vmem:[#allocation81_spill] sm:$0xff] }
 0x201   :  { %3284 = vmatprep.mubr.msk.bf16.mxu1 %vm898_vm0, %v4809_v34 }
 0x202   :  { %2305 = vmatpush1.bf16.msra.mxu0 %v6404_v0  ;;  %v6425_v0 = vld [vmem:[#allocation83_spill] sm:$0xff] }
 0x203   :  { %2346 = vmatpush1.bf16.msra.mxu1 %v6405_v20  ;;  %2306 = vmatprep.subr.bf16.mxu0 %v6406_v7  ;;  %v6426_v20 = vld [vmem:[#allocation84_spill] sm:$0xff]  ;;  %v6427_v7 = vld [vmem:[#allocation85_spill] sm:$0xff] }
 0x204   :  { %2347 = vmatprep.subr.bf16.mxu1 %v6407_v8  ;;  %v6428_v8 = vld [vmem:[#allocation86_spill] sm:$0xff] }
 0x206   :  { %2307 = vmatpush1.bf16.msra.mxu0 %v6408_v14  ;;  %v6429_v14 = vld [vmem:[#allocation87_spill] sm:$0xff] }
 0x207   :  { %2348 = vmatpush1.bf16.msra.mxu1 %v6409_v51  ;;  %2308 = vmatprep.subr.bf16.mxu0 %v6410_v28  ;;  %v6430_v51 = vld [vmem:[#allocation88_spill] sm:$0xff]  ;;  %v6431_v28 = vld [vmem:[#allocation89_spill] sm:$0xff] }
 0x208   :  { %2349 = vmatprep.subr.bf16.mxu1 %v6411_v23  ;;  %v6432_v23 = vld [vmem:[#allocation90_spill] sm:$0xff] }
 0x209   :  { %v5029_v40 = vpop.f32.mrf.mxu0  ;;  %v5031_v30 = vpop.f32.mrf.mxu1 }
 0x20a   :  { %2309 = vmatpush1.bf16.msra.mxu0 %v6412_v42  ;;  %v6434_v42 = vld [vmem:[#allocation92_spill] sm:$0xff] }
 0x20b   :  { %2350 = vmatpush1.bf16.msra.mxu1 %v6413_v3  ;;  %v5035_v35 = vpop.f32.mrf.mxu0  ;;  %2310 = vmatprep.subr.bf16.mxu0 %v6414_v2  ;;  %v5038_v27 = vpop.f32.mrf.mxu1  ;;  %v6435_v3 = vld [vmem:[#allocation93_spill] sm:$0xff]  ;;  %v6436_v2 = vld [vmem:[#allocation94_spill] sm:$0xff] }
 0x20c   :  { %2351 = vmatprep.subr.bf16.mxu1 %v6314_v60  ;;  %v6422_v60 = vld [vmem:[#allocation79_spill] sm:$0xff] }
 0x20d   :  { %v1764_v19 = vpop.f32.mrf.mxu0  ;;  %v1805_v9 = vpop.f32.mrf.mxu1 }
 0x20e   :  { %2311 = vmatpush1.bf16.msra.mxu0 %v6415_v6  ;;  %v6437_v19 = vld [vmem:[#allocation95_spill] sm:$0xff]  ;;  %v6438_v9 = vld [vmem:[#allocation96_spill] sm:$0xff]  ;;  %v6439_v6 = vld [vmem:[#allocation97_spill] sm:$0xff] }
 0x20f   :  { %2352 = vmatpush1.bf16.msra.mxu1 %v6316_v22  ;;  %v1765_v25 = vpop.f32.mrf.mxu0  ;;  %2312 = vmatprep.subr.bf16.mxu0 %v6416_v47  ;;  %v1806_v15 = vpop.f32.mrf.mxu1  ;;  %v6424_v22 = vld [vmem:[#allocation82_spill] sm:$0xff]  ;;  %v6441_v47 = vld [vmem:[#allocation99_spill] sm:$0xff] }
 0x210   :  { %2353 = vmatprep.subr.bf16.mxu1 %v6417_v48  ;;  %v6440_v25 = vld [vmem:[#allocation98_spill] sm:$0xff]  ;;  %v6442_v15 = vld [vmem:[#allocation100_spill] sm:$0xff]  ;;  %v6443_v48 = vld [vmem:[#allocation101_spill] sm:$0xff] }
 0x212   :  { %2313 = vmatpush1.bf16.msra.mxu0 %v6418_v53  ;;  %v6444_v53 = vld [vmem:[#allocation102_spill] sm:$0xff] }
 0x213   :  { %2354 = vmatpush1.bf16.msra.mxu1 %v6419_v54  ;;  %2314 = vmatprep.subr.bf16.mxu0 %v6420_v55 }
 0x214   :  { %2355 = vmatprep.subr.bf16.mxu1 %v6421_v61  ;;  %v6445_v61 = vld [vmem:[#allocation103_spill] sm:$0xff] }
 0x216   :  { %2315 = vmatpush1.bf16.msra.mxu0 %v6422_v60 }
 0x217   :  { %2356 = vmatpush1.bf16.msra.mxu1 %v6324_v37  ;;  %2316 = vmatprep.subr.bf16.mxu0 %v6423_v4  ;;  %v6433_v37 = vld [vmem:[#allocation91_spill] sm:$0xff] }
 0x218   :  { %2357 = vmatprep.subr.bf16.mxu1 %v6424_v22 }
 0x21a   :  { %2317 = vmatpush1.bf16.msra.mxu0 %v6425_v0 }
 0x21b   :  { %2358 = vmatpush1.bf16.msra.mxu1 %v6426_v20  ;;  %2332 = vmatprep.subr.bf16.mxu0 %v6427_v7 }
 0x21c   :  { %2373 = vmatprep.subr.bf16.mxu1 %v6428_v8 }
 0x21e   :  { %2333 = vmatpush2.bf16.msra.mxu0 %v6429_v14 }
 0x21f   :  { %2374 = vmatpush2.bf16.msra.mxu1 %v6430_v51  ;;  %2384 = vmatprep.subr.bf16.mxu0 %v6431_v28 }
 0x220   :  { %2425 = vmatprep.subr.bf16.mxu1 %v6432_v23 }
 0x221   :  { %2335 = vmatmul.mubr.bf16.vlgmr.msra.gmra.mxu0 %v4913_v63 }
 0x222   :  { %2376 = vmatmul.mubr.bf16.vlgmr.msra.gmra.mxu1 %v4913_v63  ;;  %2385 = vmatpush1.bf16.msra.mxu0 %v6433_v37 }
 0x223   :  { %2426 = vmatpush1.bf16.msra.mxu1 %v6434_v42  ;;  %2386 = vmatprep.subr.bf16.mxu0 %v6435_v3 }
 0x224   :  { %2427 = vmatprep.subr.bf16.mxu1 %v6436_v2  ;;  %3285 = vmatprep.mubr.msk.bf16.mxu0 %vm898_vm0, %v4809_v34 }
 0x225   :  { %3286 = vmatprep.mubr.msk.bf16.mxu1 %vm898_vm0, %v4809_v34 }
 0x226   :  { %2387 = vmatpush1.bf16.msra.mxu0 %v6437_v19 }
 0x227   :  { %2428 = vmatpush1.bf16.msra.mxu1 %v6438_v9  ;;  %2388 = vmatprep.subr.bf16.mxu0 %v6439_v6 }
 0x228   :  { %2429 = vmatprep.subr.bf16.mxu1 %v6440_v25 }
 0x22a   :  { %2389 = vmatpush1.bf16.msra.mxu0 %v6441_v47 }
 0x22b   :  { %2430 = vmatpush1.bf16.msra.mxu1 %v6442_v15  ;;  %2390 = vmatprep.subr.bf16.mxu0 %v6443_v48 }
 0x22c   :  { %2431 = vmatprep.subr.bf16.mxu1 %v6444_v53 }
 0x22d   :  { %v1842_v54 = vpop.f32.mrf.mxu0 }
 0x22e   :  { %v1883_v55 = vpop.f32.mrf.mxu1  ;;  %2391 = vmatpush1.bf16.msra.mxu0 %v6445_v61 }
 0x22f   :  { %2432 = vmatpush1.bf16.msra.mxu1 %v6348_v49  ;;  %v1844_v34 = vpop.f32.mrf.mxu0  ;;  %2392 = vmatprep.subr.bf16.mxu0 %v6349_v29 }
 0x230   :  { %v1885_v60 = vpop.f32.mrf.mxu1  ;;  %2433 = vmatprep.subr.bf16.mxu1 %v6350_v38 }
 0x231   :  { %v1846_v4 = vpop.f32.mrf.mxu0 }
 0x232   :  { %v1887_v22 = vpop.f32.mrf.mxu1  ;;  %2393 = vmatpush1.bf16.msra.mxu0 %v6233_v36  ;;  %v6446_v36 = vld [vmem:[#allocation115_spill] sm:$0xff] }
 0x233   :  { %2434 = vmatpush1.bf16.msra.mxu1 %v6234_v32  ;;  %v1847_v0 = vpop.f32.mrf.mxu0  ;;  %2394 = vmatprep.subr.bf16.mxu0 %v6235_v5 }
 0x234   :  { %v1888_v20 = vpop.f32.mrf.mxu1  ;;  %2435 = vmatprep.subr.bf16.mxu1 %v6236_v43 }
 0x236   :  { %2395 = vmatpush1.bf16.msra.mxu0 %v6237_v59  ;;  %v5103_v59 = vpop.permute.xlu1 %1714 }
 0x237   :  { %2436 = vmatpush1.bf16.msra.mxu1 %v6238_v13  ;;  %2396 = vmatprep.subr.bf16.mxu0 %v6239_v12  ;;  %v6447_v13 = vld [vmem:[#allocation116_spill] sm:$0xff]  ;;  %v6448_v12 = vld [vmem:[#allocation117_spill] sm:$0xff]  ;;  %v5125_v32 = vadd.f32 %v5038_v27, %v5103_v59  ;;  %v5139_v28 = vadd.f32 %v1844_v34, %v5103_v59  ;;  %v5143_v3 = vadd.f32 %v1883_v55, %v5103_v59 }
 0x238   :  { %2437 = vmatprep.subr.bf16.mxu1 %v6240_v44  ;;  %v5151_v25 = vadd.f32 %v1885_v60, %v5103_v59 }
 0x239   :  { %v2091_v7 = vmul.f32 %v5125_v32, %v5125_v32  ;;  %v2093_v2 = vmul.f32 %v5139_v28, %v5139_v28  ;;  %v2094_v9 = vmul.f32 %v5143_v3, %v5143_v3 }
 0x23a   :  { %2397 = vmatpush1.bf16.msra.mxu0 %v4252_v16  ;;  %v2095_v48 = vmul.f32 %v5151_v25, %v5151_v25 }
 0x23b   :  { %2438 = vmatpush1.bf16.msra.mxu1 %v4256_v31  ;;  %2398 = vmatprep.subr.bf16.mxu0 %v4258_v18  ;;  %v5111_v18 = vadd.f32 %v5035_v35, %v5103_v59 }
 0x23c   :  { %2439 = vmatprep.subr.bf16.mxu1 %v4261_v17  ;;  %v5107_v17 = vadd.f32 %v5029_v40, %v5103_v59  ;;  %v5131_v40 = vadd.f32 %v1842_v54, %v5103_v59 }
 0x23e   :  { %2399 = vmatpush1.bf16.msra.mxu0 %v4276_v50  ;;  %v2088_v31 = vmul.f32 %v5107_v17, %v5107_v17  ;;  %v2070_v50 = vadd.f32 %v5111_v18, %v5107_v17  ;;  %v2092_v51 = vmul.f32 %v5131_v40, %v5131_v40 }
 0x23f   :  { %2440 = vmatpush1.bf16.msra.mxu1 %v4280_v57  ;;  %2414 = vmatprep.subr.bf16.mxu0 %v4282_v52  ;;  %v2089_v52 = vmul.f32 %v5111_v18, %v5111_v18  ;;  %v5119_v57 = vadd.f32 %v5031_v30, %v5103_v59 }
 0x240   :  { %2455 = vmatprep.subr.bf16.mxu1 %v6446_v36 }
 0x241   :  { %v2104_v44 = vadd.f32 %v2089_v52, %v2088_v31  ;;  %v2090_v29 = vmul.f32 %v5119_v57, %v5119_v57 }
 0x242   :  { %2415 = vmatpush2.bf16.msra.mxu0 %v6447_v13 }
 0x243   :  { %2456 = vmatpush2.bf16.msra.mxu1 %v6448_v12  ;;  %v2105_v8 = vadd.f32 %v2104_v44, %v2090_v29 }
 0x245   :  { %2417 = vmatmul.mubr.bf16.vlgmr.msra.gmra.mxu0 %v4913_v63  ;;  %v2106_v23 = vadd.f32 %v2105_v8, %v2091_v7 }
 0x246   :  { %2458 = vmatmul.mubr.bf16.vlgmr.msra.gmra.mxu1 %v4913_v63  ;;  %v2071_v63 = vadd.f32 %v2070_v50, %v5119_v57 }
 0x247   :  { %v2107_v42 = vadd.f32 %v2106_v23, %v2092_v51 }
 0x248   :  { %v2072_v27 = vadd.f32 %v2071_v63, %v5125_v32 }
 0x249   :  { %v2108_v6 = vadd.f32 %v2107_v42, %v2093_v2 }
 0x24a   :  { %v2073_v37 = vadd.f32 %v2072_v27, %v5131_v40 }
 0x24b   :  { %v2109_v53 = vadd.f32 %v2108_v6, %v2094_v9 }
 0x24c   :  { %v2074_v19 = vadd.f32 %v2073_v37, %v5139_v28 }
 0x24d   :  { %v2110_v34 = vadd.f32 %v2109_v53, %v2095_v48 }
 0x24e   :  { %v2075_v47 = vadd.f32 %v2074_v19, %v5143_v3 }
 0x250   :  { %v2076_v54 = vadd.f32 %v2075_v47, %v5151_v25 }
 0x251   :  { %v1924_v16 = vpop.f32.mrf.mxu0 }
 0x252   :  { %v1965_v43 = vpop.f32.mrf.mxu1  ;;  %v5155_v15 = vadd.f32 %v1924_v16, %v5103_v59 }
 0x253   :  { %v1926_v5 = vpop.f32.mrf.mxu0  ;;  %v5167_v22 = vadd.f32 %v1965_v43, %v5103_v59 }
 0x254   :  { %v1967_v49 = vpop.f32.mrf.mxu1  ;;  %v2096_v55 = vmul.f32 %v5155_v15, %v5155_v15  ;;  %v5163_v61 = vadd.f32 %v1926_v5, %v5103_v59  ;;  %v2077_v60 = vadd.f32 %v2076_v54, %v5155_v15 }
 0x255   :  { %v1928_v38 = vpop.f32.mrf.mxu0  ;;  %v2098_v36 = vmul.f32 %v5167_v22, %v5167_v22  ;;  %v5175_v12 = vadd.f32 %v1967_v49, %v5103_v59 }
 0x256   :  { %v1969_v30 = vpop.f32.mrf.mxu1  ;;  %v2111_v4 = vadd.f32 %v2110_v34, %v2096_v55  ;;  %v2097_v0 = vmul.f32 %v5163_v61, %v5163_v61  ;;  %v2078_v20 = vadd.f32 %v2077_v60, %v5163_v61 }
 0x257   :  { %v1929_v35 = vpop.f32.mrf.mxu0  ;;  %v2099_v52 = vmul.f32 %v5175_v12, %v5175_v12 }
 0x258   :  { %v1970_v14 = vpop.f32.mrf.mxu1  ;;  %v2112_v13 = vadd.f32 %v2111_v4, %v2097_v0  ;;  %v2079_v31 = vadd.f32 %v2078_v20, %v5167_v22 }
 0x25a   :  { %v2113_v16 = vadd.f32 %v2112_v13, %v2098_v36  ;;  %v2080_v43 = vadd.f32 %v2079_v31, %v5175_v12 }
 0x25c   :  { %v2114_v63 = vadd.f32 %v2113_v16, %v2099_v52 }
 0x275   :  { %v2006_v50 = vpop.f32.mrf.mxu0 }
 0x276   :  { %v5182_v5 = vadd.f32 %v2006_v50, %v5103_v59  ;;  %v2047_v44 = vpop.f32.mrf.mxu1 }
 0x277   :  { %v5185_v29 = vadd.f32 %v2047_v44, %v5103_v59  ;;  %v2008_v38 = vpop.f32.mrf.mxu0 }
 0x278   :  { %v2081_v49 = vadd.f32 %v2080_v43, %v5182_v5  ;;  %v2100_v30 = vmul.f32 %v5182_v5, %v5182_v5  ;;  %v5191_v35 = vadd.f32 %v2008_v38, %v5103_v59  ;;  %v2049_v7 = vpop.f32.mrf.mxu1 }
 0x279   :  { %v5194_v8 = vadd.f32 %v2049_v7, %v5103_v59  ;;  %v2010_v14 = vpop.f32.mrf.mxu0  ;;  %v2102_v51 = vmul.f32 %v5185_v29, %v5185_v29 }
 0x27a   :  { %v2115_v27 = vadd.f32 %v2114_v63, %v2100_v30  ;;  %v2082_v23 = vadd.f32 %v2081_v49, %v5191_v35  ;;  %v2101_v37 = vmul.f32 %v5191_v35, %v5191_v35  ;;  %v2051_v42 = vpop.f32.mrf.mxu1  ;;  %v5205_v63 = vpop.permute.xlu1 %2126 }
 0x27b   :  { %v2011_v2 = vpop.f32.mrf.mxu0  ;;  %v2103_v6 = vmul.f32 %v5194_v8, %v5194_v8 }
 0x27c   :  { %v2052_v19 = vpop.f32.mrf.mxu1  ;;  %v2083_v9 = vadd.f32 %v2082_v23, %v5185_v29  ;;  %v2116_v59 = vadd.f32 %v2115_v27, %v2101_v37 }
 0x27e   :  { %v2084_v47 = vadd.f32 %v2083_v9, %v5194_v8  ;;  %v2117_v48 = vadd.f32 %v2116_v59, %v2102_v51 }
 0x280   :  { %2085 = vadd.xlane.f32.xlu1 %v2084_v47  ;;  %v2118_v53 = vadd.f32 %v2117_v48, %v2103_v6 }
 0x282   :  { %2119 = vadd.xlane.f32.xlu0 %v2118_v53 }
 0x299   :  { %v2172_v54 = vpop.f32.mrf.mxu0 }
 0x29a   :  { %v2213_v55 = vpop.f32.mrf.mxu1  ;;  %v5208_v49 = vadd.f32 %v2172_v54, %v5205_v63 }
 0x29b   :  { %v2174_v34 = vpop.f32.mrf.mxu0  ;;  %v5216_v14 = vadd.f32 %v2213_v55, %v5205_v63 }
 0x29c   :  { %v2215_v60 = vpop.f32.mrf.mxu1  ;;  %v5211_v30 = vadd.f32 %v2174_v34, %v5205_v63  ;;  %v2500_v7 = vmul.f32 %v5208_v49, %v5208_v49 }
 0x29d   :  { %v2176_v4 = vpop.f32.mrf.mxu0  ;;  %v2502_v42 = vmul.f32 %v5216_v14, %v5216_v14  ;;  %v5225_v19 = vadd.f32 %v2215_v60, %v5205_v63 }
 0x29e   :  { %v2217_v0 = vpop.f32.mrf.mxu1  ;;  %v2501_v27 = vmul.f32 %v5211_v30, %v5211_v30  ;;  %v2482_v23 = vadd.f32 %v5211_v30, %v5208_v49 }
 0x29f   :  { %v2177_v20 = vpop.f32.mrf.mxu0  ;;  %v2503_v54 = vmul.f32 %v5225_v19, %v5225_v19 }
 0x2a0   :  { %v2218_v36 = vpop.f32.mrf.mxu1  ;;  %v2516_v2 = vadd.f32 %v2501_v27, %v2500_v7  ;;  %v2483_v48 = vadd.f32 %v2482_v23, %v5216_v14 }
 0x2a2   :  { %v2517_v55 = vadd.f32 %v2516_v2, %v2502_v42  ;;  %v2484_v20 = vadd.f32 %v2483_v48, %v5225_v19 }
 0x2a4   :  { %v2518_v36 = vadd.f32 %v2517_v55, %v2503_v54 }
 0x2bd   :  { %v2254_v13 = vpop.f32.mrf.mxu0 }
 0x2be   :  { %v2295_v31 = vpop.f32.mrf.mxu1  ;;  %v5228_v59 = vadd.f32 %v2254_v13, %v5205_v63 }
 0x2bf   :  { %v2256_v52 = vpop.f32.mrf.mxu0 }
 0x2c0   :  { %v2297_v16 = vpop.f32.mrf.mxu1  ;;  %v2504_v0 = vmul.f32 %v5228_v59, %v5228_v59  ;;  %v5236_v60 = vadd.f32 %v2256_v52, %v5205_v63  ;;  %v2485_v13 = vadd.f32 %v2484_v20, %v5228_v59 }
 0x2c1   :  { %v2258_v50 = vpop.f32.mrf.mxu0  ;;  %v5249_v52 = vadd.f32 %v2297_v16, %v5205_v63 }
 0x2c2   :  { %v2299_v43 = vpop.f32.mrf.mxu1  ;;  %v2519_v50 = vadd.f32 %v2518_v36, %v2504_v0 }
 0x2c3   :  { %v2259_v44 = vpop.f32.mrf.mxu0  ;;  %v5241_v43 = vadd.f32 %v2295_v31, %v5205_v63  ;;  %v2507_v31 = vmul.f32 %v5249_v52, %v5249_v52 }
 0x2c4   :  { %v2300_v38 = vpop.f32.mrf.mxu1  ;;  %v2505_v44 = vmul.f32 %v5236_v60, %v5236_v60 }
 0x2c5   :  { %v2486_v38 = vadd.f32 %v2485_v13, %v5236_v60  ;;  %v2506_v7 = vmul.f32 %v5241_v43, %v5241_v43 }
 0x2c6   :  { %v2520_v27 = vadd.f32 %v2519_v50, %v2505_v44 }
 0x2c7   :  { %v2487_v42 = vadd.f32 %v2486_v38, %v5241_v43 }
 0x2c8   :  { %v2521_v2 = vadd.f32 %v2520_v27, %v2506_v7 }
 0x2ca   :  { %v2522_v54 = vadd.f32 %v2521_v2, %v2507_v31 }
 0x2e1   :  { %v2336_v51 = vpop.f32.mrf.mxu0 }
 0x2e2   :  { %v2377_v37 = vpop.f32.mrf.mxu1  ;;  %v5252_v23 = vadd.f32 %v2336_v51, %v5205_v63 }
 0x2e3   :  { %v2338_v9 = vpop.f32.mrf.mxu0  ;;  %v5265_v51 = vadd.f32 %v2377_v37, %v5205_v63 }
 0x2e4   :  { %v2379_v6 = vpop.f32.mrf.mxu1  ;;  %v5260_v48 = vadd.f32 %v2338_v9, %v5205_v63 }
 0x2e5   :  { %v2340_v47 = vpop.f32.mrf.mxu0  ;;  %v2510_v0 = vmul.f32 %v5265_v51, %v5265_v51  ;;  %v5273_v9 = vadd.f32 %v2379_v6, %v5205_v63 }
 0x2e6   :  { %v2381_v53 = vpop.f32.mrf.mxu1  ;;  %v2508_v47 = vmul.f32 %v5252_v23, %v5252_v23 }
 0x2e7   :  { %v2341_v34 = vpop.f32.mrf.mxu0  ;;  %v2488_v53 = vadd.f32 %v2487_v42, %v5249_v52  ;;  %v2511_v13 = vmul.f32 %v5273_v9, %v5273_v9 }
 0x2e8   :  { %v2382_v4 = vpop.f32.mrf.mxu1  ;;  %v2523_v55 = vadd.f32 %v2522_v54, %v2508_v47  ;;  %v2509_v34 = vmul.f32 %v5260_v48, %v5260_v48 }
 0x2e9   :  { %v2489_v16 = vadd.f32 %v2488_v53, %v5252_v23 }
 0x2ea   :  { %v2524_v20 = vadd.f32 %v2523_v55, %v2509_v34 }
 0x2eb   :  { %v2490_v4 = vadd.f32 %v2489_v16, %v5260_v48 }
 0x2ec   :  { %v2525_v50 = vadd.f32 %v2524_v20, %v2510_v0 }
 0x2ed   :  { %v2491_v36 = vadd.f32 %v2490_v4, %v5265_v51 }
 0x2ee   :  { %v2526_v27 = vadd.f32 %v2525_v50, %v2511_v13 }
 0x2ef   :  { %v2492_v44 = vadd.f32 %v2491_v36, %v5273_v9 }
 0x305   :  { %v2418_v37 = vpop.f32.mrf.mxu0 }
 0x306   :  { %v5280_v38 = vadd.f32 %v2418_v37, %v5205_v63  ;;  %v2459_v7 = vpop.f32.mrf.mxu1 }
 0x307   :  { %v2420_v42 = vpop.f32.mrf.mxu0  ;;  %v5286_v2 = vadd.f32 %v2459_v7, %v5205_v63 }
 0x308   :  { %6449 = vst [vmem:[#allocation37_spill] sm:$0xff] %v5280_v38  ;;  %v2493_v31 = vadd.f32 %v2492_v44, %v5280_v38  ;;  %v2512_v6 = vmul.f32 %v5280_v38, %v5280_v38  ;;  %v5289_v47 = vadd.f32 %v2420_v42, %v5205_v63  ;;  %v2461_v53 = vpop.f32.mrf.mxu1 }
 0x309   :  { %6450 = vst [vmem:[#allocation70_spill] sm:$0xff] %v5286_v2  ;;  %v2422_v54 = vpop.f32.mrf.mxu0  ;;  %v5295_v4 = vadd.f32 %v2461_v53, %v5205_v63  ;;  %v2514_v36 = vmul.f32 %v5286_v2, %v5286_v2  ;;  %v1262_v63 = vpop.xlane.xlu0 %1261 }
 0x30a   :  { %6451 = vst [vmem:[#allocation72_spill] sm:$0xff] %v5289_v47  ;;  %v2527_v16 = vadd.f32 %v2526_v27, %v2512_v6  ;;  %v2494_v55 = vadd.f32 %v2493_v31, %v5289_v47  ;;  %v2513_v34 = vmul.f32 %v5289_v47, %v5289_v47  ;;  %v2463_v0 = vpop.f32.mrf.mxu1  ;;  %v1674_v6 = vpop.xlane.xlu1 %1673 }
 0x30b   :  { %6452 = vst [vmem:[#allocation80_spill] sm:$0xff] %v5295_v4  ;;  %v2423_v20 = vpop.f32.mrf.mxu0  ;;  %v2515_v7 = vmul.f32 %v5295_v4, %v5295_v4  ;;  %v1675_v0 = vadd.f32 %v1674_v6, %v1262_v63  ;;  %v2542_v63 = vld [vmem:[%s5797_s4] sm:$0xff] }
 0x30c   :  { %v2464_v13 = vpop.f32.mrf.mxu1  ;;  %v2495_v50 = vadd.f32 %v2494_v55, %v5286_v2  ;;  %v2528_v37 = vadd.f32 %v2527_v16, %v2513_v34 }
 0x30d   :  { %v1296_v31 = vpop.xlane.xlu0 %1295 }
 0x30e   :  { %v2496_v44 = vadd.f32 %v2495_v50, %v5295_v4  ;;  %v2529_v27 = vadd.f32 %v2528_v37, %v2514_v36  ;;  %v2086_v54 = vpop.xlane.xlu1 %2085 }
 0x30f   :  { %v2087_v47 = vadd.f32 %v2086_v54, %v1675_v0  ;;  %v6455_v0 = vld [vmem:[#allocation109_spill] sm:$0xff] }
 0x310   :  { %2497 = vadd.xlane.f32.xlu1 %v2496_v44  ;;  %v2530_v42 = vadd.f32 %v2529_v27, %v2515_v7  ;;  %v2538_v7 = vld [vmem:[%s5796_s3] sm:$0xff] }
 0x311   :  { %v1708_v53 = vpop.xlane.xlu0 %1707 }
 0x312   :  { %2531 = vadd.xlane.f32.xlu0 %v2530_v42  ;;  %v1709_v13 = vadd.f32 %v1708_v53, %v1296_v31  ;;  %v6454_v53 = vld [vmem:[#allocation108_spill] sm:$0xff] }
 0x315   :  { %v2120_v20 = vpop.xlane.xlu0 %2119 }
 0x316   :  { %v2121_v16 = vadd.f32 %v2120_v20, %v1709_v13  ;;  %v6456_v13 = vld [vmem:[#allocation110_spill] sm:$0xff] }
 0x399   :  { %v2498_v55 = vpop.xlane.xlu1 %2497 }
 0x39a   :  { %v2499_v34 = vadd.f32 %v2498_v55, %v2087_v47 }
 0x39b   :  { %v2532_v50 = vpop.xlane.xlu0 %2531 }
 0x39c   :  { %v2534_v2 = vmul.f32 0.00012207031, %v2499_v34  ;;  %v2533_v38 = vadd.f32 %v2532_v50, %v2121_v16  ;;  %v6458_v34 = vld [vmem:[#allocation112_spill] sm:$0xff] }
 0x39e   :  { %v2536_v4 = vmul.f32 %v2534_v2, %v2534_v2  ;;  %v2535_v36 = vmul.f32 0.00012207031, %v2533_v38  ;;  %v6453_v38 = vld [vmem:[#allocation107_spill] sm:$0xff] }
 0x3a0   :  { %v2537_v37 = vsub.f32 %v2535_v36, %v2536_v4  ;;  %v6459_v36 = vld [vmem:[#allocation113_spill] sm:$0xff] }
 0x3a2   :  { %v2539_v44 = vadd.f32 1e-05, %v2537_v37 }
 0x3a4   :  { %3362 = vrsqrt.f32 %v2539_v44  ;;  %v6460_v44 = vld [vmem:[#allocation114_spill] sm:$0xff] }
 0x3b1   :  { %v3363_v27 = vpop.eup %3362 }
 0x3b2   :  { %v2541_v42 = vmul.f32 %v3363_v27, %v2538_v7  ;;  %v6461_v27 = vld [vmem:[#allocation13_spill] sm:$0xff] }
 0x3b4   :  { %2563 = vperm.xlu1 %3353, %v2541_v42   ;;  %v2543_v47 = vmul.f32 %v2541_v42, %v2534_v2  ;;  %v6457_v2 = vld [vmem:[#allocation111_spill] sm:$0xff] }
 0x3b6   :  { %v2544_v31 = vsub.f32 %v2542_v63, %v2543_v47  ;;  %v6462_v63 = vld [vmem:[#allocation14_spill] sm:$0xff] }
 0x3b8   :  { %2584 = vperm.xlu0 %3352, %v2544_v31   ;;  %v6463_v31 = vld [vmem:[#allocation118_spill] sm:$0xff] }
 0x42f   :  { %v5309_v6 = vpop.permute.xlu1 %2563 }
 0x430   :  { %v5313_v4 = vmul.f32 %v5309_v6, %v6453_v38  ;;  %v5317_v54 = vmul.f32 %v5309_v6, %v6454_v53  ;;  %v5321_v20 = vmul.f32 %v5309_v6, %v6455_v0  ;;  %v5325_v55 = vmul.f32 %v5309_v6, %v6456_v13  ;;  %v6465_v53 = vld [vmem:[#allocation119_spill] sm:$0xff]  ;;  %v6467_v13 = vld [vmem:[#allocation120_spill] sm:$0xff] }
 0x431   :  { %v5329_v16 = vmul.f32 %v5309_v6, %v6457_v2  ;;  %v5333_v50 = vmul.f32 %v5309_v6, %v6458_v34  ;;  %v5337_v37 = vmul.f32 %v5309_v6, %v6459_v36  ;;  %v5341_v7 = vmul.f32 %v5309_v6, %v6460_v44  ;;  %v6468_v34 = vld [vmem:[#allocation122_spill] sm:$0xff]  ;;  %v6469_v44 = vld [vmem:[#allocation121_spill] sm:$0xff] }
 0x432   :  { %v5345_v42 = vmul.f32 %v5309_v6, %v6461_v27  ;;  %v5349_v47 = vmul.f32 %v5309_v6, %v6462_v63  ;;  %v5353_v38 = vmul.f32 %v5309_v6, %v6463_v31  ;;  %v5357_v0 = vmul.f32 %v5309_v6, %v6465_v53  ;;  %v6470_v63 = vld [vmem:[#allocation123_spill] sm:$0xff] }
 0x433   :  { %v5361_v2 = vmul.f32 %v5309_v6, %v6467_v13  ;;  %v5365_v36 = vmul.f32 %v5309_v6, %v6468_v34  ;;  %v5369_v27 = vmul.f32 %v5309_v6, %v6469_v44  ;;  %v5373_v31 = vmul.f32 %v5309_v6, %v6470_v63 }
 0x434   :  { %6464 = vst [vmem:[#allocation104_spill] sm:$0xff] %v5353_v38  ;;  %6466 = vst [vmem:[#allocation105_spill] sm:$0xff] %v5357_v0  ;;  %v6471_v38 = vld [vmem:[#allocation35_spill] sm:$0xff]  ;;  %v6472_v0 = vld [vmem:[#allocation36_spill] sm:$0xff]  ;;  %v5385_v34 = vmul.f32 %v5309_v6, %v4844_v26  ;;  %v5389_v44 = vmul.f32 %v5309_v6, %v4856_v58  ;;  %v5393_v63 = vmul.f32 %v5309_v6, %v4866_v21 }
 0x435   :  { %v5377_v53 = vmul.f32 %v5309_v6, %v6471_v38  ;;  %v5381_v13 = vmul.f32 %v5309_v6, %v6472_v0  ;;  %v5397_v38 = vmul.f32 %v5309_v6, %v4879_v45  ;;  %v5401_v0 = vmul.f32 %v5309_v6, %v4888_v1 }
 0x436   :  { %v5405_v26 = vmul.f32 %v5309_v6, %v4901_v56  ;;  %v5409_v58 = vmul.f32 %v5309_v6, %v4908_v62  ;;  %v5413_v21 = vmul.f32 %v5309_v6, %v4924_v33  ;;  %v5417_v45 = vmul.f32 %v5309_v6, %v4935_v24 }
 0x437   :  { %v5421_v1 = vmul.f32 %v5309_v6, %v4952_v41  ;;  %v5425_v56 = vmul.f32 %v5309_v6, %v4964_v39  ;;  %v5429_v62 = vmul.f32 %v5309_v6, %v4976_v10  ;;  %v5433_v33 = vmul.f32 %v5309_v6, %v4968_v11 }
 0x438   :  { %v5437_v24 = vmul.f32 %v5309_v6, %v4980_v46  ;;  %v5441_v41 = vmul.f32 %v5309_v6, %v5107_v17  ;;  %v5445_v39 = vmul.f32 %v5309_v6, %v5111_v18  ;;  %v5449_v10 = vmul.f32 %v5309_v6, %v5119_v57 }
 0x439   :  { %v5453_v11 = vmul.f32 %v5309_v6, %v5125_v32  ;;  %v5457_v46 = vmul.f32 %v5309_v6, %v5131_v40  ;;  %v5461_v17 = vmul.f32 %v5309_v6, %v5139_v28  ;;  %v5465_v18 = vmul.f32 %v5309_v6, %v5143_v3 }
 0x43a   :  { %v5469_v57 = vmul.f32 %v5309_v6, %v5151_v25  ;;  %v5473_v32 = vmul.f32 %v5309_v6, %v5155_v15  ;;  %v5477_v40 = vmul.f32 %v5309_v6, %v5163_v61  ;;  %v5481_v28 = vmul.f32 %v5309_v6, %v5167_v22 }
 0x43b   :  { %v5485_v3 = vmul.f32 %v5309_v6, %v5175_v12  ;;  %v5489_v25 = vmul.f32 %v5309_v6, %v5182_v5  ;;  %v5493_v15 = vmul.f32 %v5309_v6, %v5191_v35  ;;  %v5497_v61 = vmul.f32 %v5309_v6, %v5185_v29 }
 0x43c   :  { %v5501_v22 = vmul.f32 %v5309_v6, %v5194_v8  ;;  %v5505_v12 = vmul.f32 %v5309_v6, %v5208_v49  ;;  %v5509_v5 = vmul.f32 %v5309_v6, %v5211_v30  ;;  %v5513_v35 = vmul.f32 %v5309_v6, %v5216_v14 }
 0x43d   :  { %6473 = vst [vmem:[#allocation106_spill] sm:$0xff] %v5485_v3  ;;  %6474 = vst [vmem:[#allocation3_spill] sm:$0xff] %v5489_v25  ;;  %v5517_v29 = vmul.f32 %v5309_v6, %v5225_v19  ;;  %v5521_v8 = vmul.f32 %v5309_v6, %v5228_v59  ;;  %v5525_v49 = vmul.f32 %v5309_v6, %v5236_v60 }
 0x43e   :  { %6475 = vst [vmem:[#allocation4_spill] sm:$0xff] %v5493_v15  ;;  %6476 = vst [vmem:[#allocation5_spill] sm:$0xff] %v5497_v61  ;;  %v5529_v30 = vmul.f32 %v5309_v6, %v5241_v43  ;;  %v5533_v14 = vmul.f32 %v5309_v6, %v5249_v52  ;;  %v5539_v19 = vmul.f32 %v5309_v6, %v5252_v23  ;;  %v6490_v52 = vld [vmem:[#allocation37_spill] sm:$0xff] }
 0x43f   :  { %6477 = vst [vmem:[#allocation6_spill] sm:$0xff] %v5501_v22  ;;  %6478 = vst [vmem:[#allocation7_spill] sm:$0xff] %v5505_v12  ;;  %v5543_v59 = vmul.f32 %v5309_v6, %v5260_v48  ;;  %v5547_v60 = vmul.f32 %v5309_v6, %v5265_v51  ;;  %v5551_v43 = vmul.f32 %v5309_v6, %v5273_v9 }
 0x440   :  { %6479 = vst [vmem:[#allocation8_spill] sm:$0xff] %v5509_v5  ;;  %6480 = vst [vmem:[#allocation9_spill] sm:$0xff] %v5513_v35  ;;  %v5535_v35 = vpop.permute.xlu0 %2584 }
 0x441   :  { %6481 = vst [vmem:[#allocation10_spill] sm:$0xff] %v5517_v29  ;;  %6482 = vst [vmem:[#allocation11_spill] sm:$0xff] %v5521_v8  ;;  %v2587_v9 = vadd.f32 %v5535_v35, %v5313_v4  ;;  %v2594_v4 = vadd.f32 %v5535_v35, %v5341_v7  ;;  %v2601_v7 = vadd.f32 %v5535_v35, %v5369_v27 }
 0x442   :  { %6483 = vst [vmem:[#allocation12_spill] sm:$0xff] %v5525_v49  ;;  %6484 = vst [vmem:[#allocation15_spill] sm:$0xff] %v5529_v30  ;;  %v6492_v30 = vld [vmem:[#allocation72_spill] sm:$0xff] }
 0x443   :  { %6485 = vst [vmem:[#allocation16_spill] sm:$0xff] %v5533_v14  ;;  %6486 = vst [vmem:[#allocation17_spill] sm:$0xff] %v5539_v19  ;;  %v5555_v14 = vmul.f32 %v5309_v6, %v6490_v52  ;;  %v5559_v23 = vmul.f32 %v5309_v6, %v6492_v30  ;;  %v6494_v19 = vld [vmem:[#allocation70_spill] sm:$0xff]  ;;  %v2589_v52 = vadd.f32 %v5535_v35, %v5321_v20  ;;  %v2617_v61 = vmax.f32 %v2601_v7, 0.0 }
 0x444   :  { %6487 = vst [vmem:[#allocation18_spill] sm:$0xff] %v5543_v59  ;;  %6488 = vst [vmem:[#allocation19_spill] sm:$0xff] %v5547_v60  ;;  %v5563_v48 = vmul.f32 %v5309_v6, %v6494_v19  ;;  %v6496_v59 = vld [vmem:[#allocation80_spill] sm:$0xff]  ;;  %v2590_v30 = vadd.f32 %v5535_v35, %v5325_v55  ;;  %v2591_v19 = vadd.f32 %v5535_v35, %v5329_v16 }
 0x445   :  { %6489 = vst [vmem:[#allocation20_spill] sm:$0xff] %v5551_v43  ;;  %6491 = vst [vmem:[#allocation21_spill] sm:$0xff] %v5555_v14  ;;  %v5567_v51 = vmul.f32 %v5309_v6, %v6496_v59  ;;  %v2588_v43 = vadd.f32 %v5535_v35, %v5317_v54  ;;  %v2593_v6 = vadd.f32 %v5535_v35, %v5337_v37  ;;  %v6498_v59 = vld [vmem:[#allocation104_spill] sm:$0xff]  ;;  %v2605_v14 = vmax.f32 %v2589_v52, 0.0 }
 0x446   :  { %6493 = vst [vmem:[#allocation22_spill] sm:$0xff] %v5559_v23  ;;  %6495 = vst [vmem:[#allocation23_spill] sm:$0xff] %v5563_v48  ;;  %v2592_v48 = vadd.f32 %v5535_v35, %v5333_v50  ;;  %v2595_v54 = vadd.f32 %v5535_v35, %v5345_v42  ;;  %v2596_v20 = vadd.f32 %v5535_v35, %v5349_v47  ;;  %v2603_v23 = vmax.f32 %v2587_v9, 0.0 }
 0x447   :  { %6497 = vst [vmem:[#allocation24_spill] sm:$0xff] %v5567_v51  ;;  %v2597_v55 = vadd.f32 %v5535_v35, %v6498_v59  ;;  %v6499_v51 = vld [vmem:[#allocation105_spill] sm:$0xff]  ;;  %v2599_v50 = vadd.f32 %v5535_v35, %v5361_v2  ;;  %v2600_v37 = vadd.f32 %v5535_v35, %v5365_v36  ;;  %v2602_v42 = vadd.f32 %v5535_v35, %v5373_v31 }
 0x448   :  { %v2598_v16 = vadd.f32 %v5535_v35, %v6499_v51  ;;  %v2604_v47 = vmax.f32 %v2588_v43, 0.0  ;;  %v2606_v60 = vmax.f32 %v2590_v30, 0.0  ;;  %v2607_v59 = vmax.f32 %v2591_v19, 0.0 }
 0x449   :  { %v2608_v49 = vmax.f32 %v2592_v48, 0.0  ;;  %v2609_v8 = vmax.f32 %v2593_v6, 0.0  ;;  %v2610_v51 = vmax.f32 %v2594_v4, 0.0  ;;  %v2611_v29 = vmax.f32 %v2595_v54, 0.0 }
 0x44a   :  { %v2612_v5 = vmax.f32 %v2596_v20, 0.0  ;;  %v2613_v2 = vmax.f32 %v2597_v55, 0.0  ;;  %v2614_v12 = vmax.f32 %v2598_v16, 0.0  ;;  %v2615_v22 = vmax.f32 %v2599_v50, 0.0 }
 0x44b   :  { %v2616_v36 = vmax.f32 %v2600_v37, 0.0  ;;  %v2618_v15 = vmax.f32 %v2602_v42, 0.0  ;;  %v3319_v27 = vpack.c.bf16 %v2604_v47, %v2603_v23  ;;  %v3320_v25 = vpack.c.bf16 %v2606_v60, %v2605_v14 }
 0x44c   :  { %v3321_v3 = vpack.c.bf16 %v2608_v49, %v2607_v59  ;;  %v3322_v31 = vpack.c.bf16 %v2610_v51, %v2609_v8  ;;  %v3323_v9 = vpack.c.bf16 %v2612_v5, %v2611_v29  ;;  %v3324_v43 = vpack.c.bf16 %v2614_v12, %v2613_v2 }
 0x44d   :  { %v3325_v52 = vpack.c.bf16 %v2616_v36, %v2615_v22  ;;  %v3326_v30 = vpack.c.bf16 %v2618_v15, %v2617_v61  ;;  %2683 = vst [vmem:[%s5798_s5] sm:$0xff] %v3319_v27  ;;  %2684 = vst [vmem:[%s5798_s5 + $0x8] sm:$0xff] %v3320_v25  ;;  %v2723_v22 = vadd.f32 %v5377_v53, %v5535_v35 }
 0x44e   :  { %2685 = vst [vmem:[%s5798_s5 + $0x10] sm:$0xff] %v3321_v3  ;;  %2686 = vst [vmem:[%s5798_s5 + $0x18] sm:$0xff] %v3322_v31  ;;  %v2724_v15 = vadd.f32 %v5381_v13, %v5535_v35  ;;  %v2725_v61 = vadd.f32 %v5385_v34, %v5535_v35  ;;  %v2726_v25 = vadd.f32 %v5389_v44, %v5535_v35 }
 0x44f   :  { %2687 = vst [vmem:[%s5798_s5 + $0x20] sm:$0xff] %v3323_v9  ;;  %2688 = vst [vmem:[%s5798_s5 + $0x28] sm:$0xff] %v3324_v43  ;;  %v2727_v53 = vadd.f32 %v5393_v63, %v5535_v35  ;;  %v2728_v13 = vadd.f32 %v5397_v38, %v5535_v35  ;;  %v2729_v34 = vadd.f32 %v5401_v0, %v5535_v35  ;;  %v2739_v29 = vmax.f32 %v2723_v22, 0.0 }
 0x450   :  { %2689 = vst [vmem:[%s5798_s5 + $0x30] sm:$0xff] %v3325_v52  ;;  %2690 = vst [vmem:[%s5798_s5 + $0x38] sm:$0xff] %v3326_v30  ;;  %v2730_v44 = vadd.f32 %v5405_v26, %v5535_v35  ;;  %v2731_v3 = vadd.f32 %v5409_v58, %v5535_v35  ;;  %v2732_v12 = vadd.f32 %v5413_v21, %v5535_v35  ;;  %v2740_v21 = vmax.f32 %v2724_v15, 0.0 }
 0x451   :  { %v2733_v5 = vadd.f32 %v5417_v45, %v5535_v35  ;;  %v2734_v63 = vadd.f32 %v5421_v1, %v5535_v35  ;;  %v2735_v38 = vadd.f32 %v5425_v56, %v5535_v35  ;;  %v2736_v0 = vadd.f32 %v5429_v62, %v5535_v35 }
 0x452   :  { %v2737_v26 = vadd.f32 %v5433_v33, %v5535_v35  ;;  %v2738_v58 = vadd.f32 %v5437_v24, %v5535_v35  ;;  %v2741_v8 = vmax.f32 %v2725_v61, 0.0  ;;  %v2742_v49 = vmax.f32 %v2726_v25, 0.0 }
 0x453   :  { %v2743_v45 = vmax.f32 %v2727_v53, 0.0  ;;  %v2744_v14 = vmax.f32 %v2728_v13, 0.0  ;;  %v2745_v60 = vmax.f32 %v2729_v34, 0.0  ;;  %v2746_v1 = vmax.f32 %v2730_v44, 0.0 }
 0x454   :  { %v2747_v23 = vmax.f32 %v2731_v3, 0.0  ;;  %v2748_v48 = vmax.f32 %v2732_v12, 0.0  ;;  %v2749_v56 = vmax.f32 %v2733_v5, 0.0  ;;  %v2750_v19 = vmax.f32 %v2734_v63, 0.0 }
 0x455   :  { %v2751_v6 = vmax.f32 %v2735_v38, 0.0  ;;  %v2752_v62 = vmax.f32 %v2736_v0, 0.0  ;;  %v2753_v4 = vmax.f32 %v2737_v26, 0.0  ;;  %v2754_v54 = vmax.f32 %v2738_v58, 0.0 }
 0x456   :  { %v3327_v33 = vpack.c.bf16 %v2740_v21, %v2739_v29  ;;  %v3328_v20 = vpack.c.bf16 %v2742_v49, %v2741_v8  ;;  %v3329_v55 = vpack.c.bf16 %v2744_v14, %v2743_v45  ;;  %v3330_v24 = vpack.c.bf16 %v2746_v1, %v2745_v60  ;;  %v6505_v60 = vld [vmem:[#allocation7_spill] sm:$0xff] }
 0x457   :  { %v3331_v16 = vpack.c.bf16 %v2748_v48, %v2747_v23  ;;  %v3332_v50 = vpack.c.bf16 %v2750_v19, %v2749_v56  ;;  %v3333_v37 = vpack.c.bf16 %v2752_v62, %v2751_v6  ;;  %v3334_v7 = vpack.c.bf16 %v2754_v54, %v2753_v4  ;;  %v6506_v23 = vld [vmem:[#allocation8_spill] sm:$0xff]  ;;  %v6507_v56 = vld [vmem:[#allocation9_spill] sm:$0xff]  ;;  %v6508_v6 = vld [vmem:[#allocation10_spill] sm:$0xff] }
 0x458   :  { %2819 = vst [vmem:[%s5798_s5 + $0x40] sm:$0xff] %v3327_v33  ;;  %2820 = vst [vmem:[%s5798_s5 + $0x48] sm:$0xff] %v3328_v20  ;;  %v2859_v42 = vadd.f32 %v5441_v41, %v5535_v35  ;;  %v2860_v47 = vadd.f32 %v5445_v39, %v5535_v35  ;;  %v2861_v59 = vadd.f32 %v5449_v10, %v5535_v35  ;;  %v6509_v4 = vld [vmem:[#allocation11_spill] sm:$0xff]  ;;  %v6510_v33 = vld [vmem:[#allocation12_spill] sm:$0xff] }
 0x459   :  { %2821 = vst [vmem:[%s5798_s5 + $0x50] sm:$0xff] %v3329_v55  ;;  %2822 = vst [vmem:[%s5798_s5 + $0x58] sm:$0xff] %v3330_v24  ;;  %v2862_v51 = vadd.f32 %v5453_v11, %v5535_v35  ;;  %v2863_v41 = vadd.f32 %v5457_v46, %v5535_v35  ;;  %v2864_v39 = vadd.f32 %v5461_v17, %v5535_v35  ;;  %v6500_v46 = vld [vmem:[#allocation106_spill] sm:$0xff]  ;;  %v6501_v17 = vld [vmem:[#allocation3_spill] sm:$0xff] }
 0x45a   :  { %2823 = vst [vmem:[%s5798_s5 + $0x60] sm:$0xff] %v3331_v16  ;;  %2824 = vst [vmem:[%s5798_s5 + $0x68] sm:$0xff] %v3332_v50  ;;  %v2865_v10 = vadd.f32 %v5465_v18, %v5535_v35  ;;  %v2866_v11 = vadd.f32 %v5469_v57, %v5535_v35  ;;  %v2867_v2 = vadd.f32 %v5473_v32, %v5535_v35  ;;  %v6502_v18 = vld [vmem:[#allocation4_spill] sm:$0xff]  ;;  %v6503_v57 = vld [vmem:[#allocation5_spill] sm:$0xff]  ;;  %v2875_v22 = vmax.f32 %v2859_v42, 0.0 }
 0x45b   :  { %2825 = vst [vmem:[%s5798_s5 + $0x70] sm:$0xff] %v3333_v37  ;;  %2826 = vst [vmem:[%s5798_s5 + $0x78] sm:$0xff] %v3334_v7  ;;  %v2868_v36 = vadd.f32 %v5477_v40, %v5535_v35  ;;  %v2869_v27 = vadd.f32 %v5481_v28, %v5535_v35  ;;  %v2870_v31 = vadd.f32 %v6500_v46, %v5535_v35  ;;  %v6504_v32 = vld [vmem:[#allocation6_spill] sm:$0xff]  ;;  %v2876_v40 = vmax.f32 %v2860_v47, 0.0  ;;  %v6511_v55 = vld [vmem:[#allocation15_spill] sm:$0xff] }
 0x45c   :  { %v2871_v9 = vadd.f32 %v6501_v17, %v5535_v35  ;;  %v2872_v43 = vadd.f32 %v6502_v18, %v5535_v35  ;;  %v2873_v52 = vadd.f32 %v6503_v57, %v5535_v35  ;;  %v2874_v30 = vadd.f32 %v6504_v32, %v5535_v35  ;;  %v6512_v16 = vld [vmem:[#allocation16_spill] sm:$0xff]  ;;  %v6513_v37 = vld [vmem:[#allocation17_spill] sm:$0xff]  ;;  %v6514_v42 = vld [vmem:[#allocation18_spill] sm:$0xff] }
 0x45d   :  { %v2877_v15 = vmax.f32 %v2861_v59, 0.0  ;;  %v2878_v61 = vmax.f32 %v2862_v51, 0.0  ;;  %v2879_v28 = vmax.f32 %v2863_v41, 0.0  ;;  %v2880_v25 = vmax.f32 %v2864_v39, 0.0  ;;  %v6515_v59 = vld [vmem:[#allocation19_spill] sm:$0xff]  ;;  %v6516_v41 = vld [vmem:[#allocation20_spill] sm:$0xff] }
 0x45e   :  { %v2881_v53 = vmax.f32 %v2865_v10, 0.0  ;;  %v2882_v13 = vmax.f32 %v2866_v11, 0.0  ;;  %v2883_v34 = vmax.f32 %v2867_v2, 0.0  ;;  %v2884_v44 = vmax.f32 %v2868_v36, 0.0  ;;  %v6517_v10 = vld [vmem:[#allocation21_spill] sm:$0xff]  ;;  %v6518_v2 = vld [vmem:[#allocation22_spill] sm:$0xff] }
 0x45f   :  { %v2885_v3 = vmax.f32 %v2869_v27, 0.0  ;;  %v2886_v12 = vmax.f32 %v2870_v31, 0.0  ;;  %v2887_v5 = vmax.f32 %v2871_v9, 0.0  ;;  %v2888_v63 = vmax.f32 %v2872_v43, 0.0  ;;  %v6519_v27 = vld [vmem:[#allocation23_spill] sm:$0xff]  ;;  %v6520_v31 = vld [vmem:[#allocation24_spill] sm:$0xff] }
 0x460   :  { %v2889_v38 = vmax.f32 %v2873_v52, 0.0  ;;  %v2890_v0 = vmax.f32 %v2874_v30, 0.0  ;;  %v3335_v26 = vpack.c.bf16 %v2876_v40, %v2875_v22  ;;  %v3336_v58 = vpack.c.bf16 %v2878_v61, %v2877_v15 }
 0x461   :  { %v3337_v29 = vpack.c.bf16 %v2880_v25, %v2879_v28  ;;  %v3338_v21 = vpack.c.bf16 %v2882_v13, %v2881_v53  ;;  %v3339_v8 = vpack.c.bf16 %v2884_v44, %v2883_v34  ;;  %v3340_v49 = vpack.c.bf16 %v2886_v12, %v2885_v3 }
 0x462   :  { %v3341_v45 = vpack.c.bf16 %v2888_v63, %v2887_v5  ;;  %v3342_v14 = vpack.c.bf16 %v2890_v0, %v2889_v38  ;;  %2955 = vst [vmem:[%s5798_s5 + $0x80] sm:$0xff] %v3335_v26  ;;  %2956 = vst [vmem:[%s5798_s5 + $0x88] sm:$0xff] %v3336_v58  ;;  %v2995_v1 = vadd.f32 %v6505_v60, %v5535_v35 }
 0x463   :  { %2957 = vst [vmem:[%s5798_s5 + $0x90] sm:$0xff] %v3337_v29  ;;  %2958 = vst [vmem:[%s5798_s5 + $0x98] sm:$0xff] %v3338_v21  ;;  %v2996_v48 = vadd.f32 %v6506_v23, %v5535_v35  ;;  %v2997_v19 = vadd.f32 %v6507_v56, %v5535_v35  ;;  %v2998_v62 = vadd.f32 %v6508_v6, %v5535_v35 }
 0x464   :  { %2959 = vst [vmem:[%s5798_s5 + $0xa0] sm:$0xff] %v3339_v8  ;;  %2960 = vst [vmem:[%s5798_s5 + $0xa8] sm:$0xff] %v3340_v49  ;;  %v2999_v54 = vadd.f32 %v6509_v4, %v5535_v35  ;;  %v3000_v20 = vadd.f32 %v6510_v33, %v5535_v35  ;;  %v3001_v24 = vadd.f32 %v6511_v55, %v5535_v35  ;;  %v3011_v9 = vmax.f32 %v2995_v1, 0.0 }
 0x465   :  { %2961 = vst [vmem:[%s5798_s5 + $0xb0] sm:$0xff] %v3341_v45  ;;  %2962 = vst [vmem:[%s5798_s5 + $0xb8] sm:$0xff] %v3342_v14  ;;  %v3002_v50 = vadd.f32 %v6512_v16, %v5535_v35  ;;  %v3003_v7 = vadd.f32 %v6513_v37, %v5535_v35  ;;  %v3004_v47 = vadd.f32 %v6514_v42, %v5535_v35  ;;  %v3012_v18 = vmax.f32 %v2996_v48, 0.0 }
 0x466   :  { %v3005_v51 = vadd.f32 %v6515_v59, %v5535_v35  ;;  %v3006_v39 = vadd.f32 %v6516_v41, %v5535_v35  ;;  %v3007_v11 = vadd.f32 %v6517_v10, %v5535_v35  ;;  %v3008_v36 = vadd.f32 %v6518_v2, %v5535_v35 }
 0x467   :  { %v3009_v46 = vadd.f32 %v6519_v27, %v5535_v35  ;;  %v3010_v17 = vadd.f32 %v6520_v31, %v5535_v35  ;;  %v3013_v43 = vmax.f32 %v2997_v19, 0.0  ;;  %v3014_v57 = vmax.f32 %v2998_v62, 0.0 }
 0x468   :  { %v3015_v52 = vmax.f32 %v2999_v54, 0.0  ;;  %v3016_v32 = vmax.f32 %v3000_v20, 0.0  ;;  %v3017_v30 = vmax.f32 %v3001_v24, 0.0  ;;  %v3018_v22 = vmax.f32 %v3002_v50, 0.0 }
 0x469   :  { %v3019_v40 = vmax.f32 %v3003_v7, 0.0  ;;  %v3020_v15 = vmax.f32 %v3004_v47, 0.0  ;;  %v3021_v61 = vmax.f32 %v3005_v51, 0.0  ;;  %v3022_v28 = vmax.f32 %v3006_v39, 0.0 }
 0x46a   :  { %v3023_v25 = vmax.f32 %v3007_v11, 0.0  ;;  %v3024_v53 = vmax.f32 %v3008_v36, 0.0  ;;  %v3025_v13 = vmax.f32 %v3009_v46, 0.0  ;;  %v3026_v34 = vmax.f32 %v3010_v17, 0.0 }
 0x46b   :  { %v3343_v44 = vpack.c.bf16 %v3012_v18, %v3011_v9  ;;  %v3344_v3 = vpack.c.bf16 %v3014_v57, %v3013_v43  ;;  %v3345_v12 = vpack.c.bf16 %v3016_v32, %v3015_v52  ;;  %v3346_v35 = vpack.c.bf16 %v3018_v22, %v3017_v30 }
 0x46c   :  { %v3347_v5 = vpack.c.bf16 %v3020_v15, %v3019_v40  ;;  %v3348_v63 = vpack.c.bf16 %v3022_v28, %v3021_v61  ;;  %v3349_v38 = vpack.c.bf16 %v3024_v53, %v3023_v25  ;;  %v3350_v0 = vpack.c.bf16 %v3026_v34, %v3025_v13 }
 0x46d   :  { %3091 = vst [vmem:[%s5798_s5 + $0xc0] sm:$0xff] %v3343_v44  ;;  %3092 = vst [vmem:[%s5798_s5 + $0xc8] sm:$0xff] %v3344_v3 }
 0x46e   :  { %3093 = vst [vmem:[%s5798_s5 + $0xd0] sm:$0xff] %v3345_v12  ;;  %3094 = vst [vmem:[%s5798_s5 + $0xd8] sm:$0xff] %v3346_v35 }
 0x46f   :  { %3095 = vst [vmem:[%s5798_s5 + $0xe0] sm:$0xff] %v3347_v5  ;;  %3096 = vst [vmem:[%s5798_s5 + $0xe8] sm:$0xff] %v3348_v63 }
 0x470   :  { %3097 = vst [vmem:[%s5798_s5 + $0xf0] sm:$0xff] %v3349_v38  ;;  %3098 = vst [vmem:[%s5798_s5 + $0xf8] sm:$0xff] %v3350_v0 }

// kernel: vae_forward.13
= control target key start
LH: loop header
LB: loop body
LE: loop exit
PB: predicated region body
PF: predicated region fallthrough
CT: control target
= control target key end

     0   :  { %s2655_s12 = smov 0   ;;  %s2657_s13 = smov 0   ;;  %s3286_s0 = inlined_call_operand.vmem [shape: bf16[4,72], index: 0, kind: input, shape index: {}]   ;;  %s3287_s1 = inlined_call_operand.vmem [shape: bf16[72,8192], index: 1, kind: input, shape index: {}]   ;;  %s3288_s2 = inlined_call_operand.vmem [shape: f32[4,1], index: 2, kind: input, shape index: {}]   ;;  %s3289_s3 = inlined_call_operand.vmem [shape: f32[4,8192], index: 3, kind: output, shape index: {}]  }
   0x1   :  { %s2659_s14 = smov 0  }
   0x2 LB: > { %s2282_s15 = sadd.s32 4294967295, %s2632_s14   ;;  %s2672_s16 = sadd.s32 1, %s2632_s14   ;;  %s2632_s14 = sphi %s2659_s14, %s3292_s14   ;;  %s2628_s13 = sphi %s2657_s13, %s3291_s13   ;;  %s2624_s12 = sphi %s2655_s12, %s3290_s12  }
   0x3   : > { %s38_s17 = ssub.s32 %s2632_s14, %s2672_s16  ;;  %s41_s18 = sadd.s32 1, %s2628_s13 }
   0x4   : > { %p39_p0 = scmp.eq.s32.totalorder %s38_s17, 0  ;;  %p48_p1 = scmp.ne.s32.totalorder %s2628_s13, %s2624_s12 }
   0x5   : > { %p49_p2 = scmp.eq.s32.totalorder %s2632_s14, 0  ;;  %p2285_p4 = scmp.ge.s32.totalorder %s2632_s14, 2 }
   0x6   : > { %s2681_s19 = scalar_select %p39_p0, %s2628_s13, %s41_s18  }
   0x7   : > { %p50_p3 = por %p49_p2, %p48_p1  ;;  %127 = sbr.rel (%p2285_p4) target bundleno = 89 (0x59), region = 24 }
   0xc   : > { %130 = sbr.rel (!%p50_p3) target bundleno = 89 (0x59), region = 28  ;;  %s132_s20 = sand.u32 (%p50_p3), 1, %s2628_s13  }
   0xd   : > { %s2485_s21 = sshll.u32 (%p50_p3), %s2632_s14, 7  ;;  %s2486_s22 = smul.u32 (%p50_p3), 1152, %s132_s20 }
   0xe   : > { %s2689_s25 = scalar_lea.vmem (%p50_p3), %s3287_s1, %s2485_s21 }
   0xf   : > { %v150_v0 = vld [vmem:[%s2689_s25] sm:$0xff] (%p50_p3)  ;;  %v152_v1 = vld [vmem:[%s2689_s25 + $0x8] sm:$0xff] (%p50_p3)  ;;  %v154_v2 = vld [vmem:[%s2689_s25 + $0x10] sm:$0xff] (%p50_p3)  ;;  %s2697_s26 = scalar_lea.vmem (%p50_p3), [#allocation2], %s2486_s22 }
  0x10   : > { %v156_v3 = vld [vmem:[%s2689_s25 + $0x18] sm:$0xff] (%p50_p3)  ;;  %v158_v4 = vld [vmem:[%s2689_s25 + $0x20] sm:$0xff] (%p50_p3)  ;;  %v160_v5 = vld [vmem:[%s2689_s25 + $0x28] sm:$0xff] (%p50_p3)  ;;  %151 = vst [vmem:[%s2697_s26] sm:$0xff] (%p50_p3), %v150_v0 }
  0x11   : > { %153 = vst [vmem:[%s2697_s26 + $0x8] sm:$0xff] %v152_v1  ;;  %155 = vst [vmem:[%s2697_s26 + $0x10] sm:$0xff] %v154_v2  ;;  %v162_v6 = vld [vmem:[%s2689_s25 + $0x30] sm:$0xff]  ;;  %v164_v7 = vld [vmem:[%s2689_s25 + $0x38] sm:$0xff] }
  0x12   : > { %157 = vst [vmem:[%s2697_s26 + $0x18] sm:$0xff] %v156_v3  ;;  %159 = vst [vmem:[%s2697_s26 + $0x20] sm:$0xff] %v158_v4  ;;  %v166_v8 = vld [vmem:[%s2689_s25 + $0x40] sm:$0xff]  ;;  %v168_v9 = vld [vmem:[%s2689_s25 + $0x48] sm:$0xff] }
  0x13   : > { %161 = vst [vmem:[%s2697_s26 + $0x28] sm:$0xff] %v160_v5  ;;  %163 = vst [vmem:[%s2697_s26 + $0x30] sm:$0xff] %v162_v6  ;;  %v170_v10 = vld [vmem:[%s2689_s25 + $0x50] sm:$0xff]  ;;  %v172_v11 = vld [vmem:[%s2689_s25 + $0x58] sm:$0xff] }
  0x14   : > { %165 = vst [vmem:[%s2697_s26 + $0x38] sm:$0xff] %v164_v7  ;;  %167 = vst [vmem:[%s2697_s26 + $0x40] sm:$0xff] %v166_v8  ;;  %v174_v12 = vld [vmem:[%s2689_s25 + $0x60] sm:$0xff]  ;;  %v176_v13 = vld [vmem:[%s2689_s25 + $0x68] sm:$0xff] }
  0x15   : > { %169 = vst [vmem:[%s2697_s26 + $0x48] sm:$0xff] %v168_v9  ;;  %171 = vst [vmem:[%s2697_s26 + $0x50] sm:$0xff] %v170_v10  ;;  %v178_v14 = vld [vmem:[%s2689_s25 + $0x70] sm:$0xff]  ;;  %v180_v15 = vld [vmem:[%s2689_s25 + $0x78] sm:$0xff] }
  0x16   : > { %173 = vst [vmem:[%s2697_s26 + $0x58] sm:$0xff] %v172_v11  ;;  %175 = vst [vmem:[%s2697_s26 + $0x60] sm:$0xff] %v174_v12  ;;  %v182_v16 = vld [vmem:[%s2689_s25 + $0x100] sm:$0xff]  ;;  %v184_v17 = vld [vmem:[%s2689_s25 + $0x108] sm:$0xff] }
  0x17   : > { %177 = vst [vmem:[%s2697_s26 + $0x68] sm:$0xff] %v176_v13  ;;  %179 = vst [vmem:[%s2697_s26 + $0x70] sm:$0xff] %v178_v14  ;;  %v186_v18 = vld [vmem:[%s2689_s25 + $0x110] sm:$0xff]  ;;  %v188_v19 = vld [vmem:[%s2689_s25 + $0x118] sm:$0xff] }
  0x18   : > { %181 = vst [vmem:[%s2697_s26 + $0x78] sm:$0xff] %v180_v15  ;;  %183 = vst [vmem:[%s2697_s26 + $0x80] sm:$0xff] %v182_v16  ;;  %v190_v20 = vld [vmem:[%s2689_s25 + $0x120] sm:$0xff]  ;;  %v192_v21 = vld [vmem:[%s2689_s25 + $0x128] sm:$0xff] }
  0x19   : > { %185 = vst [vmem:[%s2697_s26 + $0x88] sm:$0xff] %v184_v17  ;;  %187 = vst [vmem:[%s2697_s26 + $0x90] sm:$0xff] %v186_v18  ;;  %v194_v22 = vld [vmem:[%s2689_s25 + $0x130] sm:$0xff]  ;;  %v196_v23 = vld [vmem:[%s2689_s25 + $0x138] sm:$0xff] }
  0x1a   : > { %189 = vst [vmem:[%s2697_s26 + $0x98] sm:$0xff] %v188_v19  ;;  %191 = vst [vmem:[%s2697_s26 + $0xa0] sm:$0xff] %v190_v20  ;;  %v198_v24 = vld [vmem:[%s2689_s25 + $0x140] sm:$0xff]  ;;  %v200_v25 = vld [vmem:[%s2689_s25 + $0x148] sm:$0xff] }
  0x1b   : > { %193 = vst [vmem:[%s2697_s26 + $0xa8] sm:$0xff] %v192_v21  ;;  %195 = vst [vmem:[%s2697_s26 + $0xb0] sm:$0xff] %v194_v22  ;;  %v202_v26 = vld [vmem:[%s2689_s25 + $0x150] sm:$0xff]  ;;  %v204_v27 = vld [vmem:[%s2689_s25 + $0x158] sm:$0xff] }
  0x1c   : > { %197 = vst [vmem:[%s2697_s26 + $0xb8] sm:$0xff] %v196_v23  ;;  %199 = vst [vmem:[%s2697_s26 + $0xc0] sm:$0xff] %v198_v24  ;;  %v206_v28 = vld [vmem:[%s2689_s25 + $0x160] sm:$0xff]  ;;  %v208_v29 = vld [vmem:[%s2689_s25 + $0x168] sm:$0xff] }
  0x1d   : > { %201 = vst [vmem:[%s2697_s26 + $0xc8] sm:$0xff] %v200_v25  ;;  %203 = vst [vmem:[%s2697_s26 + $0xd0] sm:$0xff] %v202_v26  ;;  %v210_v30 = vld [vmem:[%s2689_s25 + $0x170] sm:$0xff]  ;;  %v212_v31 = vld [vmem:[%s2689_s25 + $0x178] sm:$0xff] }
  0x1e   : > { %205 = vst [vmem:[%s2697_s26 + $0xd8] sm:$0xff] %v204_v27  ;;  %207 = vst [vmem:[%s2697_s26 + $0xe0] sm:$0xff] %v206_v28  ;;  %v214_v32 = vld [vmem:[%s2689_s25 + $0x200] sm:$0xff]  ;;  %v216_v33 = vld [vmem:[%s2689_s25 + $0x208] sm:$0xff] }
  0x1f   : > { %209 = vst [vmem:[%s2697_s26 + $0xe8] sm:$0xff] %v208_v29  ;;  %211 = vst [vmem:[%s2697_s26 + $0xf0] sm:$0xff] %v210_v30  ;;  %v218_v34 = vld [vmem:[%s2689_s25 + $0x210] sm:$0xff]  ;;  %v220_v35 = vld [vmem:[%s2689_s25 + $0x218] sm:$0xff] }
  0x20   : > { %213 = vst [vmem:[%s2697_s26 + $0xf8] sm:$0xff] %v212_v31  ;;  %215 = vst [vmem:[%s2697_s26 + $0x100] sm:$0xff] %v214_v32  ;;  %v222_v36 = vld [vmem:[%s2689_s25 + $0x220] sm:$0xff]  ;;  %v224_v37 = vld [vmem:[%s2689_s25 + $0x228] sm:$0xff] }
  0x21   : > { %217 = vst [vmem:[%s2697_s26 + $0x108] sm:$0xff] %v216_v33  ;;  %219 = vst [vmem:[%s2697_s26 + $0x110] sm:$0xff] %v218_v34  ;;  %v226_v38 = vld [vmem:[%s2689_s25 + $0x230] sm:$0xff]  ;;  %v228_v39 = vld [vmem:[%s2689_s25 + $0x238] sm:$0xff] }
  0x22   : > { %221 = vst [vmem:[%s2697_s26 + $0x118] sm:$0xff] %v220_v35  ;;  %223 = vst [vmem:[%s2697_s26 + $0x120] sm:$0xff] %v222_v36  ;;  %v230_v40 = vld [vmem:[%s2689_s25 + $0x240] sm:$0xff]  ;;  %v232_v41 = vld [vmem:[%s2689_s25 + $0x248] sm:$0xff] }
  0x23   : > { %225 = vst [vmem:[%s2697_s26 + $0x128] sm:$0xff] %v224_v37  ;;  %227 = vst [vmem:[%s2697_s26 + $0x130] sm:$0xff] %v226_v38  ;;  %v234_v42 = vld [vmem:[%s2689_s25 + $0x250] sm:$0xff]  ;;  %v236_v43 = vld [vmem:[%s2689_s25 + $0x258] sm:$0xff] }
  0x24   : > { %229 = vst [vmem:[%s2697_s26 + $0x138] sm:$0xff] %v228_v39  ;;  %231 = vst [vmem:[%s2697_s26 + $0x140] sm:$0xff] %v230_v40  ;;  %v238_v44 = vld [vmem:[%s2689_s25 + $0x260] sm:$0xff]  ;;  %v240_v45 = vld [vmem:[%s2689_s25 + $0x268] sm:$0xff] }
  0x25   : > { %233 = vst [vmem:[%s2697_s26 + $0x148] sm:$0xff] %v232_v41  ;;  %235 = vst [vmem:[%s2697_s26 + $0x150] sm:$0xff] %v234_v42  ;;  %v242_v46 = vld [vmem:[%s2689_s25 + $0x270] sm:$0xff]  ;;  %v244_v47 = vld [vmem:[%s2689_s25 + $0x278] sm:$0xff] }
  0x26   : > { %237 = vst [vmem:[%s2697_s26 + $0x158] sm:$0xff] %v236_v43  ;;  %239 = vst [vmem:[%s2697_s26 + $0x160] sm:$0xff] %v238_v44  ;;  %v246_v48 = vld [vmem:[%s2689_s25 + $0x300] sm:$0xff]  ;;  %v248_v49 = vld [vmem:[%s2689_s25 + $0x308] sm:$0xff] }
  0x27   : > { %241 = vst [vmem:[%s2697_s26 + $0x168] sm:$0xff] %v240_v45  ;;  %243 = vst [vmem:[%s2697_s26 + $0x170] sm:$0xff] %v242_v46  ;;  %v250_v50 = vld [vmem:[%s2689_s25 + $0x310] sm:$0xff]  ;;  %v252_v51 = vld [vmem:[%s2689_s25 + $0x318] sm:$0xff] }
  0x28   : > { %245 = vst [vmem:[%s2697_s26 + $0x178] sm:$0xff] %v244_v47  ;;  %247 = vst [vmem:[%s2697_s26 + $0x180] sm:$0xff] %v246_v48  ;;  %v254_v52 = vld [vmem:[%s2689_s25 + $0x320] sm:$0xff]  ;;  %v256_v53 = vld [vmem:[%s2689_s25 + $0x328] sm:$0xff] }
  0x29   : > { %249 = vst [vmem:[%s2697_s26 + $0x188] sm:$0xff] %v248_v49  ;;  %251 = vst [vmem:[%s2697_s26 + $0x190] sm:$0xff] %v250_v50  ;;  %v258_v54 = vld [vmem:[%s2689_s25 + $0x330] sm:$0xff]  ;;  %v260_v55 = vld [vmem:[%s2689_s25 + $0x338] sm:$0xff] }
  0x2a   : > { %253 = vst [vmem:[%s2697_s26 + $0x198] sm:$0xff] %v252_v51  ;;  %255 = vst [vmem:[%s2697_s26 + $0x1a0] sm:$0xff] %v254_v52  ;;  %v262_v56 = vld [vmem:[%s2689_s25 + $0x340] sm:$0xff]  ;;  %v264_v57 = vld [vmem:[%s2689_s25 + $0x348] sm:$0xff] }
  0x2b   : > { %257 = vst [vmem:[%s2697_s26 + $0x1a8] sm:$0xff] %v256_v53  ;;  %259 = vst [vmem:[%s2697_s26 + $0x1b0] sm:$0xff] %v258_v54  ;;  %v266_v58 = vld [vmem:[%s2689_s25 + $0x350] sm:$0xff]  ;;  %v268_v59 = vld [vmem:[%s2689_s25 + $0x358] sm:$0xff] }
  0x2c   : > { %261 = vst [vmem:[%s2697_s26 + $0x1b8] sm:$0xff] %v260_v55  ;;  %263 = vst [vmem:[%s2697_s26 + $0x1c0] sm:$0xff] %v262_v56  ;;  %v270_v60 = vld [vmem:[%s2689_s25 + $0x360] sm:$0xff]  ;;  %v272_v61 = vld [vmem:[%s2689_s25 + $0x368] sm:$0xff] }
  0x2d   : > { %265 = vst [vmem:[%s2697_s26 + $0x1c8] sm:$0xff] %v264_v57  ;;  %267 = vst [vmem:[%s2697_s26 + $0x1d0] sm:$0xff] %v266_v58  ;;  %v274_v62 = vld [vmem:[%s2689_s25 + $0x370] sm:$0xff]  ;;  %v276_v63 = vld [vmem:[%s2689_s25 + $0x378] sm:$0xff] }
  0x2e   : > { %269 = vst [vmem:[%s2697_s26 + $0x1d8] sm:$0xff] %v268_v59  ;;  %271 = vst [vmem:[%s2697_s26 + $0x1e0] sm:$0xff] %v270_v60  ;;  %v278_v0 = vld [vmem:[%s2689_s25 + $0x400] sm:$0xff]  ;;  %v280_v1 = vld [vmem:[%s2689_s25 + $0x408] sm:$0xff] }
  0x2f   : > { %273 = vst [vmem:[%s2697_s26 + $0x1e8] sm:$0xff] %v272_v61  ;;  %275 = vst [vmem:[%s2697_s26 + $0x1f0] sm:$0xff] %v274_v62  ;;  %v282_v2 = vld [vmem:[%s2689_s25 + $0x410] sm:$0xff]  ;;  %v284_v3 = vld [vmem:[%s2689_s25 + $0x418] sm:$0xff] }
  0x30   : > { %277 = vst [vmem:[%s2697_s26 + $0x1f8] sm:$0xff] %v276_v63  ;;  %279 = vst [vmem:[%s2697_s26 + $0x200] sm:$0xff] %v278_v0  ;;  %v286_v4 = vld [vmem:[%s2689_s25 + $0x420] sm:$0xff]  ;;  %v288_v5 = vld [vmem:[%s2689_s25 + $0x428] sm:$0xff] }
  0x31   : > { %281 = vst [vmem:[%s2697_s26 + $0x208] sm:$0xff] %v280_v1  ;;  %283 = vst [vmem:[%s2697_s26 + $0x210] sm:$0xff] %v282_v2  ;;  %v290_v6 = vld [vmem:[%s2689_s25 + $0x430] sm:$0xff]  ;;  %v292_v7 = vld [vmem:[%s2689_s25 + $0x438] sm:$0xff] }
  0x32   : > { %285 = vst [vmem:[%s2697_s26 + $0x218] sm:$0xff] %v284_v3  ;;  %287 = vst [vmem:[%s2697_s26 + $0x220] sm:$0xff] %v286_v4  ;;  %v294_v8 = vld [vmem:[%s2689_s25 + $0x440] sm:$0xff]  ;;  %v296_v9 = vld [vmem:[%s2689_s25 + $0x448] sm:$0xff] }
  0x33   : > { %289 = vst [vmem:[%s2697_s26 + $0x228] sm:$0xff] %v288_v5  ;;  %291 = vst [vmem:[%s2697_s26 + $0x230] sm:$0xff] %v290_v6  ;;  %v298_v10 = vld [vmem:[%s2689_s25 + $0x450] sm:$0xff]  ;;  %v300_v11 = vld [vmem:[%s2689_s25 + $0x458] sm:$0xff] }
  0x34   : > { %293 = vst [vmem:[%s2697_s26 + $0x238] sm:$0xff] %v292_v7  ;;  %295 = vst [vmem:[%s2697_s26 + $0x240] sm:$0xff] %v294_v8  ;;  %v302_v12 = vld [vmem:[%s2689_s25 + $0x460] sm:$0xff]  ;;  %v304_v13 = vld [vmem:[%s2689_s25 + $0x468] sm:$0xff] }
  0x35   : > { %297 = vst [vmem:[%s2697_s26 + $0x248] sm:$0xff] %v296_v9  ;;  %299 = vst [vmem:[%s2697_s26 + $0x250] sm:$0xff] %v298_v10  ;;  %v306_v14 = vld [vmem:[%s2689_s25 + $0x470] sm:$0xff]  ;;  %v308_v15 = vld [vmem:[%s2689_s25 + $0x478] sm:$0xff] }
  0x36   : > { %301 = vst [vmem:[%s2697_s26 + $0x258] sm:$0xff] %v300_v11  ;;  %303 = vst [vmem:[%s2697_s26 + $0x260] sm:$0xff] %v302_v12  ;;  %v310_v16 = vld [vmem:[%s2689_s25 + $0x500] sm:$0xff]  ;;  %v312_v17 = vld [vmem:[%s2689_s25 + $0x508] sm:$0xff] }
  0x37   : > { %305 = vst [vmem:[%s2697_s26 + $0x268] sm:$0xff] %v304_v13  ;;  %307 = vst [vmem:[%s2697_s26 + $0x270] sm:$0xff] %v306_v14  ;;  %v314_v18 = vld [vmem:[%s2689_s25 + $0x510] sm:$0xff]  ;;  %v316_v19 = vld [vmem:[%s2689_s25 + $0x518] sm:$0xff] }
  0x38   : > { %309 = vst [vmem:[%s2697_s26 + $0x278] sm:$0xff] %v308_v15  ;;  %311 = vst [vmem:[%s2697_s26 + $0x280] sm:$0xff] %v310_v16  ;;  %v318_v20 = vld [vmem:[%s2689_s25 + $0x520] sm:$0xff]  ;;  %v320_v21 = vld [vmem:[%s2689_s25 + $0x528] sm:$0xff] }
  0x39   : > { %313 = vst [vmem:[%s2697_s26 + $0x288] sm:$0xff] %v312_v17  ;;  %315 = vst [vmem:[%s2697_s26 + $0x290] sm:$0xff] %v314_v18  ;;  %v322_v22 = vld [vmem:[%s2689_s25 + $0x530] sm:$0xff]  ;;  %v324_v23 = vld [vmem:[%s2689_s25 + $0x538] sm:$0xff] }
  0x3a   : > { %317 = vst [vmem:[%s2697_s26 + $0x298] sm:$0xff] %v316_v19  ;;  %319 = vst [vmem:[%s2697_s26 + $0x2a0] sm:$0xff] %v318_v20  ;;  %v326_v24 = vld [vmem:[%s2689_s25 + $0x540] sm:$0xff]  ;;  %v328_v25 = vld [vmem:[%s2689_s25 + $0x548] sm:$0xff] }
  0x3b   : > { %321 = vst [vmem:[%s2697_s26 + $0x2a8] sm:$0xff] %v320_v21  ;;  %323 = vst [vmem:[%s2697_s26 + $0x2b0] sm:$0xff] %v322_v22  ;;  %v330_v26 = vld [vmem:[%s2689_s25 + $0x550] sm:$0xff]  ;;  %v332_v27 = vld [vmem:[%s2689_s25 + $0x558] sm:$0xff] }
  0x3c   : > { %325 = vst [vmem:[%s2697_s26 + $0x2b8] sm:$0xff] %v324_v23  ;;  %327 = vst [vmem:[%s2697_s26 + $0x2c0] sm:$0xff] %v326_v24  ;;  %v334_v28 = vld [vmem:[%s2689_s25 + $0x560] sm:$0xff]  ;;  %v336_v29 = vld [vmem:[%s2689_s25 + $0x568] sm:$0xff] }
  0x3d   : > { %329 = vst [vmem:[%s2697_s26 + $0x2c8] sm:$0xff] %v328_v25  ;;  %331 = vst [vmem:[%s2697_s26 + $0x2d0] sm:$0xff] %v330_v26  ;;  %v338_v30 = vld [vmem:[%s2689_s25 + $0x570] sm:$0xff]  ;;  %v340_v31 = vld [vmem:[%s2689_s25 + $0x578] sm:$0xff] }
  0x3e   : > { %333 = vst [vmem:[%s2697_s26 + $0x2d8] sm:$0xff] %v332_v27  ;;  %335 = vst [vmem:[%s2697_s26 + $0x2e0] sm:$0xff] %v334_v28  ;;  %v342_v32 = vld [vmem:[%s2689_s25 + $0x600] sm:$0xff]  ;;  %v344_v33 = vld [vmem:[%s2689_s25 + $0x608] sm:$0xff] }
  0x3f   : > { %337 = vst [vmem:[%s2697_s26 + $0x2e8] sm:$0xff] %v336_v29  ;;  %339 = vst [vmem:[%s2697_s26 + $0x2f0] sm:$0xff] %v338_v30  ;;  %v346_v34 = vld [vmem:[%s2689_s25 + $0x610] sm:$0xff]  ;;  %v348_v35 = vld [vmem:[%s2689_s25 + $0x618] sm:$0xff] }
  0x40   : > { %341 = vst [vmem:[%s2697_s26 + $0x2f8] sm:$0xff] %v340_v31  ;;  %343 = vst [vmem:[%s2697_s26 + $0x300] sm:$0xff] %v342_v32  ;;  %v350_v36 = vld [vmem:[%s2689_s25 + $0x620] sm:$0xff]  ;;  %v352_v37 = vld [vmem:[%s2689_s25 + $0x628] sm:$0xff] }
  0x41   : > { %345 = vst [vmem:[%s2697_s26 + $0x308] sm:$0xff] %v344_v33  ;;  %347 = vst [vmem:[%s2697_s26 + $0x310] sm:$0xff] %v346_v34  ;;  %v354_v38 = vld [vmem:[%s2689_s25 + $0x630] sm:$0xff]  ;;  %v356_v39 = vld [vmem:[%s2689_s25 + $0x638] sm:$0xff] }
  0x42   : > { %349 = vst [vmem:[%s2697_s26 + $0x318] sm:$0xff] %v348_v35  ;;  %351 = vst [vmem:[%s2697_s26 + $0x320] sm:$0xff] %v350_v36  ;;  %v358_v40 = vld [vmem:[%s2689_s25 + $0x640] sm:$0xff]  ;;  %v360_v41 = vld [vmem:[%s2689_s25 + $0x648] sm:$0xff] }
  0x43   : > { %353 = vst [vmem:[%s2697_s26 + $0x328] sm:$0xff] %v352_v37  ;;  %355 = vst [vmem:[%s2697_s26 + $0x330] sm:$0xff] %v354_v38  ;;  %v362_v42 = vld [vmem:[%s2689_s25 + $0x650] sm:$0xff]  ;;  %v364_v43 = vld [vmem:[%s2689_s25 + $0x658] sm:$0xff] }
  0x44   : > { %357 = vst [vmem:[%s2697_s26 + $0x338] sm:$0xff] %v356_v39  ;;  %359 = vst [vmem:[%s2697_s26 + $0x340] sm:$0xff] %v358_v40  ;;  %v366_v44 = vld [vmem:[%s2689_s25 + $0x660] sm:$0xff]  ;;  %v368_v45 = vld [vmem:[%s2689_s25 + $0x668] sm:$0xff] }
  0x45   : > { %361 = vst [vmem:[%s2697_s26 + $0x348] sm:$0xff] %v360_v41  ;;  %363 = vst [vmem:[%s2697_s26 + $0x350] sm:$0xff] %v362_v42  ;;  %v370_v46 = vld [vmem:[%s2689_s25 + $0x670] sm:$0xff]  ;;  %v372_v47 = vld [vmem:[%s2689_s25 + $0x678] sm:$0xff] }
  0x46   : > { %365 = vst [vmem:[%s2697_s26 + $0x358] sm:$0xff] %v364_v43  ;;  %367 = vst [vmem:[%s2697_s26 + $0x360] sm:$0xff] %v366_v44  ;;  %v374_v48 = vld [vmem:[%s2689_s25 + $0x700] sm:$0xff]  ;;  %v376_v49 = vld [vmem:[%s2689_s25 + $0x708] sm:$0xff] }
  0x47   : > { %369 = vst [vmem:[%s2697_s26 + $0x368] sm:$0xff] %v368_v45  ;;  %371 = vst [vmem:[%s2697_s26 + $0x370] sm:$0xff] %v370_v46  ;;  %v378_v50 = vld [vmem:[%s2689_s25 + $0x710] sm:$0xff]  ;;  %v380_v51 = vld [vmem:[%s2689_s25 + $0x718] sm:$0xff] }
  0x48   : > { %373 = vst [vmem:[%s2697_s26 + $0x378] sm:$0xff] %v372_v47  ;;  %375 = vst [vmem:[%s2697_s26 + $0x380] sm:$0xff] %v374_v48  ;;  %v382_v52 = vld [vmem:[%s2689_s25 + $0x720] sm:$0xff]  ;;  %v384_v53 = vld [vmem:[%s2689_s25 + $0x728] sm:$0xff] }
  0x49   : > { %377 = vst [vmem:[%s2697_s26 + $0x388] sm:$0xff] %v376_v49  ;;  %379 = vst [vmem:[%s2697_s26 + $0x390] sm:$0xff] %v378_v50  ;;  %v386_v54 = vld [vmem:[%s2689_s25 + $0x730] sm:$0xff]  ;;  %v388_v55 = vld [vmem:[%s2689_s25 + $0x738] sm:$0xff] }
  0x4a   : > { %381 = vst [vmem:[%s2697_s26 + $0x398] sm:$0xff] %v380_v51  ;;  %383 = vst [vmem:[%s2697_s26 + $0x3a0] sm:$0xff] %v382_v52  ;;  %v390_v56 = vld [vmem:[%s2689_s25 + $0x740] sm:$0xff]  ;;  %v392_v57 = vld [vmem:[%s2689_s25 + $0x748] sm:$0xff] }
  0x4b   : > { %385 = vst [vmem:[%s2697_s26 + $0x3a8] sm:$0xff] %v384_v53  ;;  %387 = vst [vmem:[%s2697_s26 + $0x3b0] sm:$0xff] %v386_v54  ;;  %v394_v58 = vld [vmem:[%s2689_s25 + $0x750] sm:$0xff]  ;;  %v396_v59 = vld [vmem:[%s2689_s25 + $0x758] sm:$0xff] }
  0x4c   : > { %389 = vst [vmem:[%s2697_s26 + $0x3b8] sm:$0xff] %v388_v55  ;;  %391 = vst [vmem:[%s2697_s26 + $0x3c0] sm:$0xff] %v390_v56  ;;  %v398_v60 = vld [vmem:[%s2689_s25 + $0x760] sm:$0xff]  ;;  %v400_v61 = vld [vmem:[%s2689_s25 + $0x768] sm:$0xff] }
  0x4d   : > { %393 = vst [vmem:[%s2697_s26 + $0x3c8] sm:$0xff] %v392_v57  ;;  %395 = vst [vmem:[%s2697_s26 + $0x3d0] sm:$0xff] %v394_v58  ;;  %v402_v62 = vld [vmem:[%s2689_s25 + $0x770] sm:$0xff]  ;;  %v404_v63 = vld [vmem:[%s2689_s25 + $0x778] sm:$0xff] }
  0x4e   : > { %397 = vst [vmem:[%s2697_s26 + $0x3d8] sm:$0xff] %v396_v59  ;;  %399 = vst [vmem:[%s2697_s26 + $0x3e0] sm:$0xff] %v398_v60  ;;  %v406_v0 = vld [vmem:[%s2689_s25 + $0x800] sm:$0xff]  ;;  %v408_v1 = vld [vmem:[%s2689_s25 + $0x808] sm:$0xff] }
  0x4f   : > { %401 = vst [vmem:[%s2697_s26 + $0x3e8] sm:$0xff] %v400_v61  ;;  %403 = vst [vmem:[%s2697_s26 + $0x3f0] sm:$0xff] %v402_v62  ;;  %v410_v2 = vld [vmem:[%s2689_s25 + $0x810] sm:$0xff]  ;;  %v412_v3 = vld [vmem:[%s2689_s25 + $0x818] sm:$0xff] }
  0x50   : > { %405 = vst [vmem:[%s2697_s26 + $0x3f8] sm:$0xff] %v404_v63  ;;  %407 = vst [vmem:[%s2697_s26 + $0x400] sm:$0xff] %v406_v0  ;;  %v414_v4 = vld [vmem:[%s2689_s25 + $0x820] sm:$0xff]  ;;  %v416_v5 = vld [vmem:[%s2689_s25 + $0x828] sm:$0xff] }
  0x51   : > { %409 = vst [vmem:[%s2697_s26 + $0x408] sm:$0xff] %v408_v1  ;;  %411 = vst [vmem:[%s2697_s26 + $0x410] sm:$0xff] %v410_v2  ;;  %v418_v6 = vld [vmem:[%s2689_s25 + $0x830] sm:$0xff]  ;;  %v420_v7 = vld [vmem:[%s2689_s25 + $0x838] sm:$0xff] }
  0x52   : > { %413 = vst [vmem:[%s2697_s26 + $0x418] sm:$0xff] %v412_v3  ;;  %415 = vst [vmem:[%s2697_s26 + $0x420] sm:$0xff] %v414_v4  ;;  %v422_v8 = vld [vmem:[%s2689_s25 + $0x840] sm:$0xff]  ;;  %v424_v9 = vld [vmem:[%s2689_s25 + $0x848] sm:$0xff] }
  0x53   : > { %417 = vst [vmem:[%s2697_s26 + $0x428] sm:$0xff] %v416_v5  ;;  %419 = vst [vmem:[%s2697_s26 + $0x430] sm:$0xff] %v418_v6  ;;  %v426_v10 = vld [vmem:[%s2689_s25 + $0x850] sm:$0xff]  ;;  %v428_v11 = vld [vmem:[%s2689_s25 + $0x858] sm:$0xff] }
  0x54   : > { %421 = vst [vmem:[%s2697_s26 + $0x438] sm:$0xff] %v420_v7  ;;  %423 = vst [vmem:[%s2697_s26 + $0x440] sm:$0xff] %v422_v8  ;;  %v430_v12 = vld [vmem:[%s2689_s25 + $0x860] sm:$0xff]  ;;  %v432_v13 = vld [vmem:[%s2689_s25 + $0x868] sm:$0xff] }
  0x55   : > { %425 = vst [vmem:[%s2697_s26 + $0x448] sm:$0xff] %v424_v9  ;;  %427 = vst [vmem:[%s2697_s26 + $0x450] sm:$0xff] %v426_v10  ;;  %v434_v14 = vld [vmem:[%s2689_s25 + $0x870] sm:$0xff]  ;;  %v436_v15 = vld [vmem:[%s2689_s25 + $0x878] sm:$0xff] }
  0x56   : > { %429 = vst [vmem:[%s2697_s26 + $0x458] sm:$0xff] %v428_v11  ;;  %431 = vst [vmem:[%s2697_s26 + $0x460] sm:$0xff] %v430_v12 }
  0x57   : > { %433 = vst [vmem:[%s2697_s26 + $0x468] sm:$0xff] %v432_v13  ;;  %435 = vst [vmem:[%s2697_s26 + $0x470] sm:$0xff] %v434_v14 }
  0x58   : > { %437 = vst [vmem:[%s2697_s26 + $0x478] sm:$0xff] %v436_v15 }
  0x59 PF: > { %p2288_p5 = scmp.ge.s32.totalorder %s2632_s14, 1  ;;  %p442_p6 = scmp.lt.s32.totalorder %s2632_s14, 3 }
  0x5b   : > { %p443_p7 = pnand %p2288_p5, %p442_p6 }
  0x5c   : > { %s449_s27 = sand.u32 (!%p443_p7), 1, %s2624_s12   ;;  %s2289_s7 = sshll.u32 (!%p443_p7), %s2282_s15, 5 }
  0x5d   : > { %446 = sbr.rel (%p443_p7) target bundleno = 477 (0x1dd), region = 51  ;;  %p474_p8 = scmp.lt.s32.totalorder (!%p443_p7), %s2289_s7, 63 }
  0x5e   : > { %s2487_s28 = smul.u32 (!%p443_p7), 1152, %s449_s27 }
  0x60   : > { %s2990_s4 = scalar_lea.vmem (!%p443_p7), [#allocation2], %s2487_s28 }
  0x62   : > { %v2634_v16 = vmov 0   ;;  %v625_v17 = vld [vmem:[%s3288_s2] sm:$0xf]  ;;  %vm1355_vm0 = vcmask 1043456   ;;  %v610_v19 = vld [vmem:[%s2990_s4 + $0x408] sm:$0xff]  ;;  %v611_v56 = vld [vmem:[%s2990_s4 + $0x410] sm:$0xff] }
  0x63   : > { %1484 = vmatprep.mubr.bf16.mxu0 %v2634_v16  ;;  %1525 = vmatprep.mubr.bf16.mxu1 %v2634_v16  ;;  %v609_v18 = vld [vmem:[%s2990_s4 + $0x400] sm:$0xff]  ;;  %v2422_v22 = vcombine.high %v610_v19, %v610_v19  ;;  %v2421_v24 = vcombine.low %v610_v19, %v610_v19  ;;  %v578_v26 = vld [vmem:[%s2990_s4 + $0x308] sm:$0xff]  ;;  %v612_v57 = vld [vmem:[%s2990_s4 + $0x418] sm:$0xff]  ;;  %v2424_v60 = vcombine.high %v611_v56, %v611_v56  ;;  %vm1351_vm1 = vcmask 588800   ;;  %s3294_s7 = smov (!%p474_p8, %s2289_s7), 63 }
  0x64   : > { %2513 = vset.pattern.permute.xlu0 %v2634_v16  ;;  %v577_v20 = vld [vmem:[%s2990_s4 + $0x300] sm:$0xff]  ;;  %v2420_v21 = vcombine.high %v609_v18, %v609_v18  ;;  %v2419_v23 = vcombine.low %v609_v18, %v609_v18  ;;  %v594_v27 = vld [vmem:[%s2990_s4 + $0x388] sm:$0xff]  ;;  %v2426_v61 = vcombine.high %v612_v57, %v612_v57  ;;  %v2423_v62 = vcombine.low %v611_v56, %v611_v56  ;;  %v579_v0 = vld [vmem:[%s2990_s4 + $0x310] sm:$0xff]  ;;  %s2290_s8 = sshll.u32 %s3294_s7, 2 }
  0x65   : > { %628 = vperm.xlu0 %2513, %v625_v17   ;;  %v593_v25 = vld [vmem:[%s2990_s4 + $0x380] sm:$0xff]  ;;  %v2390_v29 = vcombine.high %v578_v26, %v594_v27  ;;  %v546_v32 = vld [vmem:[%s2990_s4 + $0x208] sm:$0xff]  ;;  %2453 = vmatprep.subr.msk.bf16.mxu1 %vm1355_vm0, %v2422_v22  ;;  %v1363_v34 = vsel %vm1355_vm0, %v2421_v24, 0  ;;  %v2389_v37 = vcombine.low %v578_v26, %v594_v27  ;;  %v2425_v63 = vcombine.low %v612_v57, %v612_v57  ;;  %v595_v1 = vld [vmem:[%s2990_s4 + $0x390] sm:$0xff]  ;;  %s3230_s11 = scalar_lea.vmem %s3289_s3, %s2290_s8 }
  0x66   : > { %v2388_v28 = vcombine.high %v577_v20, %v593_v25  ;;  %v545_v30 = vld [vmem:[%s2990_s4 + $0x200] sm:$0xff]  ;;  %2451 = vmatprep.subr.msk.bf16.mxu0 %vm1355_vm0, %v2420_v21  ;;  %v1357_v33 = vsel %vm1355_vm0, %v2419_v23, 0  ;;  %v562_v35 = vld [vmem:[%s2990_s4 + $0x288] sm:$0xff]  ;;  %1500 = vmatpush1.bf16.msra.mxu1 %v1363_v34  ;;  %v2387_v36 = vcombine.low %v577_v20, %v593_v25  ;;  %v580_v2 = vld [vmem:[%s2990_s4 + $0x318] sm:$0xff]  ;;  %v1369_v5 = vsel %vm1355_vm0, %v2423_v62, 0 }
  0x67   : > { %v561_v31 = vld [vmem:[%s2990_s4 + $0x280] sm:$0xff]  ;;  %1459 = vmatpush1.bf16.msra.mxu0 %v1357_v33  ;;  %1501 = vmatprep.subr.bf16.mxu1 %v2390_v29  ;;  %v2358_v39 = vcombine.high %v546_v32, %v562_v35  ;;  %v514_v42 = vld [vmem:[%s2990_s4 + $0x108] sm:$0xff]  ;;  %v2357_v45 = vcombine.low %v546_v32, %v562_v35  ;;  %v596_v3 = vld [vmem:[%s2990_s4 + $0x398] sm:$0xff]  ;;  %v1375_v6 = vsel %vm1355_vm0, %v2425_v63, 0  ;;  %v2392_v7 = vcombine.high %v579_v0, %v595_v1 }
  0x68   : > { %1460 = vmatprep.subr.bf16.mxu0 %v2388_v28  ;;  %v2356_v38 = vcombine.high %v545_v30, %v561_v31  ;;  %v513_v40 = vld [vmem:[%s2990_s4 + $0x100] sm:$0xff]  ;;  %v530_v43 = vld [vmem:[%s2990_s4 + $0x188] sm:$0xff]  ;;  %v2355_v44 = vcombine.low %v545_v30, %v561_v31  ;;  %v2394_v8 = vcombine.high %v580_v2, %v596_v3  ;;  %v547_v9 = vld [vmem:[%s2990_s4 + $0x210] sm:$0xff]  ;;  %v2391_v13 = vcombine.low %v579_v0, %v595_v1 }
  0x69   : > { %v529_v41 = vld [vmem:[%s2990_s4 + $0x180] sm:$0xff]  ;;  %v2326_v47 = vcombine.high %v514_v42, %v530_v43  ;;  %v482_v50 = vld [vmem:[%s2990_s4 + $0x8] sm:$0xff]  ;;  %v2325_v53 = vcombine.low %v514_v42, %v530_v43  ;;  %v563_v10 = vld [vmem:[%s2990_s4 + $0x290] sm:$0xff]  ;;  %v2393_v14 = vcombine.low %v580_v2, %v596_v3 }
  0x6a   : > { %1502 = vmatpush1.bf16.msra.mxu1 %v2389_v37  ;;  %v2324_v46 = vcombine.high %v513_v40, %v529_v41  ;;  %v481_v48 = vld [vmem:[%s2990_s4] sm:$0xff]  ;;  %v498_v51 = vld [vmem:[%s2990_s4 + $0x88] sm:$0xff]  ;;  %v2323_v52 = vcombine.low %v513_v40, %v529_v41  ;;  %v548_v11 = vld [vmem:[%s2990_s4 + $0x218] sm:$0xff]  ;;  %v2360_v15 = vcombine.high %v547_v9, %v563_v10  ;;  %v2359_v22 = vcombine.low %v547_v9, %v563_v10 }
  0x6b   : > { %1461 = vmatpush1.bf16.msra.mxu0 %v2387_v36  ;;  %1503 = vmatprep.subr.bf16.mxu1 %v2358_v39  ;;  %v497_v49 = vld [vmem:[%s2990_s4 + $0x80] sm:$0xff]  ;;  %v2294_v55 = vcombine.high %v482_v50, %v498_v51  ;;  %v2293_v59 = vcombine.low %v482_v50, %v498_v51  ;;  %v564_v12 = vld [vmem:[%s2990_s4 + $0x298] sm:$0xff]  ;;  %v515_v18 = vld [vmem:[%s2990_s4 + $0x110] sm:$0xff] }
  0x6c   : > { %1462 = vmatprep.subr.bf16.mxu0 %v2356_v38  ;;  %v2292_v54 = vcombine.high %v481_v48, %v497_v49  ;;  %v2291_v58 = vcombine.low %v481_v48, %v497_v49  ;;  %v3023_v4 = vld [vmem:[%s3286_s0] sm:$0x3]  ;;  %v2362_v17 = vcombine.high %v548_v11, %v564_v12  ;;  %v531_v19 = vld [vmem:[%s2990_s4 + $0x190] sm:$0xff]  ;;  %v516_v20 = vld [vmem:[%s2990_s4 + $0x118] sm:$0xff]  ;;  %v2361_v23 = vcombine.low %v548_v11, %v564_v12 }
  0x6d   : > { %v532_v21 = vld [vmem:[%s2990_s4 + $0x198] sm:$0xff]  ;;  %v2328_v24 = vcombine.high %v515_v18, %v531_v19  ;;  %v483_v26 = vld [vmem:[%s2990_s4 + $0x10] sm:$0xff]  ;;  %v2327_v30 = vcombine.low %v515_v18, %v531_v19  ;;  %v613_v34 = vld [vmem:[%s2990_s4 + $0x420] sm:$0xff] }
  0x6e   : > { %1504 = vmatpush1.bf16.msra.mxu1 %v2357_v45  ;;  %v2330_v25 = vcombine.high %v516_v20, %v532_v21  ;;  %v499_v27 = vld [vmem:[%s2990_s4 + $0x90] sm:$0xff]  ;;  %v484_v28 = vld [vmem:[%s2990_s4 + $0x18] sm:$0xff]  ;;  %v2329_v31 = vcombine.low %v516_v20, %v532_v21  ;;  %v614_v35 = vld [vmem:[%s2990_s4 + $0x428] sm:$0xff]  ;;  %v2428_v38 = vcombine.high %v613_v34, %v613_v34  ;;  %v2427_v40 = vcombine.low %v613_v34, %v613_v34 }
  0x6f   : > { %1463 = vmatpush1.bf16.msra.mxu0 %v2355_v44  ;;  %1505 = vmatprep.subr.bf16.mxu1 %v2326_v47  ;;  %v500_v29 = vld [vmem:[%s2990_s4 + $0x98] sm:$0xff]  ;;  %v2296_v32 = vcombine.high %v483_v26, %v499_v27  ;;  %v2295_v36 = vcombine.low %v483_v26, %v499_v27  ;;  %v2430_v39 = vcombine.high %v614_v35, %v614_v35  ;;  %v581_v42 = vld [vmem:[%s2990_s4 + $0x320] sm:$0xff]  ;;  %v582_v44 = vld [vmem:[%s2990_s4 + $0x328] sm:$0xff] }
  0x70   : > { %1464 = vmatprep.subr.bf16.mxu0 %v2324_v46  ;;  %v2298_v33 = vcombine.high %v484_v28, %v500_v29  ;;  %v2297_v37 = vcombine.low %v484_v28, %v500_v29  ;;  %v2429_v41 = vcombine.low %v614_v35, %v614_v35  ;;  %v597_v43 = vld [vmem:[%s2990_s4 + $0x3a0] sm:$0xff]  ;;  %v598_v45 = vld [vmem:[%s2990_s4 + $0x3a8] sm:$0xff]  ;;  %v1381_v46 = vsel %vm1355_vm0, %v2427_v40, 0  ;;  %v615_v11 = vld [vmem:[%s2990_s4 + $0x430] sm:$0xff] }
  0x71   : > { %v2396_v48 = vcombine.high %v581_v42, %v597_v43  ;;  %v2398_v49 = vcombine.high %v582_v44, %v598_v45  ;;  %v549_v50 = vld [vmem:[%s2990_s4 + $0x220] sm:$0xff]  ;;  %v616_v12 = vld [vmem:[%s2990_s4 + $0x438] sm:$0xff]  ;;  %v2431_v18 = vcombine.low %v615_v11, %v615_v11  ;;  %v583_v20 = vld [vmem:[%s2990_s4 + $0x330] sm:$0xff] }
  0x72   : > { %1506 = vmatpush1.bf16.msra.mxu1 %v2325_v53  ;;  %v1387_v47 = vsel %vm1355_vm0, %v2429_v41, 0  ;;  %v565_v51 = vld [vmem:[%s2990_s4 + $0x2a0] sm:$0xff]  ;;  %v566_v53 = vld [vmem:[%s2990_s4 + $0x2a8] sm:$0xff]  ;;  %v2433_v19 = vcombine.low %v616_v12, %v616_v12  ;;  %v599_v21 = vld [vmem:[%s2990_s4 + $0x3b0] sm:$0xff] }
  0x73   : > { %1465 = vmatpush1.bf16.msra.mxu0 %v2323_v52  ;;  %1507 = vmatprep.subr.bf16.mxu1 %v2294_v55  ;;  %v550_v52 = vld [vmem:[%s2990_s4 + $0x228] sm:$0xff]  ;;  %v2397_v55 = vcombine.low %v582_v44, %v598_v45  ;;  %v2364_v56 = vcombine.high %v549_v50, %v565_v51  ;;  %v2363_v62 = vcombine.low %v549_v50, %v565_v51  ;;  %v485_v2 = vld [vmem:[%s2990_s4 + $0x20] sm:$0xff]  ;;  %v551_v28 = vld [vmem:[%s2990_s4 + $0x230] sm:$0xff] }
  0x74   : > { %1466 = vmatprep.subr.bf16.mxu0 %v2292_v54  ;;  %v2395_v54 = vcombine.low %v581_v42, %v597_v43  ;;  %v2366_v57 = vcombine.high %v550_v52, %v566_v53  ;;  %v2365_v63 = vcombine.low %v550_v52, %v566_v53  ;;  %v501_v3 = vld [vmem:[%s2990_s4 + $0xa0] sm:$0xff]  ;;  %v2400_v26 = vcombine.high %v583_v20, %v599_v21  ;;  %v567_v29 = vld [vmem:[%s2990_s4 + $0x2b0] sm:$0xff]  ;;  %v618_v53 = vld [vmem:[%s2990_s4 + $0x448] sm:$0xff] }
  0x75   : > { %v2300_v9 = vcombine.high %v485_v2, %v501_v3  ;;  %v2368_v34 = vcombine.high %v551_v28, %v567_v29  ;;  %v2367_v40 = vcombine.low %v551_v28, %v567_v29  ;;  %v487_v44 = vld [vmem:[%s2990_s4 + $0x30] sm:$0xff]  ;;  %v617_v52 = vld [vmem:[%s2990_s4 + $0x440] sm:$0xff] }
  0x76   : > { %1508 = vmatpush1.bf16.msra.mxu1 %v2293_v59  ;;  %v533_v59 = vld [vmem:[%s2990_s4 + $0x1a0] sm:$0xff]  ;;  %v503_v45 = vld [vmem:[%s2990_s4 + $0xb0] sm:$0xff] }
  0x77   : > { %1467 = vmatpush1.bf16.msra.mxu0 %v2291_v58  ;;  %2457 = vmatprep.subr.msk.bf16.mxu1 %vm1355_vm0, %v2426_v61  ;;  %v517_v58 = vld [vmem:[%s2990_s4 + $0x120] sm:$0xff]  ;;  %v534_v61 = vld [vmem:[%s2990_s4 + $0x1a8] sm:$0xff]  ;;  %v2304_v50 = vcombine.high %v487_v44, %v503_v45 }
  0x78   : > { %2455 = vmatprep.subr.msk.bf16.mxu0 %vm1355_vm0, %v2424_v60  ;;  %v518_v60 = vld [vmem:[%s2990_s4 + $0x128] sm:$0xff]  ;;  %v2332_v0 = vcombine.high %v517_v58, %v533_v59 }
  0x79   : > { %2454 = vmatmul.mubr.msk.bf16.vlgmr.msra.gmra.mxu1 %vm1351_vm1, %v3023_v4  ;;  %v2334_v1 = vcombine.high %v518_v60, %v534_v61 }
  0x7a   : > { %2452 = vmatmul.mubr.msk.bf16.vlgmr.msra.gmra.mxu0 %vm1351_vm1, %v3023_v4  ;;  %1582 = vmatpush1.bf16.msra.mxu1 %v1375_v6  ;;  %v502_v6 = vld [vmem:[%s2990_s4 + $0xa8] sm:$0xff] }
  0x7b   : > { %1541 = vmatpush1.bf16.msra.mxu0 %v1369_v5  ;;  %1583 = vmatprep.subr.bf16.mxu1 %v2394_v8  ;;  %v486_v5 = vld [vmem:[%s2990_s4 + $0x28] sm:$0xff]  ;;  %v2333_v8 = vcombine.low %v518_v60, %v534_v61  ;;  %v585_v60 = vld [vmem:[%s2990_s4 + $0x340] sm:$0xff] }
  0x7c   : > { %1542 = vmatprep.subr.bf16.mxu0 %v2392_v7  ;;  %1566 = vmatprep.mubr.bf16.mxu0 %v2634_v16  ;;  %v2331_v7 = vcombine.low %v517_v58, %v533_v59  ;;  %v2302_v10 = vcombine.high %v486_v5, %v502_v6  ;;  %v2435_v58 = vcombine.low %v617_v52, %v617_v52  ;;  %v601_v61 = vld [vmem:[%s2990_s4 + $0x3c0] sm:$0xff] }
  0x7d   : > { %1607 = vmatprep.mubr.bf16.mxu1 %v2634_v16  ;;  %v2437_v59 = vcombine.low %v618_v53, %v618_v53 }
  0x7e   : > { %1584 = vmatpush1.bf16.msra.mxu1 %v2393_v14  ;;  %v2301_v14 = vcombine.low %v486_v5, %v502_v6  ;;  %v553_v5 = vld [vmem:[%s2990_s4 + $0x240] sm:$0xff] }
  0x7f   : > { %1543 = vmatpush1.bf16.msra.mxu0 %v2391_v13  ;;  %1585 = vmatprep.subr.bf16.mxu1 %v2362_v17  ;;  %v2299_v13 = vcombine.low %v485_v2, %v501_v3  ;;  %v2434_v17 = vcombine.high %v616_v12, %v616_v12  ;;  %v2404_v2 = vcombine.high %v585_v60, %v601_v61  ;;  %v569_v6 = vld [vmem:[%s2990_s4 + $0x2c0] sm:$0xff] }
  0x80   : > { %1544 = vmatprep.subr.bf16.mxu0 %v2360_v15  ;;  %v2432_v15 = vcombine.high %v615_v11, %v615_v11  ;;  %v2372_v11 = vcombine.high %v553_v5, %v569_v6 }
  0x82   : > { %1586 = vmatpush1.bf16.msra.mxu1 %v2361_v23  ;;  %v600_v23 = vld [vmem:[%s2990_s4 + $0x3b8] sm:$0xff] }
  0x83   : > { %1545 = vmatpush1.bf16.msra.mxu0 %v2359_v22  ;;  %1587 = vmatprep.subr.bf16.mxu1 %v2330_v25  ;;  %v584_v22 = vld [vmem:[%s2990_s4 + $0x338] sm:$0xff]  ;;  %v1399_v25 = vsel %vm1355_vm0, %v2433_v19, 0 }
  0x84   : > { %1546 = vmatprep.subr.bf16.mxu0 %v2328_v24  ;;  %v1393_v24 = vsel %vm1355_vm0, %v2431_v18, 0  ;;  %v2402_v27 = vcombine.high %v584_v22, %v600_v23  ;;  %v2371_v18 = vcombine.low %v553_v5, %v569_v6 }
  0x86   : > { %1588 = vmatpush1.bf16.msra.mxu1 %v2329_v31  ;;  %v568_v31 = vld [vmem:[%s2990_s4 + $0x2b8] sm:$0xff] }
  0x87   : > { %1547 = vmatpush1.bf16.msra.mxu0 %v2327_v30  ;;  %1589 = vmatprep.subr.bf16.mxu1 %v2298_v33  ;;  %v552_v30 = vld [vmem:[%s2990_s4 + $0x238] sm:$0xff]  ;;  %v2401_v33 = vcombine.low %v584_v22, %v600_v23  ;;  %v489_v22 = vld [vmem:[%s2990_s4 + $0x40] sm:$0xff] }
  0x88   : > { %1548 = vmatprep.subr.bf16.mxu0 %v2296_v32  ;;  %v2399_v32 = vcombine.low %v583_v20, %v599_v21  ;;  %v2370_v35 = vcombine.high %v552_v30, %v568_v31  ;;  %v2369_v41 = vcombine.low %v552_v30, %v568_v31  ;;  %v505_v23 = vld [vmem:[%s2990_s4 + $0xc0] sm:$0xff]  ;;  %v619_v30 = vld [vmem:[%s2990_s4 + $0x450] sm:$0xff]  ;;  %v620_v31 = vld [vmem:[%s2990_s4 + $0x458] sm:$0xff] }
  0x89   : > { %v2308_v28 = vcombine.high %v489_v22, %v505_v23 }
  0x8a   : > { %1590 = vmatpush1.bf16.msra.mxu1 %v2297_v37  ;;  %v535_v37 = vld [vmem:[%s2990_s4 + $0x1b0] sm:$0xff] }
  0x8b   : > { %1549 = vmatpush1.bf16.msra.mxu0 %v2295_v36  ;;  %2461 = vmatprep.subr.msk.bf16.mxu1 %vm1355_vm0, %v2430_v39  ;;  %v519_v36 = vld [vmem:[%s2990_s4 + $0x130] sm:$0xff]  ;;  %v536_v39 = vld [vmem:[%s2990_s4 + $0x1b8] sm:$0xff] }
  0x8c   : > { %2459 = vmatprep.subr.msk.bf16.mxu0 %vm1355_vm0, %v2428_v38  ;;  %v520_v38 = vld [vmem:[%s2990_s4 + $0x138] sm:$0xff]  ;;  %v2336_v42 = vcombine.high %v519_v36, %v535_v37 }
  0x8d   : > { %2458 = vmatmul.mubr.msk.bf16.vlgmr.msra.gmra.mxu1 %vm1351_vm1, %v3023_v4  ;;  %v2338_v43 = vcombine.high %v520_v38, %v536_v39 }
  0x8e   : > { %2456 = vmatmul.mubr.msk.bf16.vlgmr.msra.gmra.mxu0 %vm1351_vm1, %v3023_v4  ;;  %1664 = vmatpush1.bf16.msra.mxu1 %v1387_v47  ;;  %v504_v47 = vld [vmem:[%s2990_s4 + $0xb8] sm:$0xff] }
  0x8f   : > { %1623 = vmatpush1.bf16.msra.mxu0 %v1381_v46  ;;  %1665 = vmatprep.subr.bf16.mxu1 %v2398_v49  ;;  %v488_v46 = vld [vmem:[%s2990_s4 + $0x38] sm:$0xff]  ;;  %v2337_v49 = vcombine.low %v520_v38, %v536_v39  ;;  %v587_v38 = vld [vmem:[%s2990_s4 + $0x350] sm:$0xff] }
  0x90   : > { %1624 = vmatprep.subr.bf16.mxu0 %v2396_v48  ;;  %1648 = vmatprep.mubr.bf16.mxu0 %v2634_v16  ;;  %v2335_v48 = vcombine.low %v519_v36, %v535_v37  ;;  %v2306_v51 = vcombine.high %v488_v46, %v504_v47  ;;  %v2439_v36 = vcombine.low %v619_v30, %v619_v30  ;;  %v603_v39 = vld [vmem:[%s2990_s4 + $0x3d0] sm:$0xff] }
  0x91   : > { %1689 = vmatprep.mubr.bf16.mxu1 %v2634_v16  ;;  %v2441_v37 = vcombine.low %v620_v31, %v620_v31 }
  0x92   : > { %1666 = vmatpush1.bf16.msra.mxu1 %v2397_v55  ;;  %v2305_v55 = vcombine.low %v488_v46, %v504_v47  ;;  %v555_v46 = vld [vmem:[%s2990_s4 + $0x250] sm:$0xff] }
  0x93   : > { %1625 = vmatpush1.bf16.msra.mxu0 %v2395_v54  ;;  %1667 = vmatprep.subr.bf16.mxu1 %v2366_v57  ;;  %v2303_v54 = vcombine.low %v487_v44, %v503_v45  ;;  %v2438_v57 = vcombine.high %v618_v53, %v618_v53  ;;  %v2408_v44 = vcombine.high %v587_v38, %v603_v39  ;;  %v571_v47 = vld [vmem:[%s2990_s4 + $0x2d0] sm:$0xff] }
  0x94   : > { %1626 = vmatprep.subr.bf16.mxu0 %v2364_v56  ;;  %v2436_v56 = vcombine.high %v617_v52, %v617_v52  ;;  %v2376_v52 = vcombine.high %v555_v46, %v571_v47 }
  0x96   : > { %1668 = vmatpush1.bf16.msra.mxu1 %v2365_v63  ;;  %v602_v63 = vld [vmem:[%s2990_s4 + $0x3c8] sm:$0xff] }
  0x97   : > { %1627 = vmatpush1.bf16.msra.mxu0 %v2363_v62  ;;  %1669 = vmatprep.subr.bf16.mxu1 %v2334_v1  ;;  %v586_v62 = vld [vmem:[%s2990_s4 + $0x348] sm:$0xff]  ;;  %v1411_v1 = vsel %vm1355_vm0, %v2437_v59, 0 }
  0x98   : > { %1628 = vmatprep.subr.bf16.mxu0 %v2332_v0  ;;  %v1405_v0 = vsel %vm1355_vm0, %v2435_v58, 0  ;;  %v2406_v3 = vcombine.high %v586_v62, %v602_v63  ;;  %v2375_v58 = vcombine.low %v555_v46, %v571_v47 }
  0x9a   : > { %1670 = vmatpush1.bf16.msra.mxu1 %v2333_v8  ;;  %v570_v8 = vld [vmem:[%s2990_s4 + $0x2c8] sm:$0xff] }
  0x9b   : > { %1629 = vmatpush1.bf16.msra.mxu0 %v2331_v7  ;;  %1671 = vmatprep.subr.bf16.mxu1 %v2302_v10  ;;  %v554_v7 = vld [vmem:[%s2990_s4 + $0x248] sm:$0xff]  ;;  %v2405_v10 = vcombine.low %v586_v62, %v602_v63  ;;  %v491_v62 = vld [vmem:[%s2990_s4 + $0x50] sm:$0xff] }
  0x9c   : > { %1630 = vmatprep.subr.bf16.mxu0 %v2300_v9  ;;  %v2403_v9 = vcombine.low %v585_v60, %v601_v61  ;;  %v2374_v12 = vcombine.high %v554_v7, %v570_v8  ;;  %v2373_v19 = vcombine.low %v554_v7, %v570_v8  ;;  %v507_v63 = vld [vmem:[%s2990_s4 + $0xd0] sm:$0xff]  ;;  %v621_v7 = vld [vmem:[%s2990_s4 + $0x460] sm:$0xff]  ;;  %v622_v8 = vld [vmem:[%s2990_s4 + $0x468] sm:$0xff] }
  0x9d   : > { %v2312_v5 = vcombine.high %v491_v62, %v507_v63 }
  0x9e   : > { %1672 = vmatpush1.bf16.msra.mxu1 %v2301_v14  ;;  %v537_v14 = vld [vmem:[%s2990_s4 + $0x1c0] sm:$0xff] }
  0x9f   : > { %1631 = vmatpush1.bf16.msra.mxu0 %v2299_v13  ;;  %2465 = vmatprep.subr.msk.bf16.mxu1 %vm1355_vm0, %v2434_v17  ;;  %v521_v13 = vld [vmem:[%s2990_s4 + $0x140] sm:$0xff]  ;;  %v538_v17 = vld [vmem:[%s2990_s4 + $0x1c8] sm:$0xff] }
  0xa0   : > { %2463 = vmatprep.subr.msk.bf16.mxu0 %vm1355_vm0, %v2432_v15  ;;  %v522_v15 = vld [vmem:[%s2990_s4 + $0x148] sm:$0xff]  ;;  %v2340_v20 = vcombine.high %v521_v13, %v537_v14 }
  0xa1   : > { %2462 = vmatmul.mubr.msk.bf16.vlgmr.msra.gmra.mxu1 %vm1351_vm1, %v3023_v4  ;;  %v2342_v21 = vcombine.high %v522_v15, %v538_v17 }
  0xa2   : > { %2460 = vmatmul.mubr.msk.bf16.vlgmr.msra.gmra.mxu0 %vm1351_vm1, %v3023_v4  ;;  %1746 = vmatpush1.bf16.msra.mxu1 %v1399_v25  ;;  %v506_v25 = vld [vmem:[%s2990_s4 + $0xc8] sm:$0xff] }
  0xa3   : > { %1705 = vmatpush1.bf16.msra.mxu0 %v1393_v24  ;;  %1747 = vmatprep.subr.bf16.mxu1 %v2402_v27  ;;  %v490_v24 = vld [vmem:[%s2990_s4 + $0x48] sm:$0xff]  ;;  %v2341_v27 = vcombine.low %v522_v15, %v538_v17  ;;  %v589_v15 = vld [vmem:[%s2990_s4 + $0x360] sm:$0xff] }
  0xa4   : > { %1706 = vmatprep.subr.bf16.mxu0 %v2400_v26  ;;  %1730 = vmatprep.mubr.bf16.mxu0 %v2634_v16  ;;  %v2339_v26 = vcombine.low %v521_v13, %v537_v14  ;;  %v2310_v29 = vcombine.high %v490_v24, %v506_v25  ;;  %v2443_v13 = vcombine.low %v621_v7, %v621_v7  ;;  %v605_v17 = vld [vmem:[%s2990_s4 + $0x3e0] sm:$0xff] }
  0xa5   : > { %1771 = vmatprep.mubr.bf16.mxu1 %v2634_v16  ;;  %v2445_v14 = vcombine.low %v622_v8, %v622_v8 }
  0xa6   : > { %1748 = vmatpush1.bf16.msra.mxu1 %v2401_v33  ;;  %v2309_v33 = vcombine.low %v490_v24, %v506_v25  ;;  %v557_v24 = vld [vmem:[%s2990_s4 + $0x260] sm:$0xff] }
  0xa7   : > { %1707 = vmatpush1.bf16.msra.mxu0 %v2399_v32  ;;  %1749 = vmatprep.subr.bf16.mxu1 %v2370_v35  ;;  %v2307_v32 = vcombine.low %v489_v22, %v505_v23  ;;  %v2442_v35 = vcombine.high %v620_v31, %v620_v31  ;;  %v2412_v22 = vcombine.high %v589_v15, %v605_v17  ;;  %v573_v25 = vld [vmem:[%s2990_s4 + $0x2e0] sm:$0xff] }
  0xa8   : > { %1708 = vmatprep.subr.bf16.mxu0 %v2368_v34  ;;  %v2440_v34 = vcombine.high %v619_v30, %v619_v30  ;;  %v2380_v30 = vcombine.high %v557_v24, %v573_v25 }
  0xaa   : > { %1750 = vmatpush1.bf16.msra.mxu1 %v2369_v41  ;;  %v604_v41 = vld [vmem:[%s2990_s4 + $0x3d8] sm:$0xff] }
  0xab   : > { %1709 = vmatpush1.bf16.msra.mxu0 %v2367_v40  ;;  %1751 = vmatprep.subr.bf16.mxu1 %v2338_v43  ;;  %v588_v40 = vld [vmem:[%s2990_s4 + $0x358] sm:$0xff]  ;;  %v1423_v43 = vsel %vm1355_vm0, %v2441_v37, 0 }
  0xac   : > { %1710 = vmatprep.subr.bf16.mxu0 %v2336_v42  ;;  %v1417_v42 = vsel %vm1355_vm0, %v2439_v36, 0  ;;  %v2410_v45 = vcombine.high %v588_v40, %v604_v41  ;;  %v2379_v36 = vcombine.low %v557_v24, %v573_v25 }
  0xae   : > { %1752 = vmatpush1.bf16.msra.mxu1 %v2337_v49  ;;  %v572_v49 = vld [vmem:[%s2990_s4 + $0x2d8] sm:$0xff] }
  0xaf   : > { %1711 = vmatpush1.bf16.msra.mxu0 %v2335_v48  ;;  %1753 = vmatprep.subr.bf16.mxu1 %v2306_v51  ;;  %v556_v48 = vld [vmem:[%s2990_s4 + $0x258] sm:$0xff]  ;;  %v2409_v51 = vcombine.low %v588_v40, %v604_v41  ;;  %v493_v40 = vld [vmem:[%s2990_s4 + $0x60] sm:$0xff] }
  0xb0   : > { %1712 = vmatprep.subr.bf16.mxu0 %v2304_v50  ;;  %v2407_v50 = vcombine.low %v587_v38, %v603_v39  ;;  %v2378_v53 = vcombine.high %v556_v48, %v572_v49  ;;  %v2377_v59 = vcombine.low %v556_v48, %v572_v49  ;;  %v509_v41 = vld [vmem:[%s2990_s4 + $0xe0] sm:$0xff]  ;;  %v623_v48 = vld [vmem:[%s2990_s4 + $0x470] sm:$0xff]  ;;  %v624_v49 = vld [vmem:[%s2990_s4 + $0x478] sm:$0xff] }
  0xb1   : > { %v2316_v46 = vcombine.high %v493_v40, %v509_v41 }
  0xb2   : > { %1754 = vmatpush1.bf16.msra.mxu1 %v2305_v55  ;;  %v539_v55 = vld [vmem:[%s2990_s4 + $0x1d0] sm:$0xff] }
  0xb3   : > { %1713 = vmatpush1.bf16.msra.mxu0 %v2303_v54  ;;  %2469 = vmatprep.subr.msk.bf16.mxu1 %vm1355_vm0, %v2438_v57  ;;  %v523_v54 = vld [vmem:[%s2990_s4 + $0x150] sm:$0xff]  ;;  %v540_v57 = vld [vmem:[%s2990_s4 + $0x1d8] sm:$0xff] }
  0xb4   : > { %2467 = vmatprep.subr.msk.bf16.mxu0 %vm1355_vm0, %v2436_v56  ;;  %v524_v56 = vld [vmem:[%s2990_s4 + $0x158] sm:$0xff]  ;;  %v2344_v60 = vcombine.high %v523_v54, %v539_v55 }
  0xb5   : > { %2466 = vmatmul.mubr.msk.bf16.vlgmr.msra.gmra.mxu1 %vm1351_vm1, %v3023_v4  ;;  %v2346_v61 = vcombine.high %v524_v56, %v540_v57 }
  0xb6   : > { %2464 = vmatmul.mubr.msk.bf16.vlgmr.msra.gmra.mxu0 %vm1351_vm1, %v3023_v4  ;;  %1828 = vmatpush1.bf16.msra.mxu1 %v1411_v1  ;;  %v508_v1 = vld [vmem:[%s2990_s4 + $0xd8] sm:$0xff] }
  0xb7   : > { %1787 = vmatpush1.bf16.msra.mxu0 %v1405_v0  ;;  %1829 = vmatprep.subr.bf16.mxu1 %v2406_v3  ;;  %v492_v0 = vld [vmem:[%s2990_s4 + $0x58] sm:$0xff]  ;;  %v2345_v3 = vcombine.low %v524_v56, %v540_v57  ;;  %v591_v56 = vld [vmem:[%s2990_s4 + $0x370] sm:$0xff] }
  0xb8   : > { %1788 = vmatprep.subr.bf16.mxu0 %v2404_v2  ;;  %1812 = vmatprep.mubr.bf16.mxu0 %v2634_v16  ;;  %v2343_v2 = vcombine.low %v523_v54, %v539_v55  ;;  %v2314_v6 = vcombine.high %v492_v0, %v508_v1  ;;  %v2447_v54 = vcombine.low %v623_v48, %v623_v48  ;;  %v607_v57 = vld [vmem:[%s2990_s4 + $0x3f0] sm:$0xff] }
  0xb9   : > { %1853 = vmatprep.mubr.bf16.mxu1 %v2634_v16  ;;  %v2449_v55 = vcombine.low %v624_v49, %v624_v49 }
  0xba   : > { %1830 = vmatpush1.bf16.msra.mxu1 %v2405_v10  ;;  %v2313_v10 = vcombine.low %v492_v0, %v508_v1  ;;  %v559_v0 = vld [vmem:[%s2990_s4 + $0x270] sm:$0xff] }
  0xbb   : > { %1789 = vmatpush1.bf16.msra.mxu0 %v2403_v9  ;;  %1831 = vmatprep.subr.bf16.mxu1 %v2374_v12  ;;  %v2311_v9 = vcombine.low %v491_v62, %v507_v63  ;;  %v2446_v12 = vcombine.high %v622_v8, %v622_v8  ;;  %v2416_v62 = vcombine.high %v591_v56, %v607_v57  ;;  %v575_v1 = vld [vmem:[%s2990_s4 + $0x2f0] sm:$0xff] }
  0xbc   : > { %1790 = vmatprep.subr.bf16.mxu0 %v2372_v11  ;;  %v2444_v11 = vcombine.high %v621_v7, %v621_v7  ;;  %v2384_v7 = vcombine.high %v559_v0, %v575_v1 }
  0xbe   : > { %1832 = vmatpush1.bf16.msra.mxu1 %v2373_v19  ;;  %v606_v19 = vld [vmem:[%s2990_s4 + $0x3e8] sm:$0xff] }
  0xbf   : > { %1791 = vmatpush1.bf16.msra.mxu0 %v2371_v18  ;;  %1833 = vmatprep.subr.bf16.mxu1 %v2342_v21  ;;  %v590_v18 = vld [vmem:[%s2990_s4 + $0x368] sm:$0xff]  ;;  %v1435_v21 = vsel %vm1355_vm0, %v2445_v14, 0 }
  0xc0   : > { %1792 = vmatprep.subr.bf16.mxu0 %v2340_v20  ;;  %v1429_v20 = vsel %vm1355_vm0, %v2443_v13, 0  ;;  %v2414_v23 = vcombine.high %v590_v18, %v606_v19  ;;  %v2383_v13 = vcombine.low %v559_v0, %v575_v1 }
  0xc2   : > { %1834 = vmatpush1.bf16.msra.mxu1 %v2341_v27  ;;  %v574_v27 = vld [vmem:[%s2990_s4 + $0x2e8] sm:$0xff] }
  0xc3   : > { %1793 = vmatpush1.bf16.msra.mxu0 %v2339_v26  ;;  %1835 = vmatprep.subr.bf16.mxu1 %v2310_v29  ;;  %v558_v26 = vld [vmem:[%s2990_s4 + $0x268] sm:$0xff]  ;;  %v2413_v29 = vcombine.low %v590_v18, %v606_v19  ;;  %v495_v18 = vld [vmem:[%s2990_s4 + $0x70] sm:$0xff] }
  0xc4   : > { %1794 = vmatprep.subr.bf16.mxu0 %v2308_v28  ;;  %v2411_v28 = vcombine.low %v589_v15, %v605_v17  ;;  %v2382_v31 = vcombine.high %v558_v26, %v574_v27  ;;  %v2381_v37 = vcombine.low %v558_v26, %v574_v27  ;;  %v511_v19 = vld [vmem:[%s2990_s4 + $0xf0] sm:$0xff] }
  0xc5   : > { %v2320_v24 = vcombine.high %v495_v18, %v511_v19  ;;  %v2319_v25 = vcombine.low %v495_v18, %v511_v19 }
  0xc6   : > { %1836 = vmatpush1.bf16.msra.mxu1 %v2309_v33  ;;  %v541_v33 = vld [vmem:[%s2990_s4 + $0x1e0] sm:$0xff] }
  0xc7   : > { %1795 = vmatpush1.bf16.msra.mxu0 %v2307_v32  ;;  %2473 = vmatprep.subr.msk.bf16.mxu1 %vm1355_vm0, %v2442_v35  ;;  %v525_v32 = vld [vmem:[%s2990_s4 + $0x160] sm:$0xff]  ;;  %v542_v35 = vld [vmem:[%s2990_s4 + $0x1e8] sm:$0xff] }
  0xc8   : > { %2471 = vmatprep.subr.msk.bf16.mxu0 %vm1355_vm0, %v2440_v34  ;;  %v526_v34 = vld [vmem:[%s2990_s4 + $0x168] sm:$0xff]  ;;  %v2348_v38 = vcombine.high %v525_v32, %v541_v33 }
  0xc9   : > { %2470 = vmatmul.mubr.msk.bf16.vlgmr.msra.gmra.mxu1 %vm1351_vm1, %v3023_v4  ;;  %v2350_v39 = vcombine.high %v526_v34, %v542_v35 }
  0xca   : > { %2468 = vmatmul.mubr.msk.bf16.vlgmr.msra.gmra.mxu0 %vm1351_vm1, %v3023_v4  ;;  %1910 = vmatpush1.bf16.msra.mxu1 %v1423_v43  ;;  %v510_v43 = vld [vmem:[%s2990_s4 + $0xe8] sm:$0xff] }
  0xcb   : > { %1869 = vmatpush1.bf16.msra.mxu0 %v1417_v42  ;;  %1911 = vmatprep.subr.bf16.mxu1 %v2410_v45  ;;  %v494_v42 = vld [vmem:[%s2990_s4 + $0x68] sm:$0xff]  ;;  %v2349_v45 = vcombine.low %v526_v34, %v542_v35 }
  0xcc   : > { %1870 = vmatprep.subr.bf16.mxu0 %v2408_v44  ;;  %1894 = vmatprep.mubr.bf16.mxu0 %v2634_v16  ;;  %v2347_v44 = vcombine.low %v525_v32, %v541_v33  ;;  %v2318_v47 = vcombine.high %v494_v42, %v510_v43 }
  0xcd   : > { %1935 = vmatprep.mubr.bf16.mxu1 %v2634_v16 }
  0xce   : > { %1912 = vmatpush1.bf16.msra.mxu1 %v2409_v51  ;;  %v2317_v51 = vcombine.low %v494_v42, %v510_v43 }
  0xcf   : > { %1871 = vmatpush1.bf16.msra.mxu0 %v2407_v50  ;;  %1913 = vmatprep.subr.bf16.mxu1 %v2378_v53  ;;  %v2315_v50 = vcombine.low %v493_v40, %v509_v41  ;;  %v2450_v53 = vcombine.high %v624_v49, %v624_v49 }
  0xd0   : > { %1872 = vmatprep.subr.bf16.mxu0 %v2376_v52  ;;  %v2448_v52 = vcombine.high %v623_v48, %v623_v48 }
  0xd2   : > { %1914 = vmatpush1.bf16.msra.mxu1 %v2377_v59  ;;  %v608_v59 = vld [vmem:[%s2990_s4 + $0x3f8] sm:$0xff] }
  0xd3   : > { %1873 = vmatpush1.bf16.msra.mxu0 %v2375_v58  ;;  %1915 = vmatprep.subr.bf16.mxu1 %v2346_v61  ;;  %v592_v58 = vld [vmem:[%s2990_s4 + $0x378] sm:$0xff]  ;;  %v1447_v61 = vsel %vm1355_vm0, %v2449_v55, 0 }
  0xd4   : > { %1874 = vmatprep.subr.bf16.mxu0 %v2344_v60  ;;  %v1441_v60 = vsel %vm1355_vm0, %v2447_v54, 0  ;;  %v2418_v63 = vcombine.high %v592_v58, %v608_v59 }
  0xd6   : > { %1916 = vmatpush1.bf16.msra.mxu1 %v2345_v3  ;;  %v576_v3 = vld [vmem:[%s2990_s4 + $0x2f8] sm:$0xff] }
  0xd7   : > { %1875 = vmatpush1.bf16.msra.mxu0 %v2343_v2  ;;  %1917 = vmatprep.subr.bf16.mxu1 %v2314_v6  ;;  %v560_v2 = vld [vmem:[%s2990_s4 + $0x278] sm:$0xff]  ;;  %v2417_v6 = vcombine.low %v592_v58, %v608_v59 }
  0xd8   : > { %1876 = vmatprep.subr.bf16.mxu0 %v2312_v5  ;;  %v2415_v5 = vcombine.low %v591_v56, %v607_v57  ;;  %v2386_v8 = vcombine.high %v560_v2, %v576_v3  ;;  %v2385_v14 = vcombine.low %v560_v2, %v576_v3 }
  0xda   : > { %1918 = vmatpush1.bf16.msra.mxu1 %v2313_v10  ;;  %v543_v10 = vld [vmem:[%s2990_s4 + $0x1f0] sm:$0xff] }
  0xdb   : > { %1877 = vmatpush1.bf16.msra.mxu0 %v2311_v9  ;;  %2477 = vmatprep.subr.msk.bf16.mxu1 %vm1355_vm0, %v2446_v12  ;;  %v527_v9 = vld [vmem:[%s2990_s4 + $0x170] sm:$0xff]  ;;  %v544_v12 = vld [vmem:[%s2990_s4 + $0x1f8] sm:$0xff] }
  0xdc   : > { %2475 = vmatprep.subr.msk.bf16.mxu0 %vm1355_vm0, %v2444_v11  ;;  %v528_v11 = vld [vmem:[%s2990_s4 + $0x178] sm:$0xff]  ;;  %v2352_v15 = vcombine.high %v527_v9, %v543_v10 }
  0xdd   : > { %2474 = vmatmul.mubr.msk.bf16.vlgmr.msra.gmra.mxu1 %vm1351_vm1, %v3023_v4  ;;  %v2354_v17 = vcombine.high %v528_v11, %v544_v12 }
  0xde   : > { %2472 = vmatmul.mubr.msk.bf16.vlgmr.msra.gmra.mxu0 %vm1351_vm1, %v3023_v4  ;;  %1992 = vmatpush1.bf16.msra.mxu1 %v1435_v21  ;;  %v512_v21 = vld [vmem:[%s2990_s4 + $0xf8] sm:$0xff] }
  0xdf   : > { %1951 = vmatpush1.bf16.msra.mxu0 %v1429_v20  ;;  %1993 = vmatprep.subr.bf16.mxu1 %v2414_v23  ;;  %v496_v20 = vld [vmem:[%s2990_s4 + $0x78] sm:$0xff]  ;;  %v2353_v23 = vcombine.low %v528_v11, %v544_v12 }
  0xe0   : > { %1952 = vmatprep.subr.bf16.mxu0 %v2412_v22  ;;  %1976 = vmatprep.mubr.bf16.mxu0 %v2634_v16  ;;  %v2351_v22 = vcombine.low %v527_v9, %v543_v10  ;;  %v2321_v26 = vcombine.low %v496_v20, %v512_v21  ;;  %v3219_v27 = vpop.permute.xlu0 %628 }
  0xe1   : > { %2017 = vmatprep.mubr.bf16.mxu1 %v2634_v16 }
  0xe2   : > { %1994 = vmatpush1.bf16.msra.mxu1 %v2413_v29 }
  0xe3   : > { %1953 = vmatpush1.bf16.msra.mxu0 %v2411_v28  ;;  %1995 = vmatprep.subr.bf16.mxu1 %v2382_v31 }
  0xe4   : > { %1954 = vmatprep.subr.bf16.mxu0 %v2380_v30 }
  0xe6   : > { %1996 = vmatpush1.bf16.msra.mxu1 %v2381_v37 }
  0xe7   : > { %1955 = vmatpush1.bf16.msra.mxu0 %v2379_v36  ;;  %1997 = vmatprep.subr.bf16.mxu1 %v2350_v39 }
  0xe8   : > { %1956 = vmatprep.subr.bf16.mxu0 %v2348_v38 }
  0xea   : > { %1998 = vmatpush1.bf16.msra.mxu1 %v2349_v45 }
  0xeb   : > { %1957 = vmatpush1.bf16.msra.mxu0 %v2347_v44  ;;  %1999 = vmatprep.subr.bf16.mxu1 %v2318_v47 }
  0xec   : > { %1958 = vmatprep.subr.bf16.mxu0 %v2316_v46 }
  0xee   : > { %2000 = vmatpush1.bf16.msra.mxu1 %v2317_v51 }
  0xef   : > { %1959 = vmatpush1.bf16.msra.mxu0 %v2315_v50  ;;  %2481 = vmatprep.subr.msk.bf16.mxu1 %vm1355_vm0, %v2450_v53 }
  0xf0   : > { %2479 = vmatprep.subr.msk.bf16.mxu0 %vm1355_vm0, %v2448_v52 }
  0xf1   : > { %2478 = vmatmul.mubr.msk.bf16.vlgmr.msra.gmra.mxu1 %vm1351_vm1, %v3023_v4 }
  0xf2   : > { %2476 = vmatmul.mubr.msk.bf16.vlgmr.msra.gmra.mxu0 %vm1351_vm1, %v3023_v4  ;;  %2074 = vmatpush1.bf16.msra.mxu1 %v1447_v61 }
  0xf3   : > { %2033 = vmatpush1.bf16.msra.mxu0 %v1441_v60  ;;  %2075 = vmatprep.subr.bf16.mxu1 %v2418_v63 }
  0xf4   : > { %2034 = vmatprep.subr.bf16.mxu0 %v2416_v62  ;;  %2058 = vmatprep.mubr.bf16.mxu0 %v2634_v16 }
  0xf5   : > { %2099 = vmatprep.mubr.bf16.mxu1 %v2634_v16  ;;  %v2322_v16 = vcombine.high %v496_v20, %v512_v21 }
  0xf6   : > { %2076 = vmatpush1.bf16.msra.mxu1 %v2417_v6 }
  0xf7   : > { %2035 = vmatpush1.bf16.msra.mxu0 %v2415_v5  ;;  %2077 = vmatprep.subr.bf16.mxu1 %v2386_v8 }
  0xf8   : > { %2036 = vmatprep.subr.bf16.mxu0 %v2384_v7 }
  0xfa   : > { %2078 = vmatpush1.bf16.msra.mxu1 %v2385_v14 }
  0xfb   : > { %2037 = vmatpush1.bf16.msra.mxu0 %v2383_v13  ;;  %2079 = vmatprep.subr.bf16.mxu1 %v2354_v17 }
  0xfc   : > { %2038 = vmatprep.subr.bf16.mxu0 %v2352_v15 }
  0xfe   : > { %2080 = vmatpush1.bf16.msra.mxu1 %v2353_v23 }
  0xff   : > { %2039 = vmatpush1.bf16.msra.mxu0 %v2351_v22  ;;  %2081 = vmatprep.subr.bf16.mxu1 %v2322_v16 }
 0x100   : > { %2040 = vmatprep.subr.bf16.mxu0 %v2320_v24 }
 0x102   : > { %2082 = vmatpush1.bf16.msra.mxu1 %v2321_v26 }
 0x103   : > { %2041 = vmatpush1.bf16.msra.mxu0 %v2319_v25 }
 0x105   : > { %2482 = vmatmul.mubr.msk.bf16.vlgmr.msra.gmra.mxu1 %vm1351_vm1, %v3023_v4 }
 0x106   : > { %2480 = vmatmul.mubr.msk.bf16.vlgmr.msra.gmra.mxu0 %vm1351_vm1, %v3023_v4 }
 0x139   : > { %v1527_v29 = vpop.f32.mrf.mxu1 }
 0x13a   : > { %v1486_v28 = vpop.f32.mrf.mxu0  ;;  %v1528_v31 = vadd.f32 %v1527_v29, %v3219_v27 }
 0x13b   : > { %v1487_v30 = vadd.f32 %v1486_v28, %v3219_v27  ;;  %v1529_v33 = vpop.f32.mrf.mxu1 }
 0x13c   : > { %v1488_v32 = vpop.f32.mrf.mxu0  ;;  %v1530_v35 = vadd.f32 %v1529_v33, %v3219_v27 }
 0x13d   : > { %v1489_v34 = vadd.f32 %v1488_v32, %v3219_v27  ;;  %2546 = vtanh.f32 %v1487_v30  ;;  %v1531_v4 = vpop.f32.mrf.mxu1 }
 0x13e   : > { %2548 = vtanh.f32 %v1528_v31  ;;  %v1490_v36 = vpop.f32.mrf.mxu0 }
 0x13f   : > { %2550 = vtanh.f32 %v1489_v34  ;;  %v1532_v38 = vpop.f32.mrf.mxu1 }
 0x140   : > { %2552 = vtanh.f32 %v1530_v35  ;;  %v1491_v37 = vpop.f32.mrf.mxu0 }
 0x14a   : > { %v2547_v39 = vpop.eup %2546 }
 0x14b   : > { %v2549_v40 = vpop.eup %2548 }
 0x14c   : > { %v2551_v41 = vpop.eup %2550 }
 0x14d   : > { %v2553_v42 = vpop.eup %2552  ;;  %v2172_v43 = vcombine.low %v2547_v39, %v2551_v41  ;;  %v1609_v46 = vpop.f32.mrf.mxu1 }
 0x14e   : > { %v2173_v44 = vcombine.low %v2549_v40, %v2553_v42  ;;  %v1568_v45 = vpop.f32.mrf.mxu0  ;;  %v1610_v48 = vadd.f32 %v1609_v46, %v3219_v27 }
 0x14f   : > { %2204 = vst [vmem:[%s3230_s11] sm:$0xff] %v2172_v43  ;;  %v1569_v47 = vadd.f32 %v1568_v45, %v3219_v27  ;;  %v1611_v50 = vpop.f32.mrf.mxu1 }
 0x150   : > { %2205 = vst [vmem:[%s3230_s11 + $0x8] sm:$0xff] %v2173_v44  ;;  %v1570_v49 = vpop.f32.mrf.mxu0  ;;  %v1612_v52 = vadd.f32 %v1611_v50, %v3219_v27 }
 0x151   : > { %2554 = vtanh.f32 %v1569_v47  ;;  %v1571_v51 = vadd.f32 %v1570_v49, %v3219_v27  ;;  %v1613_v54 = vpop.f32.mrf.mxu1 }
 0x152   : > { %2556 = vtanh.f32 %v1610_v48  ;;  %v1572_v53 = vpop.f32.mrf.mxu0 }
 0x153   : > { %2558 = vtanh.f32 %v1571_v51  ;;  %v1614_v56 = vpop.f32.mrf.mxu1 }
 0x154   : > { %2560 = vtanh.f32 %v1612_v52  ;;  %v1573_v55 = vpop.f32.mrf.mxu0 }
 0x15e   : > { %v2555_v57 = vpop.eup %2554 }
 0x15f   : > { %v2557_v58 = vpop.eup %2556 }
 0x160   : > { %v2559_v59 = vpop.eup %2558 }
 0x161   : > { %v2561_v60 = vpop.eup %2560  ;;  %v2174_v61 = vcombine.low %v2555_v57, %v2559_v59  ;;  %v1691_v0 = vpop.f32.mrf.mxu1 }
 0x162   : > { %v2175_v62 = vcombine.low %v2557_v58, %v2561_v60  ;;  %v1650_v63 = vpop.f32.mrf.mxu0  ;;  %v1692_v2 = vadd.f32 %v1691_v0, %v3219_v27 }
 0x163   : > { %2206 = vst [vmem:[%s3230_s11 + $0x10] sm:$0xff] %v2174_v61  ;;  %v1651_v1 = vadd.f32 %v1650_v63, %v3219_v27  ;;  %v1693_v5 = vpop.f32.mrf.mxu1 }
 0x164   : > { %2207 = vst [vmem:[%s3230_s11 + $0x18] sm:$0xff] %v2175_v62  ;;  %v1652_v3 = vpop.f32.mrf.mxu0  ;;  %v1694_v7 = vadd.f32 %v1693_v5, %v3219_v27 }
 0x165   : > { %2562 = vtanh.f32 %v1651_v1  ;;  %v1653_v6 = vadd.f32 %v1652_v3, %v3219_v27  ;;  %v1695_v9 = vpop.f32.mrf.mxu1 }
 0x166   : > { %2564 = vtanh.f32 %v1692_v2  ;;  %v1654_v8 = vpop.f32.mrf.mxu0 }
 0x167   : > { %2566 = vtanh.f32 %v1653_v6  ;;  %v1696_v11 = vpop.f32.mrf.mxu1 }
 0x168   : > { %2568 = vtanh.f32 %v1694_v7  ;;  %v1655_v10 = vpop.f32.mrf.mxu0 }
 0x172   : > { %v2563_v12 = vpop.eup %2562 }
 0x173   : > { %v2565_v13 = vpop.eup %2564 }
 0x174   : > { %v2567_v14 = vpop.eup %2566 }
 0x175   : > { %v2569_v15 = vpop.eup %2568  ;;  %v2176_v17 = vcombine.low %v2563_v12, %v2567_v14  ;;  %v1773_v20 = vpop.f32.mrf.mxu1 }
 0x176   : > { %v2177_v18 = vcombine.low %v2565_v13, %v2569_v15  ;;  %v1732_v19 = vpop.f32.mrf.mxu0  ;;  %v1774_v22 = vadd.f32 %v1773_v20, %v3219_v27 }
 0x177   : > { %2208 = vst [vmem:[%s3230_s11 + $0x20] sm:$0xff] %v2176_v17  ;;  %v1733_v21 = vadd.f32 %v1732_v19, %v3219_v27  ;;  %v1775_v24 = vpop.f32.mrf.mxu1 }
 0x178   : > { %2209 = vst [vmem:[%s3230_s11 + $0x28] sm:$0xff] %v2177_v18  ;;  %v1734_v23 = vpop.f32.mrf.mxu0  ;;  %v1776_v25 = vadd.f32 %v1775_v24, %v3219_v27 }
 0x179   : > { %2570 = vtanh.f32 %v1733_v21  ;;  %v1735_v16 = vadd.f32 %v1734_v23, %v3219_v27  ;;  %v1777_v28 = vpop.f32.mrf.mxu1 }
 0x17a   : > { %2572 = vtanh.f32 %v1774_v22  ;;  %v1736_v26 = vpop.f32.mrf.mxu0 }
 0x17b   : > { %2574 = vtanh.f32 %v1735_v16  ;;  %v1778_v30 = vpop.f32.mrf.mxu1 }
 0x17c   : > { %2576 = vtanh.f32 %v1776_v25  ;;  %v1737_v29 = vpop.f32.mrf.mxu0 }
 0x186   : > { %v2571_v31 = vpop.eup %2570 }
 0x187   : > { %v2573_v32 = vpop.eup %2572 }
 0x188   : > { %v2575_v33 = vpop.eup %2574 }
 0x189   : > { %v2577_v34 = vpop.eup %2576  ;;  %v2178_v35 = vcombine.low %v2571_v31, %v2575_v33  ;;  %v1855_v37 = vpop.f32.mrf.mxu1 }
 0x18a   : > { %v2179_v36 = vcombine.low %v2573_v32, %v2577_v34  ;;  %v1814_v4 = vpop.f32.mrf.mxu0  ;;  %v1856_v39 = vadd.f32 %v1855_v37, %v3219_v27 }
 0x18b   : > { %2210 = vst [vmem:[%s3230_s11 + $0x30] sm:$0xff] %v2178_v35  ;;  %v1815_v38 = vadd.f32 %v1814_v4, %v3219_v27  ;;  %v1857_v41 = vpop.f32.mrf.mxu1 }
 0x18c   : > { %2211 = vst [vmem:[%s3230_s11 + $0x38] sm:$0xff] %v2179_v36  ;;  %v1816_v40 = vpop.f32.mrf.mxu0  ;;  %v1858_v43 = vadd.f32 %v1857_v41, %v3219_v27 }
 0x18d   : > { %2578 = vtanh.f32 %v1815_v38  ;;  %v1817_v42 = vadd.f32 %v1816_v40, %v3219_v27  ;;  %v1859_v45 = vpop.f32.mrf.mxu1 }
 0x18e   : > { %2580 = vtanh.f32 %v1856_v39  ;;  %v1818_v44 = vpop.f32.mrf.mxu0 }
 0x18f   : > { %2582 = vtanh.f32 %v1817_v42  ;;  %v1860_v47 = vpop.f32.mrf.mxu1 }
 0x190   : > { %2584 = vtanh.f32 %v1858_v43  ;;  %v1819_v46 = vpop.f32.mrf.mxu0 }
 0x19a   : > { %v2579_v48 = vpop.eup %2578 }
 0x19b   : > { %v2581_v49 = vpop.eup %2580 }
 0x19c   : > { %v2583_v50 = vpop.eup %2582 }
 0x19d   : > { %v2585_v51 = vpop.eup %2584  ;;  %v2180_v52 = vcombine.low %v2579_v48, %v2583_v50  ;;  %v1937_v55 = vpop.f32.mrf.mxu1 }
 0x19e   : > { %v2181_v53 = vcombine.low %v2581_v49, %v2585_v51  ;;  %v1896_v54 = vpop.f32.mrf.mxu0  ;;  %v1938_v57 = vadd.f32 %v1937_v55, %v3219_v27 }
 0x19f   : > { %2212 = vst [vmem:[%s3230_s11 + $0x40] sm:$0xff] %v2180_v52  ;;  %v1897_v56 = vadd.f32 %v1896_v54, %v3219_v27  ;;  %v1939_v59 = vpop.f32.mrf.mxu1 }
 0x1a0   : > { %2213 = vst [vmem:[%s3230_s11 + $0x48] sm:$0xff] %v2181_v53  ;;  %v1898_v58 = vpop.f32.mrf.mxu0  ;;  %v1940_v61 = vadd.f32 %v1939_v59, %v3219_v27 }
 0x1a1   : > { %2586 = vtanh.f32 %v1897_v56  ;;  %v1899_v60 = vadd.f32 %v1898_v58, %v3219_v27  ;;  %v1941_v63 = vpop.f32.mrf.mxu1 }
 0x1a2   : > { %2588 = vtanh.f32 %v1938_v57  ;;  %v1900_v62 = vpop.f32.mrf.mxu0 }
 0x1a3   : > { %2590 = vtanh.f32 %v1899_v60  ;;  %v1942_v1 = vpop.f32.mrf.mxu1 }
 0x1a4   : > { %2592 = vtanh.f32 %v1940_v61  ;;  %v1901_v0 = vpop.f32.mrf.mxu0 }
 0x1ae   : > { %v2587_v2 = vpop.eup %2586 }
 0x1af   : > { %v2589_v3 = vpop.eup %2588 }
 0x1b0   : > { %v2591_v5 = vpop.eup %2590 }
 0x1b1   : > { %v2593_v6 = vpop.eup %2592  ;;  %v2182_v7 = vcombine.low %v2587_v2, %v2591_v5  ;;  %v2019_v10 = vpop.f32.mrf.mxu1 }
 0x1b2   : > { %v2183_v8 = vcombine.low %v2589_v3, %v2593_v6  ;;  %v1978_v9 = vpop.f32.mrf.mxu0  ;;  %v2020_v12 = vadd.f32 %v2019_v10, %v3219_v27 }
 0x1b3   : > { %2214 = vst [vmem:[%s3230_s11 + $0x50] sm:$0xff] %v2182_v7  ;;  %v1979_v11 = vadd.f32 %v1978_v9, %v3219_v27  ;;  %v2021_v14 = vpop.f32.mrf.mxu1 }
 0x1b4   : > { %2215 = vst [vmem:[%s3230_s11 + $0x58] sm:$0xff] %v2183_v8  ;;  %v1980_v13 = vpop.f32.mrf.mxu0  ;;  %v2022_v17 = vadd.f32 %v2021_v14, %v3219_v27 }
 0x1b5   : > { %2594 = vtanh.f32 %v1979_v11  ;;  %v1981_v15 = vadd.f32 %v1980_v13, %v3219_v27  ;;  %v2023_v19 = vpop.f32.mrf.mxu1 }
 0x1b6   : > { %2596 = vtanh.f32 %v2020_v12  ;;  %v1982_v18 = vpop.f32.mrf.mxu0 }
 0x1b7   : > { %2598 = vtanh.f32 %v1981_v15  ;;  %v2024_v21 = vpop.f32.mrf.mxu1 }
 0x1b8   : > { %2600 = vtanh.f32 %v2022_v17  ;;  %v1983_v20 = vpop.f32.mrf.mxu0 }
 0x1c2   : > { %v2595_v22 = vpop.eup %2594 }
 0x1c3   : > { %v2597_v23 = vpop.eup %2596 }
 0x1c4   : > { %v2599_v24 = vpop.eup %2598 }
 0x1c5   : > { %v2601_v16 = vpop.eup %2600  ;;  %v2184_v25 = vcombine.low %v2595_v22, %v2599_v24  ;;  %v2101_v29 = vpop.f32.mrf.mxu1 }
 0x1c6   : > { %v2185_v26 = vcombine.low %v2597_v23, %v2601_v16  ;;  %v2060_v28 = vpop.f32.mrf.mxu0  ;;  %v2102_v31 = vadd.f32 %v2101_v29, %v3219_v27 }
 0x1c7   : > { %2216 = vst [vmem:[%s3230_s11 + $0x60] sm:$0xff] %v2184_v25  ;;  %v2061_v30 = vadd.f32 %v2060_v28, %v3219_v27  ;;  %v2103_v33 = vpop.f32.mrf.mxu1 }
 0x1c8   : > { %2217 = vst [vmem:[%s3230_s11 + $0x68] sm:$0xff] %v2185_v26  ;;  %v2062_v32 = vpop.f32.mrf.mxu0  ;;  %v2104_v35 = vadd.f32 %v2103_v33, %v3219_v27 }
 0x1c9   : > { %2602 = vtanh.f32 %v2061_v30  ;;  %v2063_v34 = vadd.f32 %v2062_v32, %v3219_v27  ;;  %v2105_v4 = vpop.f32.mrf.mxu1 }
 0x1ca   : > { %2604 = vtanh.f32 %v2102_v31  ;;  %v2064_v36 = vpop.f32.mrf.mxu0 }
 0x1cb   : > { %2606 = vtanh.f32 %v2063_v34  ;;  %v2106_v38 = vpop.f32.mrf.mxu1 }
 0x1cc   : > { %2608 = vtanh.f32 %v2104_v35  ;;  %v2065_v37 = vpop.f32.mrf.mxu0 }
 0x1d6   : > { %v2603_v39 = vpop.eup %2602 }
 0x1d7   : > { %v2605_v40 = vpop.eup %2604 }
 0x1d8   : > { %v2607_v41 = vpop.eup %2606 }
 0x1d9   : > { %v2609_v42 = vpop.eup %2608  ;;  %v2186_v43 = vcombine.low %v2603_v39, %v2607_v41 }
 0x1da   : > { %v2187_v44 = vcombine.low %v2605_v40, %v2609_v42 }
 0x1db   : > { %2218 = vst [vmem:[%s3230_s11 + $0x70] sm:$0xff] %v2186_v43 }
 0x1dc   : > { %2219 = vst [vmem:[%s3230_s11 + $0x78] sm:$0xff] %v2187_v44 }
 0x1dd PF: > { %p10_p9 = scmp.ge.s32.totalorder %s2672_s16, 4   ;;  %s3290_s12 = smov %s2628_s13 }
 0x1de   : > { %s3291_s13 = smov %s2681_s19  ;;  %s3292_s14 = smov %s2672_s16 }
 0x1df   :  { %12 = sbr.rel (!%p10_p9) target bundleno = 2 (0x2), region = 90 }

</bundles_post_ra>
